<compile_context>
chip_gen: v5e
topology: v5e:2x2
jax: 0.10.0
libtpu: 0.0.40
codegen_flags: <defaults>
</compile_context>

<pallas_src>
import jax
import jax.numpy as jnp
from jax import lax
from jax.experimental import pallas as pl
from jax.experimental.pallas import tpu as pltpu

H = 128          # LSTM hidden size (hard-coded in the PyTorch module)
G4 = 4 * H       # per-direction gate width (i, f, g, o)
G8 = 8 * H       # both directions


# ----------------------------------------------------------------------------
# Fused bidirectional-LSTM + time-pooling kernel (single invocation, no grid).
# ----------------------------------------------------------------------------
def _bilstm_pool_kernel(x_ref, wih_ref, whh_ref, b_ref,
                        sum_ref, max_ref, gxf_scr, gxb_scr):
    TB, _ = x_ref.shape
    B = sum_ref.shape[0]
    T = TB // B

    # --- Phase 1: hoisted input projection for BOTH directions in one matmul.
    #     (T*B, E) bf16 @ (E, 8H) bf16 -> f32, bias folded in once.
    gx = jnp.dot(x_ref[...], wih_ref[...],
                 preferred_element_type=jnp.float32) + b_ref[...]
    gxf_scr[...] = gx[:, :G4]      # forward-direction input gates (natural time)
    gxb_scr[...] = gx[:, G4:]      # backward-direction input gates (natural time)

    whh = whh_ref[...]             # (2H, 8H) bf16 block-diagonal, loop-invariant

    # --- Phase 2: the only serial chain: one (B,2H)@(2H,8H) matmul per step.
    def step(s, carry):
        h, c, acc_sum, acc_max = carry          # all (B, 2H) f32, [fwd | bwd]
        rec = jnp.dot(h.astype(jnp.bfloat16), whh,
                      preferred_element_type=jnp.float32)      # (B, 8H)
        # Forward consumes time s, backward time T-1-s.  Row offsets are
        # multiples of the f32 sublane tile (B % 8 == 0) -> hinted alignment.
        row_f = pl.multiple_of(s * B, 8)
        row_b = pl.multiple_of((T - 1 - s) * B, 8)
        gf = gxf_scr[pl.ds(row_f, B), :] + rec[:, :G4]          # (B, 4H)
        gb = gxb_scr[pl.ds(row_b, B), :] + rec[:, G4:]          # (B, 4H)
        # PyTorch gate order i, f, g, o.  Fuse directions so each EUP
        # activation runs once over 2H = 256 lanes (concat of 128-lane-aligned
        # pieces is a layout op, not data movement).
        i = jax.nn.sigmoid(jnp.concatenate([gf[:, 0:H],         gb[:, 0:H]],         axis=1))
        f = jax.nn.sigmoid(jnp.concatenate([gf[:, H:2 * H],     gb[:, H:2 * H]],     axis=1))
        g = jnp.tanh(      jnp.concatenate([gf[:, 2 * H:3 * H], gb[:, 2 * H:3 * H]], axis=1))
        o = jax.nn.sigmoid(jnp.concatenate([gf[:, 3 * H:4 * H], gb[:, 3 * H:4 * H]], axis=1))
        c = f * c + i * g
        h = o * jnp.tanh(c)
        return h, c, acc_sum + h, jnp.maximum(acc_max, h)

    zeros = jnp.zeros((B, 2 * H), jnp.float32)
    init = (zeros, zeros, zeros, jnp.full((B, 2 * H), -jnp.inf, jnp.float32))
    # Bounded unroll: scheduler visibility without blowing up code size / vregs
    # at realistic T.
    _, _, acc_sum, acc_max = lax.fori_loop(0, T, step, init, unroll=min(8, T))

    # Pooling over time is order-invariant, so the backward direction needs no
    # un-reversal; outputs land directly in PyTorch's (B, [fwd | bwd]) layout.
    sum_ref[...] = acc_sum
    max_ref[...] = acc_max


def bilstm_pooled(x_2d, w_ih, w_hh, b, *, seq_len, batch):
    """x_2d: (T*B, E) bf16, time-major.  Returns (sum_pool, max_pool), each (B, 2H) f32."""
    T, B = seq_len, batch
    assert B % 8 == 0, "pad batch to a multiple of 8 (f32 sublane tile)"
    assert x_2d.shape[0] == T * B
    vmem_spec = pl.BlockSpec(memory_space=pltpu.MemorySpace.VMEM)
    return pl.pallas_call(
        _bilstm_pool_kernel,
        out_shape=(jax.ShapeDtypeStruct((B, 2 * H), jnp.float32),   # sum over time
                   jax.ShapeDtypeStruct((B, 2 * H), jnp.float32)),  # max over time
        in_specs=[vmem_spec, vmem_spec, vmem_spec, vmem_spec],
        out_specs=(vmem_spec, vmem_spec),
        scratch_shapes=[
            pltpu.VMEM((T * B, G4), jnp.float32),   # forward  x @ W_ih (+ bias)
            pltpu.VMEM((T * B, G4), jnp.float32),   # backward x @ W_ih (+ bias)
        ],
        compiler_params=pltpu.CompilerParams(
            # Explicit scoped-VMEM budget; toy shapes need ~1 MiB, real shapes
            # should be sized (and gx chunked) before raising this further.
            vmem_limit_bytes=32 * 1024 * 1024),
    )(x_2d, w_ih, w_hh, b)


# ----------------------------------------------------------------------------
# Full forward pass (embedding lookup + tiny N=1 head in JAX glue, heavy
# compute in the single fused Pallas call above).
# ----------------------------------------------------------------------------
def lstm_sentiment_forward(tokens, params):
    emb = params["embedding"]                    # (V, E) f32, frozen
    B, T = tokens.shape
    E = emb.shape[1]
    # Gather directly time-major, cast once to bf16 (halves HBM->VMEM DMA and
    # feeds the bf16-native MXU), flatten in glue so the kernel needs no
    # bf16 re-tiling reshape.
    x = emb[tokens.T].astype(jnp.bfloat16).reshape(T * B, E)

    sum_pool, max_pool = bilstm_pooled(x, params["w_ih"], params["w_hh"],
                                       params["b"], seq_len=T, batch=B)
    avg = sum_pool * (1.0 / T)                   # mean pool over (padded) length T

    # Linear(512, 1) on cat([avg_pool, max_pool]); the concat is folded by
    # splitting the weight rows (0:2H multiply avg, 2H:4H multiply max).
    # NOTE: torch.max(x, 1) returns (values, indices); Linear(512, 1) implies
    # the max *values* are used -- that is what is computed here.
    w = params["w_out"]                          # (4H, 1) == Linear weight, transposed
    logits = avg @ w[:2 * H] + max_pool @ w[2 * H:] + params["b_out"]
    return logits                                # (B, 1)


def init_params(key, vocab, embed_dim):
    ks = jax.random.split(key, 12)
    bound = 1.0 / jnp.sqrt(jnp.float32(H))

    def u(k, shape):
        return jax.random.uniform(k, shape, jnp.float32, -bound, bound)

    # Per-direction weights in (E,4H)/(H,4H) layout, gate blocks [i | f | g | o].
    # (PyTorch stores weight_ih_l0 as (4H,E) / weight_hh_l0 as (4H,H); a real
    #  checkpoint import must transpose before packing.)
    w_ih_f, w_ih_b = u(ks[1], (embed_dim, G4)), u(ks[2], (embed_dim, G4))
    w_hh_f, w_hh_b = u(ks[3], (H, G4)), u(ks[4], (H, G4))
    b_f = u(ks[5], (1, G4)) + u(ks[6], (1, G4))   # b_ih + b_hh, forward
    b_b = u(ks[7], (1, G4)) + u(ks[8], (1, G4))   # b_ih + b_hh, backward

    # Fused kernel operands: W_ih columns = [fwd 4H | bwd 4H]; W_hh is
    # block-diagonal so one (B,2H)@(2H,8H) matmul advances both directions.
    w_ih = jnp.concatenate([w_ih_f, w_ih_b], axis=1).astype(jnp.bfloat16)   # (E, 8H)
    w_hh = jnp.zeros((2 * H, G8), jnp.float32)
    w_hh = w_hh.at[:H, :G4].set(w_hh_f).at[H:, G4:].set(w_hh_b)
    w_hh = w_hh.astype(jnp.bfloat16)                                        # (2H, 8H)
    b = jnp.concatenate([b_f, b_b], axis=1)                                 # (1, 8H) f32

    return dict(
        embedding=0.1 * jax.random.normal(ks[0], (vocab, embed_dim), jnp.float32),
        w_ih=w_ih, w_hh=w_hh, b=b,
        w_out=u(ks[9], (4 * H, 1)),              # Linear(512, 1) weight, transposed
        b_out=u(ks[10], (1, 1)),
    )


if __name__ == "__main__":
    key = jax.random.PRNGKey(0)
    k_tok, k_par = jax.random.split(key)

    VOCAB, EMBED_DIM, BATCH, SEQ = 100, 128, 8, 8
    params = init_params(k_par, VOCAB, EMBED_DIM)
    tokens = jax.random.randint(k_tok, (BATCH, SEQ), 0, VOCAB, dtype=jnp.int32)

    out = jax.jit(lstm_sentiment_forward)(tokens, params)
    out = jax.block_until_ready(out)
    assert out.shape == (BATCH, 1) and out.dtype == jnp.float32
    assert bool(jnp.all(jnp.isfinite(out)))
    print("KERNEL_OK")
</pallas_src>

<mosaic_0001>
module attributes {stable_mosaic.version = 11 : i64} {
  func.func @_bilstm_pool_kernel(%arg0: memref<64x128xbf16, #tpu.memory_space<vmem>>, %arg1: memref<128x1024xbf16, #tpu.memory_space<vmem>>, %arg2: memref<256x1024xbf16, #tpu.memory_space<vmem>>, %arg3: memref<1x1024xf32, #tpu.memory_space<vmem>>, %arg4: memref<8x256xf32, #tpu.memory_space<vmem>>, %arg5: memref<8x256xf32, #tpu.memory_space<vmem>>, %arg6: memref<64x512xf32, #tpu.memory_space<vmem>>, %arg7: memref<64x512xf32, #tpu.memory_space<vmem>>) attributes {dimension_semantics = [], scalar_prefetch = 0 : i64, scratch_operands = 2 : i64, tpu.core_type = #tpu.core_type<tc>} {
    %c0 = arith.constant 0 : index
    %c0_0 = arith.constant 0 : index
    %0 = vector.load %arg0[%c0, %c0_0] : memref<64x128xbf16, #tpu.memory_space<vmem>>, vector<64x128xbf16>
    %c0_1 = arith.constant 0 : index
    %c0_2 = arith.constant 0 : index
    %1 = vector.load %arg1[%c0_1, %c0_2] : memref<128x1024xbf16, #tpu.memory_space<vmem>>, vector<128x1024xbf16>
    %cst = arith.constant dense<0.000000e+00> : vector<64x1024xf32>
    %2 = tpu.matmul %0, %1, %cst {dimension_numbers = #tpu.dot_dimension_numbers<[1], [0], [0], [1], [0, 0, 1, 1], [], []>} : vector<64x128xbf16>, vector<128x1024xbf16>, vector<64x1024xf32> -> vector<64x1024xf32>
    %c0_3 = arith.constant 0 : index
    %c0_4 = arith.constant 0 : index
    %3 = vector.load %arg3[%c0_3, %c0_4] : memref<1x1024xf32, #tpu.memory_space<vmem>>, vector<1x1024xf32>
    %4 = vector.broadcast %3 : vector<1x1024xf32> to vector<64x1024xf32>
    %5 = arith.addf %2, %4 : vector<64x1024xf32>
    %6 = vector.extract_strided_slice %5 {offsets = [0, 0], sizes = [64, 512], strides = [1, 1]} : vector<64x1024xf32> to vector<64x512xf32>
    %c0_5 = arith.constant 0 : index
    %c0_6 = arith.constant 0 : index
    %7 = vector.load %arg6[%c0_5, %c0_6] : memref<64x512xf32, #tpu.memory_space<vmem>>, vector<64x512xf32>
    tpu.vector_store %arg6[%c0_5, %c0_6], %6 {strides = array<i32>} : memref<64x512xf32, #tpu.memory_space<vmem>>, vector<64x512xf32>,
    %8 = vector.extract_strided_slice %5 {offsets = [0, 512], sizes = [64, 512], strides = [1, 1]} : vector<64x1024xf32> to vector<64x512xf32>
    %c0_7 = arith.constant 0 : index
    %c0_8 = arith.constant 0 : index
    %9 = vector.load %arg7[%c0_7, %c0_8] : memref<64x512xf32, #tpu.memory_space<vmem>>, vector<64x512xf32>
    tpu.vector_store %arg7[%c0_7, %c0_8], %8 {strides = array<i32>} : memref<64x512xf32, #tpu.memory_space<vmem>>, vector<64x512xf32>,
    %c0_9 = arith.constant 0 : index
    %c0_10 = arith.constant 0 : index
    %10 = vector.load %arg2[%c0_9, %c0_10] : memref<256x1024xbf16, #tpu.memory_space<vmem>>, vector<256x1024xbf16>
    %cst_11 = arith.constant 0.000000e+00 : f32
    %11 = vector.broadcast %cst_11 : f32 to vector<8x256xf32>
    %cst_12 = arith.constant 0xFF800000 : f32
    %12 = vector.broadcast %cst_12 : f32 to vector<8x256xf32>
    %c0_i32 = arith.constant 0 : i32
    %13 = arith.truncf %11 : vector<8x256xf32> to vector<8x256xbf16>
    %cst_13 = arith.constant dense<0.000000e+00> : vector<8x1024xf32>
    %14 = tpu.matmul %13, %10, %cst_13 {dimension_numbers = #tpu.dot_dimension_numbers<[1], [0], [0], [1], [0, 0, 1, 1], [], []>} : vector<8x256xbf16>, vector<256x1024xbf16>, vector<8x1024xf32> -> vector<8x1024xf32>
    %c8_i32 = arith.constant 8 : i32
    %15 = arith.muli %c0_i32, %c8_i32 : i32
    %16 = tpu.assume_multiple %15, 8 : i32
    %c7_i32 = arith.constant 7 : i32
    %17 = arith.subi %c7_i32, %c0_i32 : i32
    %c8_i32_14 = arith.constant 8 : i32
    %18 = arith.muli %17, %c8_i32_14 : i32
    %19 = tpu.assume_multiple %18, 8 : i32
    %20 = arith.index_cast %16 : i32 to index
    %c0_15 = arith.constant 0 : index
    %21 = vector.load %arg6[%20, %c0_15] : memref<64x512xf32, #tpu.memory_space<vmem>>, vector<8x512xf32>
    %22 = vector.extract_strided_slice %14 {offsets = [0, 0], sizes = [8, 512], strides = [1, 1]} : vector<8x1024xf32> to vector<8x512xf32>
    %23 = arith.addf %21, %22 : vector<8x512xf32>
    %24 = arith.index_cast %19 : i32 to index
    %c0_16 = arith.constant 0 : index
    %25 = vector.load %arg7[%24, %c0_16] : memref<64x512xf32, #tpu.memory_space<vmem>>, vector<8x512xf32>
    %26 = vector.extract_strided_slice %14 {offsets = [0, 512], sizes = [8, 512], strides = [1, 1]} : vector<8x1024xf32> to vector<8x512xf32>
    %27 = arith.addf %25, %26 : vector<8x512xf32>
    %28 = vector.extract_strided_slice %23 {offsets = [0, 0], sizes = [8, 128], strides = [1, 1]} : vector<8x512xf32> to vector<8x128xf32>
    %29 = vector.extract_strided_slice %27 {offsets = [0, 0], sizes = [8, 128], strides = [1, 1]} : vector<8x512xf32> to vector<8x128xf32>
    %30 = tpu.concatenate %28, %29 in 1 : vector<8x128xf32>, vector<8x128xf32> -> vector<8x256xf32>
    %31 = arith.negf %30 : vector<8x256xf32>
    %32 = math.exp %31 : vector<8x256xf32>
    %cst_17 = arith.constant 1.000000e+00 : f32
    %33 = vector.broadcast %cst_17 : f32 to vector<8x256xf32>
    %34 = arith.addf %33, %32 : vector<8x256xf32>
    %35 = arith.divf %33, %34 : vector<8x256xf32>
    %36 = vector.extract_strided_slice %23 {offsets = [0, 128], sizes = [8, 128], strides = [1, 1]} : vector<8x512xf32> to vector<8x128xf32>
    %37 = vector.extract_strided_slice %27 {offsets = [0, 128], sizes = [8, 128], strides = [1, 1]} : vector<8x512xf32> to vector<8x128xf32>
    %38 = tpu.concatenate %36, %37 in 1 : vector<8x128xf32>, vector<8x128xf32> -> vector<8x256xf32>
    %39 = arith.negf %38 : vector<8x256xf32>
    %40 = math.exp %39 : vector<8x256xf32>
    %cst_18 = arith.constant 1.000000e+00 : f32
    %41 = vector.broadcast %cst_18 : f32 to vector<8x256xf32>
    %42 = arith.addf %41, %40 : vector<8x256xf32>
    %43 = arith.divf %41, %42 : vector<8x256xf32>
    %44 = vector.extract_strided_slice %23 {offsets = [0, 256], sizes = [8, 128], strides = [1, 1]} : vector<8x512xf32> to vector<8x128xf32>
    %45 = vector.extract_strided_slice %27 {offsets = [0, 256], sizes = [8, 128], strides = [1, 1]} : vector<8x512xf32> to vector<8x128xf32>
    %46 = tpu.concatenate %44, %45 in 1 : vector<8x128xf32>, vector<8x128xf32> -> vector<8x256xf32>
    %47 = math.tanh %46 : vector<8x256xf32>
    %48 = vector.extract_strided_slice %23 {offsets = [0, 384], sizes = [8, 128], strides = [1, 1]} : vector<8x512xf32> to vector<8x128xf32>
    %49 = vector.extract_strided_slice %27 {offsets = [0, 384], sizes = [8, 128], strides = [1, 1]} : vector<8x512xf32> to vector<8x128xf32>
    %50 = tpu.concatenate %48, %49 in 1 : vector<8x128xf32>, vector<8x128xf32> -> vector<8x256xf32>
    %51 = arith.negf %50 : vector<8x256xf32>
    %52 = math.exp %51 : vector<8x256xf32>
    %cst_19 = arith.constant 1.000000e+00 : f32
    %53 = vector.broadcast %cst_19 : f32 to vector<8x256xf32>
    %54 = arith.addf %53, %52 : vector<8x256xf32>
    %55 = arith.divf %53, %54 : vector<8x256xf32>
    %56 = arith.mulf %43, %11 : vector<8x256xf32>
    %57 = arith.mulf %35, %47 : vector<8x256xf32>
    %58 = arith.addf %56, %57 : vector<8x256xf32>
    %59 = math.tanh %58 : vector<8x256xf32>
    %60 = arith.mulf %55, %59 : vector<8x256xf32>
    %61 = arith.addf %11, %60 : vector<8x256xf32>
    %62 = arith.maximumf %12, %60 : vector<8x256xf32>
    %c1_i32 = arith.constant 1 : i32
    %63 = arith.truncf %60 : vector<8x256xf32> to vector<8x256xbf16>
    %cst_20 = arith.constant dense<0.000000e+00> : vector<8x1024xf32>
    %64 = tpu.matmul %63, %10, %cst_20 {dimension_numbers = #tpu.dot_dimension_numbers<[1], [0], [0], [1], [0, 0, 1, 1], [], []>} : vector<8x256xbf16>, vector<256x1024xbf16>, vector<8x1024xf32> -> vector<8x1024xf32>
    %c8_i32_21 = arith.constant 8 : i32
    %65 = arith.muli %c1_i32, %c8_i32_21 : i32
    %66 = tpu.assume_multiple %65, 8 : i32
    %c7_i32_22 = arith.constant 7 : i32
    %67 = arith.subi %c7_i32_22, %c1_i32 : i32
    %c8_i32_23 = arith.constant 8 : i32
    %68 = arith.muli %67, %c8_i32_23 : i32
    %69 = tpu.assume_multiple %68, 8 : i32
    %70 = arith.index_cast %66 : i32 to index
    %c0_24 = arith.constant 0 : index
    %71 = vector.load %arg6[%70, %c0_24] : memref<64x512xf32, #tpu.memory_space<vmem>>, vector<8x512xf32>
    %72 = vector.extract_strided_slice %64 {offsets = [0, 0], sizes = [8, 512], strides = [1, 1]} : vector<8x1024xf32> to vector<8x512xf32>
    %73 = arith.addf %71, %72 : vector<8x512xf32>
    %74 = arith.index_cast %69 : i32 to index
    %c0_25 = arith.constant 0 : index
    %75 = vector.load %arg7[%74, %c0_25] : memref<64x512xf32, #tpu.memory_space<vmem>>, vector<8x512xf32>
    %76 = vector.extract_strided_slice %64 {offsets = [0, 512], sizes = [8, 512], strides = [1, 1]} : vector<8x1024xf32> to vector<8x512xf32>
    %77 = arith.addf %75, %76 : vector<8x512xf32>
    %78 = vector.extract_strided_slice %73 {offsets = [0, 0], sizes = [8, 128], strides = [1, 1]} : vector<8x512xf32> to vector<8x128xf32>
    %79 = vector.extract_strided_slice %77 {offsets = [0, 0], sizes = [8, 128], strides = [1, 1]} : vector<8x512xf32> to vector<8x128xf32>
    %80 = tpu.concatenate %78, %79 in 1 : vector<8x128xf32>, vector<8x128xf32> -> vector<8x256xf32>
    %81 = arith.negf %80 : vector<8x256xf32>
    %82 = math.exp %81 : vector<8x256xf32>
    %cst_26 = arith.constant 1.000000e+00 : f32
    %83 = vector.broadcast %cst_26 : f32 to vector<8x256xf32>
    %84 = arith.addf %83, %82 : vector<8x256xf32>
    %85 = arith.divf %83, %84 : vector<8x256xf32>
    %86 = vector.extract_strided_slice %73 {offsets = [0, 128], sizes = [8, 128], strides = [1, 1]} : vector<8x512xf32> to vector<8x128xf32>
    %87 = vector.extract_strided_slice %77 {offsets = [0, 128], sizes = [8, 128], strides = [1, 1]} : vector<8x512xf32> to vector<8x128xf32>
    %88 = tpu.concatenate %86, %87 in 1 : vector<8x128xf32>, vector<8x128xf32> -> vector<8x256xf32>
    %89 = arith.negf %88 : vector<8x256xf32>
    %90 = math.exp %89 : vector<8x256xf32>
    %cst_27 = arith.constant 1.000000e+00 : f32
    %91 = vector.broadcast %cst_27 : f32 to vector<8x256xf32>
    %92 = arith.addf %91, %90 : vector<8x256xf32>
    %93 = arith.divf %91, %92 : vector<8x256xf32>
    %94 = vector.extract_strided_slice %73 {offsets = [0, 256], sizes = [8, 128], strides = [1, 1]} : vector<8x512xf32> to vector<8x128xf32>
    %95 = vector.extract_strided_slice %77 {offsets = [0, 256], sizes = [8, 128], strides = [1, 1]} : vector<8x512xf32> to vector<8x128xf32>
    %96 = tpu.concatenate %94, %95 in 1 : vector<8x128xf32>, vector<8x128xf32> -> vector<8x256xf32>
    %97 = math.tanh %96 : vector<8x256xf32>
    %98 = vector.extract_strided_slice %73 {offsets = [0, 384], sizes = [8, 128], strides = [1, 1]} : vector<8x512xf32> to vector<8x128xf32>
    %99 = vector.extract_strided_slice %77 {offsets = [0, 384], sizes = [8, 128], strides = [1, 1]} : vector<8x512xf32> to vector<8x128xf32>
    %100 = tpu.concatenate %98, %99 in 1 : vector<8x128xf32>, vector<8x128xf32> -> vector<8x256xf32>
    %101 = arith.negf %100 : vector<8x256xf32>
    %102 = math.exp %101 : vector<8x256xf32>
    %cst_28 = arith.constant 1.000000e+00 : f32
    %103 = vector.broadcast %cst_28 : f32 to vector<8x256xf32>
    %104 = arith.addf %103, %102 : vector<8x256xf32>
    %105 = arith.divf %103, %104 : vector<8x256xf32>
    %106 = arith.mulf %93, %58 : vector<8x256xf32>
    %107 = arith.mulf %85, %97 : vector<8x256xf32>
    %108 = arith.addf %106, %107 : vector<8x256xf32>
    %109 = math.tanh %108 : vector<8x256xf32>
    %110 = arith.mulf %105, %109 : vector<8x256xf32>
    %111 = arith.addf %61, %110 : vector<8x256xf32>
    %112 = arith.maximumf %62, %110 : vector<8x256xf32>
    %c2_i32 = arith.constant 2 : i32
    %113 = arith.truncf %110 : vector<8x256xf32> to vector<8x256xbf16>
    %cst_29 = arith.constant dense<0.000000e+00> : vector<8x1024xf32>
    %114 = tpu.matmul %113, %10, %cst_29 {dimension_numbers = #tpu.dot_dimension_numbers<[1], [0], [0], [1], [0, 0, 1, 1], [], []>} : vector<8x256xbf16>, vector<256x1024xbf16>, vector<8x1024xf32> -> vector<8x1024xf32>
    %c8_i32_30 = arith.constant 8 : i32
    %115 = arith.muli %c2_i32, %c8_i32_30 : i32
    %116 = tpu.assume_multiple %115, 8 : i32
    %c7_i32_31 = arith.constant 7 : i32
    %117 = arith.subi %c7_i32_31, %c2_i32 : i32
    %c8_i32_32 = arith.constant 8 : i32
    %118 = arith.muli %117, %c8_i32_32 : i32
    %119 = tpu.assume_multiple %118, 8 : i32
    %120 = arith.index_cast %116 : i32 to index
    %c0_33 = arith.constant 0 : index
    %121 = vector.load %arg6[%120, %c0_33] : memref<64x512xf32, #tpu.memory_space<vmem>>, vector<8x512xf32>
    %122 = vector.extract_strided_slice %114 {offsets = [0, 0], sizes = [8, 512], strides = [1, 1]} : vector<8x1024xf32> to vector<8x512xf32>
    %123 = arith.addf %121, %122 : vector<8x512xf32>
    %124 = arith.index_cast %119 : i32 to index
    %c0_34 = arith.constant 0 : index
    %125 = vector.load %arg7[%124, %c0_34] : memref<64x512xf32, #tpu.memory_space<vmem>>, vector<8x512xf32>
    %126 = vector.extract_strided_slice %114 {offsets = [0, 512], sizes = [8, 512], strides = [1, 1]} : vector<8x1024xf32> to vector<8x512xf32>
    %127 = arith.addf %125, %126 : vector<8x512xf32>
    %128 = vector.extract_strided_slice %123 {offsets = [0, 0], sizes = [8, 128], strides = [1, 1]} : vector<8x512xf32> to vector<8x128xf32>
    %129 = vector.extract_strided_slice %127 {offsets = [0, 0], sizes = [8, 128], strides = [1, 1]} : vector<8x512xf32> to vector<8x128xf32>
    %130 = tpu.concatenate %128, %129 in 1 : vector<8x128xf32>, vector<8x128xf32> -> vector<8x256xf32>
    %131 = arith.negf %130 : vector<8x256xf32>
    %132 = math.exp %131 : vector<8x256xf32>
    %cst_35 = arith.constant 1.000000e+00 : f32
    %133 = vector.broadcast %cst_35 : f32 to vector<8x256xf32>
    %134 = arith.addf %133, %132 : vector<8x256xf32>
    %135 = arith.divf %133, %134 : vector<8x256xf32>
    %136 = vector.extract_strided_slice %123 {offsets = [0, 128], sizes = [8, 128], strides = [1, 1]} : vector<8x512xf32> to vector<8x128xf32>
    %137 = vector.extract_strided_slice %127 {offsets = [0, 128], sizes = [8, 128], strides = [1, 1]} : vector<8x512xf32> to vector<8x128xf32>
    %138 = tpu.concatenate %136, %137 in 1 : vector<8x128xf32>, vector<8x128xf32> -> vector<8x256xf32>
    %139 = arith.negf %138 : vector<8x256xf32>
    %140 = math.exp %139 : vector<8x256xf32>
    %cst_36 = arith.constant 1.000000e+00 : f32
    %141 = vector.broadcast %cst_36 : f32 to vector<8x256xf32>
    %142 = arith.addf %141, %140 : vector<8x256xf32>
    %143 = arith.divf %141, %142 : vector<8x256xf32>
    %144 = vector.extract_strided_slice %123 {offsets = [0, 256], sizes = [8, 128], strides = [1, 1]} : vector<8x512xf32> to vector<8x128xf32>
    %145 = vector.extract_strided_slice %127 {offsets = [0, 256], sizes = [8, 128], strides = [1, 1]} : vector<8x512xf32> to vector<8x128xf32>
    %146 = tpu.concatenate %144, %145 in 1 : vector<8x128xf32>, vector<8x128xf32> -> vector<8x256xf32>
    %147 = math.tanh %146 : vector<8x256xf32>
    %148 = vector.extract_strided_slice %123 {offsets = [0, 384], sizes = [8, 128], strides = [1, 1]} : vector<8x512xf32> to vector<8x128xf32>
    %149 = vector.extract_strided_slice %127 {offsets = [0, 384], sizes = [8, 128], strides = [1, 1]} : vector<8x512xf32> to vector<8x128xf32>
    %150 = tpu.concatenate %148, %149 in 1 : vector<8x128xf32>, vector<8x128xf32> -> vector<8x256xf32>
    %151 = arith.negf %150 : vector<8x256xf32>
    %152 = math.exp %151 : vector<8x256xf32>
    %cst_37 = arith.constant 1.000000e+00 : f32
    %153 = vector.broadcast %cst_37 : f32 to vector<8x256xf32>
    %154 = arith.addf %153, %152 : vector<8x256xf32>
    %155 = arith.divf %153, %154 : vector<8x256xf32>
    %156 = arith.mulf %143, %108 : vector<8x256xf32>
    %157 = arith.mulf %135, %147 : vector<8x256xf32>
    %158 = arith.addf %156, %157 : vector<8x256xf32>
    %159 = math.tanh %158 : vector<8x256xf32>
    %160 = arith.mulf %155, %159 : vector<8x256xf32>
    %161 = arith.addf %111, %160 : vector<8x256xf32>
    %162 = arith.maximumf %112, %160 : vector<8x256xf32>
    %c3_i32 = arith.constant 3 : i32
    %163 = arith.truncf %160 : vector<8x256xf32> to vector<8x256xbf16>
    %cst_38 = arith.constant dense<0.000000e+00> : vector<8x1024xf32>
    %164 = tpu.matmul %163, %10, %cst_38 {dimension_numbers = #tpu.dot_dimension_numbers<[1], [0], [0], [1], [0, 0, 1, 1], [], []>} : vector<8x256xbf16>, vector<256x1024xbf16>, vector<8x1024xf32> -> vector<8x1024xf32>
    %c8_i32_39 = arith.constant 8 : i32
    %165 = arith.muli %c3_i32, %c8_i32_39 : i32
    %166 = tpu.assume_multiple %165, 8 : i32
    %c7_i32_40 = arith.constant 7 : i32
    %167 = arith.subi %c7_i32_40, %c3_i32 : i32
    %c8_i32_41 = arith.constant 8 : i32
    %168 = arith.muli %167, %c8_i32_41 : i32
    %169 = tpu.assume_multiple %168, 8 : i32
    %170 = arith.index_cast %166 : i32 to index
    %c0_42 = arith.constant 0 : index
    %171 = vector.load %arg6[%170, %c0_42] : memref<64x512xf32, #tpu.memory_space<vmem>>, vector<8x512xf32>
    %172 = vector.extract_strided_slice %164 {offsets = [0, 0], sizes = [8, 512], strides = [1, 1]} : vector<8x1024xf32> to vector<8x512xf32>
    %173 = arith.addf %171, %172 : vector<8x512xf32>
    %174 = arith.index_cast %169 : i32 to index
    %c0_43 = arith.constant 0 : index
    %175 = vector.load %arg7[%174, %c0_43] : memref<64x512xf32, #tpu.memory_space<vmem>>, vector<8x512xf32>
    %176 = vector.extract_strided_slice %164 {offsets = [0, 512], sizes = [8, 512], strides = [1, 1]} : vector<8x1024xf32> to vector<8x512xf32>
    %177 = arith.addf %175, %176 : vector<8x512xf32>
    %178 = vector.extract_strided_slice %173 {offsets = [0, 0], sizes = [8, 128], strides = [1, 1]} : vector<8x512xf32> to vector<8x128xf32>
    %179 = vector.extract_strided_slice %177 {offsets = [0, 0], sizes = [8, 128], strides = [1, 1]} : vector<8x512xf32> to vector<8x128xf32>
    %180 = tpu.concatenate %178, %179 in 1 : vector<8x128xf32>, vector<8x128xf32> -> vector<8x256xf32>
    %181 = arith.negf %180 : vector<8x256xf32>
    %182 = math.exp %181 : vector<8x256xf32>
    %cst_44 = arith.constant 1.000000e+00 : f32
    %183 = vector.broadcast %cst_44 : f32 to vector<8x256xf32>
    %184 = arith.addf %183, %182 : vector<8x256xf32>
    %185 = arith.divf %183, %184 : vector<8x256xf32>
    %186 = vector.extract_strided_slice %173 {offsets = [0, 128], sizes = [8, 128], strides = [1, 1]} : vector<8x512xf32> to vector<8x128xf32>
    %187 = vector.extract_strided_slice %177 {offsets = [0, 128], sizes = [8, 128], strides = [1, 1]} : vector<8x512xf32> to vector<8x128xf32>
    %188 = tpu.concatenate %186, %187 in 1 : vector<8x128xf32>, vector<8x128xf32> -> vector<8x256xf32>
    %189 = arith.negf %188 : vector<8x256xf32>
    %190 = math.exp %189 : vector<8x256xf32>
    %cst_45 = arith.constant 1.000000e+00 : f32
    %191 = vector.broadcast %cst_45 : f32 to vector<8x256xf32>
    %192 = arith.addf %191, %190 : vector<8x256xf32>
    %193 = arith.divf %191, %192 : vector<8x256xf32>
    %194 = vector.extract_strided_slice %173 {offsets = [0, 256], sizes = [8, 128], strides = [1, 1]} : vector<8x512xf32> to vector<8x128xf32>
    %195 = vector.extract_strided_slice %177 {offsets = [0, 256], sizes = [8, 128], strides = [1, 1]} : vector<8x512xf32> to vector<8x128xf32>
    %196 = tpu.concatenate %194, %195 in 1 : vector<8x128xf32>, vector<8x128xf32> -> vector<8x256xf32>
    %197 = math.tanh %196 : vector<8x256xf32>
    %198 = vector.extract_strided_slice %173 {offsets = [0, 384], sizes = [8, 128], strides = [1, 1]} : vector<8x512xf32> to vector<8x128xf32>
    %199 = vector.extract_strided_slice %177 {offsets = [0, 384], sizes = [8, 128], strides = [1, 1]} : vector<8x512xf32> to vector<8x128xf32>
    %200 = tpu.concatenate %198, %199 in 1 : vector<8x128xf32>, vector<8x128xf32> -> vector<8x256xf32>
    %201 = arith.negf %200 : vector<8x256xf32>
    %202 = math.exp %201 : vector<8x256xf32>
    %cst_46 = arith.constant 1.000000e+00 : f32
    %203 = vector.broadcast %cst_46 : f32 to vector<8x256xf32>
    %204 = arith.addf %203, %202 : vector<8x256xf32>
    %205 = arith.divf %203, %204 : vector<8x256xf32>
    %206 = arith.mulf %193, %158 : vector<8x256xf32>
    %207 = arith.mulf %185, %197 : vector<8x256xf32>
    %208 = arith.addf %206, %207 : vector<8x256xf32>
    %209 = math.tanh %208 : vector<8x256xf32>
    %210 = arith.mulf %205, %209 : vector<8x256xf32>
    %211 = arith.addf %161, %210 : vector<8x256xf32>
    %212 = arith.maximumf %162, %210 : vector<8x256xf32>
    %c4_i32 = arith.constant 4 : i32
    %213 = arith.truncf %210 : vector<8x256xf32> to vector<8x256xbf16>
    %cst_47 = arith.constant dense<0.000000e+00> : vector<8x1024xf32>
    %214 = tpu.matmul %213, %10, %cst_47 {dimension_numbers = #tpu.dot_dimension_numbers<[1], [0], [0], [1], [0, 0, 1, 1], [], []>} : vector<8x256xbf16>, vector<256x1024xbf16>, vector<8x1024xf32> -> vector<8x1024xf32>
    %c8_i32_48 = arith.constant 8 : i32
    %215 = arith.muli %c4_i32, %c8_i32_48 : i32
    %216 = tpu.assume_multiple %215, 8 : i32
    %c7_i32_49 = arith.constant 7 : i32
    %217 = arith.subi %c7_i32_49, %c4_i32 : i32
    %c8_i32_50 = arith.constant 8 : i32
    %218 = arith.muli %217, %c8_i32_50 : i32
    %219 = tpu.assume_multiple %218, 8 : i32
    %220 = arith.index_cast %216 : i32 to index
    %c0_51 = arith.constant 0 : index
    %221 = vector.load %arg6[%220, %c0_51] : memref<64x512xf32, #tpu.memory_space<vmem>>, vector<8x512xf32>
    %222 = vector.extract_strided_slice %214 {offsets = [0, 0], sizes = [8, 512], strides = [1, 1]} : vector<8x1024xf32> to vector<8x512xf32>
    %223 = arith.addf %221, %222 : vector<8x512xf32>
    %224 = arith.index_cast %219 : i32 to index
    %c0_52 = arith.constant 0 : index
    %225 = vector.load %arg7[%224, %c0_52] : memref<64x512xf32, #tpu.memory_space<vmem>>, vector<8x512xf32>
    %226 = vector.extract_strided_slice %214 {offsets = [0, 512], sizes = [8, 512], strides = [1, 1]} : vector<8x1024xf32> to vector<8x512xf32>
    %227 = arith.addf %225, %226 : vector<8x512xf32>
    %228 = vector.extract_strided_slice %223 {offsets = [0, 0], sizes = [8, 128], strides = [1, 1]} : vector<8x512xf32> to vector<8x128xf32>
    %229 = vector.extract_strided_slice %227 {offsets = [0, 0], sizes = [8, 128], strides = [1, 1]} : vector<8x512xf32> to vector<8x128xf32>
    %230 = tpu.concatenate %228, %229 in 1 : vector<8x128xf32>, vector<8x128xf32> -> vector<8x256xf32>
    %231 = arith.negf %230 : vector<8x256xf32>
    %232 = math.exp %231 : vector<8x256xf32>
    %cst_53 = arith.constant 1.000000e+00 : f32
    %233 = vector.broadcast %cst_53 : f32 to vector<8x256xf32>
    %234 = arith.addf %233, %232 : vector<8x256xf32>
    %235 = arith.divf %233, %234 : vector<8x256xf32>
    %236 = vector.extract_strided_slice %223 {offsets = [0, 128], sizes = [8, 128], strides = [1, 1]} : vector<8x512xf32> to vector<8x128xf32>
    %237 = vector.extract_strided_slice %227 {offsets = [0, 128], sizes = [8, 128], strides = [1, 1]} : vector<8x512xf32> to vector<8x128xf32>
    %238 = tpu.concatenate %236, %237 in 1 : vector<8x128xf32>, vector<8x128xf32> -> vector<8x256xf32>
    %239 = arith.negf %238 : vector<8x256xf32>
    %240 = math.exp %239 : vector<8x256xf32>
    %cst_54 = arith.constant 1.000000e+00 : f32
    %241 = vector.broadcast %cst_54 : f32 to vector<8x256xf32>
    %242 = arith.addf %241, %240 : vector<8x256xf32>
    %243 = arith.divf %241, %242 : vector<8x256xf32>
    %244 = vector.extract_strided_slice %223 {offsets = [0, 256], sizes = [8, 128], strides = [1, 1]} : vector<8x512xf32> to vector<8x128xf32>
    %245 = vector.extract_strided_slice %227 {offsets = [0, 256], sizes = [8, 128], strides = [1, 1]} : vector<8x512xf32> to vector<8x128xf32>
    %246 = tpu.concatenate %244, %245 in 1 : vector<8x128xf32>, vector<8x128xf32> -> vector<8x256xf32>
    %247 = math.tanh %246 : vector<8x256xf32>
    %248 = vector.extract_strided_slice %223 {offsets = [0, 384], sizes = [8, 128], strides = [1, 1]} : vector<8x512xf32> to vector<8x128xf32>
    %249 = vector.extract_strided_slice %227 {offsets = [0, 384], sizes = [8, 128], strides = [1, 1]} : vector<8x512xf32> to vector<8x128xf32>
    %250 = tpu.concatenate %248, %249 in 1 : vector<8x128xf32>, vector<8x128xf32> -> vector<8x256xf32>
    %251 = arith.negf %250 : vector<8x256xf32>
    %252 = math.exp %251 : vector<8x256xf32>
    %cst_55 = arith.constant 1.000000e+00 : f32
    %253 = vector.broadcast %cst_55 : f32 to vector<8x256xf32>
    %254 = arith.addf %253, %252 : vector<8x256xf32>
    %255 = arith.divf %253, %254 : vector<8x256xf32>
    %256 = arith.mulf %243, %208 : vector<8x256xf32>
    %257 = arith.mulf %235, %247 : vector<8x256xf32>
    %258 = arith.addf %256, %257 : vector<8x256xf32>
    %259 = math.tanh %258 : vector<8x256xf32>
    %260 = arith.mulf %255, %259 : vector<8x256xf32>
    %261 = arith.addf %211, %260 : vector<8x256xf32>
    %262 = arith.maximumf %212, %260 : vector<8x256xf32>
    %c5_i32 = arith.constant 5 : i32
    %263 = arith.truncf %260 : vector<8x256xf32> to vector<8x256xbf16>
    %cst_56 = arith.constant dense<0.000000e+00> : vector<8x1024xf32>
    %264 = tpu.matmul %263, %10, %cst_56 {dimension_numbers = #tpu.dot_dimension_numbers<[1], [0], [0], [1], [0, 0, 1, 1], [], []>} : vector<8x256xbf16>, vector<256x1024xbf16>, vector<8x1024xf32> -> vector<8x1024xf32>
    %c8_i32_57 = arith.constant 8 : i32
    %265 = arith.muli %c5_i32, %c8_i32_57 : i32
    %266 = tpu.assume_multiple %265, 8 : i32
    %c7_i32_58 = arith.constant 7 : i32
    %267 = arith.subi %c7_i32_58, %c5_i32 : i32
    %c8_i32_59 = arith.constant 8 : i32
    %268 = arith.muli %267, %c8_i32_59 : i32
    %269 = tpu.assume_multiple %268, 8 : i32
    %270 = arith.index_cast %266 : i32 to index
    %c0_60 = arith.constant 0 : index
    %271 = vector.load %arg6[%270, %c0_60] : memref<64x512xf32, #tpu.memory_space<vmem>>, vector<8x512xf32>
    %272 = vector.extract_strided_slice %264 {offsets = [0, 0], sizes = [8, 512], strides = [1, 1]} : vector<8x1024xf32> to vector<8x512xf32>
    %273 = arith.addf %271, %272 : vector<8x512xf32>
    %274 = arith.index_cast %269 : i32 to index
    %c0_61 = arith.constant 0 : index
    %275 = vector.load %arg7[%274, %c0_61] : memref<64x512xf32, #tpu.memory_space<vmem>>, vector<8x512xf32>
    %276 = vector.extract_strided_slice %264 {offsets = [0, 512], sizes = [8, 512], strides = [1, 1]} : vector<8x1024xf32> to vector<8x512xf32>
    %277 = arith.addf %275, %276 : vector<8x512xf32>
    %278 = vector.extract_strided_slice %273 {offsets = [0, 0], sizes = [8, 128], strides = [1, 1]} : vector<8x512xf32> to vector<8x128xf32>
    %279 = vector.extract_strided_slice %277 {offsets = [0, 0], sizes = [8, 128], strides = [1, 1]} : vector<8x512xf32> to vector<8x128xf32>
    %280 = tpu.concatenate %278, %279 in 1 : vector<8x128xf32>, vector<8x128xf32> -> vector<8x256xf32>
    %281 = arith.negf %280 : vector<8x256xf32>
    %282 = math.exp %281 : vector<8x256xf32>
    %cst_62 = arith.constant 1.000000e+00 : f32
    %283 = vector.broadcast %cst_62 : f32 to vector<8x256xf32>
    %284 = arith.addf %283, %282 : vector<8x256xf32>
    %285 = arith.divf %283, %284 : vector<8x256xf32>
    %286 = vector.extract_strided_slice %273 {offsets = [0, 128], sizes = [8, 128], strides = [1, 1]} : vector<8x512xf32> to vector<8x128xf32>
    %287 = vector.extract_strided_slice %277 {offsets = [0, 128], sizes = [8, 128], strides = [1, 1]} : vector<8x512xf32> to vector<8x128xf32>
    %288 = tpu.concatenate %286, %287 in 1 : vector<8x128xf32>, vector<8x128xf32> -> vector<8x256xf32>
    %289 = arith.negf %288 : vector<8x256xf32>
    %290 = math.exp %289 : vector<8x256xf32>
    %cst_63 = arith.constant 1.000000e+00 : f32
    %291 = vector.broadcast %cst_63 : f32 to vector<8x256xf32>
    %292 = arith.addf %291, %290 : vector<8x256xf32>
    %293 = arith.divf %291, %292 : vector<8x256xf32>
    %294 = vector.extract_strided_slice %273 {offsets = [0, 256], sizes = [8, 128], strides = [1, 1]} : vector<8x512xf32> to vector<8x128xf32>
    %295 = vector.extract_strided_slice %277 {offsets = [0, 256], sizes = [8, 128], strides = [1, 1]} : vector<8x512xf32> to vector<8x128xf32>
    %296 = tpu.concatenate %294, %295 in 1 : vector<8x128xf32>, vector<8x128xf32> -> vector<8x256xf32>
    %297 = math.tanh %296 : vector<8x256xf32>
    %298 = vector.extract_strided_slice %273 {offsets = [0, 384], sizes = [8, 128], strides = [1, 1]} : vector<8x512xf32> to vector<8x128xf32>
    %299 = vector.extract_strided_slice %277 {offsets = [0, 384], sizes = [8, 128], strides = [1, 1]} : vector<8x512xf32> to vector<8x128xf32>
    %300 = tpu.concatenate %298, %299 in 1 : vector<8x128xf32>, vector<8x128xf32> -> vector<8x256xf32>
    %301 = arith.negf %300 : vector<8x256xf32>
    %302 = math.exp %301 : vector<8x256xf32>
    %cst_64 = arith.constant 1.000000e+00 : f32
    %303 = vector.broadcast %cst_64 : f32 to vector<8x256xf32>
    %304 = arith.addf %303, %302 : vector<8x256xf32>
    %305 = arith.divf %303, %304 : vector<8x256xf32>
    %306 = arith.mulf %293, %258 : vector<8x256xf32>
    %307 = arith.mulf %285, %297 : vector<8x256xf32>
    %308 = arith.addf %306, %307 : vector<8x256xf32>
    %309 = math.tanh %308 : vector<8x256xf32>
    %310 = arith.mulf %305, %309 : vector<8x256xf32>
    %311 = arith.addf %261, %310 : vector<8x256xf32>
    %312 = arith.maximumf %262, %310 : vector<8x256xf32>
    %c6_i32 = arith.constant 6 : i32
    %313 = arith.truncf %310 : vector<8x256xf32> to vector<8x256xbf16>
    %cst_65 = arith.constant dense<0.000000e+00> : vector<8x1024xf32>
    %314 = tpu.matmul %313, %10, %cst_65 {dimension_numbers = #tpu.dot_dimension_numbers<[1], [0], [0], [1], [0, 0, 1, 1], [], []>} : vector<8x256xbf16>, vector<256x1024xbf16>, vector<8x1024xf32> -> vector<8x1024xf32>
    %c8_i32_66 = arith.constant 8 : i32
    %315 = arith.muli %c6_i32, %c8_i32_66 : i32
    %316 = tpu.assume_multiple %315, 8 : i32
    %c7_i32_67 = arith.constant 7 : i32
    %317 = arith.subi %c7_i32_67, %c6_i32 : i32
    %c8_i32_68 = arith.constant 8 : i32
    %318 = arith.muli %317, %c8_i32_68 : i32
    %319 = tpu.assume_multiple %318, 8 : i32
    %320 = arith.index_cast %316 : i32 to index
    %c0_69 = arith.constant 0 : index
    %321 = vector.load %arg6[%320, %c0_69] : memref<64x512xf32, #tpu.memory_space<vmem>>, vector<8x512xf32>
    %322 = vector.extract_strided_slice %314 {offsets = [0, 0], sizes = [8, 512], strides = [1, 1]} : vector<8x1024xf32> to vector<8x512xf32>
    %323 = arith.addf %321, %322 : vector<8x512xf32>
    %324 = arith.index_cast %319 : i32 to index
    %c0_70 = arith.constant 0 : index
    %325 = vector.load %arg7[%324, %c0_70] : memref<64x512xf32, #tpu.memory_space<vmem>>, vector<8x512xf32>
    %326 = vector.extract_strided_slice %314 {offsets = [0, 512], sizes = [8, 512], strides = [1, 1]} : vector<8x1024xf32> to vector<8x512xf32>
    %327 = arith.addf %325, %326 : vector<8x512xf32>
    %328 = vector.extract_strided_slice %323 {offsets = [0, 0], sizes = [8, 128], strides = [1, 1]} : vector<8x512xf32> to vector<8x128xf32>
    %329 = vector.extract_strided_slice %327 {offsets = [0, 0], sizes = [8, 128], strides = [1, 1]} : vector<8x512xf32> to vector<8x128xf32>
    %330 = tpu.concatenate %328, %329 in 1 : vector<8x128xf32>, vector<8x128xf32> -> vector<8x256xf32>
    %331 = arith.negf %330 : vector<8x256xf32>
    %332 = math.exp %331 : vector<8x256xf32>
    %cst_71 = arith.constant 1.000000e+00 : f32
    %333 = vector.broadcast %cst_71 : f32 to vector<8x256xf32>
    %334 = arith.addf %333, %332 : vector<8x256xf32>
    %335 = arith.divf %333, %334 : vector<8x256xf32>
    %336 = vector.extract_strided_slice %323 {offsets = [0, 128], sizes = [8, 128], strides = [1, 1]} : vector<8x512xf32> to vector<8x128xf32>
    %337 = vector.extract_strided_slice %327 {offsets = [0, 128], sizes = [8, 128], strides = [1, 1]} : vector<8x512xf32> to vector<8x128xf32>
    %338 = tpu.concatenate %336, %337 in 1 : vector<8x128xf32>, vector<8x128xf32> -> vector<8x256xf32>
    %339 = arith.negf %338 : vector<8x256xf32>
    %340 = math.exp %339 : vector<8x256xf32>
    %cst_72 = arith.constant 1.000000e+00 : f32
    %341 = vector.broadcast %cst_72 : f32 to vector<8x256xf32>
    %342 = arith.addf %341, %340 : vector<8x256xf32>
    %343 = arith.divf %341, %342 : vector<8x256xf32>
    %344 = vector.extract_strided_slice %323 {offsets = [0, 256], sizes = [8, 128], strides = [1, 1]} : vector<8x512xf32> to vector<8x128xf32>
    %345 = vector.extract_strided_slice %327 {offsets = [0, 256], sizes = [8, 128], strides = [1, 1]} : vector<8x512xf32> to vector<8x128xf32>
    %346 = tpu.concatenate %344, %345 in 1 : vector<8x128xf32>, vector<8x128xf32> -> vector<8x256xf32>
    %347 = math.tanh %346 : vector<8x256xf32>
    %348 = vector.extract_strided_slice %323 {offsets = [0, 384], sizes = [8, 128], strides = [1, 1]} : vector<8x512xf32> to vector<8x128xf32>
    %349 = vector.extract_strided_slice %327 {offsets = [0, 384], sizes = [8, 128], strides = [1, 1]} : vector<8x512xf32> to vector<8x128xf32>
    %350 = tpu.concatenate %348, %349 in 1 : vector<8x128xf32>, vector<8x128xf32> -> vector<8x256xf32>
    %351 = arith.negf %350 : vector<8x256xf32>
    %352 = math.exp %351 : vector<8x256xf32>
    %cst_73 = arith.constant 1.000000e+00 : f32
    %353 = vector.broadcast %cst_73 : f32 to vector<8x256xf32>
    %354 = arith.addf %353, %352 : vector<8x256xf32>
    %355 = arith.divf %353, %354 : vector<8x256xf32>
    %356 = arith.mulf %343, %308 : vector<8x256xf32>
    %357 = arith.mulf %335, %347 : vector<8x256xf32>
    %358 = arith.addf %356, %357 : vector<8x256xf32>
    %359 = math.tanh %358 : vector<8x256xf32>
    %360 = arith.mulf %355, %359 : vector<8x256xf32>
    %361 = arith.addf %311, %360 : vector<8x256xf32>
    %362 = arith.maximumf %312, %360 : vector<8x256xf32>
    %c7_i32_74 = arith.constant 7 : i32
    %363 = arith.truncf %360 : vector<8x256xf32> to vector<8x256xbf16>
    %cst_75 = arith.constant dense<0.000000e+00> : vector<8x1024xf32>
    %364 = tpu.matmul %363, %10, %cst_75 {dimension_numbers = #tpu.dot_dimension_numbers<[1], [0], [0], [1], [0, 0, 1, 1], [], []>} : vector<8x256xbf16>, vector<256x1024xbf16>, vector<8x1024xf32> -> vector<8x1024xf32>
    %c8_i32_76 = arith.constant 8 : i32
    %365 = arith.muli %c7_i32_74, %c8_i32_76 : i32
    %366 = tpu.assume_multiple %365, 8 : i32
    %c7_i32_77 = arith.constant 7 : i32
    %367 = arith.subi %c7_i32_77, %c7_i32_74 : i32
    %c8_i32_78 = arith.constant 8 : i32
    %368 = arith.muli %367, %c8_i32_78 : i32
    %369 = tpu.assume_multiple %368, 8 : i32
    %370 = arith.index_cast %366 : i32 to index
    %c0_79 = arith.constant 0 : index
    %371 = vector.load %arg6[%370, %c0_79] : memref<64x512xf32, #tpu.memory_space<vmem>>, vector<8x512xf32>
    %372 = vector.extract_strided_slice %364 {offsets = [0, 0], sizes = [8, 512], strides = [1, 1]} : vector<8x1024xf32> to vector<8x512xf32>
    %373 = arith.addf %371, %372 : vector<8x512xf32>
    %374 = arith.index_cast %369 : i32 to index
    %c0_80 = arith.constant 0 : index
    %375 = vector.load %arg7[%374, %c0_80] : memref<64x512xf32, #tpu.memory_space<vmem>>, vector<8x512xf32>
    %376 = vector.extract_strided_slice %364 {offsets = [0, 512], sizes = [8, 512], strides = [1, 1]} : vector<8x1024xf32> to vector<8x512xf32>
    %377 = arith.addf %375, %376 : vector<8x512xf32>
    %378 = vector.extract_strided_slice %373 {offsets = [0, 0], sizes = [8, 128], strides = [1, 1]} : vector<8x512xf32> to vector<8x128xf32>
    %379 = vector.extract_strided_slice %377 {offsets = [0, 0], sizes = [8, 128], strides = [1, 1]} : vector<8x512xf32> to vector<8x128xf32>
    %380 = tpu.concatenate %378, %379 in 1 : vector<8x128xf32>, vector<8x128xf32> -> vector<8x256xf32>
    %381 = arith.negf %380 : vector<8x256xf32>
    %382 = math.exp %381 : vector<8x256xf32>
    %cst_81 = arith.constant 1.000000e+00 : f32
    %383 = vector.broadcast %cst_81 : f32 to vector<8x256xf32>
    %384 = arith.addf %383, %382 : vector<8x256xf32>
    %385 = arith.divf %383, %384 : vector<8x256xf32>
    %386 = vector.extract_strided_slice %373 {offsets = [0, 128], sizes = [8, 128], strides = [1, 1]} : vector<8x512xf32> to vector<8x128xf32>
    %387 = vector.extract_strided_slice %377 {offsets = [0, 128], sizes = [8, 128], strides = [1, 1]} : vector<8x512xf32> to vector<8x128xf32>
    %388 = tpu.concatenate %386, %387 in 1 : vector<8x128xf32>, vector<8x128xf32> -> vector<8x256xf32>
    %389 = arith.negf %388 : vector<8x256xf32>
    %390 = math.exp %389 : vector<8x256xf32>
    %cst_82 = arith.constant 1.000000e+00 : f32
    %391 = vector.broadcast %cst_82 : f32 to vector<8x256xf32>
    %392 = arith.addf %391, %390 : vector<8x256xf32>
    %393 = arith.divf %391, %392 : vector<8x256xf32>
    %394 = vector.extract_strided_slice %373 {offsets = [0, 256], sizes = [8, 128], strides = [1, 1]} : vector<8x512xf32> to vector<8x128xf32>
    %395 = vector.extract_strided_slice %377 {offsets = [0, 256], sizes = [8, 128], strides = [1, 1]} : vector<8x512xf32> to vector<8x128xf32>
    %396 = tpu.concatenate %394, %395 in 1 : vector<8x128xf32>, vector<8x128xf32> -> vector<8x256xf32>
    %397 = math.tanh %396 : vector<8x256xf32>
    %398 = vector.extract_strided_slice %373 {offsets = [0, 384], sizes = [8, 128], strides = [1, 1]} : vector<8x512xf32> to vector<8x128xf32>
    %399 = vector.extract_strided_slice %377 {offsets = [0, 384], sizes = [8, 128], strides = [1, 1]} : vector<8x512xf32> to vector<8x128xf32>
    %400 = tpu.concatenate %398, %399 in 1 : vector<8x128xf32>, vector<8x128xf32> -> vector<8x256xf32>
    %401 = arith.negf %400 : vector<8x256xf32>
    %402 = math.exp %401 : vector<8x256xf32>
    %cst_83 = arith.constant 1.000000e+00 : f32
    %403 = vector.broadcast %cst_83 : f32 to vector<8x256xf32>
    %404 = arith.addf %403, %402 : vector<8x256xf32>
    %405 = arith.divf %403, %404 : vector<8x256xf32>
    %406 = arith.mulf %393, %358 : vector<8x256xf32>
    %407 = arith.mulf %385, %397 : vector<8x256xf32>
    %408 = arith.addf %406, %407 : vector<8x256xf32>
    %409 = math.tanh %408 : vector<8x256xf32>
    %410 = arith.mulf %405, %409 : vector<8x256xf32>
    %411 = arith.addf %361, %410 : vector<8x256xf32>
    %412 = arith.maximumf %362, %410 : vector<8x256xf32>
    %c8_i32_84 = arith.constant 8 : i32
    %c0_85 = arith.constant 0 : index
    %c0_86 = arith.constant 0 : index
    %413 = vector.load %arg4[%c0_85, %c0_86] : memref<8x256xf32, #tpu.memory_space<vmem>>, vector<8x256xf32>
    tpu.vector_store %arg4[%c0_85, %c0_86], %411 {strides = array<i32>} : memref<8x256xf32, #tpu.memory_space<vmem>>, vector<8x256xf32>,
    %c0_87 = arith.constant 0 : index
    %c0_88 = arith.constant 0 : index
    %414 = vector.load %arg5[%c0_87, %c0_88] : memref<8x256xf32, #tpu.memory_space<vmem>>, vector<8x256xf32>
    tpu.vector_store %arg5[%c0_87, %c0_88], %412 {strides = array<i32>} : memref<8x256xf32, #tpu.memory_space<vmem>>, vector<8x256xf32>,
    return
  }
}

</mosaic_0001>

<bundles_post_ra>
// kernel: lstm_sentiment_forward.1
= control target key start
LH: loop header
LB: loop body
LE: loop exit
PB: predicated region body
PF: predicated region fallthrough
CT: control target
= control target key end

     0   :  { %11 = vsyncpa [#allocation5], 0  ;;  %s7965_s0 = inlined_call_operand.vmem [shape: bf16[64,128], index: 0, kind: input, shape index: {}]   ;;  %s7966_s1 = inlined_call_operand.hbm [shape: bf16[128,1024], index: 1, kind: input, shape index: {}]   ;;  %s7967_s2 = inlined_call_operand.hbm [shape: bf16[256,1024], index: 2, kind: input, shape index: {}]   ;;  %s7968_s3 = inlined_call_operand.vmem [shape: f32[1,1024], index: 3, kind: input, shape index: {}]   ;;  %s7969_s4 = inlined_call_operand.vmem [shape: f32[8,256], index: 4, kind: output, shape index: {0}]   ;;  %s7970_s5 = inlined_call_operand.vmem [shape: f32[8,256], index: 5, kind: output, shape index: {1}]  }
   0x1   :  { %s19_s20 = sshll.u32 %s7966_s1, 4  ;;  %s20_s20 = int_to_ptr.hbm [resolvable:$true] %s19_s20 }
   0x2   :  { %12 = vsyncpa [#allocation7], 0  ;;  %s5803_s21 = smov [#allocation4]   ;;  %s32_s25 = sshll.u32 %s7967_s2, 4  ;;  %s33_s25 = int_to_ptr.hbm [resolvable:$true] %s32_s25 }
   0x3   :  { %s21_s22 = sshll.u32 %s5803_s21, 4  ;;  %s5804_s26 = smov 512   ;;  %s22_s22 = int_to_ptr.vmem [resolvable:$true] %s21_s22 }
   0x4   :  { %s5805_s27 = smov 32   ;;  %s5806_s28 = smov [#allocation6]  }
   0x5   :  { %27 = dma.hbm_to_vmem [thread:$0]  %s20_s20, 8192, %s22_s22, [#allocation5], %s5804_s26, %s5804_s26, %s5805_s27  }
   0x6   :  { %s34_s29 = sshll.u32 %s5806_s28, 4  ;;  %s35_s29 = int_to_ptr.vmem [resolvable:$true] %s34_s29 }
   0x7   :  { %40 = dma.hbm_to_vmem [thread:$0]  %s33_s25, 16384, %s35_s29, [#allocation7], %s5804_s26, %s5804_s26, %s5805_s27  }
   0x8   :  { %5799 = dma.done.wait [#allocation5], 8192  }
   0x9   :  { %5800 = vsyncadd [#allocation5], 4294959104 }
   0xa   :  { %5801 = dma.done.wait [#allocation7], 16384  }
   0xb   :  { %5802 = vsyncadd [#allocation7], 4294950912  ;;  %v4704_v0 = vld [vmem:[#allocation4 + $0x1c0] sm:$0xf]  ;;  %v5354_v2 = vld [vmem:[#allocation4 + $0x1c4] sm:$0xf] }
   0xc   :  { %v5358_v1 = vld [vmem:[#allocation4 + $0x1dc] sm:$0xf0]  ;;  %v4706_v4 = vld [vmem:[#allocation4 + $0x1e0] sm:$0xf0]  ;;  %v4712_v5 = vld [vmem:[#allocation4 + $0x1c8] sm:$0xf] }
   0xd   :  { %v4705_v3 = vor.u32 %v5358_v1, %v4704_v0  ;;  %v5359_v6 = vld [vmem:[#allocation4 + $0x1e4] sm:$0xf0]  ;;  %v4709_v7 = vor.u32 %v5354_v2, %v4706_v4  ;;  %v5355_v9 = vld [vmem:[#allocation4 + $0x1cc] sm:$0xf]  ;;  %v4672_v11 = vld [vmem:[#allocation4 + $0x180] sm:$0xf] }
   0xe   :  { %v4713_v8 = vor.u32 %v5359_v6, %v4712_v5  ;;  %v4714_v10 = vld [vmem:[#allocation4 + $0x1e8] sm:$0xf0]  ;;  %v5350_v13 = vld [vmem:[#allocation4 + $0x19c] sm:$0xf0]  ;;  %v5346_v14 = vld [vmem:[#allocation4 + $0x184] sm:$0xf] }
   0xf   :  { %486 = vmatpush.bf16.msra.mxu0 %v4705_v3  ;;  %v4717_v12 = vor.u32 %v5355_v9, %v4714_v10  ;;  %v4674_v15 = vld [vmem:[#allocation4 + $0x1a0] sm:$0xf0]  ;;  %515 = vmatpush.bf16.msra.mxu1 %v4709_v7  ;;  %v4673_v16 = vor.u32 %v5350_v13, %v4672_v11  ;;  %v4680_v18 = vld [vmem:[#allocation4 + $0x188] sm:$0xf]  ;;  %v5347_v20 = vld [vmem:[#allocation4 + $0x18c] sm:$0xf] }
  0x10   :  { %544 = vmatpush.bf16.msra.mxu2 %v4713_v8  ;;  %v4677_v17 = vor.u32 %v5346_v14, %v4674_v15  ;;  %v5351_v19 = vld [vmem:[#allocation4 + $0x1a4] sm:$0xf0]  ;;  %v4682_v22 = vld [vmem:[#allocation4 + $0x1a8] sm:$0xf0]  ;;  %v4640_v23 = vld [vmem:[#allocation4 + $0x140] sm:$0xf] }
  0x11   :  { %573 = vmatpush.bf16.msra.mxu3 %v4717_v12  ;;  %v4681_v21 = vor.u32 %v5351_v19, %v4680_v18  ;;  %v5342_v24 = vld [vmem:[#allocation4 + $0x15c] sm:$0xf0]  ;;  %v4685_v25 = vor.u32 %v5347_v20, %v4682_v22  ;;  %v5338_v26 = vld [vmem:[#allocation4 + $0x144] sm:$0xf]  ;;  %v4648_v28 = vld [vmem:[#allocation4 + $0x148] sm:$0xf] }
  0x12   :  { %v4642_v27 = vld [vmem:[#allocation4 + $0x160] sm:$0xf0]  ;;  %v4641_v29 = vor.u32 %v5342_v24, %v4640_v23  ;;  %v5343_v30 = vld [vmem:[#allocation4 + $0x164] sm:$0xf0]  ;;  %v5339_v31 = vld [vmem:[#allocation4 + $0x14c] sm:$0xf] }
  0x13   :  { %487 = vmatpush.bf16.msra.mxu0 %v4673_v16  ;;  %v4650_v32 = vld [vmem:[#allocation4 + $0x168] sm:$0xf0]  ;;  %516 = vmatpush.bf16.msra.mxu1 %v4677_v17  ;;  %v4645_v33 = vor.u32 %v5338_v26, %v4642_v27  ;;  %v4649_v34 = vor.u32 %v5343_v30, %v4648_v28  ;;  %v4608_v35 = vld [vmem:[#allocation4 + $0x100] sm:$0xf]  ;;  %v5330_v37 = vld [vmem:[#allocation4 + $0x104] sm:$0xf] }
  0x14   :  { %545 = vmatpush.bf16.msra.mxu2 %v4681_v21  ;;  %v5334_v36 = vld [vmem:[#allocation4 + $0x11c] sm:$0xf0]  ;;  %v4653_v38 = vor.u32 %v5339_v31, %v4650_v32  ;;  %v4610_v39 = vld [vmem:[#allocation4 + $0x120] sm:$0xf0]  ;;  %v4616_v40 = vld [vmem:[#allocation4 + $0x108] sm:$0xf] }
  0x15   :  { %574 = vmatpush.bf16.msra.mxu3 %v4685_v25  ;;  %v5335_v41 = vld [vmem:[#allocation4 + $0x124] sm:$0xf0]  ;;  %v5331_v42 = vld [vmem:[#allocation4 + $0x10c] sm:$0xf]  ;;  %v4609_v44 = vor.u32 %v5334_v36, %v4608_v35  ;;  %v4613_v45 = vor.u32 %v5330_v37, %v4610_v39  ;;  %v4576_v47 = vld [vmem:[#allocation4 + $0xc0] sm:$0xf] }
  0x16   :  { %v4618_v43 = vld [vmem:[#allocation4 + $0x128] sm:$0xf0]  ;;  %v4617_v46 = vor.u32 %v5335_v41, %v4616_v40  ;;  %v5326_v48 = vld [vmem:[#allocation4 + $0xdc] sm:$0xf0]  ;;  %v5322_v49 = vld [vmem:[#allocation4 + $0xc4] sm:$0xf] }
  0x17   :  { %488 = vmatpush.bf16.msra.mxu0 %v4641_v29  ;;  %517 = vmatpush.bf16.msra.mxu1 %v4645_v33  ;;  %v4621_v50 = vor.u32 %v5331_v42, %v4618_v43  ;;  %v4578_v51 = vld [vmem:[#allocation4 + $0xe0] sm:$0xf0]  ;;  %v4584_v52 = vld [vmem:[#allocation4 + $0xc8] sm:$0xf]  ;;  %v5323_v54 = vld [vmem:[#allocation4 + $0xcc] sm:$0xf]  ;;  %v4577_v56 = vor.u32 %v5326_v48, %v4576_v47 }
  0x18   :  { %546 = vmatpush.bf16.msra.mxu2 %v4649_v34  ;;  %v5327_v53 = vld [vmem:[#allocation4 + $0xe4] sm:$0xf0]  ;;  %v4586_v55 = vld [vmem:[#allocation4 + $0xe8] sm:$0xf0]  ;;  %v4581_v57 = vor.u32 %v5322_v49, %v4578_v51  ;;  %v4544_v59 = vld [vmem:[#allocation4 + $0x80] sm:$0xf] }
  0x19   :  { %575 = vmatpush.bf16.msra.mxu3 %v4653_v38  ;;  %v4585_v58 = vor.u32 %v5327_v53, %v4584_v52  ;;  %v5318_v60 = vld [vmem:[#allocation4 + $0x9c] sm:$0xf0]  ;;  %v5314_v61 = vld [vmem:[#allocation4 + $0x84] sm:$0xf]  ;;  %v4589_v62 = vor.u32 %v5323_v54, %v4586_v55  ;;  %v4552_v0 = vld [vmem:[#allocation4 + $0x88] sm:$0xf] }
  0x1a   :  { %v4546_v63 = vld [vmem:[#allocation4 + $0xa0] sm:$0xf0]  ;;  %v5319_v1 = vld [vmem:[#allocation4 + $0xa4] sm:$0xf0]  ;;  %v5315_v2 = vld [vmem:[#allocation4 + $0x8c] sm:$0xf]  ;;  %v4545_v4 = vor.u32 %v5318_v60, %v4544_v59 }
  0x1b   :  { %489 = vmatpush.bf16.msra.mxu0 %v4609_v44  ;;  %518 = vmatpush.bf16.msra.mxu1 %v4613_v45  ;;  %v4554_v3 = vld [vmem:[#allocation4 + $0xa8] sm:$0xf0]  ;;  %v4549_v5 = vor.u32 %v5314_v61, %v4546_v63  ;;  %v4553_v6 = vor.u32 %v5319_v1, %v4552_v0  ;;  %v4512_v7 = vld [vmem:[#allocation4 + $0x40] sm:$0xf]  ;;  %v5306_v9 = vld [vmem:[#allocation4 + $0x44] sm:$0xf] }
  0x1c   :  { %547 = vmatpush.bf16.msra.mxu2 %v4617_v46  ;;  %v5310_v8 = vld [vmem:[#allocation4 + $0x5c] sm:$0xf0]  ;;  %v4557_v10 = vor.u32 %v5315_v2, %v4554_v3  ;;  %v4514_v11 = vld [vmem:[#allocation4 + $0x60] sm:$0xf0]  ;;  %v4520_v12 = vld [vmem:[#allocation4 + $0x48] sm:$0xf] }
  0x1d   :  { %576 = vmatpush.bf16.msra.mxu3 %v4621_v50  ;;  %v5311_v13 = vld [vmem:[#allocation4 + $0x64] sm:$0xf0]  ;;  %v5307_v14 = vld [vmem:[#allocation4 + $0x4c] sm:$0xf]  ;;  %v4513_v16 = vor.u32 %v5310_v8, %v4512_v7  ;;  %v4517_v17 = vor.u32 %v5306_v9, %v4514_v11  ;;  %v4480_v19 = vld [vmem:[#allocation4] sm:$0xf] }
  0x1e   :  { %v4522_v15 = vld [vmem:[#allocation4 + $0x68] sm:$0xf0]  ;;  %v4521_v18 = vor.u32 %v5311_v13, %v4520_v12  ;;  %v5302_v20 = vld [vmem:[#allocation4 + $0x1c] sm:$0xf0]  ;;  %v5298_v21 = vld [vmem:[#allocation4 + $0x4] sm:$0xf] }
  0x1f   :  { %490 = vmatpush.bf16.msra.mxu0 %v4577_v56  ;;  %519 = vmatpush.bf16.msra.mxu1 %v4581_v57  ;;  %v4525_v22 = vor.u32 %v5307_v14, %v4522_v15  ;;  %v4482_v23 = vld [vmem:[#allocation4 + $0x20] sm:$0xf0]  ;;  %v4488_v24 = vld [vmem:[#allocation4 + $0x8] sm:$0xf]  ;;  %v5299_v26 = vld [vmem:[#allocation4 + $0xc] sm:$0xf]  ;;  %v4481_v28 = vor.u32 %v5302_v20, %v4480_v19 }
  0x20   :  { %548 = vmatpush.bf16.msra.mxu2 %v4585_v58  ;;  %v5303_v25 = vld [vmem:[#allocation4 + $0x24] sm:$0xf0]  ;;  %v4490_v27 = vld [vmem:[#allocation4 + $0x28] sm:$0xf0]  ;;  %v4485_v29 = vor.u32 %v5298_v21, %v4482_v23  ;;  %v5847_v32 = vld [vmem:[%s7965_s0] sm:$0xff] }
  0x21   :  { %577 = vmatpush.bf16.msra.mxu3 %v4589_v62  ;;  %v4489_v30 = vor.u32 %v5303_v25, %v4488_v24  ;;  %v4493_v31 = vor.u32 %v5299_v26, %v4490_v27  ;;  %v4720_v33 = vld [vmem:[#allocation4 + $0x1d0] sm:$0xf]  ;;  %v5356_v35 = vld [vmem:[#allocation4 + $0x1d4] sm:$0xf]  ;;  %v4728_v38 = vld [vmem:[#allocation4 + $0x1d8] sm:$0xf] }
  0x22   :  { %v5360_v34 = vld [vmem:[#allocation4 + $0x1ec] sm:$0xf0]  ;;  %v4722_v37 = vld [vmem:[#allocation4 + $0x1f0] sm:$0xf0]  ;;  %v5361_v39 = vld [vmem:[#allocation4 + $0x1f4] sm:$0xf0] }
  0x23   :  { %491 = vmatpush.bf16.msra.mxu0 %v4545_v4  ;;  %520 = vmatpush.bf16.msra.mxu1 %v4549_v5  ;;  %v4721_v36 = vor.u32 %v5360_v34, %v4720_v33  ;;  %v4725_v40 = vor.u32 %v5356_v35, %v4722_v37  ;;  %v4729_v41 = vor.u32 %v5361_v39, %v4728_v38  ;;  %v5357_v42 = vld [vmem:[#allocation4 + $0x1dc] sm:$0xf]  ;;  %v4688_v44 = vld [vmem:[#allocation4 + $0x190] sm:$0xf]  ;;  %v5348_v47 = vld [vmem:[#allocation4 + $0x194] sm:$0xf] }
  0x24   :  { %549 = vmatpush.bf16.msra.mxu2 %v4553_v6  ;;  %v4730_v43 = vld [vmem:[#allocation4 + $0x1f8] sm:$0xf0]  ;;  %v5352_v46 = vld [vmem:[#allocation4 + $0x1ac] sm:$0xf0]  ;;  %v4690_v48 = vld [vmem:[#allocation4 + $0x1b0] sm:$0xf0] }
  0x25   :  { %578 = vmatpush.bf16.msra.mxu3 %v4557_v10  ;;  %v4733_v45 = vor.u32 %v5357_v42, %v4730_v43  ;;  %v4689_v49 = vor.u32 %v5352_v46, %v4688_v44  ;;  %v4693_v50 = vor.u32 %v5348_v47, %v4690_v48  ;;  %v4696_v51 = vld [vmem:[#allocation4 + $0x198] sm:$0xf]  ;;  %v5349_v53 = vld [vmem:[#allocation4 + $0x19c] sm:$0xf]  ;;  %v4656_v56 = vld [vmem:[#allocation4 + $0x150] sm:$0xf] }
  0x26   :  { %v5353_v52 = vld [vmem:[#allocation4 + $0x1b4] sm:$0xf0]  ;;  %v4698_v55 = vld [vmem:[#allocation4 + $0x1b8] sm:$0xf0]  ;;  %v5344_v57 = vld [vmem:[#allocation4 + $0x16c] sm:$0xf0] }
  0x27   :  { %492 = vmatpush.bf16.msra.mxu0 %v4513_v16  ;;  %521 = vmatpush.bf16.msra.mxu1 %v4517_v17  ;;  %v4697_v54 = vor.u32 %v5353_v52, %v4696_v51  ;;  %v4701_v58 = vor.u32 %v5349_v53, %v4698_v55  ;;  %v5340_v59 = vld [vmem:[#allocation4 + $0x154] sm:$0xf]  ;;  %v4664_v61 = vld [vmem:[#allocation4 + $0x158] sm:$0xf]  ;;  %v4657_v62 = vor.u32 %v5344_v57, %v4656_v56  ;;  %v5341_v0 = vld [vmem:[#allocation4 + $0x15c] sm:$0xf] }
  0x28   :  { %550 = vmatpush.bf16.msra.mxu2 %v4521_v18  ;;  %v4658_v60 = vld [vmem:[#allocation4 + $0x170] sm:$0xf0]  ;;  %v5345_v63 = vld [vmem:[#allocation4 + $0x174] sm:$0xf0]  ;;  %v4666_v1 = vld [vmem:[#allocation4 + $0x178] sm:$0xf0] }
  0x29   :  { %579 = vmatpush.bf16.msra.mxu3 %v4525_v22  ;;  %v4661_v2 = vor.u32 %v5340_v59, %v4658_v60  ;;  %v4665_v3 = vor.u32 %v5345_v63, %v4664_v61  ;;  %v4624_v4 = vld [vmem:[#allocation4 + $0x110] sm:$0xf]  ;;  %v4669_v6 = vor.u32 %v5341_v0, %v4666_v1  ;;  %v5332_v7 = vld [vmem:[#allocation4 + $0x114] sm:$0xf]  ;;  %v4632_v10 = vld [vmem:[#allocation4 + $0x118] sm:$0xf] }
  0x2a   :  { %v5336_v5 = vld [vmem:[#allocation4 + $0x12c] sm:$0xf0]  ;;  %v4626_v8 = vld [vmem:[#allocation4 + $0x130] sm:$0xf0]  ;;  %v5337_v11 = vld [vmem:[#allocation4 + $0x134] sm:$0xf0] }
  0x2b   :  { %493 = vmatpush.bf16.msra.mxu0 %v4481_v28  ;;  %522 = vmatpush.bf16.msra.mxu1 %v4485_v29  ;;  %v4625_v9 = vor.u32 %v5336_v5, %v4624_v4  ;;  %v5856_v12 = vld [vmem:[%s7965_s0 + $0x8] sm:$0xff]  ;;  %v4629_v13 = vor.u32 %v5332_v7, %v4626_v8  ;;  %v5333_v14 = vld [vmem:[#allocation4 + $0x11c] sm:$0xf]  ;;  %v4633_v16 = vor.u32 %v5337_v11, %v4632_v10  ;;  %v4592_v18 = vld [vmem:[#allocation4 + $0xd0] sm:$0xf] }
  0x2c   :  { %551 = vmatpush.bf16.msra.mxu2 %v4489_v30  ;;  %v4634_v15 = vld [vmem:[#allocation4 + $0x138] sm:$0xf0]  ;;  %v5328_v19 = vld [vmem:[#allocation4 + $0xec] sm:$0xf0]  ;;  %v5324_v20 = vld [vmem:[#allocation4 + $0xd4] sm:$0xf] }
  0x2d   :  { %580 = vmatpush.bf16.msra.mxu3 %v4493_v31  ;;  %v4637_v17 = vor.u32 %v5333_v14, %v4634_v15  ;;  %v4593_v21 = vor.u32 %v5328_v19, %v4592_v18  ;;  %v4594_v22 = vld [vmem:[#allocation4 + $0xf0] sm:$0xf0]  ;;  %v4600_v23 = vld [vmem:[#allocation4 + $0xd8] sm:$0xf]  ;;  %v5325_v27 = vld [vmem:[#allocation4 + $0xdc] sm:$0xf] }
  0x2e   :  { %494 = vmatmul.bf16.vlgmr.msra.gmra.mxu0 %v5847_v32  ;;  %523 = vmatmul.bf16.vlgmr.msra.gmra.mxu1 %v5847_v32  ;;  %v5329_v24 = vld [vmem:[#allocation4 + $0xf4] sm:$0xf0]  ;;  %v4597_v25 = vor.u32 %v5324_v20, %v4594_v22  ;;  %v4602_v28 = vld [vmem:[#allocation4 + $0xf8] sm:$0xf0]  ;;  %v4560_v29 = vld [vmem:[#allocation4 + $0x90] sm:$0xf] }
  0x2f   :  { %552 = vmatmul.bf16.vlgmr.msra.gmra.mxu2 %v5847_v32  ;;  %602 = vmatpush.bf16.msrb.mxu0 %v4721_v36  ;;  %v4601_v26 = vor.u32 %v5329_v24, %v4600_v23  ;;  %v4605_v30 = vor.u32 %v5325_v27, %v4602_v28  ;;  %v5320_v31 = vld [vmem:[#allocation4 + $0xac] sm:$0xf0]  ;;  %v5316_v33 = vld [vmem:[#allocation4 + $0x94] sm:$0xf]  ;;  %v4568_v37 = vld [vmem:[#allocation4 + $0x98] sm:$0xf] }
  0x30   :  { %581 = vmatmul.bf16.vlgmr.msra.gmra.mxu3 %v5847_v32  ;;  %631 = vmatpush.bf16.msrb.mxu1 %v4725_v40  ;;  %v4562_v34 = vld [vmem:[#allocation4 + $0xb0] sm:$0xf0]  ;;  %v4561_v35 = vor.u32 %v5320_v31, %v4560_v29  ;;  %v5321_v38 = vld [vmem:[#allocation4 + $0xb4] sm:$0xf0]  ;;  %v5317_v39 = vld [vmem:[#allocation4 + $0x9c] sm:$0xf] }
  0x31   :  { %660 = vmatpush.bf16.msrb.mxu2 %v4729_v41  ;;  %689 = vmatpush.bf16.msrb.mxu3 %v4733_v45  ;;  %v4565_v36 = vor.u32 %v5316_v33, %v4562_v34  ;;  %v4570_v40 = vld [vmem:[#allocation4 + $0xb8] sm:$0xf0]  ;;  %v4528_v41 = vld [vmem:[#allocation4 + $0x50] sm:$0xf]  ;;  %v4569_v43 = vor.u32 %v5321_v38, %v4568_v37  ;;  %v5308_v44 = vld [vmem:[#allocation4 + $0x54] sm:$0xf] }
  0x32   :  { %v5312_v42 = vld [vmem:[#allocation4 + $0x6c] sm:$0xf0]  ;;  %v4530_v45 = vld [vmem:[#allocation4 + $0x70] sm:$0xf0]  ;;  %v4573_v46 = vor.u32 %v5317_v39, %v4570_v40  ;;  %v4536_v48 = vld [vmem:[#allocation4 + $0x58] sm:$0xf] }
  0x33   :  { %603 = vmatpush.bf16.msrb.mxu0 %v4689_v49  ;;  %v4529_v47 = vor.u32 %v5312_v42, %v4528_v41  ;;  %v5313_v49 = vld [vmem:[#allocation4 + $0x74] sm:$0xf0]  ;;  %v4533_v51 = vor.u32 %v5308_v44, %v4530_v45  ;;  %v4538_v52 = vld [vmem:[#allocation4 + $0x78] sm:$0xf0]  ;;  %v4496_v53 = vld [vmem:[#allocation4 + $0x10] sm:$0xf] }
  0x34   :  { %632 = vmatpush.bf16.msrb.mxu1 %v4693_v50  ;;  %v5309_v50 = vld [vmem:[#allocation4 + $0x5c] sm:$0xf]  ;;  %v5300_v55 = vld [vmem:[#allocation4 + $0x14] sm:$0xf]  ;;  %v4537_v57 = vor.u32 %v5313_v49, %v4536_v48  ;;  %v4504_v60 = vld [vmem:[#allocation4 + $0x18] sm:$0xf] }
  0x35   :  { %661 = vmatpush.bf16.msrb.mxu2 %v4697_v54  ;;  %690 = vmatpush.bf16.msrb.mxu3 %v4701_v58  ;;  %v5304_v54 = vld [vmem:[#allocation4 + $0x2c] sm:$0xf0]  ;;  %v4498_v56 = vld [vmem:[#allocation4 + $0x30] sm:$0xf0]  ;;  %v4541_v58 = vor.u32 %v5309_v50, %v4538_v52  ;;  %v5305_v61 = vld [vmem:[#allocation4 + $0x34] sm:$0xf0] }
  0x36   :  { %v4497_v59 = vor.u32 %v5304_v54, %v4496_v53  ;;  %v4501_v63 = vor.u32 %v5300_v55, %v4498_v56  ;;  %v5301_v0 = vld [vmem:[#allocation4 + $0x1c] sm:$0xf]  ;;  %v4960_v4 = vld [vmem:[#allocation6 + $0x1c0] sm:$0xf]  ;;  %v4962_v10 = vld [vmem:[#allocation6 + $0x1e0] sm:$0xf0] }
  0x37   :  { %604 = vmatpush.bf16.msrb.mxu0 %v4657_v62  ;;  %v5865_v62 = vld [vmem:[%s7965_s0 + $0x10] sm:$0xff]  ;;  %v4506_v1 = vld [vmem:[#allocation4 + $0x38] sm:$0xf0]  ;;  %v5422_v5 = vld [vmem:[#allocation6 + $0x1dc] sm:$0xf0] }
  0x38   :  { %633 = vmatpush.bf16.msrb.mxu1 %v4661_v2  ;;  %v4505_v2 = vor.u32 %v5305_v61, %v4504_v60  ;;  %v5871_v7 = vor.u32 %v5422_v5, %v4960_v4  ;;  %v5486_v8 = vld [vmem:[#allocation6 + $0x3dc] sm:$0xf0]  ;;  %v5482_v14 = vld [vmem:[#allocation6 + $0x3c4] sm:$0xf]  ;;  %v5906_v42 = vld [vmem:[%s7965_s0 + $0x18] sm:$0xff] }
  0x39   :  { %662 = vmatpush.bf16.msrb.mxu2 %v4665_v3  ;;  %691 = vmatpush.bf16.msrb.mxu3 %v4669_v6  ;;  %v4509_v3 = vor.u32 %v5301_v0, %v4506_v1  ;;  %v5216_v6 = vld [vmem:[#allocation6 + $0x3c0] sm:$0xf]  ;;  %v5218_v15 = vld [vmem:[#allocation6 + $0x3e0] sm:$0xf0] }
  0x3a   :  { %8258 = vst [vmem:[#allocation10_spill] sm:$0xff] %v5871_v7  ;;  %v5873_v11 = vor.u32 %v5486_v8, %v5216_v6  ;;  %v5414_v18 = vld [vmem:[#allocation6 + $0x19c] sm:$0xf0]  ;;  %v5410_v23 = vld [vmem:[#allocation6 + $0x184] sm:$0xf] }
  0x3b   :  { %605 = vmatpush.bf16.msrb.mxu0 %v4625_v9  ;;  %v5418_v9 = vld [vmem:[#allocation6 + $0x1c4] sm:$0xf]  ;;  %v5184_v19 = vld [vmem:[#allocation6 + $0x380] sm:$0xf] }
  0x3c   :  { %634 = vmatpush.bf16.msrb.mxu1 %v4629_v13  ;;  %8259 = vst [vmem:[#allocation11_spill] sm:$0xff] %v5873_v11  ;;  %v5875_v13 = vor.u32 %v5418_v9, %v4962_v10  ;;  %v5478_v20 = vld [vmem:[#allocation6 + $0x39c] sm:$0xf0]  ;;  %v4930_v24 = vld [vmem:[#allocation6 + $0x1a0] sm:$0xf0] }
  0x3d   :  { %663 = vmatpush.bf16.msrb.mxu2 %v4633_v16  ;;  %692 = vmatpush.bf16.msrb.mxu3 %v4637_v17  ;;  %v4928_v16 = vld [vmem:[#allocation6 + $0x180] sm:$0xf]  ;;  %v5878_v17 = vor.u32 %v5482_v14, %v5218_v15  ;;  %v5884_v22 = vor.u32 %v5478_v20, %v5184_v19  ;;  %v5186_v27 = vld [vmem:[#allocation6 + $0x3a0] sm:$0xf0] }
  0x3e   :  { %499 = vmatmul.bf16.gmra.mxu0 %v5856_v12  ;;  %528 = vmatmul.bf16.gmra.mxu1 %v5856_v12  ;;  %8260 = vst [vmem:[#allocation12_spill] sm:$0xff] %v5875_v13  ;;  %v4896_v28 = vld [vmem:[#allocation6 + $0x140] sm:$0xf]  ;;  %v5402_v34 = vld [vmem:[#allocation6 + $0x144] sm:$0xf] }
  0x3f   :  { %557 = vmatmul.bf16.gmra.mxu2 %v5856_v12  ;;  %606 = vmatpush.bf16.msrb.mxu0 %v4593_v21  ;;  %8261 = vst [vmem:[#allocation13_spill] sm:$0xff] %v5878_v17  ;;  %v5882_v21 = vor.u32 %v5414_v18, %v4928_v16  ;;  %v5406_v29 = vld [vmem:[#allocation6 + $0x15c] sm:$0xf0]  ;;  %v5466_v37 = vld [vmem:[#allocation6 + $0x344] sm:$0xf] }
  0x40   :  { %586 = vmatmul.bf16.gmra.mxu3 %v5856_v12  ;;  %635 = vmatpush.bf16.msrb.mxu1 %v4597_v25  ;;  %8263 = vst [vmem:[#allocation15_spill] sm:$0xff] %v5884_v22  ;;  %v5474_v25 = vld [vmem:[#allocation6 + $0x384] sm:$0xf]  ;;  %v5152_v31 = vld [vmem:[#allocation6 + $0x340] sm:$0xf] }
  0x41   :  { %664 = vmatpush.bf16.msrb.mxu2 %v4601_v26  ;;  %693 = vmatpush.bf16.msrb.mxu3 %v4605_v30  ;;  %8262 = vst [vmem:[#allocation14_spill] sm:$0xff] %v5882_v21  ;;  %v5887_v26 = vor.u32 %v5410_v23, %v4930_v24  ;;  %v5889_v30 = vor.u32 %v5474_v25, %v5186_v27  ;;  %v5470_v33 = vld [vmem:[#allocation6 + $0x35c] sm:$0xf0]  ;;  %v5154_v38 = vld [vmem:[#allocation6 + $0x360] sm:$0xf0] }
  0x42   :  { %v5896_v39 = vor.u32 %v5470_v33, %v5152_v31  ;;  %v5901_v41 = vor.u32 %v5466_v37, %v5154_v38  ;;  %v5398_v44 = vld [vmem:[#allocation6 + $0x11c] sm:$0xf0]  ;;  %v5394_v48 = vld [vmem:[#allocation6 + $0x104] sm:$0xf] }
  0x43   :  { %607 = vmatpush.bf16.msrb.mxu0 %v4561_v35  ;;  %8264 = vst [vmem:[#allocation16_spill] sm:$0xff] %v5887_v26  ;;  %v5892_v35 = vor.u32 %v5406_v29, %v4896_v28  ;;  %v5120_v45 = vld [vmem:[#allocation6 + $0x300] sm:$0xf]  ;;  %v4866_v49 = vld [vmem:[#allocation6 + $0x120] sm:$0xf0] }
  0x44   :  { %636 = vmatpush.bf16.msrb.mxu1 %v4565_v36  ;;  %8265 = vst [vmem:[#allocation17_spill] sm:$0xff] %v5889_v30  ;;  %v4898_v36 = vld [vmem:[#allocation6 + $0x160] sm:$0xf0]  ;;  %v4832_v54 = vld [vmem:[#allocation6 + $0xc0] sm:$0xf] }
  0x45   :  { %665 = vmatpush.bf16.msrb.mxu2 %v4569_v43  ;;  %694 = vmatpush.bf16.msrb.mxu3 %v4573_v46  ;;  %8266 = vst [vmem:[#allocation18_spill] sm:$0xff] %v5892_v35  ;;  %v5898_v40 = vor.u32 %v5402_v34, %v4898_v36  ;;  %v4864_v43 = vld [vmem:[#allocation6 + $0x100] sm:$0xf]  ;;  %v5458_v52 = vld [vmem:[#allocation6 + $0x304] sm:$0xf] }
  0x46   :  { %8267 = vst [vmem:[#allocation19_spill] sm:$0xff] %v5896_v39  ;;  %v5916_v46 = vor.u32 %v5398_v44, %v4864_v43  ;;  %v5122_v53 = vld [vmem:[#allocation6 + $0x320] sm:$0xf0]  ;;  %v5390_v56 = vld [vmem:[#allocation6 + $0xdc] sm:$0xf0] }
  0x47   :  { %608 = vmatpush.bf16.msrb.mxu0 %v4529_v47  ;;  %8268 = vst [vmem:[#allocation20_spill] sm:$0xff] %v5898_v40  ;;  %v5462_v47 = vld [vmem:[#allocation6 + $0x31c] sm:$0xf0]  ;;  %v5923_v55 = vor.u32 %v5458_v52, %v5122_v53  ;;  %v5386_v61 = vld [vmem:[#allocation6 + $0xc4] sm:$0xf] }
  0x48   :  { %637 = vmatpush.bf16.msrb.mxu1 %v4533_v51  ;;  %8269 = vst [vmem:[#allocation21_spill] sm:$0xff] %v5901_v41  ;;  %v5918_v50 = vor.u32 %v5462_v47, %v5120_v45  ;;  %v5920_v51 = vor.u32 %v5394_v48, %v4866_v49  ;;  %v5450_v0 = vld [vmem:[#allocation6 + $0x2c4] sm:$0xf]  ;;  %v5382_v4 = vld [vmem:[#allocation6 + $0x9c] sm:$0xf0] }
  0x49   :  { %666 = vmatpush.bf16.msrb.mxu2 %v4537_v57  ;;  %695 = vmatpush.bf16.msrb.mxu3 %v4541_v58  ;;  %8270 = vst [vmem:[#allocation22_spill] sm:$0xff] %v5916_v46  ;;  %v5088_v57 = vld [vmem:[#allocation6 + $0x2c0] sm:$0xf]  ;;  %v5378_v9 = vld [vmem:[#allocation6 + $0x84] sm:$0xf] }
  0x4a   :  { %8271 = vst [vmem:[#allocation23_spill] sm:$0xff] %v5918_v50  ;;  %v5454_v58 = vld [vmem:[#allocation6 + $0x2dc] sm:$0xf0]  ;;  %v4802_v14 = vld [vmem:[#allocation6 + $0xa0] sm:$0xf0] }
  0x4b   :  { %609 = vmatpush.bf16.msrb.mxu0 %v4497_v59  ;;  %8272 = vst [vmem:[#allocation24_spill] sm:$0xff] %v5920_v51  ;;  %v5927_v59 = vor.u32 %v5390_v56, %v4832_v54  ;;  %v5929_v60 = vor.u32 %v5454_v58, %v5088_v57  ;;  %v5056_v6 = vld [vmem:[#allocation6 + $0x280] sm:$0xf]  ;;  %v5442_v15 = vld [vmem:[#allocation6 + $0x284] sm:$0xf]  ;;  %v5943_v19 = vor.u32 %v5378_v9, %v4802_v14 }
  0x4c   :  { %638 = vmatpush.bf16.msrb.mxu1 %v4501_v63  ;;  %8273 = vst [vmem:[#allocation25_spill] sm:$0xff] %v5923_v55  ;;  %v4834_v63 = vld [vmem:[#allocation6 + $0xe0] sm:$0xf0]  ;;  %v5446_v8 = vld [vmem:[#allocation6 + $0x29c] sm:$0xf0] }
  0x4d   :  { %667 = vmatpush.bf16.msrb.mxu2 %v4505_v2  ;;  %696 = vmatpush.bf16.msrb.mxu3 %v4509_v3  ;;  %8274 = vst [vmem:[#allocation26_spill] sm:$0xff] %v5927_v59  ;;  %v5932_v1 = vor.u32 %v5386_v61, %v4834_v63  ;;  %v5090_v2 = vld [vmem:[#allocation6 + $0x2e0] sm:$0xf0]  ;;  %v4800_v3 = vld [vmem:[#allocation6 + $0x80] sm:$0xf]  ;;  %v5941_v18 = vor.u32 %v5446_v8, %v5056_v6 }
  0x4e   :  { %504 = vmatmul.bf16.gmra.mxu0 %v5865_v62  ;;  %533 = vmatmul.bf16.gmra.mxu1 %v5865_v62  ;;  %8275 = vst [vmem:[#allocation27_spill] sm:$0xff] %v5929_v60  ;;  %v5934_v5 = vor.u32 %v5450_v0, %v5090_v2  ;;  %v5937_v10 = vor.u32 %v5382_v4, %v4800_v3  ;;  %v5058_v16 = vld [vmem:[#allocation6 + $0x2a0] sm:$0xf0]  ;;  %v4768_v23 = vld [vmem:[#allocation6 + $0x40] sm:$0xf] }
  0x4f   :  { %562 = vmatmul.bf16.gmra.mxu2 %v5865_v62  ;;  %1550 = vmatpush.bf16.msra.mxu0 %v5871_v7  ;;  %8276 = vst [vmem:[#allocation28_spill] sm:$0xff] %v5932_v1  ;;  %v5946_v20 = vor.u32 %v5442_v15, %v5058_v16  ;;  %v5374_v24 = vld [vmem:[#allocation6 + $0x5c] sm:$0xf0]  ;;  %v5370_v28 = vld [vmem:[#allocation6 + $0x44] sm:$0xf] }
  0x50   :  { %591 = vmatmul.bf16.gmra.mxu3 %v5865_v62  ;;  %1563 = vmatpush.bf16.msra.mxu1 %v5873_v11  ;;  %8277 = vst [vmem:[#allocation29_spill] sm:$0xff] %v5934_v5  ;;  %v5024_v25 = vld [vmem:[#allocation6 + $0x240] sm:$0xf]  ;;  %v4770_v29 = vld [vmem:[#allocation6 + $0x60] sm:$0xf0]  ;;  %v5952_v34 = vor.u32 %v5374_v24, %v4768_v23 }
  0x51   :  { %1576 = vmatpush.bf16.msra.mxu2 %v5875_v13  ;;  %1589 = vmatpush.bf16.msra.mxu3 %v5878_v17  ;;  %8278 = vst [vmem:[#allocation30_spill] sm:$0xff] %v5937_v10  ;;  %v5438_v27 = vld [vmem:[#allocation6 + $0x25c] sm:$0xf0]  ;;  %v5434_v31 = vld [vmem:[#allocation6 + $0x244] sm:$0xf]  ;;  %v5956_v37 = vor.u32 %v5370_v28, %v4770_v29 }
  0x52   :  { %8279 = vst [vmem:[#allocation31_spill] sm:$0xff] %v5941_v18  ;;  %v5026_v33 = vld [vmem:[#allocation6 + $0x260] sm:$0xf0]  ;;  %v5954_v36 = vor.u32 %v5438_v27, %v5024_v25  ;;  %v4736_v43 = vld [vmem:[#allocation6] sm:$0xf] }
  0x53   :  { %1551 = vmatpush.bf16.msra.mxu0 %v5882_v21  ;;  %8280 = vst [vmem:[#allocation32_spill] sm:$0xff] %v5943_v19  ;;  %v5959_v38 = vor.u32 %v5434_v31, %v5026_v33  ;;  %v5366_v44 = vld [vmem:[#allocation6 + $0x1c] sm:$0xf0]  ;;  %v5362_v49 = vld [vmem:[#allocation6 + $0x4] sm:$0xf] }
  0x54   :  { %1564 = vmatpush.bf16.msra.mxu1 %v5884_v22  ;;  %8281 = vst [vmem:[#allocation33_spill] sm:$0xff] %v5946_v20  ;;  %v4992_v45 = vld [vmem:[#allocation6 + $0x200] sm:$0xf]  ;;  %v5965_v47 = vor.u32 %v5366_v44, %v4736_v43  ;;  %v4738_v52 = vld [vmem:[#allocation6 + $0x20] sm:$0xf0] }
  0x55   :  { %1577 = vmatpush.bf16.msra.mxu2 %v5887_v26  ;;  %1590 = vmatpush.bf16.msra.mxu3 %v5889_v30  ;;  %8282 = vst [vmem:[#allocation34_spill] sm:$0xff] %v5952_v34  ;;  %v5430_v48 = vld [vmem:[#allocation6 + $0x21c] sm:$0xf0]  ;;  %v5971_v54 = vor.u32 %v5362_v49, %v4738_v52  ;;  %v5426_v56 = vld [vmem:[#allocation6 + $0x204] sm:$0xf] }
  0x56   :  { %8283 = vst [vmem:[#allocation35_spill] sm:$0xff] %v5954_v36  ;;  %v5969_v53 = vor.u32 %v5430_v48, %v4992_v45  ;;  %v4994_v57 = vld [vmem:[#allocation6 + $0x220] sm:$0xf0]  ;;  %v4968_v58 = vld [vmem:[#allocation6 + $0x1c8] sm:$0xf] }
  0x57   :  { %1552 = vmatpush.bf16.msra.mxu0 %v5892_v35  ;;  %8284 = vst [vmem:[#allocation36_spill] sm:$0xff] %v5956_v37  ;;  %v5423_v61 = vld [vmem:[#allocation6 + $0x1e4] sm:$0xf0]  ;;  %v5419_v4 = vld [vmem:[#allocation6 + $0x1cc] sm:$0xf] }
  0x58   :  { %1565 = vmatpush.bf16.msra.mxu1 %v5896_v39  ;;  %8285 = vst [vmem:[#allocation37_spill] sm:$0xff] %v5959_v38  ;;  %v5224_v63 = vld [vmem:[#allocation6 + $0x3c8] sm:$0xf]  ;;  %v5976_v2 = vor.u32 %v5423_v61, %v4968_v58  ;;  %v4970_v6 = vld [vmem:[#allocation6 + $0x1e8] sm:$0xf0] }
  0x59   :  { %1578 = vmatpush.bf16.msra.mxu2 %v5898_v40  ;;  %1591 = vmatpush.bf16.msra.mxu3 %v5901_v41  ;;  %8286 = vst [vmem:[#allocation38_spill] sm:$0xff] %v5965_v47  ;;  %v5487_v0 = vld [vmem:[#allocation6 + $0x3e4] sm:$0xf0]  ;;  %v5483_v8 = vld [vmem:[#allocation6 + $0x3cc] sm:$0xf]  ;;  %v5981_v9 = vor.u32 %v5419_v4, %v4970_v6 }
  0x5a   :  { %8287 = vst [vmem:[#allocation39_spill] sm:$0xff] %v5969_v53  ;;  %v5978_v3 = vor.u32 %v5487_v0, %v5224_v63  ;;  %v5226_v14 = vld [vmem:[#allocation6 + $0x3e8] sm:$0xf0]  ;;  %v4936_v15 = vld [vmem:[#allocation6 + $0x188] sm:$0xf] }
  0x5b   :  { %1553 = vmatpush.bf16.msra.mxu0 %v5916_v46  ;;  %8288 = vst [vmem:[#allocation40_spill] sm:$0xff] %v5971_v54  ;;  %v5415_v16 = vld [vmem:[#allocation6 + $0x1a4] sm:$0xf0]  ;;  %v5985_v23 = vor.u32 %v5483_v8, %v5226_v14  ;;  %v5411_v27 = vld [vmem:[#allocation6 + $0x18c] sm:$0xf] }
  0x5c   :  { %1566 = vmatpush.bf16.msra.mxu1 %v5918_v50  ;;  %8290 = vst [vmem:[#allocation42_spill] sm:$0xff] %v5976_v2  ;;  %v5192_v24 = vld [vmem:[#allocation6 + $0x388] sm:$0xf]  ;;  %v5989_v28 = vor.u32 %v5415_v16, %v4936_v15  ;;  %v4938_v29 = vld [vmem:[#allocation6 + $0x1a8] sm:$0xf0] }
  0x5d   :  { %1579 = vmatpush.bf16.msra.mxu2 %v5920_v51  ;;  %1592 = vmatpush.bf16.msra.mxu3 %v5923_v55  ;;  %8291 = vst [vmem:[#allocation43_spill] sm:$0xff] %v5978_v3  ;;  %v5479_v25 = vld [vmem:[#allocation6 + $0x3a4] sm:$0xf0]  ;;  %v5475_v31 = vld [vmem:[#allocation6 + $0x38c] sm:$0xf]  ;;  %v5995_v44 = vor.u32 %v5411_v27, %v4938_v29 }
  0x5e   :  { %509 = vmatmul.bf16.gmra.mxu0 %v5906_v42  ;;  %538 = vmatmul.bf16.gmra.mxu1 %v5906_v42  ;;  %8292 = vst [vmem:[#allocation44_spill] sm:$0xff] %v5981_v9  ;;  %v5194_v33 = vld [vmem:[#allocation6 + $0x3a8] sm:$0xf0]  ;;  %v5993_v43 = vor.u32 %v5479_v25, %v5192_v24  ;;  %v4904_v48 = vld [vmem:[#allocation6 + $0x148] sm:$0xf] }
  0x5f   :  { %567 = vmatmul.bf16.gmra.mxu2 %v5906_v42  ;;  %1554 = vmatpush.bf16.msra.mxu0 %v5927_v59  ;;  %8293 = vst [vmem:[#allocation45_spill] sm:$0xff] %v5985_v23  ;;  %v5998_v45 = vor.u32 %v5475_v31, %v5194_v33  ;;  %v5407_v49 = vld [vmem:[#allocation6 + $0x164] sm:$0xf0]  ;;  %v4906_v58 = vld [vmem:[#allocation6 + $0x168] sm:$0xf0] }
  0x60   :  { %596 = vmatmul.bf16.gmra.mxu3 %v5906_v42  ;;  %1567 = vmatpush.bf16.msra.mxu1 %v5929_v60  ;;  %8294 = vst [vmem:[#allocation46_spill] sm:$0xff] %v5989_v28  ;;  %v5160_v52 = vld [vmem:[#allocation6 + $0x348] sm:$0xf]  ;;  %v5467_v61 = vld [vmem:[#allocation6 + $0x34c] sm:$0xf]  ;;  %v6004_v0 = vor.u32 %v5407_v49, %v4904_v48 }
  0x61   :  { %1580 = vmatpush.bf16.msra.mxu2 %v5932_v1  ;;  %1593 = vmatpush.bf16.msra.mxu3 %v5934_v5  ;;  %8295 = vst [vmem:[#allocation47_spill] sm:$0xff] %v5993_v43  ;;  %v5162_v63 = vld [vmem:[#allocation6 + $0x368] sm:$0xf0]  ;;  %v4872_v8 = vld [vmem:[#allocation6 + $0x108] sm:$0xf] }
  0x62   :  { %8296 = vst [vmem:[#allocation48_spill] sm:$0xff] %v5995_v44  ;;  %v5399_v14 = vld [vmem:[#allocation6 + $0x124] sm:$0xf0]  ;;  %v6011_v16 = vor.u32 %v5467_v61, %v5162_v63  ;;  %v5395_v25 = vld [vmem:[#allocation6 + $0x10c] sm:$0xf] }
  0x63   :  { %1555 = vmatpush.bf16.msra.mxu0 %v5937_v10  ;;  %8297 = vst [vmem:[#allocation49_spill] sm:$0xff] %v5998_v45  ;;  %v5128_v15 = vld [vmem:[#allocation6 + $0x308] sm:$0xf]  ;;  %v4874_v27 = vld [vmem:[#allocation6 + $0x128] sm:$0xf0]  ;;  %v6017_v33 = vor.u32 %v5399_v14, %v4872_v8 }
  0x64   :  { %1568 = vmatpush.bf16.msra.mxu1 %v5941_v18  ;;  %8298 = vst [vmem:[#allocation50_spill] sm:$0xff] %v6004_v0  ;;  %v5463_v24 = vld [vmem:[#allocation6 + $0x324] sm:$0xf0]  ;;  %v5459_v29 = vld [vmem:[#allocation6 + $0x30c] sm:$0xf]  ;;  %v6023_v49 = vor.u32 %v5395_v25, %v4874_v27 }
  0x65   :  { %1581 = vmatpush.bf16.msra.mxu2 %v5943_v19  ;;  %1594 = vmatpush.bf16.msra.mxu3 %v5946_v20  ;;  %8301 = vst [vmem:[#allocation53_spill] sm:$0xff] %v6011_v16  ;;  %v5130_v31 = vld [vmem:[#allocation6 + $0x328] sm:$0xf0]  ;;  %v6021_v48 = vor.u32 %v5463_v24, %v5128_v15  ;;  %v4808_v25 = vld [vmem:[#allocation6 + $0x88] sm:$0xf] }
  0x66   :  { %8302 = vst [vmem:[#allocation54_spill] sm:$0xff] %v6017_v33  ;;  %v5387_v61 = vld [vmem:[#allocation6 + $0xcc] sm:$0xf]  ;;  %v5383_v27 = vld [vmem:[#allocation6 + $0xa4] sm:$0xf0] }
  0x67   :  { %1556 = vmatpush.bf16.msra.mxu0 %v5952_v34  ;;  %8303 = vst [vmem:[#allocation55_spill] sm:$0xff] %v6021_v48  ;;  %v4842_v63 = vld [vmem:[#allocation6 + $0xe8] sm:$0xf0] }
  0x68   :  { %1569 = vmatpush.bf16.msra.mxu1 %v5954_v36  ;;  %8304 = vst [vmem:[#allocation56_spill] sm:$0xff] %v6023_v49  ;;  %v5451_v8 = vld [vmem:[#allocation6 + $0x2cc] sm:$0xf]  ;;  %v6035_v24 = vor.u32 %v5387_v61, %v4842_v63  ;;  %v4776_v61 = vld [vmem:[#allocation6 + $0x48] sm:$0xf] }
  0x69   :  { %1582 = vmatpush.bf16.msra.mxu2 %v5956_v37  ;;  %1595 = vmatpush.bf16.msra.mxu3 %v5959_v38  ;;  %v5098_v14 = vld [vmem:[#allocation6 + $0x2e8] sm:$0xf0]  ;;  %v5375_v63 = vld [vmem:[#allocation6 + $0x64] sm:$0xf0] }
  0x6a   :  { %8308 = vst [vmem:[#allocation60_spill] sm:$0xff] %v6035_v24 }
  0x6b   :  { %1557 = vmatpush.bf16.msra.mxu0 %v5965_v47 }
  0x6c   :  { %1570 = vmatpush.bf16.msra.mxu1 %v5969_v53 }
  0x6d   :  { %1583 = vmatpush.bf16.msra.mxu2 %v5971_v54 }
  0x6e   :  { %610 = vmatmul.bf16.vlgmr.msrb.gmra.mxu0 %v5847_v32  ;;  %639 = vmatmul.bf16.vlgmr.msrb.gmra.mxu1 %v5847_v32 }
  0x6f   :  { %668 = vmatmul.bf16.vlgmr.msrb.gmra.mxu2 %v5847_v32  ;;  %1602 = vmatpush.bf16.msrb.mxu0 %v5976_v2 }
  0x70   :  { %697 = vmatmul.bf16.vlgmr.msrb.gmra.mxu3 %v5847_v32  ;;  %v5974_v32 = vor.u32 %v5426_v56, %v4994_v57  ;;  %1615 = vmatpush.bf16.msrb.mxu1 %v5978_v3  ;;  %v5471_v56 = vld [vmem:[#allocation6 + $0x364] sm:$0xf0]  ;;  %v5403_v57 = vld [vmem:[#allocation6 + $0x14c] sm:$0xf]  ;;  %v5240_v3 = vld [vmem:[#allocation6 + $0x3d8] sm:$0xf] }
  0x71   :  { %1628 = vmatpush.bf16.msrb.mxu2 %v5981_v9  ;;  %v6006_v4 = vor.u32 %v5471_v56, %v5160_v52  ;;  %v6008_v6 = vor.u32 %v5403_v57, %v4906_v58  ;;  %v4840_v52 = vld [vmem:[#allocation6 + $0xc8] sm:$0xf]  ;;  %v6026_v58 = vor.u32 %v5459_v29, %v5130_v31  ;;  %v6038_v31 = vor.u32 %v5451_v8, %v5098_v14 }
  0x72   :  { %8289 = vst [vmem:[#allocation41_spill] sm:$0xff] %v5974_v32  ;;  %1596 = vmatpush.bf16.msra.mxu3 %v5974_v32  ;;  %v5391_v56 = vld [vmem:[#allocation6 + $0xe4] sm:$0xf0] }
  0x73   :  { %1603 = vmatpush.bf16.msrb.mxu0 %v5989_v28  ;;  %8299 = vst [vmem:[#allocation51_spill] sm:$0xff] %v6006_v4  ;;  %v5096_v57 = vld [vmem:[#allocation6 + $0x2c8] sm:$0xf]  ;;  %v5425_v28 = vld [vmem:[#allocation6 + $0x1f4] sm:$0xf0] }
  0x74   :  { %1616 = vmatpush.bf16.msrb.mxu1 %v5993_v43  ;;  %8300 = vst [vmem:[#allocation52_spill] sm:$0xff] %v6008_v6  ;;  %v5064_v29 = vld [vmem:[#allocation6 + $0x288] sm:$0xf] }
  0x75   :  { %1629 = vmatpush.bf16.msrb.mxu2 %v5995_v44  ;;  %8305 = vst [vmem:[#allocation57_spill] sm:$0xff] %v6026_v58  ;;  %v5032_v8 = vld [vmem:[#allocation6 + $0x248] sm:$0xf]  ;;  %v5440_v44 = vld [vmem:[#allocation6 + $0x26c] sm:$0xf0] }
  0x76   :  { %1641 = vmatpush.bf16.msrb.mxu3 %v5985_v23  ;;  %8309 = vst [vmem:[#allocation61_spill] sm:$0xff] %v6038_v31  ;;  %v5432_v23 = vld [vmem:[#allocation6 + $0x22c] sm:$0xf0] }
  0x77   :  { %1604 = vmatpush.bf16.msrb.mxu0 %v6004_v0 }
  0x78   :  { %1617 = vmatpush.bf16.msrb.mxu1 %v6006_v4  ;;  %v6029_v4 = vor.u32 %v5391_v56, %v4840_v52  ;;  %v5443_v52 = vld [vmem:[#allocation6 + $0x28c] sm:$0xf] }
  0x79   :  { %1630 = vmatpush.bf16.msrb.mxu2 %v6008_v6  ;;  %v5379_v6 = vld [vmem:[#allocation6 + $0x8c] sm:$0xf] }
  0x7a   :  { %1642 = vmatpush.bf16.msrb.mxu3 %v5998_v45  ;;  %8306 = vst [vmem:[#allocation58_spill] sm:$0xff] %v6029_v4  ;;  %v5066_v56 = vld [vmem:[#allocation6 + $0x2a8] sm:$0xf0]  ;;  %v5384_v45 = vld [vmem:[#allocation6 + $0xac] sm:$0xf0] }
  0x7b   :  { %1605 = vmatpush.bf16.msrb.mxu0 %v6017_v33  ;;  %v4810_v33 = vld [vmem:[#allocation6 + $0xa8] sm:$0xf0]  ;;  %v6050_v14 = vor.u32 %v5443_v52, %v5066_v56  ;;  %v5000_v52 = vld [vmem:[#allocation6 + $0x208] sm:$0xf] }
  0x7c   :  { %1618 = vmatpush.bf16.msrb.mxu1 %v6021_v48  ;;  %v6041_v48 = vor.u32 %v5383_v27, %v4808_v25  ;;  %v5435_v25 = vld [vmem:[#allocation6 + $0x24c] sm:$0xf] }
  0x7d   :  { %1631 = vmatpush.bf16.msrb.mxu2 %v6023_v49  ;;  %8313 = vst [vmem:[#allocation65_spill] sm:$0xff] %v6050_v14  ;;  %v5371_v49 = vld [vmem:[#allocation6 + $0x4c] sm:$0xf] }
  0x7e   :  { %615 = vmatmul.bf16.gmra.mxu0 %v5856_v12  ;;  %644 = vmatmul.bf16.gmra.mxu1 %v5856_v12  ;;  %8310 = vst [vmem:[#allocation62_spill] sm:$0xff] %v6041_v48  ;;  %v5034_v27 = vld [vmem:[#allocation6 + $0x268] sm:$0xf0] }
  0x7f   :  { %673 = vmatmul.bf16.gmra.mxu2 %v5856_v12  ;;  %1643 = vmatpush.bf16.msrb.mxu3 %v6011_v16  ;;  %v5447_v16 = vld [vmem:[#allocation6 + $0x2a4] sm:$0xf0]  ;;  %v6063_v56 = vor.u32 %v5435_v25, %v5034_v27 }
  0x80   :  { %702 = vmatmul.bf16.gmra.mxu3 %v5856_v12  ;;  %v5455_v12 = vld [vmem:[#allocation6 + $0x2e4] sm:$0xf0]  ;;  %1606 = vmatpush.bf16.msrb.mxu0 %v6029_v4  ;;  %v4778_v4 = vld [vmem:[#allocation6 + $0x68] sm:$0xf0] }
  0x81   :  { %v6033_v15 = vor.u32 %v5455_v12, %v5096_v57  ;;  %1632 = vmatpush.bf16.msrb.mxu2 %v6035_v24  ;;  %v6045_v57 = vor.u32 %v5447_v16, %v5064_v29  ;;  %v6047_v12 = vor.u32 %v5379_v6, %v4810_v33  ;;  %v6059_v16 = vor.u32 %v5371_v49, %v4778_v4  ;;  %v4744_v33 = vld [vmem:[#allocation6 + $0x8] sm:$0xf]  ;;  %v4816_v24 = vld [vmem:[#allocation6 + $0x90] sm:$0xf] }
  0x82   :  { %v5367_v29 = vld [vmem:[#allocation6 + $0x24] sm:$0xf0]  ;;  %8317 = vst [vmem:[#allocation69_spill] sm:$0xff] %v6063_v56 }
  0x83   :  { %8307 = vst [vmem:[#allocation59_spill] sm:$0xff] %v6033_v15  ;;  %1644 = vmatpush.bf16.msrb.mxu3 %v6026_v58  ;;  %1619 = vmatpush.bf16.msrb.mxu1 %v6033_v15  ;;  %v5439_v58 = vld [vmem:[#allocation6 + $0x264] sm:$0xf0]  ;;  %v6053_v15 = vor.u32 %v5375_v63, %v4776_v61  ;;  %v5363_v61 = vld [vmem:[#allocation6 + $0xc] sm:$0xf]  ;;  %v6069_v4 = vor.u32 %v5367_v29, %v4744_v33 }
  0x84   :  { %8311 = vst [vmem:[#allocation63_spill] sm:$0xff] %v6045_v57  ;;  %1607 = vmatpush.bf16.msrb.mxu0 %v6041_v48  ;;  %v6057_v6 = vor.u32 %v5439_v58, %v5032_v8  ;;  %v4746_v63 = vld [vmem:[#allocation6 + $0x28] sm:$0xf0]  ;;  %v5232_v33 = vld [vmem:[#allocation6 + $0x3d0] sm:$0xf] }
  0x85   :  { %8312 = vst [vmem:[#allocation64_spill] sm:$0xff] %v6047_v12  ;;  %1633 = vmatpush.bf16.msrb.mxu2 %v6047_v12  ;;  %v5427_v58 = vld [vmem:[#allocation6 + $0x20c] sm:$0xf]  ;;  %v6075_v25 = vor.u32 %v5363_v61, %v4746_v63  ;;  %v5488_v29 = vld [vmem:[#allocation6 + $0x3ec] sm:$0xf0] }
  0x86   :  { %8314 = vst [vmem:[#allocation66_spill] sm:$0xff] %v6053_v15  ;;  %v5002_v8 = vld [vmem:[#allocation6 + $0x228] sm:$0xf0]  ;;  %v4978_v61 = vld [vmem:[#allocation6 + $0x1f0] sm:$0xf0] }
  0x87   :  { %1645 = vmatpush.bf16.msrb.mxu3 %v6038_v31  ;;  %1620 = vmatpush.bf16.msrb.mxu1 %v6045_v57  ;;  %8315 = vst [vmem:[#allocation67_spill] sm:$0xff] %v6057_v6  ;;  %v5431_v31 = vld [vmem:[#allocation6 + $0x224] sm:$0xf0]  ;;  %v6078_v27 = vor.u32 %v5427_v58, %v5002_v8  ;;  %v5484_v58 = vld [vmem:[#allocation6 + $0x3d4] sm:$0xf] }
  0x88   :  { %8316 = vst [vmem:[#allocation68_spill] sm:$0xff] %v6059_v16  ;;  %1608 = vmatpush.bf16.msrb.mxu0 %v6053_v15  ;;  %v6073_v49 = vor.u32 %v5431_v31, %v5000_v52  ;;  %v5424_v31 = vld [vmem:[#allocation6 + $0x1ec] sm:$0xf0]  ;;  %v5420_v52 = vld [vmem:[#allocation6 + $0x1d4] sm:$0xf] }
  0x89   :  { %8318 = vst [vmem:[#allocation70_spill] sm:$0xff] %v6069_v4  ;;  %1634 = vmatpush.bf16.msrb.mxu2 %v6059_v16  ;;  %v5234_v8 = vld [vmem:[#allocation6 + $0x3f0] sm:$0xf0]  ;;  %v8011_v16 = vmov 0   ;;  %v5480_v15 = vld [vmem:[#allocation6 + $0x3ac] sm:$0xf0] }
  0x8a   :  { %8319 = vst [vmem:[#allocation71_spill] sm:$0xff] %v6073_v49  ;;  %v4946_v57 = vld [vmem:[#allocation6 + $0x1b0] sm:$0xf0] }
  0x8b   :  { %1646 = vmatpush.bf16.msrb.mxu3 %v6050_v14  ;;  %1621 = vmatpush.bf16.msrb.mxu1 %v6057_v6  ;;  %8320 = vst [vmem:[#allocation72_spill] sm:$0xff] %v6075_v25  ;;  %v5200_v6 = vld [vmem:[#allocation6 + $0x390] sm:$0xf]  ;;  %v6099_v14 = vor.u32 %v5484_v58, %v5234_v8 }
  0x8c   :  { %8321 = vst [vmem:[#allocation73_spill] sm:$0xff] %v6078_v27  ;;  %1609 = vmatpush.bf16.msrb.mxu0 %v6069_v4  ;;  %v4944_v4 = vld [vmem:[#allocation6 + $0x190] sm:$0xf] }
  0x8d   :  { %1635 = vmatpush.bf16.msrb.mxu2 %v6075_v25  ;;  %v6094_v25 = vor.u32 %v5488_v29, %v5232_v33  ;;  %8327 = vst [vmem:[#allocation79_spill] sm:$0xff] %v6099_v14  ;;  %v6109_v29 = vor.u32 %v5480_v15, %v5200_v6  ;;  %v5408_v58 = vld [vmem:[#allocation6 + $0x16c] sm:$0xf0]  ;;  %v5468_v15 = vld [vmem:[#allocation6 + $0x354] sm:$0xf] }
  0x8e   :  { %620 = vmatmul.bf16.gmra.mxu0 %v5865_v62  ;;  %649 = vmatmul.bf16.gmra.mxu1 %v5865_v62  ;;  %v5168_v8 = vld [vmem:[#allocation6 + $0x350] sm:$0xf]  ;;  %v5170_v6 = vld [vmem:[#allocation6 + $0x370] sm:$0xf0] }
  0x8f   :  { %678 = vmatmul.bf16.gmra.mxu2 %v5865_v62  ;;  %1647 = vmatpush.bf16.msrb.mxu3 %v6063_v56  ;;  %8325 = vst [vmem:[#allocation77_spill] sm:$0xff] %v6094_v25  ;;  %v6096_v56 = vor.u32 %v5420_v52, %v4978_v61  ;;  %v4912_v61 = vld [vmem:[#allocation6 + $0x150] sm:$0xf] }
  0x90   :  { %707 = vmatmul.bf16.gmra.mxu3 %v5865_v62  ;;  %1622 = vmatpush.bf16.msrb.mxu1 %v6073_v49  ;;  %v4976_v62 = vld [vmem:[#allocation6 + $0x1d0] sm:$0xf]  ;;  %8329 = vst [vmem:[#allocation81_spill] sm:$0xff] %v6109_v29 }
  0x91   :  { %8326 = vst [vmem:[#allocation78_spill] sm:$0xff] %v6096_v56 }
  0x93   :  { %1648 = vmatpush.bf16.msrb.mxu3 %v6078_v27  ;;  %v6092_v27 = vor.u32 %v5424_v31, %v4976_v62  ;;  %v5476_v62 = vld [vmem:[#allocation6 + $0x394] sm:$0xf] }
  0x94   :  { %v5202_v31 = vld [vmem:[#allocation6 + $0x3b0] sm:$0xf0] }
  0x95   :  { %8324 = vst [vmem:[#allocation76_spill] sm:$0xff] %v6092_v27 }
  0x9e   :  { %625 = vmatmul.bf16.gmra.mxu0 %v5906_v42  ;;  %654 = vmatmul.bf16.gmra.mxu1 %v5906_v42 }
  0x9f   :  { %683 = vmatmul.bf16.gmra.mxu2 %v5906_v42 }
  0xa0   :  { %712 = vmatmul.bf16.gmra.mxu3 %v5906_v42  ;;  %v5416_v42 = vld [vmem:[#allocation6 + $0x1ac] sm:$0xf0] }
  0xa1   :  { %v6105_v33 = vor.u32 %v5416_v42, %v4944_v4  ;;  %v5404_v4 = vld [vmem:[#allocation6 + $0x154] sm:$0xf] }
  0xa2   :  { %v4914_v42 = vld [vmem:[#allocation6 + $0x170] sm:$0xf0] }
  0xa3   :  { %8328 = vst [vmem:[#allocation80_spill] sm:$0xff] %v6105_v33 }
  0xab   :  { %v6088_v63 = vpop.f32.mrf.mxu0  ;;  %v6090_v49 = vpop.f32.mrf.mxu1 }
  0xac   :  { %8322 = vst [vmem:[#allocation74_spill] sm:$0xff] %v6088_v63  ;;  %v5412_v63 = vld [vmem:[#allocation6 + $0x194] sm:$0xf] }
  0xad   :  { %8323 = vst [vmem:[#allocation75_spill] sm:$0xff] %v6090_v49  ;;  %v6111_v52 = vor.u32 %v5412_v63, %v4946_v57  ;;  %v6125_v63 = vor.u32 %v5408_v58, %v4912_v61  ;;  %v6139_v61 = vld [vmem:[%s7968_s3] sm:$0xff]  ;;  %v5460_v58 = vld [vmem:[#allocation6 + $0x314] sm:$0xf] }
  0xae   :  { %1558 = vmatmul.bf16.vlgmr.msra.gmra.mxu0 %v8011_v16  ;;  %1571 = vmatmul.bf16.vlgmr.msra.gmra.mxu1 %v8011_v16 }
  0xaf   :  { %1584 = vmatmul.bf16.vlgmr.msra.gmra.mxu2 %v8011_v16  ;;  %1654 = vmatpush.bf16.msra.mxu0 %v6092_v27  ;;  %8330 = vst [vmem:[#allocation82_spill] sm:$0xff] %v6111_v52  ;;  %v5472_v27 = vld [vmem:[#allocation6 + $0x36c] sm:$0xf0] }
  0xb0   :  { %1597 = vmatmul.bf16.vlgmr.msra.gmra.mxu3 %v8011_v16  ;;  %1667 = vmatpush.bf16.msra.mxu1 %v6094_v25  ;;  %v6116_v16 = vor.u32 %v5476_v62, %v5202_v31  ;;  %8336 = vst [vmem:[#allocation88_spill] sm:$0xff] %v6125_v63  ;;  %v6129_v62 = vor.u32 %v5472_v27, %v5168_v8  ;;  %v5138_v27 = vld [vmem:[#allocation6 + $0x330] sm:$0xf0]  ;;  %v6142_v8 = vperm.slane %v6139_v61, 0 }
  0xb1   :  { %1680 = vmatpush.bf16.msra.mxu2 %v6096_v56  ;;  %1693 = vmatpush.bf16.msra.mxu3 %v6099_v14  ;;  %v6131_v31 = vor.u32 %v5404_v4, %v4914_v42  ;;  %v4880_v14 = vld [vmem:[#allocation6 + $0x110] sm:$0xf]  ;;  %v6156_v48 = vor.u32 %v5460_v58, %v5138_v27 }
  0xb2   :  { %v6114_v49 = vpop.f32.mrf.mxu2  ;;  %8332 = vst [vmem:[#allocation84_spill] sm:$0xff] %v6116_v16  ;;  %v5400_v56 = vld [vmem:[#allocation6 + $0x12c] sm:$0xf0] }
  0xb3   :  { %8331 = vst [vmem:[#allocation83_spill] sm:$0xff] %v6114_v49  ;;  %v6118_v12 = vpop.f32.mrf.mxu3  ;;  %v6120_v25 = vpop.f32.mrf.mxu0  ;;  %1655 = vmatpush.bf16.msra.mxu0 %v6105_v33  ;;  %v5464_v33 = vld [vmem:[#allocation6 + $0x32c] sm:$0xf0]  ;;  %v5396_v49 = vld [vmem:[#allocation6 + $0x114] sm:$0xf]  ;;  %v6145_v4 = vor.u32 %v5400_v56, %v4880_v14 }
  0xb4   :  { %8333 = vst [vmem:[#allocation85_spill] sm:$0xff] %v6118_v12  ;;  %v6123_v57 = vpop.f32.mrf.mxu1  ;;  %1668 = vmatpush.bf16.msra.mxu1 %v6109_v29  ;;  %v5136_v12 = vld [vmem:[#allocation6 + $0x310] sm:$0xf]  ;;  %v5388_v14 = vld [vmem:[#allocation6 + $0xd4] sm:$0xf] }
  0xb5   :  { %8334 = vst [vmem:[#allocation86_spill] sm:$0xff] %v6120_v25  ;;  %1681 = vmatpush.bf16.msra.mxu2 %v6111_v52  ;;  %1694 = vmatpush.bf16.msra.mxu3 %v6116_v16  ;;  %v6134_v25 = vor.u32 %v5468_v15, %v5170_v6  ;;  %v6149_v42 = vor.u32 %v5464_v33, %v5136_v12  ;;  %v4848_v6 = vld [vmem:[#allocation6 + $0xd0] sm:$0xf]  ;;  %v4850_v56 = vld [vmem:[#allocation6 + $0xf0] sm:$0xf0] }
  0xb6   :  { %8335 = vst [vmem:[#allocation87_spill] sm:$0xff] %v6123_v57  ;;  %v4882_v57 = vld [vmem:[#allocation6 + $0x130] sm:$0xf0]  ;;  %v5392_v16 = vld [vmem:[#allocation6 + $0xec] sm:$0xf0] }
  0xb7   :  { %8337 = vst [vmem:[#allocation89_spill] sm:$0xff] %v6129_v62  ;;  %1656 = vmatpush.bf16.msra.mxu0 %v6125_v63  ;;  %v6151_v15 = vor.u32 %v5396_v49, %v4882_v57  ;;  %v5104_v29 = vld [vmem:[#allocation6 + $0x2d0] sm:$0xf]  ;;  %v5452_v49 = vld [vmem:[#allocation6 + $0x2d4] sm:$0xf] }
  0xb8   :  { %8338 = vst [vmem:[#allocation90_spill] sm:$0xff] %v6131_v31  ;;  %1669 = vmatpush.bf16.msra.mxu1 %v6129_v62  ;;  %v5456_v63 = vld [vmem:[#allocation6 + $0x2ec] sm:$0xf0]  ;;  %v6159_v62 = vperm.slane %v6139_v61, 1  ;;  %v5106_v33 = vld [vmem:[#allocation6 + $0x2f0] sm:$0xf0] }
  0xb9   :  { %8339 = vst [vmem:[#allocation91_spill] sm:$0xff] %v6134_v25  ;;  %1682 = vmatpush.bf16.msra.mxu2 %v6131_v31  ;;  %1695 = vmatpush.bf16.msra.mxu3 %v6134_v25  ;;  %v6174_v27 = vor.u32 %v5456_v63, %v5104_v29  ;;  %v5074_v29 = vld [vmem:[#allocation6 + $0x2b0] sm:$0xf0]  ;;  %v6185_v63 = vperm.slane %v6139_v61, 2 }
  0xba   :  { %8340 = vst [vmem:[#allocation92_spill] sm:$0xff] %v6142_v8  ;;  %v6154_v52 = vpop.f32.mrf.mxu2 }
  0xbb   :  { %8341 = vst [vmem:[#allocation93_spill] sm:$0xff] %v6145_v4  ;;  %v6161_v31 = vpop.f32.mrf.mxu3  ;;  %v500_v12 = vpop.f32.mrf.mxu0  ;;  %1657 = vmatpush.bf16.msra.mxu0 %v6145_v4  ;;  %v5072_v4 = vld [vmem:[#allocation6 + $0x290] sm:$0xf] }
  0xbc   :  { %8342 = vst [vmem:[#allocation94_spill] sm:$0xff] %v6149_v42  ;;  %v6165_v57 = vadd.f32 %v500_v12, %v6142_v8  ;;  %v529_v25 = vpop.f32.mrf.mxu1  ;;  %1670 = vmatpush.bf16.msra.mxu1 %v6149_v42  ;;  %v8353_v12 = vmov 0   ;;  %v4818_v42 = vld [vmem:[#allocation6 + $0xb0] sm:$0xf0] }
  0xbd   :  { %8343 = vst [vmem:[#allocation95_spill] sm:$0xff] %v6151_v15  ;;  %1683 = vmatpush.bf16.msra.mxu2 %v6151_v15  ;;  %v6172_v58 = vadd.f32 %v529_v25, %v6159_v62  ;;  %1696 = vmatpush.bf16.msra.mxu3 %v6156_v48  ;;  %v5444_v25 = vld [vmem:[#allocation6 + $0x294] sm:$0xf]  ;;  %v5040_v15 = vld [vmem:[#allocation6 + $0x250] sm:$0xf] }
  0xbe   :  { %8344 = vst [vmem:[#allocation96_spill] sm:$0xff] %v6154_v52  ;;  %v6167_v52 = vor.u32 %v5392_v16, %v4848_v6  ;;  %1610 = vmatmul.bf16.vlgmr.msrb.gmra.mxu0 %v8353_v12  ;;  %v6180_v16 = vor.u32 %v5452_v49, %v5106_v33  ;;  %v5448_v6 = vld [vmem:[#allocation6 + $0x2ac] sm:$0xf0]  ;;  %1623 = vmatmul.bf16.vlgmr.msrb.gmra.mxu1 %v8353_v12 }
  0xbf   :  { %8345 = vst [vmem:[#allocation97_spill] sm:$0xff] %v6156_v48  ;;  %1636 = vmatmul.bf16.vlgmr.msrb.gmra.mxu2 %v8353_v12  ;;  %v6196_v49 = vor.u32 %v5448_v6, %v5072_v4  ;;  %v5376_v48 = vld [vmem:[#allocation6 + $0x6c] sm:$0xf0]  ;;  %v6201_v43 = vor.u32 %v5444_v25, %v5074_v29  ;;  %v5436_v4 = vld [vmem:[#allocation6 + $0x254] sm:$0xf] }
  0xc0   :  { %8346 = vst [vmem:[#allocation98_spill] sm:$0xff] %v6159_v62  ;;  %1649 = vmatmul.bf16.vlgmr.msrb.gmra.mxu3 %v8353_v12  ;;  %1658 = vmatpush.bf16.msra.mxu0 %v6167_v52  ;;  %v4752_v29 = vld [vmem:[#allocation6 + $0x10] sm:$0xf] }
  0xc1   :  { %8347 = vst [vmem:[#allocation99_spill] sm:$0xff] %v6161_v31  ;;  %v6176_v31 = vor.u32 %v5388_v14, %v4850_v56  ;;  %v6188_v14 = vperm.slane %v6139_v61, 3  ;;  %v6192_v56 = vor.u32 %v5384_v45, %v4816_v24  ;;  %1671 = vmatpush.bf16.msra.mxu1 %v6174_v27  ;;  %1697 = vmatpush.bf16.msra.mxu3 %v6180_v16  ;;  %v4786_v45 = vld [vmem:[#allocation6 + $0x70] sm:$0xf0] }
  0xc2   :  { %8348 = vst [vmem:[#allocation100_spill] sm:$0xff] %v6165_v57  ;;  %v5380_v57 = vld [vmem:[#allocation6 + $0x94] sm:$0xf]  ;;  %v558_v0 = vpop.f32.mrf.mxu2 }
  0xc3   :  { %8349 = vst [vmem:[#allocation101_spill] sm:$0xff] %v6167_v52  ;;  %1684 = vmatpush.bf16.msra.mxu2 %v6176_v31  ;;  %v6198_v33 = vor.u32 %v5380_v57, %v4818_v42  ;;  %v5372_v52 = vld [vmem:[#allocation6 + $0x54] sm:$0xf]  ;;  %v6204_v24 = vadd.f32 %v558_v0, %v6185_v63  ;;  %v6218_v0 = vor.u32 %v5440_v44, %v5040_v15  ;;  %v5489_v44 = vld [vmem:[#allocation6 + $0x3f4] sm:$0xf0] }
  0xc4   :  { %8350 = vst [vmem:[#allocation102_spill] sm:$0xff] %v6172_v58  ;;  %v4784_v58 = vld [vmem:[#allocation6 + $0x50] sm:$0xf]  ;;  %v5042_v42 = vld [vmem:[#allocation6 + $0x270] sm:$0xf0]  ;;  %1659 = vmatpush.bf16.msra.mxu0 %v6192_v56  ;;  %v6212_v6 = vpop.f32.mrf.mxu1 }
  0xc5   :  { %8351 = vst [vmem:[#allocation103_spill] sm:$0xff] %v6174_v27  ;;  %v587_v27 = vpop.f32.mrf.mxu3  ;;  %v6214_v25 = vor.u32 %v5376_v48, %v4784_v58  ;;  %1672 = vmatpush.bf16.msra.mxu1 %v6196_v49  ;;  %1698 = vmatpush.bf16.msra.mxu3 %v6201_v43  ;;  %v5428_v48 = vld [vmem:[#allocation6 + $0x214] sm:$0xf]  ;;  %v4986_v15 = vld [vmem:[#allocation6 + $0x1f8] sm:$0xf0] }
  0xc6   :  { %8352 = vst [vmem:[#allocation104_spill] sm:$0xff] %v6176_v31  ;;  %v6206_v31 = vpop.f32.mrf.mxu0  ;;  %v6209_v57 = vadd.f32 %v587_v27, %v6188_v14  ;;  %v5364_v27 = vld [vmem:[#allocation6 + $0x14] sm:$0xf] }
  0xc7   :  { %8354 = vst [vmem:[#allocation105_spill] sm:$0xff] %v6180_v16  ;;  %v5368_v16 = vld [vmem:[#allocation6 + $0x2c] sm:$0xf0]  ;;  %1685 = vmatpush.bf16.msra.mxu2 %v6198_v33  ;;  %v5010_v58 = vld [vmem:[#allocation6 + $0x230] sm:$0xf0] }
  0xc8   :  { %8355 = vst [vmem:[#allocation106_spill] sm:$0xff] %v6185_v63  ;;  %1660 = vmatpush.bf16.msra.mxu0 %v6214_v25 }
  0xc9   :  { %8356 = vst [vmem:[#allocation107_spill] sm:$0xff] %v6188_v14  ;;  %1673 = vmatpush.bf16.msra.mxu1 %v6218_v0 }
  0xca   :  { %8357 = vst [vmem:[#allocation108_spill] sm:$0xff] %v6192_v56  ;;  %v4984_v56 = vld [vmem:[#allocation6 + $0x1d8] sm:$0xf] }
  0xcb   :  { %8358 = vst [vmem:[#allocation109_spill] sm:$0xff] %v6196_v49  ;;  %v6226_v49 = vor.u32 %v5368_v16, %v4752_v29  ;;  %v6239_v16 = vor.u32 %v5425_v28, %v4984_v56  ;;  %v5481_v28 = vld [vmem:[#allocation6 + $0x3b4] sm:$0xf0]  ;;  %v5413_v56 = vld [vmem:[#allocation6 + $0x19c] sm:$0xf] }
  0xcc   :  { %8359 = vst [vmem:[#allocation110_spill] sm:$0xff] %v6198_v33  ;;  %v6235_v33 = vpop.f32.mrf.mxu2 }
  0xcd   :  { %8360 = vst [vmem:[#allocation111_spill] sm:$0xff] %v6201_v43  ;;  %v5242_v43 = vld [vmem:[#allocation6 + $0x3f8] sm:$0xf0]  ;;  %v6241_v29 = vpop.f32.mrf.mxu3  ;;  %1661 = vmatpush.bf16.msra.mxu0 %v6226_v49 }
  0xce   :  { %8361 = vst [vmem:[#allocation112_spill] sm:$0xff] %v6204_v24  ;;  %v5008_v24 = vld [vmem:[#allocation6 + $0x210] sm:$0xf]  ;;  %v505_v32 = vpop.f32.mrf.mxu0 }
  0xcf   :  { %8362 = vst [vmem:[#allocation113_spill] sm:$0xff] %v6206_v31  ;;  %v6220_v31 = vor.u32 %v5372_v52, %v4786_v45  ;;  %v5421_v52 = vld [vmem:[#allocation6 + $0x1dc] sm:$0xf]  ;;  %v6230_v45 = vor.u32 %v5432_v23, %v5008_v24  ;;  %v4952_v23 = vld [vmem:[#allocation6 + $0x198] sm:$0xf] }
  0xd0   :  { %8363 = vst [vmem:[#allocation114_spill] sm:$0xff] %v6209_v57  ;;  %v6223_v57 = vor.u32 %v5436_v4, %v5042_v42  ;;  %v5485_v42 = vld [vmem:[#allocation6 + $0x3dc] sm:$0xf]  ;;  %v5417_v24 = vld [vmem:[#allocation6 + $0x1b4] sm:$0xf0]  ;;  %1662 = vmatmul.bf16.vlgmr.msra.gmra.mxu0 %v8353_v12 }
  0xd1   :  { %8364 = vst [vmem:[#allocation115_spill] sm:$0xff] %v6212_v6  ;;  %v4754_v6 = vld [vmem:[#allocation6 + $0x30] sm:$0xf0]  ;;  %1686 = vmatpush.bf16.msra.mxu2 %v6220_v31  ;;  %1674 = vmatpush.bf16.msra.mxu1 %v6230_v45 }
  0xd2   :  { %8365 = vst [vmem:[#allocation116_spill] sm:$0xff] %v6214_v25  ;;  %v6232_v4 = vor.u32 %v5364_v27, %v4754_v6  ;;  %1699 = vmatpush.bf16.msra.mxu3 %v6223_v57  ;;  %v6237_v25 = vor.u32 %v5428_v48, %v5010_v58  ;;  %v5208_v6 = vld [vmem:[#allocation6 + $0x398] sm:$0xf]  ;;  %v6249_v27 = vadd.f32 %v505_v32, %v6142_v8  ;;  %v4954_v58 = vld [vmem:[#allocation6 + $0x1b8] sm:$0xf0] }
  0xd3   :  { %8366 = vst [vmem:[#allocation117_spill] sm:$0xff] %v6218_v0  ;;  %v6243_v0 = vor.u32 %v5489_v44, %v5240_v3  ;;  %v6251_v48 = vor.u32 %v5485_v42, %v5242_v43  ;;  %v5477_v44 = vld [vmem:[#allocation6 + $0x39c] sm:$0xf]  ;;  %1706 = vmatpush.bf16.msrb.mxu0 %v6239_v16  ;;  %v6260_v32 = vor.u32 %v5417_v24, %v4952_v23  ;;  %v4920_v42 = vld [vmem:[#allocation6 + $0x158] sm:$0xf] }
  0xd4   :  { %8367 = vst [vmem:[#allocation118_spill] sm:$0xff] %v6220_v31  ;;  %v6245_v31 = vor.u32 %v5421_v52, %v4986_v15  ;;  %v5210_v52 = vld [vmem:[#allocation6 + $0x3b8] sm:$0xf0]  ;;  %v6264_v43 = vor.u32 %v5481_v28, %v5208_v6  ;;  %v6266_v15 = vor.u32 %v5413_v56, %v4954_v58  ;;  %1675 = vmatmul.bf16.vlgmr.msra.gmra.mxu1 %v8353_v12  ;;  %v563_v56 = vpop.f32.mrf.mxu2 }
  0xd5   :  { %8368 = vst [vmem:[#allocation119_spill] sm:$0xff] %v6223_v57  ;;  %1687 = vmatpush.bf16.msra.mxu2 %v6232_v4  ;;  %1719 = vmatpush.bf16.msrb.mxu1 %v6243_v0  ;;  %v5405_v23 = vld [vmem:[#allocation6 + $0x15c] sm:$0xf]  ;;  %v5401_v57 = vld [vmem:[#allocation6 + $0x134] sm:$0xf0] }
  0xd6   :  { %8369 = vst [vmem:[#allocation120_spill] sm:$0xff] %v6230_v45  ;;  %1700 = vmatpush.bf16.msra.mxu3 %v6237_v25  ;;  %v4922_v24 = vld [vmem:[#allocation6 + $0x178] sm:$0xf0]  ;;  %v4888_v45 = vld [vmem:[#allocation6 + $0x118] sm:$0xf] }
  0xd7   :  { %8370 = vst [vmem:[#allocation121_spill] sm:$0xff] %v6235_v33  ;;  %v534_v33 = vpop.f32.mrf.mxu1  ;;  %v5469_v6 = vld [vmem:[#allocation6 + $0x35c] sm:$0xf]  ;;  %1707 = vmatpush.bf16.msrb.mxu0 %v6260_v32 }
  0xd8   :  { %8371 = vst [vmem:[#allocation122_spill] sm:$0xff] %v6237_v25  ;;  %v6256_v3 = vadd.f32 %v534_v33, %v6159_v62  ;;  %v5176_v33 = vld [vmem:[#allocation6 + $0x358] sm:$0xf]  ;;  %1688 = vmatmul.bf16.vlgmr.msra.gmra.mxu2 %v8353_v12  ;;  %v5178_v28 = vld [vmem:[#allocation6 + $0x378] sm:$0xf0]  ;;  %v6287_v25 = vor.u32 %v5405_v23, %v4922_v24 }
  0xd9   :  { %8372 = vst [vmem:[#allocation123_spill] sm:$0xff] %v6241_v29  ;;  %1732 = vmatpush.bf16.msrb.mxu2 %v6245_v31  ;;  %v5473_v29 = vld [vmem:[#allocation6 + $0x374] sm:$0xf0]  ;;  %1701 = vmatmul.bf16.vlgmr.msra.gmra.mxu3 %v8353_v12 }
  0xda   :  { %8373 = vst [vmem:[#allocation124_spill] sm:$0xff] %v6243_v0  ;;  %1745 = vmatpush.bf16.msrb.mxu3 %v6251_v48  ;;  %1720 = vmatpush.bf16.msrb.mxu1 %v6264_v43  ;;  %v6285_v0 = vor.u32 %v5473_v29, %v5176_v33  ;;  %v5146_v29 = vld [vmem:[#allocation6 + $0x338] sm:$0xf0]  ;;  %v6298_v33 = vor.u32 %v5401_v57, %v4888_v45 }
  0xdb   :  { %8374 = vst [vmem:[#allocation125_spill] sm:$0xff] %v6249_v27  ;;  %v5409_v27 = vld [vmem:[#allocation6 + $0x174] sm:$0xf0]  ;;  %v5453_v57 = vld [vmem:[#allocation6 + $0x2dc] sm:$0xf] }
  0xdc   :  { %8375 = vst [vmem:[#allocation126_spill] sm:$0xff] %v6251_v48  ;;  %v6276_v58 = vor.u32 %v5409_v27, %v4920_v42  ;;  %v6283_v48 = vpop.f32.mrf.mxu0  ;;  %v5114_v45 = vld [vmem:[#allocation6 + $0x2f8] sm:$0xf0] }
  0xdd   :  { %8376 = vst [vmem:[#allocation127_spill] sm:$0xff] %v6256_v3  ;;  %v6270_v3 = vor.u32 %v5477_v44, %v5210_v52  ;;  %1733 = vmatpush.bf16.msrb.mxu2 %v6266_v15  ;;  %v6281_v44 = vadd.f32 %v563_v56, %v6185_v63  ;;  %v592_v52 = vpop.f32.mrf.mxu3  ;;  %v5465_v56 = vld [vmem:[#allocation6 + $0x334] sm:$0xf0] }
  0xde   :  { %8377 = vst [vmem:[#allocation128_spill] sm:$0xff] %v6260_v32  ;;  %v5144_v32 = vld [vmem:[#allocation6 + $0x318] sm:$0xf]  ;;  %v6291_v27 = vadd.f32 %v592_v52, %v6188_v14  ;;  %1708 = vmatpush.bf16.msrb.mxu0 %v6276_v58  ;;  %1721 = vmatpush.bf16.msrb.mxu1 %v6285_v0 }
  0xdf   :  { %8378 = vst [vmem:[#allocation129_spill] sm:$0xff] %v6264_v43  ;;  %1746 = vmatpush.bf16.msrb.mxu3 %v6270_v3  ;;  %v6293_v42 = vpop.f32.mrf.mxu1  ;;  %v6295_v43 = vor.u32 %v5469_v6, %v5178_v28  ;;  %v6302_v23 = vor.u32 %v5465_v56, %v5144_v32  ;;  %v4856_v52 = vld [vmem:[#allocation6 + $0xd8] sm:$0xf] }
  0xe0   :  { %8379 = vst [vmem:[#allocation130_spill] sm:$0xff] %v6266_v15  ;;  %v4890_v15 = vld [vmem:[#allocation6 + $0x138] sm:$0xf0]  ;;  %v5393_v6 = vld [vmem:[#allocation6 + $0xf4] sm:$0xf0] }
  0xe1   :  { %8380 = vst [vmem:[#allocation131_spill] sm:$0xff] %v6270_v3  ;;  %1734 = vmatpush.bf16.msrb.mxu2 %v6287_v25  ;;  %v5112_v28 = vld [vmem:[#allocation6 + $0x2d8] sm:$0xf]  ;;  %v5389_v3 = vld [vmem:[#allocation6 + $0xdc] sm:$0xf]  ;;  %v6312_v32 = vor.u32 %v5393_v6, %v4856_v52  ;;  %v6326_v6 = vor.u32 %v5453_v57, %v5114_v45 }
  0xe2   :  { %8381 = vst [vmem:[#allocation132_spill] sm:$0xff] %v6276_v58  ;;  %v4858_v58 = vld [vmem:[#allocation6 + $0xf8] sm:$0xf0]  ;;  %1709 = vmatpush.bf16.msrb.mxu0 %v6298_v33  ;;  %1722 = vmatpush.bf16.msrb.mxu1 %v6302_v23  ;;  %v4792_v45 = vld [vmem:[#allocation6 + $0x58] sm:$0xf] }
  0xe3   :  { %8382 = vst [vmem:[#allocation133_spill] sm:$0xff] %v6281_v44  ;;  %v5397_v44 = vld [vmem:[#allocation6 + $0x11c] sm:$0xf]  ;;  %1747 = vmatpush.bf16.msrb.mxu3 %v6295_v43  ;;  %v6320_v56 = vor.u32 %v5389_v3, %v4858_v58 }
  0xe4   :  { %8383 = vst [vmem:[#allocation134_spill] sm:$0xff] %v6283_v48  ;;  %v5461_v48 = vld [vmem:[#allocation6 + $0x31c] sm:$0xf]  ;;  %v6304_v24 = vor.u32 %v5397_v44, %v4890_v15  ;;  %v510_v44 = vpop.f32.mrf.mxu0 }
  0xe5   :  { %8384 = vst [vmem:[#allocation135_spill] sm:$0xff] %v6285_v0  ;;  %v6310_v0 = vpop.f32.mrf.mxu2  ;;  %v6316_v15 = vpop.f32.mrf.mxu3  ;;  %v5082_v3 = vld [vmem:[#allocation6 + $0x2b8] sm:$0xf0] }
  0xe6   :  { %8385 = vst [vmem:[#allocation136_spill] sm:$0xff] %v6287_v25  ;;  %1735 = vmatpush.bf16.msrb.mxu2 %v6304_v24  ;;  %v5080_v25 = vld [vmem:[#allocation6 + $0x298] sm:$0xf]  ;;  %1710 = vmatpush.bf16.msrb.mxu0 %v6312_v32 }
  0xe7   :  { %8386 = vst [vmem:[#allocation137_spill] sm:$0xff] %v6291_v27  ;;  %v5457_v27 = vld [vmem:[#allocation6 + $0x2f4] sm:$0xf0]  ;;  %v539_v52 = vpop.f32.mrf.mxu1 }
  0xe8   :  { %8387 = vst [vmem:[#allocation138_spill] sm:$0xff] %v6293_v42  ;;  %v6307_v42 = vor.u32 %v5461_v48, %v5146_v29  ;;  %v6318_v48 = vor.u32 %v5457_v27, %v5112_v28  ;;  %v4824_v29 = vld [vmem:[#allocation6 + $0x98] sm:$0xf]  ;;  %v5445_v27 = vld [vmem:[#allocation6 + $0x29c] sm:$0xf] }
  0xe9   :  { %8388 = vst [vmem:[#allocation139_spill] sm:$0xff] %v6295_v43  ;;  %v5385_v43 = vld [vmem:[#allocation6 + $0xb4] sm:$0xf0] }
  0xea   :  { %8389 = vst [vmem:[#allocation140_spill] sm:$0xff] %v6298_v33  ;;  %1748 = vmatpush.bf16.msrb.mxu3 %v6307_v42  ;;  %v4826_v33 = vld [vmem:[#allocation6 + $0xb8] sm:$0xf0]  ;;  %v6332_v58 = vor.u32 %v5385_v43, %v4824_v29  ;;  %1723 = vmatpush.bf16.msrb.mxu1 %v6318_v48 }
  0xeb   :  { %8390 = vst [vmem:[#allocation141_spill] sm:$0xff] %v6302_v23  ;;  %v5449_v23 = vld [vmem:[#allocation6 + $0x2b4] sm:$0xf0]  ;;  %1736 = vmatpush.bf16.msrb.mxu2 %v6320_v56  ;;  %v5437_v43 = vld [vmem:[#allocation6 + $0x25c] sm:$0xf] }
  0xec   :  { %8391 = vst [vmem:[#allocation142_spill] sm:$0xff] %v6304_v24  ;;  %v5381_v24 = vld [vmem:[#allocation6 + $0x9c] sm:$0xf]  ;;  %v6336_v28 = vor.u32 %v5449_v23, %v5080_v25  ;;  %1711 = vmatpush.bf16.msrb.mxu0 %v6332_v58  ;;  %v6351_v23 = vpop.f32.mrf.mxu0 }
  0xed   :  { %8392 = vst [vmem:[#allocation143_spill] sm:$0xff] %v6307_v42  ;;  %v6338_v57 = vor.u32 %v5381_v24, %v4826_v33  ;;  %v5373_v42 = vld [vmem:[#allocation6 + $0x5c] sm:$0xf]  ;;  %v597_v33 = vpop.f32.mrf.mxu3 }
  0xee   :  { %8393 = vst [vmem:[#allocation144_spill] sm:$0xff] %v6310_v0  ;;  %v6324_v0 = vadd.f32 %v510_v44, %v6142_v8  ;;  %v5377_v44 = vld [vmem:[#allocation6 + $0x74] sm:$0xf0]  ;;  %1749 = vmatpush.bf16.msrb.mxu3 %v6326_v6  ;;  %v5050_v29 = vld [vmem:[#allocation6 + $0x278] sm:$0xf0]  ;;  %1724 = vmatpush.bf16.msrb.mxu1 %v6336_v28 }
  0xef   :  { %8394 = vst [vmem:[#allocation145_spill] sm:$0xff] %v6312_v32  ;;  %v4794_v32 = vld [vmem:[#allocation6 + $0x78] sm:$0xf0]  ;;  %1737 = vmatpush.bf16.msrb.mxu2 %v6338_v57 }
  0xf0   :  { %8395 = vst [vmem:[#allocation146_spill] sm:$0xff] %v6316_v15  ;;  %v6329_v15 = vadd.f32 %v539_v52, %v6159_v62  ;;  %v6341_v52 = vor.u32 %v5445_v27, %v5082_v3  ;;  %v6355_v27 = vor.u32 %v5373_v42, %v4794_v32  ;;  %v4760_v3 = vld [vmem:[#allocation6 + $0x18] sm:$0xf] }
  0xf1   :  { %8396 = vst [vmem:[#allocation147_spill] sm:$0xff] %v6318_v48  ;;  %v568_v48 = vpop.f32.mrf.mxu2 }
  0xf2   :  { %8397 = vst [vmem:[#allocation148_spill] sm:$0xff] %v6320_v56  ;;  %v6344_v56 = vor.u32 %v5377_v44, %v4792_v45  ;;  %v6349_v25 = vadd.f32 %v568_v48, %v6185_v63  ;;  %1750 = vmatpush.bf16.msrb.mxu3 %v6341_v52  ;;  %v6359_v45 = vadd.f32 %v597_v33, %v6188_v14  ;;  %v6361_v44 = vpop.f32.mrf.mxu1  ;;  %v5433_v48 = vld [vmem:[#allocation6 + $0x234] sm:$0xf0]  ;;  %v6381_v33 = vperm.slane %v6139_v61, 5 }
  0xf3   :  { %8398 = vst [vmem:[#allocation149_spill] sm:$0xff] %v6324_v0  ;;  %v5048_v0 = vld [vmem:[#allocation6 + $0x258] sm:$0xf]  ;;  %1738 = vmatpush.bf16.msrb.mxu2 %v6355_v27 }
  0xf4   :  { %8399 = vst [vmem:[#allocation150_spill] sm:$0xff] %v6326_v6  ;;  %v5369_v6 = vld [vmem:[#allocation6 + $0x34] sm:$0xf0]  ;;  %1712 = vmatpush.bf16.msrb.mxu0 %v6344_v56 }
  0xf5   :  { %8400 = vst [vmem:[#allocation151_spill] sm:$0xff] %v6329_v15  ;;  %v5441_v15 = vld [vmem:[#allocation6 + $0x274] sm:$0xf0]  ;;  %v6366_v42 = vor.u32 %v5369_v6, %v4760_v3 }
  0xf6   :  { %8401 = vst [vmem:[#allocation152_spill] sm:$0xff] %v6332_v58  ;;  %v6353_v24 = vor.u32 %v5441_v15, %v5048_v0  ;;  %v5016_v58 = vld [vmem:[#allocation6 + $0x218] sm:$0xf]  ;;  %v5018_v0 = vld [vmem:[#allocation6 + $0x238] sm:$0xf0] }
  0xf7   :  { %8402 = vst [vmem:[#allocation153_spill] sm:$0xff] %v6336_v28  ;;  %v6363_v28 = vor.u32 %v5437_v43, %v5050_v29  ;;  %v6370_v32 = vor.u32 %v5433_v48, %v5016_v58  ;;  %v6378_v29 = vperm.slane %v6139_v61, 4  ;;  %v6388_v58 = vpop.f32.mrf.mxu3  ;;  %v6404_v48 = vperm.slane %v6139_v61, 6 }
  0xf8   :  { %8403 = vst [vmem:[#allocation154_spill] sm:$0xff] %v6338_v57  ;;  %v4762_v57 = vld [vmem:[#allocation6 + $0x38] sm:$0xf0]  ;;  %1725 = vmatpush.bf16.msrb.mxu1 %v6353_v24  ;;  %1713 = vmatpush.bf16.msrb.mxu0 %v6366_v42 }
  0xf9   :  { %8404 = vst [vmem:[#allocation155_spill] sm:$0xff] %v6341_v52  ;;  %1751 = vmatpush.bf16.msrb.mxu3 %v6363_v28  ;;  %v6384_v6 = vpop.f32.mrf.mxu2 }
  0xfa   :  { %8405 = vst [vmem:[#allocation156_spill] sm:$0xff] %v6344_v56 }
  0xfb   :  { %8406 = vst [vmem:[#allocation157_spill] sm:$0xff] %v6349_v25  ;;  %v5365_v25 = vld [vmem:[#allocation6 + $0x1c] sm:$0xf]  ;;  %1714 = vmatmul.bf16.vlgmr.msrb.gmra.mxu0 %v8353_v12 }
  0xfc   :  { %8407 = vst [vmem:[#allocation158_spill] sm:$0xff] %v6351_v23  ;;  %v5429_v23 = vld [vmem:[#allocation6 + $0x21c] sm:$0xf]  ;;  %v6372_v15 = vor.u32 %v5365_v25, %v4762_v57  ;;  %1726 = vmatpush.bf16.msrb.mxu1 %v6370_v32  ;;  %v611_v57 = vpop.f32.mrf.mxu0  ;;  %1910 = vmatpush.bf16.msra.mxu0 %v5871_v7 }
  0xfd   :  { %8408 = vst [vmem:[#allocation159_spill] sm:$0xff] %v6353_v24  ;;  %v6375_v43 = vor.u32 %v5429_v23, %v5018_v0  ;;  %v6392_v25 = vadd.f32 %v611_v57, %v6378_v29  ;;  %v640_v23 = vpop.f32.mrf.mxu1  ;;  %v6408_v0 = vperm.slane %v6139_v61, 7 }
  0xfe   :  { %8409 = vst [vmem:[#allocation160_spill] sm:$0xff] %v6355_v27  ;;  %1739 = vmatpush.bf16.msrb.mxu2 %v6372_v15  ;;  %v6397_v3 = vadd.f32 %v640_v23, %v6381_v33 }
  0xff   :  { %8410 = vst [vmem:[#allocation161_spill] sm:$0xff] %v6359_v45  ;;  %1752 = vmatpush.bf16.msrb.mxu3 %v6375_v43  ;;  %1727 = vmatmul.bf16.vlgmr.msrb.gmra.mxu1 %v8353_v12 }
 0x100   :  { %8411 = vst [vmem:[#allocation162_spill] sm:$0xff] %v6361_v44  ;;  %1923 = vmatpush.bf16.msra.mxu1 %v5873_v11  ;;  %1911 = vmatpush.bf16.msra.mxu0 %v5882_v21 }
 0x101   :  { %8412 = vst [vmem:[#allocation163_spill] sm:$0xff] %v6363_v28  ;;  %1740 = vmatmul.bf16.vlgmr.msrb.gmra.mxu2 %v8353_v12  ;;  %v669_v57 = vpop.f32.mrf.mxu2 }
 0x102   :  { %8413 = vst [vmem:[#allocation164_spill] sm:$0xff] %v6366_v42  ;;  %1936 = vmatpush.bf16.msra.mxu2 %v5875_v13  ;;  %1753 = vmatmul.bf16.vlgmr.msrb.gmra.mxu3 %v8353_v12  ;;  %v6414_v23 = vadd.f32 %v669_v57, %v6404_v48 }
 0x103   :  { %8414 = vst [vmem:[#allocation165_spill] sm:$0xff] %v6370_v32  ;;  %1949 = vmatpush.bf16.msra.mxu3 %v5878_v17 }
 0x104   :  { %8415 = vst [vmem:[#allocation166_spill] sm:$0xff] %v6372_v15  ;;  %v6416_v12 = vpop.f32.mrf.mxu0  ;;  %1924 = vmatpush.bf16.msra.mxu1 %v5884_v22  ;;  %1912 = vmatpush.bf16.msra.mxu0 %v5892_v35 }
 0x105   :  { %8416 = vst [vmem:[#allocation167_spill] sm:$0xff] %v6375_v43  ;;  %v6422_v61 = vpop.f32.mrf.mxu1 }
 0x106   :  { %8417 = vst [vmem:[#allocation168_spill] sm:$0xff] %v6378_v29  ;;  %1937 = vmatpush.bf16.msra.mxu2 %v5887_v26 }
 0x107   :  { %8418 = vst [vmem:[#allocation169_spill] sm:$0xff] %v6381_v33  ;;  %1950 = vmatpush.bf16.msra.mxu3 %v5889_v30 }
 0x108   :  { %8419 = vst [vmem:[#allocation170_spill] sm:$0xff] %v6384_v6  ;;  %1925 = vmatpush.bf16.msra.mxu1 %v5896_v39  ;;  %1913 = vmatpush.bf16.msra.mxu0 %v5916_v46  ;;  %v8476_v39 = vld [vmem:[#allocation67_spill] sm:$0xff] }
 0x109   :  { %8420 = vst [vmem:[#allocation171_spill] sm:$0xff] %v6388_v58  ;;  %v6431_v57 = vpop.f32.mrf.mxu2 }
 0x10a   :  { %8421 = vst [vmem:[#allocation172_spill] sm:$0xff] %v6392_v25  ;;  %1938 = vmatpush.bf16.msra.mxu2 %v5898_v40 }
 0x10b   :  { %8422 = vst [vmem:[#allocation173_spill] sm:$0xff] %v6397_v3  ;;  %v698_v3 = vpop.f32.mrf.mxu3  ;;  %1951 = vmatpush.bf16.msra.mxu3 %v5901_v41 }
 0x10c   :  { %8423 = vst [vmem:[#allocation174_spill] sm:$0xff] %v6404_v48  ;;  %v6420_v25 = vadd.f32 %v698_v3, %v6408_v0  ;;  %1926 = vmatpush.bf16.msra.mxu1 %v5918_v50  ;;  %1914 = vmatpush.bf16.msra.mxu0 %v5927_v59  ;;  %v8471_v50 = vld [vmem:[#allocation66_spill] sm:$0xff] }
 0x10d   :  { %8424 = vst [vmem:[#allocation175_spill] sm:$0xff] %v6408_v0  ;;  %v645_v58 = vpop.f32.mrf.mxu1 }
 0x10e   :  { %8425 = vst [vmem:[#allocation176_spill] sm:$0xff] %v6414_v23  ;;  %1939 = vmatpush.bf16.msra.mxu2 %v5920_v51  ;;  %v6442_v6 = vadd.f32 %v645_v58, %v6381_v33 }
 0x10f   :  { %8426 = vst [vmem:[#allocation177_spill] sm:$0xff] %v6416_v12  ;;  %1952 = vmatpush.bf16.msra.mxu3 %v5923_v55  ;;  %v8468_v55 = vld [vmem:[#allocation61_spill] sm:$0xff] }
 0x110   :  { %8427 = vst [vmem:[#allocation178_spill] sm:$0xff] %v6420_v25  ;;  %v616_v25 = vpop.f32.mrf.mxu0  ;;  %1927 = vmatpush.bf16.msra.mxu1 %v5929_v60  ;;  %1915 = vmatpush.bf16.msra.mxu0 %v5937_v10 }
 0x111   :  { %8428 = vst [vmem:[#allocation179_spill] sm:$0xff] %v6422_v61  ;;  %v6437_v23 = vadd.f32 %v616_v25, %v6378_v29  ;;  %v674_v25 = vpop.f32.mrf.mxu2 }
 0x112   :  { %8429 = vst [vmem:[#allocation180_spill] sm:$0xff] %v6431_v57  ;;  %1940 = vmatpush.bf16.msra.mxu2 %v5932_v1  ;;  %v6450_v44 = vadd.f32 %v674_v25, %v6404_v48 }
 0x113   :  { %v6433_v3 = vpop.f32.mrf.mxu3  ;;  %8431 = vst [vmem:[#allocation182_spill] sm:$0xff] %v6437_v23  ;;  %1953 = vmatpush.bf16.msra.mxu3 %v5934_v5 }
 0x114   :  { %8430 = vst [vmem:[#allocation181_spill] sm:$0xff] %v6433_v3  ;;  %1928 = vmatpush.bf16.msra.mxu1 %v5941_v18  ;;  %1916 = vmatpush.bf16.msra.mxu0 %v5952_v34  ;;  %v8458_v18 = vld [vmem:[#allocation55_spill] sm:$0xff] }
 0x115   :  { %8432 = vst [vmem:[#allocation183_spill] sm:$0xff] %v6442_v6  ;;  %v6458_v61 = vpop.f32.mrf.mxu1  ;;  %v8441_v6 = vld [vmem:[#allocation43_spill] sm:$0xff] }
 0x116   :  { %1941 = vmatpush.bf16.msra.mxu2 %v5943_v19  ;;  %8433 = vst [vmem:[#allocation184_spill] sm:$0xff] %v6450_v44  ;;  %v8440_v44 = vld [vmem:[#allocation41_spill] sm:$0xff] }
 0x117   :  { %8436 = vst [vmem:[#allocation187_spill] sm:$0xff] %v6458_v61  ;;  %1954 = vmatpush.bf16.msra.mxu3 %v5946_v20  ;;  %v8443_v61 = vld [vmem:[#allocation46_spill] sm:$0xff]  ;;  %v8456_v20 = vld [vmem:[#allocation53_spill] sm:$0xff] }
 0x118   :  { %v6452_v57 = vpop.f32.mrf.mxu0  ;;  %1929 = vmatpush.bf16.msra.mxu1 %v5954_v36  ;;  %1917 = vmatpush.bf16.msra.mxu0 %v5965_v47  ;;  %v8454_v36 = vld [vmem:[#allocation51_spill] sm:$0xff] }
 0x119   :  { %8434 = vst [vmem:[#allocation185_spill] sm:$0xff] %v6452_v57  ;;  %v8445_v57 = vld [vmem:[#allocation48_spill] sm:$0xff] }
 0x11a   :  { %1942 = vmatpush.bf16.msra.mxu2 %v5956_v37 }
 0x11b   :  { %v703_v3 = vpop.f32.mrf.mxu3  ;;  %1955 = vmatpush.bf16.msra.mxu3 %v5959_v38  ;;  %v8449_v38 = vld [vmem:[#allocation52_spill] sm:$0xff] }
 0x11c   :  { %v6456_v58 = vadd.f32 %v703_v3, %v6408_v0  ;;  %1962 = vmatpush.bf16.msrb.mxu0 %v5976_v2  ;;  %v6468_v3 = vpop.f32.mrf.mxu2  ;;  %1930 = vmatpush.bf16.msra.mxu1 %v5969_v53  ;;  %v8447_v53 = vld [vmem:[#allocation50_spill] sm:$0xff] }
 0x11d   :  { %8437 = vst [vmem:[#allocation188_spill] sm:$0xff] %v6468_v3  ;;  %v8444_v3 = vld [vmem:[#allocation45_spill] sm:$0xff] }
 0x11e   :  { %8435 = vst [vmem:[#allocation186_spill] sm:$0xff] %v6456_v58  ;;  %1943 = vmatpush.bf16.msra.mxu2 %v5971_v54  ;;  %v650_v58 = vpop.f32.mrf.mxu1 }
 0x11f   :  { %1956 = vmatpush.bf16.msra.mxu3 %v8440_v44  ;;  %v6480_v23 = vadd.f32 %v650_v58, %v6381_v33 }
 0x120   :  { %v621_v12 = vpop.f32.mrf.mxu0  ;;  %1975 = vmatpush.bf16.msrb.mxu1 %v8441_v6  ;;  %1963 = vmatpush.bf16.msrb.mxu0 %v8443_v61 }
 0x121   :  { %v6475_v45 = vadd.f32 %v621_v12, %v6378_v29  ;;  %8442 = vst [vmem:[#allocation191_spill] sm:$0xff] %v6480_v23  ;;  %v8448_v12 = vld [vmem:[#allocation49_spill] sm:$0xff] }
 0x122   :  { %1988 = vmatpush.bf16.msrb.mxu2 %v5981_v9 }
 0x123   :  { %v6471_v25 = vpop.f32.mrf.mxu3  ;;  %8439 = vst [vmem:[#allocation190_spill] sm:$0xff] %v6475_v45  ;;  %2001 = vmatpush.bf16.msrb.mxu3 %v8444_v3 }
 0x124   :  { %8438 = vst [vmem:[#allocation189_spill] sm:$0xff] %v6471_v25  ;;  %v8446_v25 = vld [vmem:[#allocation47_spill] sm:$0xff]  ;;  %1964 = vmatpush.bf16.msrb.mxu0 %v8447_v53  ;;  %v679_v45 = vpop.f32.mrf.mxu2 }
 0x125   :  { %1976 = vmatpush.bf16.msrb.mxu1 %v8446_v25  ;;  %v6490_v6 = vadd.f32 %v679_v45, %v6404_v48  ;;  %v8455_v25 = vld [vmem:[#allocation54_spill] sm:$0xff] }
 0x126   :  { %1989 = vmatpush.bf16.msrb.mxu2 %v8445_v57  ;;  %v6497_v3 = vpop.f32.mrf.mxu1  ;;  %v8459_v45 = vld [vmem:[#allocation58_spill] sm:$0xff] }
 0x127   :  { %2002 = vmatpush.bf16.msrb.mxu3 %v8448_v12  ;;  %8450 = vst [vmem:[#allocation192_spill] sm:$0xff] %v6490_v6  ;;  %v8457_v12 = vld [vmem:[#allocation56_spill] sm:$0xff]  ;;  %v8460_v6 = vld [vmem:[#allocation57_spill] sm:$0xff] }
 0x128   :  { %v6492_v23 = vpop.f32.mrf.mxu0  ;;  %8453 = vst [vmem:[#allocation195_spill] sm:$0xff] %v6497_v3  ;;  %1965 = vmatpush.bf16.msrb.mxu0 %v8455_v25 }
 0x129   :  { %8451 = vst [vmem:[#allocation193_spill] sm:$0xff] %v6492_v23  ;;  %1977 = vmatpush.bf16.msrb.mxu1 %v8454_v36 }
 0x12a   :  { %1990 = vmatpush.bf16.msrb.mxu2 %v8449_v38 }
 0x12b   :  { %v708_v58 = vpop.f32.mrf.mxu3  ;;  %2003 = vmatpush.bf16.msrb.mxu3 %v8456_v20  ;;  %v8465_v20 = vld [vmem:[#allocation59_spill] sm:$0xff] }
 0x12c   :  { %v6495_v44 = vadd.f32 %v708_v58, %v6408_v0  ;;  %1966 = vmatpush.bf16.msrb.mxu0 %v8459_v45  ;;  %v6506_v23 = vpop.f32.mrf.mxu2  ;;  %v8462_v58 = vld [vmem:[#allocation60_spill] sm:$0xff] }
 0x12d   :  { %1978 = vmatpush.bf16.msrb.mxu1 %v8458_v18  ;;  %8461 = vst [vmem:[#allocation196_spill] sm:$0xff] %v6506_v23  ;;  %v8467_v18 = vld [vmem:[#allocation62_spill] sm:$0xff]  ;;  %v8470_v23 = vld [vmem:[#allocation63_spill] sm:$0xff] }
 0x12e   :  { %8452 = vst [vmem:[#allocation194_spill] sm:$0xff] %v6495_v44  ;;  %1991 = vmatpush.bf16.msrb.mxu2 %v8457_v12  ;;  %v655_v5 = vpop.f32.mrf.mxu1 }
 0x12f   :  { %2004 = vmatpush.bf16.msrb.mxu3 %v8460_v6  ;;  %v6516_v60 = vadd.f32 %v655_v5, %v6381_v33  ;;  %v8469_v6 = vld [vmem:[#allocation64_spill] sm:$0xff] }
 0x130   :  { %v626_v3 = vpop.f32.mrf.mxu0  ;;  %1967 = vmatpush.bf16.msrb.mxu0 %v8467_v18  ;;  %v8482_v18 = vld [vmem:[#allocation74_spill] sm:$0xff] }
 0x131   :  { %v6512_v36 = vadd.f32 %v626_v3, %v6378_v29  ;;  %1979 = vmatpush.bf16.msrb.mxu1 %v8465_v20  ;;  %8466 = vst [vmem:[#allocation199_spill] sm:$0xff] %v6516_v60  ;;  %v496_v30 = vadd.f32 %v8482_v18, %v6142_v8 }
 0x132   :  { %1992 = vmatpush.bf16.msrb.mxu2 %v8462_v58 }
 0x133   :  { %v6509_v44 = vpop.f32.mrf.mxu3  ;;  %8464 = vst [vmem:[#allocation198_spill] sm:$0xff] %v6512_v36  ;;  %2005 = vmatpush.bf16.msrb.mxu3 %v8468_v55  ;;  %v8473_v36 = vld [vmem:[#allocation68_spill] sm:$0xff] }
 0x134   :  { %8463 = vst [vmem:[#allocation197_spill] sm:$0xff] %v6509_v44  ;;  %1968 = vmatpush.bf16.msrb.mxu0 %v8471_v50  ;;  %v8472_v44 = vld [vmem:[#allocation65_spill] sm:$0xff]  ;;  %v684_v3 = vpop.f32.mrf.mxu2 }
 0x135   :  { %1980 = vmatpush.bf16.msrb.mxu1 %v8470_v23  ;;  %v6526_v20 = vadd.f32 %v684_v3, %v6404_v48  ;;  %v8477_v23 = vld [vmem:[#allocation70_spill] sm:$0xff]  ;;  %v8478_v50 = vld [vmem:[#allocation69_spill] sm:$0xff] }
 0x136   :  { %1993 = vmatpush.bf16.msrb.mxu2 %v8469_v6  ;;  %v6533_v55 = vpop.f32.mrf.mxu1  ;;  %v8481_v3 = vld [vmem:[#allocation73_spill] sm:$0xff] }
 0x137   :  { %2006 = vmatpush.bf16.msrb.mxu3 %v8472_v44  ;;  %8474 = vst [vmem:[#allocation200_spill] sm:$0xff] %v6526_v20  ;;  %v8479_v44 = vld [vmem:[#allocation72_spill] sm:$0xff] }
 0x138   :  { %v6528_v60 = vpop.f32.mrf.mxu0  ;;  %1969 = vmatpush.bf16.msrb.mxu0 %v8477_v23 }
 0x139   :  { %1981 = vmatpush.bf16.msrb.mxu1 %v8476_v39 }
 0x13a   :  { %1994 = vmatpush.bf16.msrb.mxu2 %v8473_v36  ;;  %v8480_v36 = vld [vmem:[#allocation71_spill] sm:$0xff] }
 0x13b   :  { %v713_v5 = vpop.f32.mrf.mxu3  ;;  %2007 = vmatpush.bf16.msrb.mxu3 %v8478_v50 }
 0x13c   :  { %v6531_v41 = vadd.f32 %v713_v5, %v6408_v0  ;;  %v6541_v20 = vpop.f32.mrf.mxu2 }
 0x13d   :  { %1982 = vmatpush.bf16.msrb.mxu1 %v8480_v36  ;;  %v8483_v36 = vld [vmem:[#allocation75_spill] sm:$0xff] }
 0x13e   :  { %8475 = vst [vmem:[#allocation201_spill] sm:$0xff] %v6531_v41  ;;  %1995 = vmatpush.bf16.msrb.mxu2 %v8479_v44  ;;  %v1572_v41 = vpop.f32.mrf.mxu1  ;;  %v525_v45 = vadd.f32 %v8483_v36, %v6159_v62 }
 0x13f   :  { %2008 = vmatpush.bf16.msrb.mxu3 %v8481_v3 }
 0x140   :  { %v1559_v5 = vpop.f32.mrf.mxu0 }
 0x141   :  { %v1573_v39 = vadd.f32 %v1572_v41, %v1559_v5  ;;  %v8484_v41 = vld [vmem:[#allocation83_spill] sm:$0xff] }
 0x143   :  { %v6543_v6 = vpop.f32.mrf.mxu3  ;;  %v1765_v22 = vadd.f32 %v1573_v39, %v496_v30 }
 0x144   :  { %v1585_v58 = vpop.f32.mrf.mxu2 }
 0x145   :  { %v5246_v23 = vmul.f32 -1.442695, %v1765_v22 }
 0x146   :  { %v1574_v17 = vpop.f32.mrf.mxu1 }
 0x147   :  { %5495 = vpow2.f32 %v5246_v23 }
 0x148   :  { %v1561_v44 = vpop.f32.mrf.mxu0 }
 0x149   :  { %v554_v44 = vadd.f32 %v8484_v41, %v6185_v63 }
 0x14b   :  { %v1598_v50 = vpop.f32.mrf.mxu3 }
 0x14c   :  { %v1599_v3 = vadd.f32 %v1598_v50, %v1585_v58  ;;  %v1587_v25 = vpop.f32.mrf.mxu2 }
 0x14d   :  { %v5496_v32 = vpop.eup %5495 }
 0x14e   :  { %v1766_v11 = vadd.f32 %v1599_v3, %v525_v45  ;;  %v1786_v12 = vadd.f32 1.0, %v5496_v32  ;;  %v1624_v30 = vpop.f32.mrf.mxu1  ;;  %v8485_v32 = vld [vmem:[#allocation85_spill] sm:$0xff] }
 0x150   :  { %v5248_v43 = vmul.f32 -1.442695, %v1766_v11  ;;  %v1611_v18 = vpop.f32.mrf.mxu0  ;;  %v1799_v3 = vand.u32 2147483648, %v1786_v12  ;;  %v1797_v41 = vand.u32 2147483647, %v1786_v12  ;;  %vm1793_vm1 = vweird.f32 %v1786_v12 }
 0x151   :  { %v1625_v22 = vadd.f32 %v1624_v30, %v1611_v18 }
 0x152   :  { %5497 = vpow2.f32 %v5248_v43  ;;  %v583_v43 = vadd.f32 %v8485_v32, %v6188_v14  ;;  %v1800_v62 = vor.u32 1.1754944e-38, %v1799_v3  ;;  %vm1798_vm3 = vcmp.eq.f32.partialorder %v1797_v41, 8.507059e+37 }
 0x153   :  { %v1600_v28 = vpop.f32.mrf.mxu3  ;;  %5499 = vrcp.f32 %v1786_v12  ;;  %v1767_v36 = vadd.f32 %v1625_v22, %v554_v44  ;;  %v629_v3 = vadd.f32 %v6528_v60, %v6378_v29 }
 0x154   :  { %v1637_v50 = vpop.f32.mrf.mxu2 }
 0x156   :  { %v1626_v25 = vpop.f32.mrf.mxu1 }
 0x158   :  { %v5498_v39 = vpop.eup %5497  ;;  %v1613_v45 = vpop.f32.mrf.mxu0 }
 0x159   :  { %v1824_v23 = vadd.f32 1.0, %v5498_v39  ;;  %v5500_v5 = vpop.eup %5499 }
 0x15a   :  { %v1789_v17 = vmul.f32 %v5500_v5, %v1786_v12  ;;  %vm1794_vm0 = vweird.f32 %v5500_v5 }
 0x15b   :  { %5501 = vrcp.f32 %v1824_v23  ;;  %v1650_v11 = vpop.f32.mrf.mxu3  ;;  %vm1795_vm2 = vmor %vm1793_vm1, %vm1794_vm0  ;;  %vm1831_vm5 = vweird.f32 %v1824_v23 }
 0x15c   :  { %v1651_v28 = vadd.f32 %v1650_v11, %v1637_v50  ;;  %v1790_v58 = vsub.f32 1.0, %v1789_v17  ;;  %5503 = vtanh.f32 %v1767_v36  ;;  %v1639_v45 = vpop.f32.mrf.mxu2  ;;  %v1837_v36 = vand.u32 2147483648, %v1824_v23 }
 0x15e   :  { %v1768_v18 = vadd.f32 %v1651_v28, %v583_v43  ;;  %v1791_v30 = vmul.f32 %v5500_v5, %v1790_v58  ;;  %v1835_v58 = vand.u32 2147483647, %v1824_v23 }
 0x160   :  { %v5250_v39 = vmul.f32 -1.442695, %v1768_v18  ;;  %v1792_v22 = vadd.f32 %v5500_v5, %v1791_v30  ;;  %v1663_v28 = vpop.f32.mrf.mxu0  ;;  %v1676_v18 = vpop.f32.mrf.mxu1  ;;  %vm1836_vm7 = vcmp.eq.f32.partialorder %v1835_v58, 8.507059e+37 }
 0x161   :  { %v5502_v63 = vpop.eup %5501  ;;  %v1677_v30 = vadd.f32 %v1676_v18, %v1663_v28 }
 0x162   :  { %v1827_v44 = vmul.f32 %v5502_v63, %v1824_v23  ;;  %5505 = vpow2.f32 %v5250_v39  ;;  %v1796_v8 = vsel %vm1795_vm2, %v5500_v5, %v1792_v22  ;;  %v5504_v11 = vpop.eup %5503  ;;  %vm1832_vm4 = vweird.f32 %v5502_v63 }
 0x163   :  { %v1652_v50 = vpop.f32.mrf.mxu3  ;;  %v1801_v32 = vsel %vm1798_vm3, %v1800_v62, %v1796_v8  ;;  %v1838_v5 = vor.u32 1.1754944e-38, %v1837_v36  ;;  %vm1833_vm6 = vmor %vm1831_vm5, %vm1832_vm4  ;;  %v1776_v62 = vadd.f32 %v1677_v30, %v629_v3 }
 0x164   :  { %v1828_v17 = vsub.f32 1.0, %v1827_v44  ;;  %v1898_v43 = vmul.f32 %v5504_v11, %v1801_v32  ;;  %v1689_v45 = vpop.f32.mrf.mxu2 }
 0x165   :  { %v5247_v60 = vmul.f32 -1.442695, %v1776_v62 }
 0x166   :  { %v1829_v25 = vmul.f32 %v5502_v63, %v1828_v17  ;;  %v658_v17 = vadd.f32 %v6533_v55, %v6381_v33  ;;  %v687_v33 = vadd.f32 %v6541_v20, %v6404_v48 }
 0x168   :  { %v5506_v12 = vpop.eup %5505  ;;  %v1830_v39 = vadd.f32 %v5502_v63, %v1829_v25  ;;  %v1665_v11 = vpop.f32.mrf.mxu0 }
 0x169   :  { %v1864_v41 = vadd.f32 1.0, %v5506_v12  ;;  %v1678_v28 = vpop.f32.mrf.mxu1 }
 0x16a   :  { %v1834_v22 = vsel %vm1833_vm6, %v5502_v63, %v1830_v39 }
 0x16b   :  { %v1839_v8 = vsel %vm1836_vm7, %v1838_v5, %v1834_v22  ;;  %5507 = vrcp.f32 %v1864_v41  ;;  %v1702_v50 = vpop.f32.mrf.mxu3  ;;  %v1877_v12 = vand.u32 2147483648, %v1864_v41  ;;  %v1875_v55 = vand.u32 2147483647, %v1864_v41 }
 0x16c   :  { %v1896_v44 = vmul.f32 0.0, %v1839_v8  ;;  %v1703_v23 = vadd.f32 %v1702_v50, %v1689_v45  ;;  %5509 = vpow2.f32 %v5247_v60  ;;  %v1691_v30 = vpop.f32.mrf.mxu2  ;;  %vm1871_vm9 = vweird.f32 %v1864_v41 }
 0x16d   :  { %v1878_v22 = vor.u32 1.1754944e-38, %v1877_v12  ;;  %vm1876_vm11 = vcmp.eq.f32.partialorder %v1875_v55, 8.507059e+37  ;;  %v8492_v55 = vld [vmem:[#allocation90_spill] sm:$0xff] }
 0x16e   :  { %v6557_v32 = vadd.f32 %v1898_v43, %v1896_v44  ;;  %v1777_v36 = vadd.f32 %v1703_v23, %v658_v17  ;;  %v8488_v23 = vld [vmem:[#allocation78_spill] sm:$0xff] }
 0x170   :  { %v5249_v63 = vmul.f32 -1.442695, %v1777_v36 }
 0x171   :  { %v5508_v25 = vpop.eup %5507 }
 0x172   :  { %v1867_v18 = vmul.f32 %v5508_v25, %v1864_v41  ;;  %5511 = vpow2.f32 %v5249_v63  ;;  %vm1872_vm8 = vweird.f32 %v5508_v25  ;;  %v5510_v43 = vpop.eup %5509  ;;  %v8487_v41 = vld [vmem:[#allocation76_spill] sm:$0xff] }
 0x173   :  { %5513 = vtanh.f32 %v6557_v32  ;;  %v1704_v3 = vpop.f32.mrf.mxu3  ;;  %vm1873_vm10 = vmor %vm1871_vm9, %vm1872_vm8  ;;  %v6560_v50 = vadd.f32 1.0, %v5510_v43  ;;  %v8489_v63 = vld [vmem:[#allocation80_spill] sm:$0xff] }
 0x174   :  { %v1868_v58 = vsub.f32 1.0, %v1867_v18 }
 0x175   :  { %vm1808_vm0 = vweird.f32 %v6560_v50 }
 0x176   :  { %v1869_v39 = vmul.f32 %v5508_v25, %v1868_v58  ;;  %v8490_v58 = vld [vmem:[#allocation82_spill] sm:$0xff] }
 0x178   :  { %v1870_v5 = vadd.f32 %v5508_v25, %v1869_v39  ;;  %v5512_v62 = vpop.eup %5511  ;;  %v1715_v28 = vpop.f32.mrf.mxu0  ;;  %v8491_v39 = vld [vmem:[#allocation88_spill] sm:$0xff] }
 0x179   :  { %v5514_v44 = vpop.eup %5513  ;;  %v6562_v11 = vadd.f32 1.0, %v5512_v62  ;;  %v716_v62 = vadd.f32 %v6543_v6, %v6408_v0 }
 0x17a   :  { %v1874_v8 = vsel %vm1873_vm10, %v5508_v25, %v1870_v5 }
 0x17b   :  { %v1879_v45 = vsel %vm1876_vm11, %v1878_v22, %v1874_v8  ;;  %5515 = vrcp.f32 %v6562_v11  ;;  %vm1846_vm13 = vweird.f32 %v6562_v11 }
 0x17c   :  { %v6564_v17 = vmul.f32 %v5514_v44, %v1879_v45  ;;  %5517 = vrcp.f32 %v6560_v50  ;;  %v1728_v25 = vpop.f32.mrf.mxu1 }
 0x17d   :  { %v1729_v8 = vadd.f32 %v1728_v25, %v1715_v28  ;;  %v8495_v28 = vld [vmem:[#allocation101_spill] sm:$0xff]  ;;  %v8496_v25 = vld [vmem:[#allocation104_spill] sm:$0xff] }
 0x17e   :  { %8486 = vst [vmem:[#allocation74_spill] sm:$0xff] %v6564_v17  ;;  %v6569_v60 = vpack.c.bf16 %v6564_v17, %v6564_v17 }
 0x180   :  { %1918 = vmatmul.bf16.vlgmr.msra.gmra.mxu0 %v6569_v60  ;;  %1944 = vmatmul.bf16.vlgmr.msra.gmra.mxu2 %v6569_v60  ;;  %v1717_v22 = vpop.f32.mrf.mxu0 }
 0x181   :  { %2014 = vmatpush.bf16.msra.mxu0 %v8487_v41  ;;  %2040 = vmatpush.bf16.msra.mxu2 %v8488_v23  ;;  %v5516_v36 = vpop.eup %5515 }
 0x182   :  { %v5518_v18 = vpop.eup %5517  ;;  %v1842_v30 = vmul.f32 %v5516_v36, %v6562_v11  ;;  %vm1847_vm12 = vweird.f32 %v5516_v36 }
 0x183   :  { %v1804_v12 = vmul.f32 %v5518_v18, %v6560_v50  ;;  %vm1809_vm14 = vweird.f32 %v5518_v18  ;;  %vm1848_vm15 = vmor %vm1846_vm13, %vm1847_vm12 }
 0x184   :  { %v1741_v3 = vpop.f32.mrf.mxu2  ;;  %v1843_v43 = vsub.f32 1.0, %v1842_v30  ;;  %v1730_v45 = vpop.f32.mrf.mxu1  ;;  %vm1810_vm1 = vmor %vm1808_vm0, %vm1809_vm14 }
 0x185   :  { %2015 = vmatpush.bf16.msra.mxu0 %v8489_v63  ;;  %2041 = vmatpush.bf16.msra.mxu2 %v8490_v58  ;;  %v1754_v5 = vpop.f32.mrf.mxu3  ;;  %v1805_v17 = vsub.f32 1.0, %v1804_v12  ;;  %v8493_v58 = vld [vmem:[#allocation93_spill] sm:$0xff]  ;;  %v8494_v63 = vld [vmem:[#allocation95_spill] sm:$0xff] }
 0x186   :  { %v1755_v44 = vadd.f32 %v1754_v5, %v1741_v3  ;;  %v1852_v3 = vand.u32 2147483648, %v6562_v11  ;;  %v8498_v5 = vld [vmem:[#allocation110_spill] sm:$0xff] }
 0x187   :  { %v1806_v23 = vmul.f32 %v5518_v18, %v1805_v17  ;;  %v1814_v17 = vand.u32 2147483648, %v6560_v50 }
 0x188   :  { %v1779_v29 = vadd.f32 %v1755_v44, %v716_v62 }
 0x189   :  { %2016 = vmatpush.bf16.msra.mxu0 %v8491_v39  ;;  %2042 = vmatpush.bf16.msra.mxu2 %v8492_v55  ;;  %v1844_v39 = vmul.f32 %v5516_v36, %v1843_v43  ;;  %v1778_v55 = vadd.f32 %v1729_v8, %v687_v33  ;;  %v1850_v33 = vand.u32 2147483647, %v6562_v11  ;;  %v8497_v43 = vld [vmem:[#allocation108_spill] sm:$0xff]  ;;  %v1815_v11 = vor.u32 1.1754944e-38, %v1814_v17 }
 0x18a   :  { %v5251_v30 = vmul.f32 -1.442695, %v1779_v29  ;;  %v1807_v29 = vadd.f32 %v5518_v18, %v1806_v23 }
 0x18b   :  { %v1845_v20 = vadd.f32 %v5516_v36, %v1844_v39  ;;  %v1812_v39 = vand.u32 2147483647, %v6560_v50  ;;  %vm1851_vm2 = vcmp.eq.f32.partialorder %v1850_v33, 8.507059e+37 }
 0x18c   :  { %5519 = vpow2.f32 %v5251_v30  ;;  %v1743_v6 = vpop.f32.mrf.mxu2  ;;  %v1811_v8 = vsel %vm1810_vm1, %v5518_v18, %v1807_v29  ;;  %v8499_v30 = vld [vmem:[#allocation116_spill] sm:$0xff] }
 0x18d   :  { %2017 = vmatpush.bf16.msra.mxu0 %v8493_v58  ;;  %2043 = vmatpush.bf16.msra.mxu2 %v8494_v63  ;;  %v1756_v12 = vpop.f32.mrf.mxu3  ;;  %5521 = vtanh.f32 %v1778_v55  ;;  %v1849_v22 = vsel %vm1848_vm15, %v5516_v36, %v1845_v20  ;;  %v1853_v55 = vor.u32 1.1754944e-38, %v1852_v3  ;;  %v8500_v6 = vld [vmem:[#allocation118_spill] sm:$0xff]  ;;  %vm1813_vm3 = vcmp.eq.f32.partialorder %v1812_v39, 8.507059e+37  ;;  %v8501_v20 = vld [vmem:[#allocation128_spill] sm:$0xff] }
 0x18e   :  { %v1816_v12 = vsel %vm1813_vm3, %v1815_v11, %v1811_v8  ;;  %v8502_v3 = vld [vmem:[#allocation130_spill] sm:$0xff]  ;;  %v8505_v11 = vld [vmem:[#allocation140_spill] sm:$0xff] }
 0x18f   :  { %v1854_v45 = vsel %vm1851_vm2, %v1853_v55, %v1849_v22  ;;  %v8503_v22 = vld [vmem:[#allocation132_spill] sm:$0xff] }
 0x190   :  { %1970 = vmatmul.bf16.vlgmr.msrb.gmra.mxu0 %v6569_v60  ;;  %1996 = vmatmul.bf16.vlgmr.msrb.gmra.mxu2 %v6569_v60  ;;  %v1897_v0 = vmul.f32 0.0, %v1854_v45  ;;  %v8506_v45 = vld [vmem:[#allocation142_spill] sm:$0xff] }
 0x191   :  { %2018 = vmatpush.bf16.msra.mxu0 %v8495_v28  ;;  %2044 = vmatpush.bf16.msra.mxu2 %v8496_v25 }
 0x192   :  { %v5520_v62 = vpop.eup %5519 }
 0x193   :  { %v1865_v23 = vadd.f32 1.0, %v5520_v62  ;;  %v5522_v44 = vpop.eup %5521 }
 0x194   :  { %v1899_v48 = vmul.f32 %v5522_v44, %v1816_v12 }
 0x195   :  { %2019 = vmatpush.bf16.msra.mxu0 %v8497_v43  ;;  %2045 = vmatpush.bf16.msra.mxu2 %v8498_v5  ;;  %5523 = vrcp.f32 %v1865_v23  ;;  %v1892_v33 = vand.u32 2147483648, %v1865_v23  ;;  %v1890_v39 = vand.u32 2147483647, %v1865_v23  ;;  %vm1886_vm5 = vweird.f32 %v1865_v23 }
 0x196   :  { %v6606_v36 = vadd.f32 %v1899_v48, %v1897_v0  ;;  %v8504_v48 = vld [vmem:[#allocation136_spill] sm:$0xff] }
 0x197   :  { %v1893_v62 = vor.u32 1.1754944e-38, %v1892_v33  ;;  %vm1891_vm7 = vcmp.eq.f32.partialorder %v1890_v39, 8.507059e+37  ;;  %v8512_v33 = vld [vmem:[#allocation152_spill] sm:$0xff]  ;;  %v8513_v39 = vld [vmem:[#allocation154_spill] sm:$0xff] }
 0x198   :  { %5525 = vtanh.f32 %v6606_v36 }
 0x199   :  { %2020 = vmatpush.bf16.msra.mxu0 %v8499_v30  ;;  %2046 = vmatpush.bf16.msra.mxu2 %v8500_v6 }
 0x19b   :  { %v5524_v50 = vpop.eup %5523 }
 0x19c   :  { %v1882_v18 = vmul.f32 %v5524_v50, %v1865_v23  ;;  %vm1887_vm4 = vweird.f32 %v5524_v50  ;;  %v8510_v23 = vld [vmem:[#allocation77_spill] sm:$0xff] }
 0x19d   :  { %2021 = vmatpush.bf16.msra.mxu0 %v6226_v49  ;;  %2047 = vmatpush.bf16.msra.mxu2 %v6232_v4  ;;  %vm1888_vm6 = vmor %vm1886_vm5, %vm1887_vm4 }
 0x19e   :  { %v1883_v29 = vsub.f32 1.0, %v1882_v18  ;;  %v5526_v8 = vpop.eup %5525 }
 0x1a0   :  { %2022 = vmatmul.bf16.vlgmr.msra.gmra.mxu0 %v6569_v60  ;;  %2048 = vmatmul.bf16.vlgmr.msra.gmra.mxu2 %v6569_v60  ;;  %v1884_v17 = vmul.f32 %v5524_v50, %v1883_v29  ;;  %v8508_v29 = vld [vmem:[#allocation145_spill] sm:$0xff] }
 0x1a1   :  { %2066 = vmatpush.bf16.msrb.mxu0 %v6239_v16  ;;  %2092 = vmatpush.bf16.msrb.mxu2 %v6245_v31 }
 0x1a2   :  { %v1885_v0 = vadd.f32 %v5524_v50, %v1884_v17  ;;  %v8509_v17 = vld [vmem:[#allocation148_spill] sm:$0xff] }
 0x1a4   :  { %v1889_v55 = vsel %vm1888_vm6, %v5524_v50, %v1885_v0  ;;  %v8511_v50 = vld [vmem:[#allocation79_spill] sm:$0xff]  ;;  %v8514_v0 = vld [vmem:[#allocation81_spill] sm:$0xff] }
 0x1a5   :  { %2067 = vmatpush.bf16.msrb.mxu0 %v8501_v20  ;;  %2093 = vmatpush.bf16.msrb.mxu2 %v8502_v3  ;;  %v1894_v44 = vsel %vm1891_vm7, %v1893_v62, %v1889_v55  ;;  %v8515_v62 = vld [vmem:[#allocation84_spill] sm:$0xff]  ;;  %v8516_v55 = vld [vmem:[#allocation89_spill] sm:$0xff] }
 0x1a6   :  { %v6617_v12 = vmul.f32 %v5526_v8, %v1894_v44  ;;  %v8517_v8 = vld [vmem:[#allocation91_spill] sm:$0xff]  ;;  %v8518_v44 = vld [vmem:[#allocation94_spill] sm:$0xff] }
 0x1a8   :  { %8507 = vst [vmem:[#allocation75_spill] sm:$0xff] %v6617_v12  ;;  %v6621_v18 = vpack.c.bf16 %v6617_v12, %v6617_v12  ;;  %v8519_v12 = vld [vmem:[#allocation97_spill] sm:$0xff] }
 0x1a9   :  { %2068 = vmatpush.bf16.msrb.mxu0 %v8503_v22  ;;  %2094 = vmatpush.bf16.msrb.mxu2 %v8504_v48 }
 0x1aa   :  { %1931 = vmatmul.bf16.vlgmr.msra.gmra.mxu1 %v6621_v18  ;;  %1957 = vmatmul.bf16.vlgmr.msra.gmra.mxu3 %v6621_v18 }
 0x1ab   :  { %2027 = vmatpush.bf16.msra.mxu1 %v8510_v23  ;;  %2053 = vmatpush.bf16.msra.mxu3 %v8511_v50 }
 0x1ad   :  { %2069 = vmatpush.bf16.msrb.mxu0 %v8505_v11  ;;  %2095 = vmatpush.bf16.msrb.mxu2 %v8506_v45 }
 0x1af   :  { %2028 = vmatpush.bf16.msra.mxu1 %v8514_v0  ;;  %2054 = vmatpush.bf16.msra.mxu3 %v8515_v62 }
 0x1b1   :  { %2070 = vmatpush.bf16.msrb.mxu0 %v8508_v29  ;;  %2096 = vmatpush.bf16.msrb.mxu2 %v8509_v17 }
 0x1b3   :  { %2029 = vmatpush.bf16.msra.mxu1 %v8516_v55  ;;  %2055 = vmatpush.bf16.msra.mxu3 %v8517_v8 }
 0x1b5   :  { %2071 = vmatpush.bf16.msrb.mxu0 %v8512_v33  ;;  %2097 = vmatpush.bf16.msrb.mxu2 %v8513_v39 }
 0x1b7   :  { %2030 = vmatpush.bf16.msra.mxu1 %v8518_v44  ;;  %2056 = vmatpush.bf16.msra.mxu3 %v8519_v12 }
 0x1b9   :  { %2072 = vmatpush.bf16.msrb.mxu0 %v6344_v56  ;;  %2098 = vmatpush.bf16.msrb.mxu2 %v6355_v27  ;;  %v8520_v27 = vld [vmem:[#allocation103_spill] sm:$0xff] }
 0x1ba   :  { %1983 = vmatmul.bf16.vlgmr.msrb.gmra.mxu1 %v6621_v18  ;;  %2009 = vmatmul.bf16.vlgmr.msrb.gmra.mxu3 %v6621_v18 }
 0x1bb   :  { %2031 = vmatpush.bf16.msra.mxu1 %v8520_v27 }
 0x1bd   :  { %2073 = vmatpush.bf16.msrb.mxu0 %v6366_v42  ;;  %2099 = vmatpush.bf16.msrb.mxu2 %v6372_v15  ;;  %v8521_v42 = vld [vmem:[#allocation105_spill] sm:$0xff]  ;;  %v8525_v15 = vld [vmem:[#allocation119_spill] sm:$0xff] }
 0x1be   :  { %2057 = vmatpush.bf16.msra.mxu3 %v8521_v42  ;;  %v8526_v42 = vld [vmem:[#allocation120_spill] sm:$0xff] }
 0x1c0   :  { %2074 = vmatmul.bf16.vlgmr.msrb.gmra.mxu0 %v6569_v60  ;;  %2100 = vmatmul.bf16.vlgmr.msrb.gmra.mxu2 %v6569_v60  ;;  %v8524_v60 = vld [vmem:[#allocation117_spill] sm:$0xff] }
 0x1c1   :  { %2272 = vmatpush.bf16.msra.mxu0 %v5871_v7  ;;  %2298 = vmatpush.bf16.msra.mxu2 %v5875_v13  ;;  %v8522_v13 = vld [vmem:[#allocation109_spill] sm:$0xff]  ;;  %v8523_v7 = vld [vmem:[#allocation111_spill] sm:$0xff] }
 0x1c2   :  { %2032 = vmatpush.bf16.msra.mxu1 %v8522_v13  ;;  %2058 = vmatpush.bf16.msra.mxu3 %v8523_v7  ;;  %v8529_v13 = vld [vmem:[#allocation126_spill] sm:$0xff] }
 0x1c5   :  { %2273 = vmatpush.bf16.msra.mxu0 %v5882_v21  ;;  %2299 = vmatpush.bf16.msra.mxu2 %v5887_v26  ;;  %v8527_v21 = vld [vmem:[#allocation122_spill] sm:$0xff]  ;;  %v8528_v26 = vld [vmem:[#allocation124_spill] sm:$0xff] }
 0x1c6   :  { %2033 = vmatpush.bf16.msra.mxu1 %v8524_v60  ;;  %2059 = vmatpush.bf16.msra.mxu3 %v8525_v15  ;;  %v8530_v15 = vld [vmem:[#allocation129_spill] sm:$0xff] }
 0x1c9   :  { %2274 = vmatpush.bf16.msra.mxu0 %v5892_v35  ;;  %2300 = vmatpush.bf16.msra.mxu2 %v5898_v40 }
 0x1ca   :  { %2034 = vmatpush.bf16.msra.mxu1 %v8526_v42  ;;  %2060 = vmatpush.bf16.msra.mxu3 %v8527_v21  ;;  %v8532_v21 = vld [vmem:[#allocation135_spill] sm:$0xff] }
 0x1cd   :  { %2275 = vmatpush.bf16.msra.mxu0 %v5916_v46  ;;  %2301 = vmatpush.bf16.msra.mxu2 %v5920_v51  ;;  %v8531_v46 = vld [vmem:[#allocation131_spill] sm:$0xff] }
 0x1ce   :  { %2079 = vmatpush.bf16.msrb.mxu1 %v8528_v26  ;;  %2105 = vmatpush.bf16.msrb.mxu3 %v8529_v13  ;;  %v8533_v26 = vld [vmem:[#allocation139_spill] sm:$0xff] }
 0x1cf   :  { %2035 = vmatmul.bf16.vlgmr.msra.gmra.mxu1 %v6621_v18  ;;  %2061 = vmatmul.bf16.vlgmr.msra.gmra.mxu3 %v6621_v18 }
 0x1d1   :  { %2276 = vmatpush.bf16.msra.mxu0 %v5927_v59  ;;  %2302 = vmatpush.bf16.msra.mxu2 %v5932_v1  ;;  %v8534_v1 = vld [vmem:[#allocation141_spill] sm:$0xff]  ;;  %v8535_v59 = vld [vmem:[#allocation143_spill] sm:$0xff] }
 0x1d2   :  { %2080 = vmatpush.bf16.msrb.mxu1 %v8530_v15  ;;  %2106 = vmatpush.bf16.msrb.mxu3 %v8531_v46  ;;  %v8586_v15 = vld [vmem:[#allocation98_spill] sm:$0xff] }
 0x1d5   :  { %2277 = vmatpush.bf16.msra.mxu0 %v5937_v10  ;;  %2303 = vmatpush.bf16.msra.mxu2 %v5943_v19  ;;  %v8536_v19 = vld [vmem:[#allocation147_spill] sm:$0xff] }
 0x1d6   :  { %2081 = vmatpush.bf16.msrb.mxu1 %v8532_v21  ;;  %2107 = vmatpush.bf16.msrb.mxu3 %v8533_v26  ;;  %v8537_v21 = vld [vmem:[#allocation150_spill] sm:$0xff] }
 0x1d9   :  { %2278 = vmatpush.bf16.msra.mxu0 %v5952_v34  ;;  %2304 = vmatpush.bf16.msra.mxu2 %v5956_v37  ;;  %v8538_v37 = vld [vmem:[#allocation153_spill] sm:$0xff]  ;;  %v8585_v34 = vld [vmem:[#allocation86_spill] sm:$0xff] }
 0x1da   :  { %2082 = vmatpush.bf16.msrb.mxu1 %v8534_v1  ;;  %2108 = vmatpush.bf16.msrb.mxu3 %v8535_v59  ;;  %v8576_v59 = vld [vmem:[#allocation59_spill] sm:$0xff] }
 0x1dd   :  { %2279 = vmatpush.bf16.msra.mxu0 %v5965_v47  ;;  %2305 = vmatpush.bf16.msra.mxu2 %v5971_v54  ;;  %v8570_v54 = vld [vmem:[#allocation47_spill] sm:$0xff] }
 0x1de   :  { %2083 = vmatpush.bf16.msrb.mxu1 %v8536_v19  ;;  %2109 = vmatpush.bf16.msrb.mxu3 %v8537_v21  ;;  %v8541_v19 = vld [vmem:[#allocation56_spill] sm:$0xff]  ;;  %v8542_v21 = vld [vmem:[#allocation165_spill] sm:$0xff]  ;;  %v8572_v47 = vld [vmem:[#allocation51_spill] sm:$0xff] }
 0x1e1   :  { %2324 = vmatpush.bf16.msrb.mxu0 %v5976_v2  ;;  %2350 = vmatpush.bf16.msrb.mxu2 %v5981_v9  ;;  %v8539_v2 = vld [vmem:[#allocation163_spill] sm:$0xff]  ;;  %v8540_v9 = vld [vmem:[#allocation54_spill] sm:$0xff] }
 0x1e2   :  { %2084 = vmatpush.bf16.msrb.mxu1 %v8538_v37  ;;  %2110 = vmatpush.bf16.msrb.mxu3 %v6341_v52  ;;  %v8545_v37 = vld [vmem:[#allocation13_spill] sm:$0xff]  ;;  %v8546_v52 = vld [vmem:[#allocation58_spill] sm:$0xff] }
 0x1e5   :  { %2325 = vmatpush.bf16.msrb.mxu0 %v8443_v61  ;;  %2351 = vmatpush.bf16.msrb.mxu2 %v8445_v57  ;;  %v8543_v61 = vld [vmem:[#allocation167_spill] sm:$0xff] }
 0x1e6   :  { %2085 = vmatpush.bf16.msrb.mxu1 %v6353_v24  ;;  %2111 = vmatpush.bf16.msrb.mxu3 %v8539_v2  ;;  %v8544_v57 = vld [vmem:[#allocation11_spill] sm:$0xff]  ;;  %v8557_v24 = vld [vmem:[#allocation25_spill] sm:$0xff] }
 0x1e7   :  { %v8548_v2 = vld [vmem:[#allocation15_spill] sm:$0xff] }
 0x1e9   :  { %2326 = vmatpush.bf16.msrb.mxu0 %v8447_v53  ;;  %2352 = vmatpush.bf16.msrb.mxu2 %v8449_v38  ;;  %v8547_v53 = vld [vmem:[#allocation60_spill] sm:$0xff] }
 0x1ea   :  { %2086 = vmatpush.bf16.msrb.mxu1 %v8542_v21  ;;  %2112 = vmatpush.bf16.msrb.mxu3 %v8543_v61  ;;  %v8551_v21 = vld [vmem:[#allocation64_spill] sm:$0xff]  ;;  %v8552_v61 = vld [vmem:[#allocation19_spill] sm:$0xff] }
 0x1ed   :  { %2327 = vmatpush.bf16.msrb.mxu0 %v8540_v9  ;;  %2353 = vmatpush.bf16.msrb.mxu2 %v8541_v19  ;;  %v8549_v9 = vld [vmem:[#allocation17_spill] sm:$0xff]  ;;  %v8550_v19 = vld [vmem:[#allocation62_spill] sm:$0xff] }
 0x1ee   :  { %2285 = vmatpush.bf16.msra.mxu1 %v8544_v57  ;;  %2311 = vmatpush.bf16.msra.mxu3 %v8545_v37  ;;  %v8553_v57 = vld [vmem:[#allocation21_spill] sm:$0xff]  ;;  %v8554_v37 = vld [vmem:[#allocation66_spill] sm:$0xff] }
 0x1ef   :  { %2087 = vmatmul.bf16.vlgmr.msrb.gmra.mxu1 %v6621_v18  ;;  %2113 = vmatmul.bf16.vlgmr.msrb.gmra.mxu3 %v6621_v18  ;;  %v8558_v18 = vld [vmem:[#allocation70_spill] sm:$0xff] }
 0x1f1   :  { %2328 = vmatpush.bf16.msrb.mxu0 %v8546_v52  ;;  %2354 = vmatpush.bf16.msrb.mxu2 %v8547_v53  ;;  %v8555_v52 = vld [vmem:[#allocation68_spill] sm:$0xff]  ;;  %v8556_v53 = vld [vmem:[#allocation23_spill] sm:$0xff] }
 0x1f2   :  { %2286 = vmatpush.bf16.msra.mxu1 %v8548_v2  ;;  %2312 = vmatpush.bf16.msra.mxu3 %v8549_v9  ;;  %v8559_v2 = vld [vmem:[#allocation72_spill] sm:$0xff]  ;;  %v8560_v9 = vld [vmem:[#allocation27_spill] sm:$0xff] }
 0x1f5   :  { %2329 = vmatpush.bf16.msrb.mxu0 %v8550_v19  ;;  %2355 = vmatpush.bf16.msrb.mxu2 %v8551_v21  ;;  %v8561_v19 = vld [vmem:[#allocation29_spill] sm:$0xff] }
 0x1f6   :  { %2287 = vmatpush.bf16.msra.mxu1 %v8552_v61  ;;  %2313 = vmatpush.bf16.msra.mxu3 %v8553_v57  ;;  %v8562_v61 = vld [vmem:[#allocation31_spill] sm:$0xff]  ;;  %v8563_v57 = vld [vmem:[#allocation33_spill] sm:$0xff] }
 0x1f9   :  { %2330 = vmatpush.bf16.msrb.mxu0 %v8554_v37  ;;  %2356 = vmatpush.bf16.msrb.mxu2 %v8555_v52  ;;  %v8564_v37 = vld [vmem:[#allocation35_spill] sm:$0xff]  ;;  %v8565_v52 = vld [vmem:[#allocation37_spill] sm:$0xff] }
 0x1fa   :  { %2288 = vmatpush.bf16.msra.mxu1 %v8556_v53  ;;  %2314 = vmatpush.bf16.msra.mxu3 %v8557_v24  ;;  %v8566_v24 = vld [vmem:[#allocation39_spill] sm:$0xff] }
 0x1fd   :  { %2331 = vmatpush.bf16.msrb.mxu0 %v8558_v18  ;;  %2357 = vmatpush.bf16.msrb.mxu2 %v8559_v2  ;;  %v1919_v21 = vpop.f32.mrf.mxu0  ;;  %v8567_v18 = vld [vmem:[#allocation41_spill] sm:$0xff]  ;;  %v8568_v2 = vld [vmem:[#allocation43_spill] sm:$0xff] }
 0x1fe   :  { %2289 = vmatpush.bf16.msra.mxu1 %v8560_v9  ;;  %2315 = vmatpush.bf16.msra.mxu3 %v8561_v19  ;;  %v8569_v9 = vld [vmem:[#allocation45_spill] sm:$0xff] }
 0x202   :  { %2290 = vmatpush.bf16.msra.mxu1 %v8562_v61  ;;  %2316 = vmatpush.bf16.msra.mxu3 %v8563_v57  ;;  %v8571_v61 = vld [vmem:[#allocation49_spill] sm:$0xff] }
 0x203   :  { %v1945_v53 = vpop.f32.mrf.mxu2 }
 0x205   :  { %v1921_v38 = vpop.f32.mrf.mxu0 }
 0x206   :  { %2291 = vmatpush.bf16.msra.mxu1 %v8564_v37  ;;  %2317 = vmatpush.bf16.msra.mxu3 %v8565_v52  ;;  %v8573_v37 = vld [vmem:[#allocation53_spill] sm:$0xff]  ;;  %v8574_v38 = vld [vmem:[#allocation55_spill] sm:$0xff] }
 0x20a   :  { %2292 = vmatpush.bf16.msra.mxu1 %v8566_v24  ;;  %2318 = vmatpush.bf16.msra.mxu3 %v8567_v18  ;;  %v8575_v24 = vld [vmem:[#allocation57_spill] sm:$0xff] }
 0x20b   :  { %v1947_v19 = vpop.f32.mrf.mxu2 }
 0x20d   :  { %v1971_v57 = vpop.f32.mrf.mxu0 }
 0x20e   :  { %2337 = vmatpush.bf16.msrb.mxu1 %v8568_v2  ;;  %2363 = vmatpush.bf16.msrb.mxu3 %v8569_v9  ;;  %v8577_v2 = vld [vmem:[#allocation61_spill] sm:$0xff]  ;;  %v8578_v9 = vld [vmem:[#allocation63_spill] sm:$0xff] }
 0x212   :  { %2338 = vmatpush.bf16.msrb.mxu1 %v8570_v54  ;;  %2364 = vmatpush.bf16.msrb.mxu3 %v8571_v61  ;;  %v8579_v54 = vld [vmem:[#allocation65_spill] sm:$0xff] }
 0x213   :  { %v1997_v52 = vpop.f32.mrf.mxu2 }
 0x215   :  { %v1973_v18 = vpop.f32.mrf.mxu0 }
 0x216   :  { %2339 = vmatpush.bf16.msrb.mxu1 %v8572_v47  ;;  %2365 = vmatpush.bf16.msrb.mxu3 %v8573_v37  ;;  %v8580_v47 = vld [vmem:[#allocation67_spill] sm:$0xff]  ;;  %v8581_v37 = vld [vmem:[#allocation69_spill] sm:$0xff] }
 0x217   :  { %v8583_v18 = vld [vmem:[#allocation73_spill] sm:$0xff] }
 0x21a   :  { %2340 = vmatpush.bf16.msrb.mxu1 %v8574_v38  ;;  %2366 = vmatpush.bf16.msrb.mxu3 %v8575_v24  ;;  %v8582_v38 = vld [vmem:[#allocation71_spill] sm:$0xff] }
 0x21b   :  { %v1999_v19 = vpop.f32.mrf.mxu2 }
 0x21c   :  { %v8584_v19 = vld [vmem:[#allocation92_spill] sm:$0xff] }
 0x21d   :  { %v6733_v61 = vpop.f32.mrf.mxu0 }
 0x21e   :  { %2341 = vmatpush.bf16.msrb.mxu1 %v8576_v59  ;;  %2367 = vmatpush.bf16.msrb.mxu3 %v8577_v2 }
 0x222   :  { %2342 = vmatpush.bf16.msrb.mxu1 %v8578_v9  ;;  %2368 = vmatpush.bf16.msrb.mxu3 %v8579_v54  ;;  %v498_v9 = vadd.f32 %v8585_v34, %v8584_v19 }
 0x223   :  { %v6737_v1 = vpop.f32.mrf.mxu2 }
 0x225   :  { %v2025_v59 = vpop.f32.mrf.mxu0 }
 0x226   :  { %2343 = vmatpush.bf16.msrb.mxu1 %v8580_v47  ;;  %2369 = vmatpush.bf16.msrb.mxu3 %v8581_v37  ;;  %v8587_v47 = vld [vmem:[#allocation87_spill] sm:$0xff] }
 0x227   :  { %v1932_v2 = vpop.f32.mrf.mxu1  ;;  %v527_v13 = vadd.f32 %v8587_v47, %v8586_v15 }
 0x228   :  { %v1933_v26 = vadd.f32 %v1932_v2, %v1919_v21  ;;  %v8589_v2 = vld [vmem:[#allocation96_spill] sm:$0xff] }
 0x22a   :  { %2344 = vmatpush.bf16.msrb.mxu1 %v8582_v38  ;;  %2370 = vmatpush.bf16.msrb.mxu3 %v8583_v18  ;;  %v2125_v54 = vadd.f32 %v1933_v26, %v498_v9 }
 0x22b   :  { %v2051_v24 = vpop.f32.mrf.mxu2 }
 0x22c   :  { %v5252_v10 = vmul.f32 -1.442695, %v2125_v54  ;;  %v8588_v54 = vld [vmem:[#allocation106_spill] sm:$0xff] }
 0x22d   :  { %v1958_v46 = vpop.f32.mrf.mxu3  ;;  %v556_v9 = vadd.f32 %v8589_v2, %v8588_v54 }
 0x22e   :  { %5527 = vpow2.f32 %v5252_v10  ;;  %v1959_v37 = vadd.f32 %v1958_v46, %v1945_v53 }
 0x22f   :  { %v1934_v42 = vpop.f32.mrf.mxu1 }
 0x230   :  { %v2126_v51 = vadd.f32 %v1959_v37, %v527_v13  ;;  %v8590_v37 = vld [vmem:[#allocation99_spill] sm:$0xff] }
 0x231   :  { %v585_v53 = vadd.f32 %v8590_v37, %v6188_v14  ;;  %v8601_v14 = vld [vmem:[#allocation201_spill] sm:$0xff] }
 0x232   :  { %v5254_v38 = vmul.f32 -1.442695, %v2126_v51 }
 0x234   :  { %v5528_v60 = vpop.eup %5527  ;;  %5529 = vpow2.f32 %v5254_v38 }
 0x235   :  { %v2146_v59 = vadd.f32 1.0, %v5528_v60  ;;  %v1960_v24 = vpop.f32.mrf.mxu3 }
 0x237   :  { %5531 = vrcp.f32 %v2146_v59  ;;  %v1984_v34 = vpop.f32.mrf.mxu1  ;;  %vm2153_vm9 = vweird.f32 %v2146_v59 }
 0x238   :  { %v1985_v21 = vadd.f32 %v1984_v34, %v1971_v57  ;;  %v2159_v34 = vand.u32 2147483648, %v2146_v59 }
 0x23a   :  { %v5530_v26 = vpop.eup %5529  ;;  %v2127_v13 = vadd.f32 %v1985_v21, %v556_v9  ;;  %v2160_v9 = vor.u32 1.1754944e-38, %v2159_v34 }
 0x23b   :  { %v2184_v19 = vadd.f32 1.0, %v5530_v26  ;;  %v2157_v26 = vand.u32 2147483647, %v2146_v59 }
 0x23d   :  { %v6745_v18 = vpop.f32.mrf.mxu0  ;;  %v5532_v46 = vpop.eup %5531  ;;  %5533 = vrcp.f32 %v2184_v19  ;;  %vm2158_vm11 = vcmp.eq.f32.partialorder %v2157_v26, 8.507059e+37  ;;  %vm2191_vm13 = vweird.f32 %v2184_v19 }
 0x23e   :  { %v2010_v51 = vpop.f32.mrf.mxu3  ;;  %v2149_v42 = vmul.f32 %v5532_v46, %v2146_v59  ;;  %5535 = vtanh.f32 %v2127_v13  ;;  %vm2154_vm8 = vweird.f32 %v5532_v46  ;;  %v2195_v13 = vand.u32 2147483647, %v2184_v19  ;;  %v8591_v59 = vld [vmem:[#allocation198_spill] sm:$0xff] }
 0x23f   :  { %v2011_v60 = vadd.f32 %v2010_v51, %v1997_v52  ;;  %v1986_v38 = vpop.f32.mrf.mxu1  ;;  %vm2155_vm10 = vmor %vm2153_vm9, %vm2154_vm8 }
 0x240   :  { %v2150_v24 = vsub.f32 1.0, %v2149_v42  ;;  %vm2196_vm15 = vcmp.eq.f32.partialorder %v2195_v13, 8.507059e+37 }
 0x241   :  { %v2128_v57 = vadd.f32 %v2011_v60, %v585_v53  ;;  %v2197_v53 = vand.u32 2147483648, %v2184_v19 }
 0x242   :  { %v2151_v15 = vmul.f32 %v5532_v46, %v2150_v24 }
 0x243   :  { %v6749_v47 = vpop.f32.mrf.mxu2  ;;  %v5256_v2 = vmul.f32 -1.442695, %v2128_v57  ;;  %v5534_v54 = vpop.eup %5533  ;;  %v2198_v34 = vor.u32 1.1754944e-38, %v2197_v53 }
 0x244   :  { %v2187_v35 = vmul.f32 %v5534_v54, %v2184_v19  ;;  %v2152_v21 = vadd.f32 %v5532_v46, %v2151_v15  ;;  %v5536_v51 = vpop.eup %5535  ;;  %vm2192_vm12 = vweird.f32 %v5534_v54  ;;  %v8592_v19 = vld [vmem:[#allocation199_spill] sm:$0xff] }
 0x245   :  { %v2077_v10 = vpop.f32.mrf.mxu0  ;;  %5537 = vpow2.f32 %v5256_v2  ;;  %vm2193_vm14 = vmor %vm2191_vm13, %vm2192_vm12 }
 0x246   :  { %v2012_v10 = vpop.f32.mrf.mxu3  ;;  %v2188_v37 = vsub.f32 1.0, %v2187_v35  ;;  %v2156_v52 = vsel %vm2155_vm10, %v5532_v46, %v2152_v21 }
 0x247   :  { %v2161_v42 = vsel %vm2158_vm11, %v2160_v9, %v2156_v52 }
 0x248   :  { %v2189_v38 = vmul.f32 %v5534_v54, %v2188_v37  ;;  %v2258_v24 = vmul.f32 %v5536_v51, %v2161_v42 }
 0x24a   :  { %v2190_v15 = vadd.f32 %v5534_v54, %v2189_v38 }
 0x24b   :  { %v2103_v40 = vpop.f32.mrf.mxu2  ;;  %v5538_v57 = vpop.eup %5537 }
 0x24c   :  { %v2036_v60 = vpop.f32.mrf.mxu1  ;;  %v2224_v35 = vadd.f32 1.0, %v5538_v57  ;;  %v2194_v46 = vsel %vm2193_vm14, %v5534_v54, %v2190_v15 }
 0x24d   :  { %v2037_v40 = vadd.f32 %v2036_v60, %v6733_v61  ;;  %v2199_v21 = vsel %vm2196_vm15, %v2198_v34, %v2194_v46 }
 0x24e   :  { %5539 = vrcp.f32 %v2224_v35  ;;  %v2256_v10 = vmul.f32 %v2199_v21, %v6557_v32  ;;  %v2237_v32 = vand.u32 2147483648, %v2224_v35  ;;  %vm2231_vm1 = vweird.f32 %v2224_v35 }
 0x24f   :  { %v2136_v2 = vadd.f32 %v2037_v40, %v8591_v59 }
 0x250   :  { %v6757_v52 = vadd.f32 %v2258_v24, %v2256_v10  ;;  %v2235_v24 = vand.u32 2147483647, %v2224_v35  ;;  %v2238_v59 = vor.u32 1.1754944e-38, %v2237_v32 }
 0x251   :  { %v5253_v26 = vmul.f32 -1.442695, %v2136_v2 }
 0x252   :  { %v2062_v9 = vpop.f32.mrf.mxu3  ;;  %vm2236_vm3 = vcmp.eq.f32.partialorder %v2235_v24, 8.507059e+37  ;;  %v8596_v24 = vld [vmem:[#allocation82_spill] sm:$0xff] }
 0x253   :  { %5541 = vpow2.f32 %v5253_v26  ;;  %v2063_v37 = vadd.f32 %v2062_v9, %v6737_v1 }
 0x254   :  { %v2038_v61 = vpop.f32.mrf.mxu1  ;;  %v5540_v60 = vpop.eup %5539 }
 0x255   :  { %v2137_v51 = vadd.f32 %v2063_v37, %v8592_v19  ;;  %v2227_v38 = vmul.f32 %v5540_v60, %v2224_v35  ;;  %vm2232_vm0 = vweird.f32 %v5540_v60  ;;  %v8593_v19 = vld [vmem:[#allocation78_spill] sm:$0xff] }
 0x256   :  { %vm2233_vm2 = vmor %vm2231_vm1, %vm2232_vm0 }
 0x257   :  { %v5255_v42 = vmul.f32 -1.442695, %v2137_v51  ;;  %v2228_v40 = vsub.f32 1.0, %v2227_v38 }
 0x259   :  { %v5542_v53 = vpop.eup %5541  ;;  %5543 = vpow2.f32 %v5255_v42  ;;  %v2229_v1 = vmul.f32 %v5540_v60, %v2228_v40  ;;  %v8594_v40 = vld [vmem:[#allocation200_spill] sm:$0xff] }
 0x25a   :  { %v6760_v54 = vadd.f32 1.0, %v5542_v53  ;;  %v2064_v13 = vpop.f32.mrf.mxu3  ;;  %5545 = vtanh.f32 %v6757_v52 }
 0x25b   :  { %v2230_v15 = vadd.f32 %v5540_v60, %v2229_v1  ;;  %v8595_v1 = vld [vmem:[#allocation80_spill] sm:$0xff] }
 0x25c   :  { %5547 = vrcp.f32 %v6760_v54  ;;  %vm2168_vm6 = vweird.f32 %v6760_v54 }
 0x25d   :  { %v2234_v46 = vsel %vm2233_vm2, %v5540_v60, %v2230_v15 }
 0x25e   :  { %v2239_v21 = vsel %vm2236_vm3, %v2238_v59, %v2234_v46  ;;  %v2172_v46 = vand.u32 2147483647, %v6760_v54 }
 0x25f   :  { %v5544_v57 = vpop.eup %5543 }
 0x260   :  { %v2185_v2 = vadd.f32 1.0, %v5544_v57  ;;  %v5546_v34 = vpop.eup %5545  ;;  %vm2173_vm11 = vcmp.eq.f32.partialorder %v2172_v46, 8.507059e+37 }
 0x261   :  { %v6764_v9 = vmul.f32 %v5546_v34, %v2239_v21  ;;  %v2174_v34 = vand.u32 2147483648, %v6760_v54 }
 0x262   :  { %v5548_v26 = vpop.eup %5547  ;;  %5549 = vrcp.f32 %v2185_v2  ;;  %v2212_v13 = vand.u32 2147483648, %v2185_v2  ;;  %v2210_v59 = vand.u32 2147483647, %v2185_v2  ;;  %vm2206_vm7 = vweird.f32 %v2185_v2 }
 0x263   :  { %v2164_v10 = vmul.f32 %v5548_v26, %v6760_v54  ;;  %v6769_v37 = vpack.c.bf16 %v6764_v9, %v6764_v9  ;;  %vm2169_vm4 = vweird.f32 %v5548_v26 }
 0x264   :  { %vm6781_vm8 = vmor %vm2168_vm6, %vm2169_vm4  ;;  %vm2211_vm10 = vcmp.eq.f32.partialorder %v2210_v59, 8.507059e+37 }
 0x265   :  { %v2165_v61 = vsub.f32 1.0, %v2164_v10  ;;  %2280 = vmatmul.bf16.vlgmr.msra.gmra.mxu0 %v6769_v37  ;;  %2306 = vmatmul.bf16.vlgmr.msra.gmra.mxu2 %v6769_v37 }
 0x266   :  { %2376 = vmatpush.bf16.msra.mxu0 %v8487_v41  ;;  %2402 = vmatpush.bf16.msra.mxu2 %v8593_v19 }
 0x267   :  { %v2166_v60 = vmul.f32 %v5548_v26, %v2165_v61  ;;  %v2213_v61 = vor.u32 1.1754944e-38, %v2212_v13 }
 0x268   :  { %v5550_v35 = vpop.eup %5549 }
 0x269   :  { %v2202_v51 = vmul.f32 %v5550_v35, %v2185_v2  ;;  %vm2207_vm5 = vweird.f32 %v5550_v35  ;;  %v2167_v15 = vadd.f32 %v5548_v26, %v2166_v60  ;;  %v8600_v60 = vld [vmem:[#allocation90_spill] sm:$0xff] }
 0x26a   :  { %2377 = vmatpush.bf16.msra.mxu0 %v8595_v1  ;;  %2403 = vmatpush.bf16.msra.mxu2 %v8596_v24  ;;  %vm2208_vm9 = vmor %vm2206_vm7, %vm2207_vm5 }
 0x26b   :  { %v2203_v38 = vsub.f32 1.0, %v2202_v51 }
 0x26c   :  { %v2088_v42 = vpop.f32.mrf.mxu1 }
 0x26d   :  { %v2089_v53 = vadd.f32 %v2088_v42, %v6745_v18  ;;  %v2204_v57 = vmul.f32 %v5550_v35, %v2203_v38  ;;  %v8599_v42 = vld [vmem:[#allocation88_spill] sm:$0xff] }
 0x26e   :  { %2378 = vmatpush.bf16.msra.mxu0 %v8599_v42  ;;  %2404 = vmatpush.bf16.msra.mxu2 %v8600_v60 }
 0x26f   :  { %v2138_v32 = vadd.f32 %v2089_v53, %v8594_v40  ;;  %v2205_v21 = vadd.f32 %v5550_v35, %v2204_v57  ;;  %v2171_v53 = vsel %vm6781_vm8, %v5548_v26, %v2167_v15  ;;  %v2175_v40 = vor.u32 1.1754944e-38, %v2174_v34 }
 0x271   :  { %5551 = vtanh.f32 %v2138_v32  ;;  %v2209_v2 = vsel %vm2208_vm9, %v5550_v35, %v2205_v21  ;;  %v2176_v24 = vsel %vm2173_vm11, %v2175_v40, %v2171_v53 }
 0x272   :  { %v2114_v10 = vpop.f32.mrf.mxu3  ;;  %v2214_v32 = vsel %vm2211_vm10, %v2213_v61, %v2209_v2  ;;  %2379 = vmatpush.bf16.msra.mxu0 %v8493_v58  ;;  %2405 = vmatpush.bf16.msra.mxu2 %v8494_v63 }
 0x273   :  { %v2115_v51 = vadd.f32 %v2114_v10, %v6749_v47  ;;  %v2257_v57 = vmul.f32 %v2214_v32, %v6606_v36  ;;  %v8602_v32 = vld [vmem:[#allocation160_spill] sm:$0xff] }
 0x274   :  { %v2090_v38 = vpop.f32.mrf.mxu1 }
 0x275   :  { %v2139_v54 = vadd.f32 %v2115_v51, %v8601_v14  ;;  %2332 = vmatmul.bf16.vlgmr.msrb.gmra.mxu0 %v6769_v37  ;;  %2358 = vmatmul.bf16.vlgmr.msrb.gmra.mxu2 %v6769_v37 }
 0x276   :  { %2380 = vmatpush.bf16.msra.mxu0 %v8495_v28  ;;  %2406 = vmatpush.bf16.msra.mxu2 %v8496_v25 }
 0x277   :  { %v5552_v13 = vpop.eup %5551  ;;  %v5257_v47 = vmul.f32 -1.442695, %v2139_v54  ;;  %v8603_v54 = vld [vmem:[#allocation164_spill] sm:$0xff] }
 0x278   :  { %v2259_v10 = vmul.f32 %v5552_v13, %v2176_v24  ;;  %v8605_v13 = vld [vmem:[#allocation10_spill] sm:$0xff] }
 0x279   :  { %5553 = vpow2.f32 %v5257_v47  ;;  %v8606_v47 = vld [vmem:[#allocation12_spill] sm:$0xff] }
 0x27a   :  { %v6795_v26 = vadd.f32 %v2259_v10, %v2257_v57  ;;  %v2116_v35 = vpop.f32.mrf.mxu3  ;;  %2381 = vmatpush.bf16.msra.mxu0 %v8497_v43  ;;  %2407 = vmatpush.bf16.msra.mxu2 %v8498_v5  ;;  %v8604_v57 = vld [vmem:[#allocation166_spill] sm:$0xff]  ;;  %v8607_v10 = vld [vmem:[#allocation105_spill] sm:$0xff] }
 0x27b   :  { %v8608_v35 = vld [vmem:[#allocation14_spill] sm:$0xff] }
 0x27e   :  { %2382 = vmatpush.bf16.msra.mxu0 %v8499_v30  ;;  %2408 = vmatpush.bf16.msra.mxu2 %v8500_v6 }
 0x27f   :  { %v5554_v14 = vpop.eup %5553 }
 0x280   :  { %v2225_v36 = vadd.f32 1.0, %v5554_v14  ;;  %v8609_v14 = vld [vmem:[#allocation16_spill] sm:$0xff] }
 0x282   :  { %5555 = vrcp.f32 %v2225_v36  ;;  %2383 = vmatpush.bf16.msra.mxu0 %v6226_v49  ;;  %2409 = vmatpush.bf16.msra.mxu2 %v6232_v4  ;;  %v2252_v34 = vand.u32 2147483648, %v2225_v36  ;;  %v2250_v46 = vand.u32 2147483647, %v2225_v36  ;;  %vm2246_vm13 = vweird.f32 %v2225_v36 }
 0x283   :  { %5557 = vtanh.f32 %v6795_v26 }
 0x284   :  { %v2253_v61 = vor.u32 1.1754944e-38, %v2252_v34  ;;  %vm2251_vm15 = vcmp.eq.f32.partialorder %v2250_v46, 8.507059e+37  ;;  %v8614_v34 = vld [vmem:[#allocation119_spill] sm:$0xff]  ;;  %v8616_v46 = vld [vmem:[#allocation24_spill] sm:$0xff] }
 0x285   :  { %2384 = vmatmul.bf16.vlgmr.msra.gmra.mxu0 %v6769_v37  ;;  %2410 = vmatmul.bf16.vlgmr.msra.gmra.mxu2 %v6769_v37 }
 0x286   :  { %2428 = vmatpush.bf16.msrb.mxu0 %v6239_v16  ;;  %2454 = vmatpush.bf16.msrb.mxu2 %v6245_v31 }
 0x288   :  { %v5556_v24 = vpop.eup %5555 }
 0x289   :  { %v2242_v15 = vmul.f32 %v5556_v24, %v2225_v36  ;;  %vm2247_vm12 = vweird.f32 %v5556_v24  ;;  %v5558_v53 = vpop.eup %5557  ;;  %v8610_v36 = vld [vmem:[#allocation109_spill] sm:$0xff] }
 0x28a   :  { %2429 = vmatpush.bf16.msrb.mxu0 %v8501_v20  ;;  %2455 = vmatpush.bf16.msrb.mxu2 %v8502_v3  ;;  %vm2248_vm14 = vmor %vm2246_vm13, %vm2247_vm12 }
 0x28b   :  { %v2243_v59 = vsub.f32 1.0, %v2242_v15  ;;  %v8612_v15 = vld [vmem:[#allocation20_spill] sm:$0xff] }
 0x28d   :  { %v2244_v18 = vmul.f32 %v5556_v24, %v2243_v59  ;;  %v8613_v59 = vld [vmem:[#allocation117_spill] sm:$0xff] }
 0x28e   :  { %2430 = vmatpush.bf16.msrb.mxu0 %v8503_v22  ;;  %2456 = vmatpush.bf16.msrb.mxu2 %v8504_v48 }
 0x28f   :  { %v2245_v21 = vadd.f32 %v5556_v24, %v2244_v18  ;;  %v8615_v18 = vld [vmem:[#allocation22_spill] sm:$0xff] }
 0x291   :  { %v2249_v51 = vsel %vm2248_vm14, %v5556_v24, %v2245_v21  ;;  %v8611_v24 = vld [vmem:[#allocation18_spill] sm:$0xff] }
 0x292   :  { %v2254_v2 = vsel %vm2251_vm15, %v2253_v61, %v2249_v51  ;;  %2431 = vmatpush.bf16.msrb.mxu0 %v8505_v11  ;;  %2457 = vmatpush.bf16.msrb.mxu2 %v8506_v45  ;;  %v8618_v21 = vld [vmem:[#allocation122_spill] sm:$0xff]  ;;  %v8619_v61 = vld [vmem:[#allocation124_spill] sm:$0xff] }
 0x293   :  { %v6816_v38 = vmul.f32 %v5558_v53, %v2254_v2  ;;  %v8620_v51 = vld [vmem:[#allocation126_spill] sm:$0xff]  ;;  %v8622_v2 = vld [vmem:[#allocation28_spill] sm:$0xff] }
 0x294   :  { %v8621_v53 = vld [vmem:[#allocation26_spill] sm:$0xff] }
 0x295   :  { %v6822_v40 = vpack.c.bf16 %v6816_v38, %v6816_v38 }
 0x296   :  { %2432 = vmatpush.bf16.msrb.mxu0 %v8508_v29  ;;  %2458 = vmatpush.bf16.msrb.mxu2 %v8509_v17 }
 0x297   :  { %2293 = vmatmul.bf16.vlgmr.msra.gmra.mxu1 %v6822_v40  ;;  %2319 = vmatmul.bf16.vlgmr.msra.gmra.mxu3 %v6822_v40 }
 0x298   :  { %2389 = vmatpush.bf16.msra.mxu1 %v8510_v23  ;;  %2415 = vmatpush.bf16.msra.mxu3 %v8511_v50 }
 0x29a   :  { %2433 = vmatpush.bf16.msrb.mxu0 %v8512_v33  ;;  %2459 = vmatpush.bf16.msrb.mxu2 %v8513_v39 }
 0x29c   :  { %2390 = vmatpush.bf16.msra.mxu1 %v8514_v0  ;;  %2416 = vmatpush.bf16.msra.mxu3 %v8515_v62 }
 0x29e   :  { %2434 = vmatpush.bf16.msrb.mxu0 %v6344_v56  ;;  %2460 = vmatpush.bf16.msrb.mxu2 %v8602_v32 }
 0x2a0   :  { %2391 = vmatpush.bf16.msra.mxu1 %v8516_v55  ;;  %2417 = vmatpush.bf16.msra.mxu3 %v8517_v8 }
 0x2a2   :  { %2435 = vmatpush.bf16.msrb.mxu0 %v8603_v54  ;;  %2461 = vmatpush.bf16.msrb.mxu2 %v8604_v57 }
 0x2a4   :  { %2392 = vmatpush.bf16.msra.mxu1 %v8518_v44  ;;  %2418 = vmatpush.bf16.msra.mxu3 %v8519_v12 }
 0x2a5   :  { %2436 = vmatmul.bf16.vlgmr.msrb.gmra.mxu0 %v6769_v37  ;;  %2462 = vmatmul.bf16.vlgmr.msrb.gmra.mxu2 %v6769_v37  ;;  %v8617_v37 = vld [vmem:[#allocation120_spill] sm:$0xff] }
 0x2a6   :  { %2634 = vmatpush.bf16.msra.mxu0 %v8605_v13  ;;  %2660 = vmatpush.bf16.msra.mxu2 %v8606_v47 }
 0x2a7   :  { %2345 = vmatmul.bf16.vlgmr.msrb.gmra.mxu1 %v6822_v40  ;;  %2371 = vmatmul.bf16.vlgmr.msrb.gmra.mxu3 %v6822_v40 }
 0x2a8   :  { %2393 = vmatpush.bf16.msra.mxu1 %v8520_v27  ;;  %2419 = vmatpush.bf16.msra.mxu3 %v8607_v10 }
 0x2aa   :  { %2635 = vmatpush.bf16.msra.mxu0 %v8608_v35  ;;  %2661 = vmatpush.bf16.msra.mxu2 %v8609_v14 }
 0x2ac   :  { %2394 = vmatpush.bf16.msra.mxu1 %v8610_v36  ;;  %2420 = vmatpush.bf16.msra.mxu3 %v8523_v7  ;;  %v8679_v7 = vld [vmem:[#allocation51_spill] sm:$0xff] }
 0x2ad   :  { %v8683_v36 = vld [vmem:[#allocation59_spill] sm:$0xff] }
 0x2ae   :  { %2636 = vmatpush.bf16.msra.mxu0 %v8611_v24  ;;  %2662 = vmatpush.bf16.msra.mxu2 %v8612_v15  ;;  %v8633_v15 = vld [vmem:[#allocation38_spill] sm:$0xff] }
 0x2b0   :  { %2395 = vmatpush.bf16.msra.mxu1 %v8613_v59  ;;  %2421 = vmatpush.bf16.msra.mxu3 %v8614_v34  ;;  %v8623_v34 = vld [vmem:[#allocation129_spill] sm:$0xff]  ;;  %v8632_v59 = vld [vmem:[#allocation143_spill] sm:$0xff] }
 0x2b2   :  { %2637 = vmatpush.bf16.msra.mxu0 %v8615_v18  ;;  %2663 = vmatpush.bf16.msra.mxu2 %v8616_v46  ;;  %v8624_v18 = vld [vmem:[#allocation131_spill] sm:$0xff]  ;;  %v8625_v46 = vld [vmem:[#allocation30_spill] sm:$0xff] }
 0x2b4   :  { %2396 = vmatpush.bf16.msra.mxu1 %v8617_v37  ;;  %2422 = vmatpush.bf16.msra.mxu3 %v8618_v21  ;;  %v8626_v37 = vld [vmem:[#allocation32_spill] sm:$0xff]  ;;  %v8627_v21 = vld [vmem:[#allocation135_spill] sm:$0xff] }
 0x2b6   :  { %2638 = vmatpush.bf16.msra.mxu0 %v8621_v53  ;;  %2664 = vmatpush.bf16.msra.mxu2 %v8622_v2  ;;  %v8630_v53 = vld [vmem:[#allocation36_spill] sm:$0xff]  ;;  %v8631_v2 = vld [vmem:[#allocation141_spill] sm:$0xff] }
 0x2b7   :  { %2397 = vmatmul.bf16.vlgmr.msra.gmra.mxu1 %v6822_v40  ;;  %2423 = vmatmul.bf16.vlgmr.msra.gmra.mxu3 %v6822_v40 }
 0x2b8   :  { %2441 = vmatpush.bf16.msrb.mxu1 %v8619_v61  ;;  %2467 = vmatpush.bf16.msrb.mxu3 %v8620_v51  ;;  %v8628_v61 = vld [vmem:[#allocation139_spill] sm:$0xff]  ;;  %v8629_v51 = vld [vmem:[#allocation34_spill] sm:$0xff] }
 0x2ba   :  { %2639 = vmatpush.bf16.msra.mxu0 %v8625_v46  ;;  %2665 = vmatpush.bf16.msra.mxu2 %v8626_v37  ;;  %v8636_v46 = vld [vmem:[#allocation44_spill] sm:$0xff]  ;;  %v8637_v37 = vld [vmem:[#allocation147_spill] sm:$0xff] }
 0x2bc   :  { %2442 = vmatpush.bf16.msrb.mxu1 %v8623_v34  ;;  %2468 = vmatpush.bf16.msrb.mxu3 %v8624_v18  ;;  %v8634_v34 = vld [vmem:[#allocation40_spill] sm:$0xff]  ;;  %v8635_v18 = vld [vmem:[#allocation42_spill] sm:$0xff] }
 0x2be   :  { %2640 = vmatpush.bf16.msra.mxu0 %v8629_v51  ;;  %2666 = vmatpush.bf16.msra.mxu2 %v8630_v53  ;;  %v8640_v51 = vld [vmem:[#allocation48_spill] sm:$0xff]  ;;  %v8641_v53 = vld [vmem:[#allocation153_spill] sm:$0xff] }
 0x2c0   :  { %2443 = vmatpush.bf16.msrb.mxu1 %v8627_v21  ;;  %2469 = vmatpush.bf16.msrb.mxu3 %v8628_v61  ;;  %v8638_v21 = vld [vmem:[#allocation150_spill] sm:$0xff] }
 0x2c1   :  { %v8639_v61 = vld [vmem:[#allocation46_spill] sm:$0xff] }
 0x2c2   :  { %2641 = vmatpush.bf16.msra.mxu0 %v8633_v15  ;;  %2667 = vmatpush.bf16.msra.mxu2 %v8634_v34  ;;  %v8644_v15 = vld [vmem:[#allocation52_spill] sm:$0xff]  ;;  %v8645_v34 = vld [vmem:[#allocation159_spill] sm:$0xff] }
 0x2c4   :  { %2444 = vmatpush.bf16.msrb.mxu1 %v8631_v2  ;;  %2470 = vmatpush.bf16.msrb.mxu3 %v8632_v59  ;;  %v8642_v2 = vld [vmem:[#allocation155_spill] sm:$0xff]  ;;  %v8643_v59 = vld [vmem:[#allocation50_spill] sm:$0xff] }
 0x2c6   :  { %2686 = vmatpush.bf16.msrb.mxu0 %v8635_v18  ;;  %2712 = vmatpush.bf16.msrb.mxu2 %v8636_v46  ;;  %v8646_v18 = vld [vmem:[#allocation163_spill] sm:$0xff]  ;;  %v8647_v46 = vld [vmem:[#allocation54_spill] sm:$0xff] }
 0x2c8   :  { %2445 = vmatpush.bf16.msrb.mxu1 %v8637_v37  ;;  %2471 = vmatpush.bf16.msrb.mxu3 %v8638_v21  ;;  %v8648_v37 = vld [vmem:[#allocation56_spill] sm:$0xff]  ;;  %v8649_v21 = vld [vmem:[#allocation165_spill] sm:$0xff] }
 0x2ca   :  { %2687 = vmatpush.bf16.msrb.mxu0 %v8639_v61  ;;  %2713 = vmatpush.bf16.msrb.mxu2 %v8640_v51  ;;  %v8650_v61 = vld [vmem:[#allocation167_spill] sm:$0xff] }
 0x2cb   :  { %v8651_v51 = vld [vmem:[#allocation11_spill] sm:$0xff] }
 0x2cc   :  { %2446 = vmatpush.bf16.msrb.mxu1 %v8641_v53  ;;  %2472 = vmatpush.bf16.msrb.mxu3 %v8642_v2  ;;  %v8652_v53 = vld [vmem:[#allocation13_spill] sm:$0xff]  ;;  %v8653_v2 = vld [vmem:[#allocation58_spill] sm:$0xff] }
 0x2ce   :  { %2688 = vmatpush.bf16.msrb.mxu0 %v8643_v59  ;;  %2714 = vmatpush.bf16.msrb.mxu2 %v8644_v15  ;;  %v8654_v59 = vld [vmem:[#allocation60_spill] sm:$0xff]  ;;  %v8673_v15 = vld [vmem:[#allocation39_spill] sm:$0xff] }
 0x2d0   :  { %2447 = vmatpush.bf16.msrb.mxu1 %v8645_v34  ;;  %2473 = vmatpush.bf16.msrb.mxu3 %v8646_v18  ;;  %v8655_v18 = vld [vmem:[#allocation15_spill] sm:$0xff]  ;;  %v8664_v34 = vld [vmem:[#allocation25_spill] sm:$0xff] }
 0x2d2   :  { %2689 = vmatpush.bf16.msrb.mxu0 %v8647_v46  ;;  %2715 = vmatpush.bf16.msrb.mxu2 %v8648_v37  ;;  %v8656_v46 = vld [vmem:[#allocation17_spill] sm:$0xff]  ;;  %v8657_v37 = vld [vmem:[#allocation62_spill] sm:$0xff] }
 0x2d4   :  { %2448 = vmatpush.bf16.msrb.mxu1 %v8649_v21  ;;  %2474 = vmatpush.bf16.msrb.mxu3 %v8650_v61  ;;  %v8658_v21 = vld [vmem:[#allocation64_spill] sm:$0xff]  ;;  %v8659_v61 = vld [vmem:[#allocation19_spill] sm:$0xff] }
 0x2d6   :  { %2690 = vmatpush.bf16.msrb.mxu0 %v8653_v2  ;;  %2716 = vmatpush.bf16.msrb.mxu2 %v8654_v59  ;;  %v8662_v2 = vld [vmem:[#allocation68_spill] sm:$0xff]  ;;  %v8663_v59 = vld [vmem:[#allocation23_spill] sm:$0xff] }
 0x2d7   :  { %2449 = vmatmul.bf16.vlgmr.msrb.gmra.mxu1 %v6822_v40  ;;  %2475 = vmatmul.bf16.vlgmr.msrb.gmra.mxu3 %v6822_v40  ;;  %v8665_v40 = vld [vmem:[#allocation70_spill] sm:$0xff] }
 0x2d8   :  { %2647 = vmatpush.bf16.msra.mxu1 %v8651_v51  ;;  %2673 = vmatpush.bf16.msra.mxu3 %v8652_v53  ;;  %v8660_v51 = vld [vmem:[#allocation21_spill] sm:$0xff]  ;;  %v8661_v53 = vld [vmem:[#allocation66_spill] sm:$0xff] }
 0x2da   :  { %2691 = vmatpush.bf16.msrb.mxu0 %v8657_v37  ;;  %2717 = vmatpush.bf16.msrb.mxu2 %v8658_v21  ;;  %v8668_v37 = vld [vmem:[#allocation29_spill] sm:$0xff]  ;;  %v8669_v21 = vld [vmem:[#allocation31_spill] sm:$0xff] }
 0x2dc   :  { %2648 = vmatpush.bf16.msra.mxu1 %v8655_v18  ;;  %2674 = vmatpush.bf16.msra.mxu3 %v8656_v46  ;;  %v8666_v18 = vld [vmem:[#allocation72_spill] sm:$0xff]  ;;  %v8667_v46 = vld [vmem:[#allocation27_spill] sm:$0xff] }
 0x2de   :  { %2692 = vmatpush.bf16.msrb.mxu0 %v8661_v53  ;;  %2718 = vmatpush.bf16.msrb.mxu2 %v8662_v2  ;;  %v8671_v53 = vld [vmem:[#allocation35_spill] sm:$0xff]  ;;  %v8672_v2 = vld [vmem:[#allocation37_spill] sm:$0xff] }
 0x2e0   :  { %2649 = vmatpush.bf16.msra.mxu1 %v8659_v61  ;;  %2675 = vmatpush.bf16.msra.mxu3 %v8660_v51  ;;  %v8670_v61 = vld [vmem:[#allocation33_spill] sm:$0xff] }
 0x2e2   :  { %2693 = vmatpush.bf16.msrb.mxu0 %v8665_v40  ;;  %2719 = vmatpush.bf16.msrb.mxu2 %v8666_v18  ;;  %v2281_v51 = vpop.f32.mrf.mxu0  ;;  %v8675_v18 = vld [vmem:[#allocation43_spill] sm:$0xff] }
 0x2e4   :  { %2650 = vmatpush.bf16.msra.mxu1 %v8663_v59  ;;  %2676 = vmatpush.bf16.msra.mxu3 %v8664_v34  ;;  %v8674_v34 = vld [vmem:[#allocation41_spill] sm:$0xff] }
 0x2e8   :  { %2651 = vmatpush.bf16.msra.mxu1 %v8667_v46  ;;  %2677 = vmatpush.bf16.msra.mxu3 %v8668_v37  ;;  %v2307_v59 = vpop.f32.mrf.mxu2  ;;  %v8676_v46 = vld [vmem:[#allocation45_spill] sm:$0xff]  ;;  %v8677_v37 = vld [vmem:[#allocation47_spill] sm:$0xff] }
 0x2ea   :  { %v2283_v40 = vpop.f32.mrf.mxu0 }
 0x2ec   :  { %2652 = vmatpush.bf16.msra.mxu1 %v8669_v21  ;;  %2678 = vmatpush.bf16.msra.mxu3 %v8670_v61  ;;  %v8678_v21 = vld [vmem:[#allocation49_spill] sm:$0xff] }
 0x2f0   :  { %2653 = vmatpush.bf16.msra.mxu1 %v8671_v53  ;;  %2679 = vmatpush.bf16.msra.mxu3 %v8672_v2  ;;  %v2309_v61 = vpop.f32.mrf.mxu2  ;;  %v8680_v53 = vld [vmem:[#allocation53_spill] sm:$0xff]  ;;  %v8681_v2 = vld [vmem:[#allocation55_spill] sm:$0xff] }
 0x2f2   :  { %v2333_v24 = vpop.f32.mrf.mxu0 }
 0x2f4   :  { %2654 = vmatpush.bf16.msra.mxu1 %v8673_v15  ;;  %2680 = vmatpush.bf16.msra.mxu3 %v8674_v34  ;;  %v8682_v15 = vld [vmem:[#allocation57_spill] sm:$0xff] }
 0x2f8   :  { %2699 = vmatpush.bf16.msrb.mxu1 %v8675_v18  ;;  %2725 = vmatpush.bf16.msrb.mxu3 %v8676_v46  ;;  %v2359_v34 = vpop.f32.mrf.mxu2  ;;  %v8684_v18 = vld [vmem:[#allocation61_spill] sm:$0xff]  ;;  %v8685_v46 = vld [vmem:[#allocation63_spill] sm:$0xff] }
 0x2fa   :  { %v2335_v40 = vpop.f32.mrf.mxu0 }
 0x2fc   :  { %2700 = vmatpush.bf16.msrb.mxu1 %v8677_v37  ;;  %2726 = vmatpush.bf16.msrb.mxu3 %v8678_v21  ;;  %v8686_v37 = vld [vmem:[#allocation65_spill] sm:$0xff] }
 0x300   :  { %2701 = vmatpush.bf16.msrb.mxu1 %v8679_v7  ;;  %2727 = vmatpush.bf16.msrb.mxu3 %v8680_v53  ;;  %v2361_v61 = vpop.f32.mrf.mxu2  ;;  %v8687_v7 = vld [vmem:[#allocation67_spill] sm:$0xff]  ;;  %v8688_v53 = vld [vmem:[#allocation69_spill] sm:$0xff] }
 0x302   :  { %v6934_v21 = vpop.f32.mrf.mxu0 }
 0x304   :  { %2702 = vmatpush.bf16.msrb.mxu1 %v8681_v2  ;;  %2728 = vmatpush.bf16.msrb.mxu3 %v8682_v15  ;;  %v8689_v2 = vld [vmem:[#allocation71_spill] sm:$0xff]  ;;  %v8690_v15 = vld [vmem:[#allocation73_spill] sm:$0xff] }
 0x308   :  { %2703 = vmatpush.bf16.msrb.mxu1 %v8683_v36  ;;  %2729 = vmatpush.bf16.msrb.mxu3 %v8684_v18  ;;  %v6940_v40 = vpop.f32.mrf.mxu2 }
 0x30a   :  { %v2387_v36 = vpop.f32.mrf.mxu0 }
 0x30c   :  { %2704 = vmatpush.bf16.msrb.mxu1 %v8685_v46  ;;  %2730 = vmatpush.bf16.msrb.mxu3 %v8686_v37  ;;  %v8691_v46 = vld [vmem:[#allocation100_spill] sm:$0xff] }
 0x310   :  { %2705 = vmatpush.bf16.msrb.mxu1 %v8687_v7  ;;  %2731 = vmatpush.bf16.msrb.mxu3 %v8688_v53  ;;  %v2413_v35 = vpop.f32.mrf.mxu2  ;;  %v8692_v7 = vld [vmem:[#allocation102_spill] sm:$0xff] }
 0x314   :  { %2706 = vmatpush.bf16.msrb.mxu1 %v8689_v2  ;;  %2732 = vmatpush.bf16.msrb.mxu3 %v8690_v15  ;;  %v2294_v14 = vpop.f32.mrf.mxu1 }
 0x315   :  { %v2295_v18 = vadd.f32 %v2294_v14, %v2281_v51 }
 0x317   :  { %v2487_v10 = vadd.f32 %v2295_v18, %v8691_v46 }
 0x319   :  { %v5258_v37 = vmul.f32 -1.442695, %v2487_v10  ;;  %v8693_v10 = vld [vmem:[#allocation112_spill] sm:$0xff] }
 0x31a   :  { %v2320_v61 = vpop.f32.mrf.mxu3 }
 0x31b   :  { %5559 = vpow2.f32 %v5258_v37  ;;  %v2321_v27 = vadd.f32 %v2320_v61, %v2307_v59 }
 0x31c   :  { %v2296_v47 = vpop.f32.mrf.mxu1 }
 0x31d   :  { %v2488_v13 = vadd.f32 %v2321_v27, %v8692_v7 }
 0x31f   :  { %v5260_v53 = vmul.f32 -1.442695, %v2488_v13 }
 0x321   :  { %v5560_v57 = vpop.eup %5559  ;;  %5561 = vpow2.f32 %v5260_v53 }
 0x322   :  { %v2508_v2 = vadd.f32 1.0, %v5560_v57  ;;  %v2322_v15 = vpop.f32.mrf.mxu3  ;;  %v6944_v12 = vpop.f32.mrf.mxu0  ;;  %v8694_v57 = vld [vmem:[#allocation114_spill] sm:$0xff] }
 0x324   :  { %5563 = vrcp.f32 %v2508_v2  ;;  %v2346_v54 = vpop.f32.mrf.mxu1  ;;  %v2521_v51 = vand.u32 2147483648, %v2508_v2  ;;  %v2519_v53 = vand.u32 2147483647, %v2508_v2  ;;  %vm2515_vm1 = vweird.f32 %v2508_v2 }
 0x325   :  { %v2347_v36 = vadd.f32 %v2346_v54, %v2333_v24 }
 0x326   :  { %vm2520_vm3 = vcmp.eq.f32.partialorder %v2519_v53, 8.507059e+37 }
 0x327   :  { %v5562_v35 = vpop.eup %5561  ;;  %v2489_v46 = vadd.f32 %v2347_v36, %v8693_v10 }
 0x328   :  { %v2546_v14 = vadd.f32 1.0, %v5562_v35  ;;  %v6947_v7 = vpop.f32.mrf.mxu2 }
 0x32a   :  { %v5564_v18 = vpop.eup %5563  ;;  %5565 = vrcp.f32 %v2546_v14  ;;  %v2372_v59 = vpop.f32.mrf.mxu3  ;;  %vm2553_vm5 = vweird.f32 %v2546_v14 }
 0x32b   :  { %v2511_v47 = vmul.f32 %v5564_v18, %v2508_v2  ;;  %v2373_v37 = vadd.f32 %v2372_v59, %v2359_v34  ;;  %5567 = vtanh.f32 %v2489_v46  ;;  %v2439_v54 = vpop.f32.mrf.mxu0  ;;  %vm2516_vm0 = vweird.f32 %v5564_v18 }
 0x32c   :  { %v2348_v27 = vpop.f32.mrf.mxu1  ;;  %vm2517_vm2 = vmor %vm2515_vm1, %vm2516_vm0  ;;  %v2522_v34 = vor.u32 1.1754944e-38, %v2521_v51  ;;  %v2557_v54 = vand.u32 2147483647, %v2546_v14 }
 0x32d   :  { %v2512_v13 = vsub.f32 1.0, %v2511_v47  ;;  %v2490_v15 = vadd.f32 %v2373_v37, %v8694_v57  ;;  %v8695_v37 = vld [vmem:[#allocation168_spill] sm:$0xff]  ;;  %v8696_v27 = vld [vmem:[#allocation193_spill] sm:$0xff]  ;;  %v2559_v57 = vand.u32 2147483648, %v2546_v14 }
 0x32e   :  { %v624_v46 = vadd.f32 %v8696_v27, %v8695_v37  ;;  %vm2558_vm7 = vcmp.eq.f32.partialorder %v2557_v54, 8.507059e+37  ;;  %v8731_v37 = vld [vmem:[#allocation124_spill] sm:$0xff] }
 0x32f   :  { %v2513_v24 = vmul.f32 %v5564_v18, %v2512_v13  ;;  %v5262_v61 = vmul.f32 -1.442695, %v2490_v15 }
 0x330   :  { %v5566_v35 = vpop.eup %5565  ;;  %v2465_v56 = vpop.f32.mrf.mxu2 }
 0x331   :  { %v2549_v44 = vmul.f32 %v5566_v35, %v2546_v14  ;;  %v2514_v32 = vadd.f32 %v5564_v18, %v2513_v24  ;;  %5569 = vpow2.f32 %v5262_v61  ;;  %v5568_v47 = vpop.eup %5567  ;;  %vm2554_vm4 = vweird.f32 %v5566_v35  ;;  %v8697_v56 = vld [vmem:[#allocation169_spill] sm:$0xff] }
 0x332   :  { %v2374_v36 = vpop.f32.mrf.mxu3  ;;  %vm2555_vm6 = vmor %vm2553_vm5, %vm2554_vm4 }
 0x333   :  { %v2550_v10 = vsub.f32 1.0, %v2549_v44  ;;  %v2518_v59 = vsel %vm2517_vm2, %v5564_v18, %v2514_v32  ;;  %v2560_v32 = vor.u32 1.1754944e-38, %v2559_v57 }
 0x334   :  { %v2523_v13 = vsel %vm2520_vm3, %v2522_v34, %v2518_v59  ;;  %v2398_v15 = vpop.f32.mrf.mxu1  ;;  %v8698_v59 = vld [vmem:[#allocation195_spill] sm:$0xff] }
 0x335   :  { %v2551_v8 = vmul.f32 %v5566_v35, %v2550_v10  ;;  %v2620_v24 = vmul.f32 %v5568_v47, %v2523_v13  ;;  %v2399_v2 = vadd.f32 %v2398_v15, %v6934_v21  ;;  %v653_v10 = vadd.f32 %v8698_v59, %v8697_v56  ;;  %v8730_v56 = vld [vmem:[#allocation122_spill] sm:$0xff] }
 0x337   :  { %v5570_v61 = vpop.eup %5569  ;;  %v2552_v51 = vadd.f32 %v5566_v35, %v2551_v8  ;;  %v2498_v44 = vadd.f32 %v2399_v2, %v624_v46 }
 0x338   :  { %v2586_v18 = vadd.f32 1.0, %v5570_v61 }
 0x339   :  { %v2556_v53 = vsel %vm2555_vm6, %v5566_v35, %v2552_v51  ;;  %v5259_v36 = vmul.f32 -1.442695, %v2498_v44 }
 0x33a   :  { %v2561_v27 = vsel %vm2558_vm7, %v2560_v32, %v2556_v53  ;;  %5571 = vrcp.f32 %v2586_v18  ;;  %v2424_v34 = vpop.f32.mrf.mxu3  ;;  %v2599_v51 = vand.u32 2147483648, %v2586_v18  ;;  %vm2593_vm9 = vweird.f32 %v2586_v18 }
 0x33b   :  { %v2618_v47 = vmul.f32 %v2561_v27, %v6757_v52  ;;  %5573 = vpow2.f32 %v5259_v36  ;;  %v2425_v21 = vadd.f32 %v2424_v34, %v6940_v40  ;;  %v2597_v40 = vand.u32 2147483647, %v2586_v18 }
 0x33c   :  { %v2400_v14 = vpop.f32.mrf.mxu1  ;;  %v2600_v32 = vor.u32 1.1754944e-38, %v2599_v51  ;;  %v8700_v51 = vld [vmem:[#allocation174_spill] sm:$0xff] }
 0x33d   :  { %v6957_v8 = vadd.f32 %v2620_v24, %v2618_v47  ;;  %v2499_v46 = vadd.f32 %v2425_v21, %v653_v10  ;;  %vm2598_vm11 = vcmp.eq.f32.partialorder %v2597_v40, 8.507059e+37  ;;  %v8699_v10 = vld [vmem:[#allocation74_spill] sm:$0xff] }
 0x33e   :  { %v2266_v47 = vadd.f32 %v6764_v9, %v8699_v10  ;;  %v2268_v21 = vmax.f32 %v8699_v10, %v6764_v9 }
 0x33f   :  { %v5261_v57 = vmul.f32 -1.442695, %v2499_v46 }
 0x340   :  { %v5572_v13 = vpop.eup %5571 }
 0x341   :  { %v5574_v35 = vpop.eup %5573  ;;  %v2589_v54 = vmul.f32 %v5572_v13, %v2586_v18  ;;  %5575 = vpow2.f32 %v5261_v57  ;;  %vm2594_vm8 = vweird.f32 %v5572_v13 }
 0x342   :  { %v6959_v15 = vadd.f32 1.0, %v5574_v35  ;;  %v2426_v2 = vpop.f32.mrf.mxu3  ;;  %5577 = vtanh.f32 %v6957_v8  ;;  %vm2595_vm10 = vmor %vm2593_vm9, %vm2594_vm8 }
 0x343   :  { %v2590_v61 = vsub.f32 1.0, %v2589_v54 }
 0x344   :  { %5579 = vrcp.f32 %v6959_v15  ;;  %vm2530_vm14 = vweird.f32 %v6959_v15 }
 0x345   :  { %v2591_v52 = vmul.f32 %v5572_v13, %v2590_v61 }
 0x347   :  { %v5576_v24 = vpop.eup %5575  ;;  %v2592_v44 = vadd.f32 %v5572_v13, %v2591_v52  ;;  %v8701_v52 = vld [vmem:[#allocation196_spill] sm:$0xff] }
 0x348   :  { %v2547_v53 = vadd.f32 1.0, %v5576_v24  ;;  %v5578_v36 = vpop.eup %5577  ;;  %v682_v40 = vadd.f32 %v8701_v52, %v8700_v51 }
 0x349   :  { %v2596_v27 = vsel %vm2595_vm10, %v5572_v13, %v2592_v44 }
 0x34a   :  { %v5580_v34 = vpop.eup %5579  ;;  %v2601_v59 = vsel %vm2598_vm11, %v2600_v32, %v2596_v27  ;;  %5581 = vrcp.f32 %v2547_v53  ;;  %v2574_v32 = vand.u32 2147483648, %v2547_v53  ;;  %v8702_v27 = vld [vmem:[#allocation82_spill] sm:$0xff]  ;;  %vm2568_vm15 = vweird.f32 %v2547_v53 }
 0x34b   :  { %v2626_v14 = vmul.f32 %v5578_v36, %v2601_v59  ;;  %v2526_v46 = vmul.f32 %v5580_v34, %v6959_v15  ;;  %vm2531_vm12 = vweird.f32 %v5580_v34 }
 0x34c   :  { %vm6985_vm0 = vmor %vm2530_vm14, %vm2531_vm12 }
 0x34d   :  { %v6968_v57 = vadd.f32 %v2626_v14, %v2266_v47  ;;  %v6970_v18 = vmax.f32 %v2268_v21, %v2626_v14  ;;  %v6972_v35 = vpack.c.bf16 %v2626_v14, %v2626_v14  ;;  %v2527_v13 = vsub.f32 1.0, %v2526_v46 }
 0x34e   :  { %v2572_v47 = vand.u32 2147483647, %v2547_v53  ;;  %v2536_v21 = vand.u32 2147483648, %v6959_v15  ;;  %v2534_v14 = vand.u32 2147483647, %v6959_v15 }
 0x34f   :  { %2642 = vmatmul.bf16.vlgmr.msra.gmra.mxu0 %v6972_v35  ;;  %2668 = vmatmul.bf16.vlgmr.msra.gmra.mxu2 %v6972_v35  ;;  %v2528_v61 = vmul.f32 %v5580_v34, %v2527_v13 }
 0x350   :  { %v5582_v54 = vpop.eup %5581  ;;  %2738 = vmatpush.bf16.msra.mxu0 %v8487_v41  ;;  %2764 = vmatpush.bf16.msra.mxu2 %v8593_v19  ;;  %vm2573_vm2 = vcmp.eq.f32.partialorder %v2572_v47, 8.507059e+37  ;;  %v2537_v15 = vor.u32 1.1754944e-38, %v2536_v21  ;;  %vm2535_vm3 = vcmp.eq.f32.partialorder %v2534_v14, 8.507059e+37 }
 0x351   :  { %v2564_v9 = vmul.f32 %v5582_v54, %v2547_v53  ;;  %vm2569_vm13 = vweird.f32 %v5582_v54  ;;  %v2529_v10 = vadd.f32 %v5580_v34, %v2528_v61  ;;  %v2575_v61 = vor.u32 1.1754944e-38, %v2574_v32 }
 0x352   :  { %vm2570_vm1 = vmor %vm2568_vm15, %vm2569_vm13 }
 0x353   :  { %v2565_v44 = vsub.f32 1.0, %v2564_v9  ;;  %v8705_v9 = vld [vmem:[#allocation175_spill] sm:$0xff]  ;;  %v2533_v53 = vsel %vm6985_vm0, %v5580_v34, %v2529_v10 }
 0x354   :  { %v2450_v2 = vpop.f32.mrf.mxu1  ;;  %2739 = vmatpush.bf16.msra.mxu0 %v8595_v1  ;;  %2765 = vmatpush.bf16.msra.mxu2 %v8702_v27  ;;  %v2538_v32 = vsel %vm2535_vm3, %v2537_v15, %v2533_v53  ;;  %v8707_v53 = vld [vmem:[#allocation75_spill] sm:$0xff] }
 0x355   :  { %v2451_v24 = vadd.f32 %v2450_v2, %v6944_v12  ;;  %v2566_v59 = vmul.f32 %v5582_v54, %v2565_v44  ;;  %v8706_v2 = vld [vmem:[#allocation197_spill] sm:$0xff] }
 0x356   :  { %v711_v52 = vadd.f32 %v8706_v2, %v8705_v9 }
 0x357   :  { %v2500_v36 = vadd.f32 %v2451_v24, %v682_v40  ;;  %v2567_v46 = vadd.f32 %v5582_v54, %v2566_v59 }
 0x358   :  { %2740 = vmatpush.bf16.msra.mxu0 %v8599_v42  ;;  %2766 = vmatpush.bf16.msra.mxu2 %v8600_v60 }
 0x359   :  { %5583 = vtanh.f32 %v2500_v36  ;;  %v2571_v24 = vsel %vm2570_vm1, %v5582_v54, %v2567_v46 }
 0x35a   :  { %v2476_v13 = vpop.f32.mrf.mxu3  ;;  %v2576_v36 = vsel %vm2573_vm2, %v2575_v61, %v2571_v24  ;;  %v2267_v24 = vadd.f32 %v6816_v38, %v8707_v53 }
 0x35b   :  { %v2477_v40 = vadd.f32 %v2476_v13, %v6947_v7  ;;  %v2619_v2 = vmul.f32 %v2576_v36, %v6795_v26 }
 0x35c   :  { %v2452_v44 = vpop.f32.mrf.mxu1  ;;  %2741 = vmatpush.bf16.msra.mxu0 %v8493_v58  ;;  %2767 = vmatpush.bf16.msra.mxu2 %v8494_v63 }
 0x35d   :  { %v2501_v59 = vadd.f32 %v2477_v40, %v711_v52  ;;  %v2269_v44 = vmax.f32 %v8707_v53, %v6816_v38  ;;  %v8708_v38 = vld [vmem:[#allocation91_spill] sm:$0xff]  ;;  %v8725_v53 = vld [vmem:[#allocation117_spill] sm:$0xff] }
 0x35f   :  { %v5584_v9 = vpop.eup %5583  ;;  %v5263_v51 = vmul.f32 -1.442695, %v2501_v59  ;;  %2694 = vmatmul.bf16.vlgmr.msrb.gmra.mxu0 %v6972_v35  ;;  %2720 = vmatmul.bf16.vlgmr.msrb.gmra.mxu2 %v6972_v35 }
 0x360   :  { %v2621_v7 = vmul.f32 %v5584_v9, %v2538_v32  ;;  %2742 = vmatpush.bf16.msra.mxu0 %v8495_v28  ;;  %2768 = vmatpush.bf16.msra.mxu2 %v8496_v25  ;;  %v8709_v32 = vld [vmem:[#allocation156_spill] sm:$0xff] }
 0x361   :  { %5585 = vpow2.f32 %v5263_v51 }
 0x362   :  { %v7000_v12 = vadd.f32 %v2621_v7, %v2619_v2  ;;  %v2478_v34 = vpop.f32.mrf.mxu3  ;;  %v8710_v7 = vld [vmem:[#allocation160_spill] sm:$0xff] }
 0x363   :  { %v8711_v34 = vld [vmem:[#allocation94_spill] sm:$0xff] }
 0x364   :  { %2743 = vmatpush.bf16.msra.mxu0 %v8497_v43  ;;  %2769 = vmatpush.bf16.msra.mxu2 %v8498_v5 }
 0x367   :  { %v5586_v26 = vpop.eup %5585 }
 0x368   :  { %v2587_v54 = vadd.f32 1.0, %v5586_v26  ;;  %2744 = vmatpush.bf16.msra.mxu0 %v8499_v30  ;;  %2770 = vmatpush.bf16.msra.mxu2 %v8500_v6  ;;  %v8712_v26 = vld [vmem:[#allocation97_spill] sm:$0xff] }
 0x36a   :  { %5587 = vrcp.f32 %v2587_v54  ;;  %v2614_v21 = vand.u32 2147483648, %v2587_v54  ;;  %v2612_v46 = vand.u32 2147483647, %v2587_v54  ;;  %vm2608_vm5 = vweird.f32 %v2587_v54 }
 0x36b   :  { %5589 = vtanh.f32 %v7000_v12 }
 0x36c   :  { %2745 = vmatpush.bf16.msra.mxu0 %v6226_v49  ;;  %2771 = vmatpush.bf16.msra.mxu2 %v6232_v4  ;;  %v2615_v9 = vor.u32 1.1754944e-38, %v2614_v21  ;;  %vm2613_vm7 = vcmp.eq.f32.partialorder %v2612_v46, 8.507059e+37  ;;  %v8717_v21 = vld [vmem:[#allocation103_spill] sm:$0xff]  ;;  %v8719_v46 = vld [vmem:[#allocation14_spill] sm:$0xff] }
 0x36f   :  { %2746 = vmatmul.bf16.vlgmr.msra.gmra.mxu0 %v6972_v35  ;;  %2772 = vmatmul.bf16.vlgmr.msra.gmra.mxu2 %v6972_v35 }
 0x370   :  { %v5588_v51 = vpop.eup %5587  ;;  %2790 = vmatpush.bf16.msrb.mxu0 %v6239_v16  ;;  %2816 = vmatpush.bf16.msrb.mxu2 %v6245_v31 }
 0x371   :  { %v2604_v10 = vmul.f32 %v5588_v51, %v2587_v54  ;;  %vm2609_vm4 = vweird.f32 %v5588_v51  ;;  %v5590_v61 = vpop.eup %5589  ;;  %v8713_v54 = vld [vmem:[#allocation164_spill] sm:$0xff] }
 0x372   :  { %vm2610_vm6 = vmor %vm2608_vm5, %vm2609_vm4 }
 0x373   :  { %v2605_v47 = vsub.f32 1.0, %v2604_v10  ;;  %v8715_v10 = vld [vmem:[#allocation10_spill] sm:$0xff] }
 0x374   :  { %2791 = vmatpush.bf16.msrb.mxu0 %v8501_v20  ;;  %2817 = vmatpush.bf16.msrb.mxu2 %v8502_v3 }
 0x375   :  { %v2606_v14 = vmul.f32 %v5588_v51, %v2605_v47  ;;  %v8716_v47 = vld [vmem:[#allocation12_spill] sm:$0xff] }
 0x377   :  { %v2607_v13 = vadd.f32 %v5588_v51, %v2606_v14  ;;  %v8718_v14 = vld [vmem:[#allocation105_spill] sm:$0xff] }
 0x378   :  { %2792 = vmatpush.bf16.msrb.mxu0 %v8503_v22  ;;  %2818 = vmatpush.bf16.msrb.mxu2 %v8504_v48 }
 0x379   :  { %v2611_v52 = vsel %vm2610_vm6, %v5588_v51, %v2607_v13  ;;  %v8714_v51 = vld [vmem:[#allocation166_spill] sm:$0xff]  ;;  %v8720_v13 = vld [vmem:[#allocation16_spill] sm:$0xff] }
 0x37a   :  { %v2616_v40 = vsel %vm2613_vm7, %v2615_v9, %v2611_v52  ;;  %v8721_v9 = vld [vmem:[#allocation109_spill] sm:$0xff]  ;;  %v8722_v52 = vld [vmem:[#allocation111_spill] sm:$0xff] }
 0x37b   :  { %v2627_v15 = vmul.f32 %v5590_v61, %v2616_v40  ;;  %v8723_v61 = vld [vmem:[#allocation18_spill] sm:$0xff]  ;;  %v8724_v40 = vld [vmem:[#allocation20_spill] sm:$0xff] }
 0x37c   :  { %2793 = vmatpush.bf16.msrb.mxu0 %v8505_v11  ;;  %2819 = vmatpush.bf16.msrb.mxu2 %v8506_v45 }
 0x37d   :  { %v7027_v36 = vadd.f32 %v2627_v15, %v2267_v24  ;;  %v7029_v59 = vmax.f32 %v2269_v44, %v2627_v15  ;;  %v7031_v2 = vpack.c.bf16 %v2627_v15, %v2627_v15  ;;  %v8726_v24 = vld [vmem:[#allocation119_spill] sm:$0xff]  ;;  %v8727_v44 = vld [vmem:[#allocation22_spill] sm:$0xff]  ;;  %v8728_v15 = vld [vmem:[#allocation24_spill] sm:$0xff] }
 0x37f   :  { %2655 = vmatmul.bf16.vlgmr.msra.gmra.mxu1 %v7031_v2  ;;  %2681 = vmatmul.bf16.vlgmr.msra.gmra.mxu3 %v7031_v2 }
 0x380   :  { %2751 = vmatpush.bf16.msra.mxu1 %v8510_v23  ;;  %2777 = vmatpush.bf16.msra.mxu3 %v8511_v50 }
 0x381   :  { %2794 = vmatpush.bf16.msrb.mxu0 %v8508_v29  ;;  %2820 = vmatpush.bf16.msrb.mxu2 %v8509_v17 }
 0x384   :  { %2752 = vmatpush.bf16.msra.mxu1 %v8514_v0  ;;  %2778 = vmatpush.bf16.msra.mxu3 %v8515_v62 }
 0x385   :  { %2795 = vmatpush.bf16.msrb.mxu0 %v8512_v33  ;;  %2821 = vmatpush.bf16.msrb.mxu2 %v8513_v39 }
 0x388   :  { %2753 = vmatpush.bf16.msra.mxu1 %v8516_v55  ;;  %2779 = vmatpush.bf16.msra.mxu3 %v8708_v38 }
 0x389   :  { %2796 = vmatpush.bf16.msrb.mxu0 %v8709_v32  ;;  %2822 = vmatpush.bf16.msrb.mxu2 %v8710_v7 }
 0x38c   :  { %2754 = vmatpush.bf16.msra.mxu1 %v8711_v34  ;;  %2780 = vmatpush.bf16.msra.mxu3 %v8712_v26  ;;  %v8805_v26 = vld [vmem:[#allocation98_spill] sm:$0xff] }
 0x38d   :  { %2797 = vmatpush.bf16.msrb.mxu0 %v8713_v54  ;;  %2823 = vmatpush.bf16.msrb.mxu2 %v8714_v51 }
 0x38f   :  { %2707 = vmatmul.bf16.vlgmr.msrb.gmra.mxu1 %v7031_v2  ;;  %2733 = vmatmul.bf16.vlgmr.msrb.gmra.mxu3 %v7031_v2 }
 0x390   :  { %2755 = vmatpush.bf16.msra.mxu1 %v8717_v21  ;;  %2781 = vmatpush.bf16.msra.mxu3 %v8718_v14  ;;  %v8795_v14 = vld [vmem:[#allocation59_spill] sm:$0xff] }
 0x391   :  { %2996 = vmatpush.bf16.msra.mxu0 %v8715_v10  ;;  %3022 = vmatpush.bf16.msra.mxu2 %v8716_v47  ;;  %v8804_v47 = vld [vmem:[#allocation113_spill] sm:$0xff] }
 0x392   :  { %2798 = vmatmul.bf16.vlgmr.msrb.gmra.mxu0 %v6972_v35  ;;  %2824 = vmatmul.bf16.vlgmr.msrb.gmra.mxu2 %v6972_v35  ;;  %v8729_v35 = vld [vmem:[#allocation120_spill] sm:$0xff] }
 0x394   :  { %2756 = vmatpush.bf16.msra.mxu1 %v8721_v9  ;;  %2782 = vmatpush.bf16.msra.mxu3 %v8722_v52  ;;  %v8732_v9 = vld [vmem:[#allocation126_spill] sm:$0xff] }
 0x395   :  { %2997 = vmatpush.bf16.msra.mxu0 %v8719_v46  ;;  %3023 = vmatpush.bf16.msra.mxu2 %v8720_v13  ;;  %v8733_v52 = vld [vmem:[#allocation26_spill] sm:$0xff]  ;;  %v8791_v46 = vld [vmem:[#allocation51_spill] sm:$0xff] }
 0x398   :  { %2757 = vmatpush.bf16.msra.mxu1 %v8725_v53  ;;  %2783 = vmatpush.bf16.msra.mxu3 %v8726_v24  ;;  %v8735_v24 = vld [vmem:[#allocation129_spill] sm:$0xff]  ;;  %v8744_v53 = vld [vmem:[#allocation143_spill] sm:$0xff] }
 0x399   :  { %2998 = vmatpush.bf16.msra.mxu0 %v8723_v61  ;;  %3024 = vmatpush.bf16.msra.mxu2 %v8724_v40  ;;  %v8734_v61 = vld [vmem:[#allocation28_spill] sm:$0xff]  ;;  %v8745_v40 = vld [vmem:[#allocation38_spill] sm:$0xff] }
 0x39c   :  { %2758 = vmatpush.bf16.msra.mxu1 %v8729_v35  ;;  %2784 = vmatpush.bf16.msra.mxu3 %v8730_v56  ;;  %v8738_v35 = vld [vmem:[#allocation32_spill] sm:$0xff]  ;;  %v8739_v56 = vld [vmem:[#allocation135_spill] sm:$0xff] }
 0x39d   :  { %2999 = vmatpush.bf16.msra.mxu0 %v8727_v44  ;;  %3025 = vmatpush.bf16.msra.mxu2 %v8728_v15  ;;  %v8736_v44 = vld [vmem:[#allocation131_spill] sm:$0xff]  ;;  %v8737_v15 = vld [vmem:[#allocation30_spill] sm:$0xff] }
 0x39f   :  { %2759 = vmatmul.bf16.vlgmr.msra.gmra.mxu1 %v7031_v2  ;;  %2785 = vmatmul.bf16.vlgmr.msra.gmra.mxu3 %v7031_v2 }
 0x3a0   :  { %2803 = vmatpush.bf16.msrb.mxu1 %v8731_v37  ;;  %2829 = vmatpush.bf16.msrb.mxu3 %v8732_v9  ;;  %v8740_v37 = vld [vmem:[#allocation139_spill] sm:$0xff]  ;;  %v8741_v9 = vld [vmem:[#allocation34_spill] sm:$0xff] }
 0x3a1   :  { %3000 = vmatpush.bf16.msra.mxu0 %v8733_v52  ;;  %3026 = vmatpush.bf16.msra.mxu2 %v8734_v61  ;;  %v8742_v52 = vld [vmem:[#allocation36_spill] sm:$0xff]  ;;  %v8743_v61 = vld [vmem:[#allocation141_spill] sm:$0xff] }
 0x3a4   :  { %2804 = vmatpush.bf16.msrb.mxu1 %v8735_v24  ;;  %2830 = vmatpush.bf16.msrb.mxu3 %v8736_v44  ;;  %v8746_v24 = vld [vmem:[#allocation40_spill] sm:$0xff]  ;;  %v8747_v44 = vld [vmem:[#allocation42_spill] sm:$0xff] }
 0x3a5   :  { %3001 = vmatpush.bf16.msra.mxu0 %v8737_v15  ;;  %3027 = vmatpush.bf16.msra.mxu2 %v8738_v35  ;;  %v8748_v15 = vld [vmem:[#allocation44_spill] sm:$0xff]  ;;  %v8749_v35 = vld [vmem:[#allocation147_spill] sm:$0xff] }
 0x3a8   :  { %2805 = vmatpush.bf16.msrb.mxu1 %v8739_v56  ;;  %2831 = vmatpush.bf16.msrb.mxu3 %v8740_v37  ;;  %v8750_v56 = vld [vmem:[#allocation150_spill] sm:$0xff] }
 0x3a9   :  { %3002 = vmatpush.bf16.msra.mxu0 %v8741_v9  ;;  %3028 = vmatpush.bf16.msra.mxu2 %v8742_v52  ;;  %v8751_v37 = vld [vmem:[#allocation46_spill] sm:$0xff]  ;;  %v8752_v9 = vld [vmem:[#allocation48_spill] sm:$0xff]  ;;  %v8753_v52 = vld [vmem:[#allocation153_spill] sm:$0xff] }
 0x3ac   :  { %2806 = vmatpush.bf16.msrb.mxu1 %v8743_v61  ;;  %2832 = vmatpush.bf16.msrb.mxu3 %v8744_v53  ;;  %v8754_v61 = vld [vmem:[#allocation155_spill] sm:$0xff]  ;;  %v8755_v53 = vld [vmem:[#allocation50_spill] sm:$0xff] }
 0x3ad   :  { %3003 = vmatpush.bf16.msra.mxu0 %v8745_v40  ;;  %3029 = vmatpush.bf16.msra.mxu2 %v8746_v24  ;;  %v8756_v40 = vld [vmem:[#allocation52_spill] sm:$0xff]  ;;  %v8757_v24 = vld [vmem:[#allocation159_spill] sm:$0xff] }
 0x3b0   :  { %2807 = vmatpush.bf16.msrb.mxu1 %v8749_v35  ;;  %2833 = vmatpush.bf16.msrb.mxu3 %v8750_v56  ;;  %v8760_v35 = vld [vmem:[#allocation56_spill] sm:$0xff]  ;;  %v8761_v56 = vld [vmem:[#allocation165_spill] sm:$0xff] }
 0x3b1   :  { %3048 = vmatpush.bf16.msrb.mxu0 %v8747_v44  ;;  %3074 = vmatpush.bf16.msrb.mxu2 %v8748_v15  ;;  %v8758_v44 = vld [vmem:[#allocation163_spill] sm:$0xff]  ;;  %v8759_v15 = vld [vmem:[#allocation54_spill] sm:$0xff] }
 0x3b4   :  { %2808 = vmatpush.bf16.msrb.mxu1 %v8753_v52  ;;  %2834 = vmatpush.bf16.msrb.mxu3 %v8754_v61  ;;  %v8764_v52 = vld [vmem:[#allocation13_spill] sm:$0xff]  ;;  %v8765_v61 = vld [vmem:[#allocation58_spill] sm:$0xff] }
 0x3b5   :  { %3049 = vmatpush.bf16.msrb.mxu0 %v8751_v37  ;;  %3075 = vmatpush.bf16.msrb.mxu2 %v8752_v9  ;;  %v8762_v37 = vld [vmem:[#allocation167_spill] sm:$0xff] }
 0x3b6   :  { %v8763_v9 = vld [vmem:[#allocation11_spill] sm:$0xff] }
 0x3b8   :  { %2809 = vmatpush.bf16.msrb.mxu1 %v8757_v24  ;;  %2835 = vmatpush.bf16.msrb.mxu3 %v8758_v44  ;;  %v8767_v44 = vld [vmem:[#allocation15_spill] sm:$0xff]  ;;  %v8776_v24 = vld [vmem:[#allocation25_spill] sm:$0xff] }
 0x3b9   :  { %3050 = vmatpush.bf16.msrb.mxu0 %v8755_v53  ;;  %3076 = vmatpush.bf16.msrb.mxu2 %v8756_v40  ;;  %v8766_v53 = vld [vmem:[#allocation60_spill] sm:$0xff]  ;;  %v8785_v40 = vld [vmem:[#allocation39_spill] sm:$0xff] }
 0x3bc   :  { %2810 = vmatpush.bf16.msrb.mxu1 %v8761_v56  ;;  %2836 = vmatpush.bf16.msrb.mxu3 %v8762_v37  ;;  %v8770_v56 = vld [vmem:[#allocation64_spill] sm:$0xff]  ;;  %v8771_v37 = vld [vmem:[#allocation19_spill] sm:$0xff] }
 0x3bd   :  { %3051 = vmatpush.bf16.msrb.mxu0 %v8759_v15  ;;  %3077 = vmatpush.bf16.msrb.mxu2 %v8760_v35  ;;  %v8768_v15 = vld [vmem:[#allocation17_spill] sm:$0xff]  ;;  %v8769_v35 = vld [vmem:[#allocation62_spill] sm:$0xff] }
 0x3bf   :  { %2811 = vmatmul.bf16.vlgmr.msrb.gmra.mxu1 %v7031_v2  ;;  %2837 = vmatmul.bf16.vlgmr.msrb.gmra.mxu3 %v7031_v2  ;;  %v8777_v2 = vld [vmem:[#allocation70_spill] sm:$0xff] }
 0x3c0   :  { %3009 = vmatpush.bf16.msra.mxu1 %v8763_v9  ;;  %3035 = vmatpush.bf16.msra.mxu3 %v8764_v52  ;;  %v8772_v9 = vld [vmem:[#allocation21_spill] sm:$0xff]  ;;  %v8773_v52 = vld [vmem:[#allocation66_spill] sm:$0xff] }
 0x3c1   :  { %3052 = vmatpush.bf16.msrb.mxu0 %v8765_v61  ;;  %3078 = vmatpush.bf16.msrb.mxu2 %v8766_v53  ;;  %v8774_v61 = vld [vmem:[#allocation68_spill] sm:$0xff]  ;;  %v8775_v53 = vld [vmem:[#allocation23_spill] sm:$0xff] }
 0x3c4   :  { %3010 = vmatpush.bf16.msra.mxu1 %v8767_v44  ;;  %3036 = vmatpush.bf16.msra.mxu3 %v8768_v15  ;;  %v8778_v44 = vld [vmem:[#allocation72_spill] sm:$0xff]  ;;  %v8779_v15 = vld [vmem:[#allocation27_spill] sm:$0xff] }
 0x3c5   :  { %3053 = vmatpush.bf16.msrb.mxu0 %v8769_v35  ;;  %3079 = vmatpush.bf16.msrb.mxu2 %v8770_v56  ;;  %v8780_v35 = vld [vmem:[#allocation29_spill] sm:$0xff]  ;;  %v8781_v56 = vld [vmem:[#allocation31_spill] sm:$0xff] }
 0x3c8   :  { %3011 = vmatpush.bf16.msra.mxu1 %v8771_v37  ;;  %3037 = vmatpush.bf16.msra.mxu3 %v8772_v9  ;;  %v8782_v37 = vld [vmem:[#allocation33_spill] sm:$0xff] }
 0x3c9   :  { %3054 = vmatpush.bf16.msrb.mxu0 %v8773_v52  ;;  %3080 = vmatpush.bf16.msrb.mxu2 %v8774_v61  ;;  %v8783_v52 = vld [vmem:[#allocation35_spill] sm:$0xff]  ;;  %v8784_v61 = vld [vmem:[#allocation37_spill] sm:$0xff] }
 0x3cc   :  { %3012 = vmatpush.bf16.msra.mxu1 %v8775_v53  ;;  %3038 = vmatpush.bf16.msra.mxu3 %v8776_v24  ;;  %v2643_v9 = vpop.f32.mrf.mxu0  ;;  %v8786_v24 = vld [vmem:[#allocation41_spill] sm:$0xff] }
 0x3cd   :  { %3055 = vmatpush.bf16.msrb.mxu0 %v8777_v2  ;;  %3081 = vmatpush.bf16.msrb.mxu2 %v8778_v44  ;;  %v8787_v44 = vld [vmem:[#allocation43_spill] sm:$0xff] }
 0x3d0   :  { %3013 = vmatpush.bf16.msra.mxu1 %v8779_v15  ;;  %3039 = vmatpush.bf16.msra.mxu3 %v8780_v35  ;;  %v8788_v15 = vld [vmem:[#allocation45_spill] sm:$0xff]  ;;  %v8789_v35 = vld [vmem:[#allocation47_spill] sm:$0xff] }
 0x3d2   :  { %v2669_v53 = vpop.f32.mrf.mxu2 }
 0x3d4   :  { %3014 = vmatpush.bf16.msra.mxu1 %v8781_v56  ;;  %3040 = vmatpush.bf16.msra.mxu3 %v8782_v37  ;;  %v2645_v2 = vpop.f32.mrf.mxu0  ;;  %v8790_v56 = vld [vmem:[#allocation49_spill] sm:$0xff] }
 0x3d8   :  { %3015 = vmatpush.bf16.msra.mxu1 %v8783_v52  ;;  %3041 = vmatpush.bf16.msra.mxu3 %v8784_v61  ;;  %v8792_v52 = vld [vmem:[#allocation53_spill] sm:$0xff]  ;;  %v8793_v61 = vld [vmem:[#allocation55_spill] sm:$0xff] }
 0x3da   :  { %v2671_v37 = vpop.f32.mrf.mxu2 }
 0x3dc   :  { %3016 = vmatpush.bf16.msra.mxu1 %v8785_v40  ;;  %3042 = vmatpush.bf16.msra.mxu3 %v8786_v24  ;;  %v2695_v13 = vpop.f32.mrf.mxu0  ;;  %v8794_v40 = vld [vmem:[#allocation57_spill] sm:$0xff] }
 0x3e0   :  { %3061 = vmatpush.bf16.msrb.mxu1 %v8787_v44  ;;  %3087 = vmatpush.bf16.msrb.mxu3 %v8788_v15  ;;  %v8796_v44 = vld [vmem:[#allocation61_spill] sm:$0xff]  ;;  %v8797_v15 = vld [vmem:[#allocation63_spill] sm:$0xff] }
 0x3e2   :  { %v2721_v24 = vpop.f32.mrf.mxu2 }
 0x3e4   :  { %3062 = vmatpush.bf16.msrb.mxu1 %v8789_v35  ;;  %3088 = vmatpush.bf16.msrb.mxu3 %v8790_v56  ;;  %v2697_v2 = vpop.f32.mrf.mxu0  ;;  %v8798_v35 = vld [vmem:[#allocation65_spill] sm:$0xff] }
 0x3e8   :  { %3063 = vmatpush.bf16.msrb.mxu1 %v8791_v46  ;;  %3089 = vmatpush.bf16.msrb.mxu3 %v8792_v52  ;;  %v8799_v46 = vld [vmem:[#allocation67_spill] sm:$0xff]  ;;  %v8800_v52 = vld [vmem:[#allocation69_spill] sm:$0xff] }
 0x3ea   :  { %v2723_v37 = vpop.f32.mrf.mxu2 }
 0x3ec   :  { %3064 = vmatpush.bf16.msrb.mxu1 %v8793_v61  ;;  %3090 = vmatpush.bf16.msrb.mxu3 %v8794_v40  ;;  %v7143_v56 = vpop.f32.mrf.mxu0  ;;  %v8801_v61 = vld [vmem:[#allocation71_spill] sm:$0xff]  ;;  %v8802_v40 = vld [vmem:[#allocation73_spill] sm:$0xff] }
 0x3f0   :  { %3065 = vmatpush.bf16.msrb.mxu1 %v8795_v14  ;;  %3091 = vmatpush.bf16.msrb.mxu3 %v8796_v44  ;;  %v8803_v44 = vld [vmem:[#allocation92_spill] sm:$0xff] }
 0x3f2   :  { %v7149_v2 = vpop.f32.mrf.mxu2 }
 0x3f4   :  { %3066 = vmatpush.bf16.msrb.mxu1 %v8797_v15  ;;  %3092 = vmatpush.bf16.msrb.mxu3 %v8798_v35  ;;  %v2749_v14 = vpop.f32.mrf.mxu0  ;;  %v503_v15 = vadd.f32 %v8804_v47, %v8803_v44 }
 0x3f8   :  { %3067 = vmatpush.bf16.msrb.mxu1 %v8799_v46  ;;  %3093 = vmatpush.bf16.msrb.mxu3 %v8800_v52  ;;  %v8806_v46 = vld [vmem:[#allocation115_spill] sm:$0xff] }
 0x3f9   :  { %v532_v34 = vadd.f32 %v8806_v46, %v8805_v26 }
 0x3fa   :  { %v2775_v35 = vpop.f32.mrf.mxu2 }
 0x3fc   :  { %3068 = vmatpush.bf16.msrb.mxu1 %v8801_v61  ;;  %3094 = vmatpush.bf16.msrb.mxu3 %v8802_v40  ;;  %v2656_v21 = vpop.f32.mrf.mxu1 }
 0x3fd   :  { %v2657_v10 = vadd.f32 %v2656_v21, %v2643_v9  ;;  %v8807_v9 = vld [vmem:[#allocation106_spill] sm:$0xff] }
 0x3ff   :  { %v2849_v37 = vadd.f32 %v2657_v10, %v503_v15  ;;  %v8808_v15 = vld [vmem:[#allocation121_spill] sm:$0xff] }
 0x400   :  { %v561_v35 = vadd.f32 %v8808_v15, %v8807_v9 }
 0x401   :  { %v5264_v51 = vmul.f32 -1.442695, %v2849_v37 }
 0x402   :  { %v2682_v54 = vpop.f32.mrf.mxu3 }
 0x403   :  { %5591 = vpow2.f32 %v5264_v51  ;;  %v2683_v52 = vadd.f32 %v2682_v54, %v2669_v53 }
 0x404   :  { %v2658_v61 = vpop.f32.mrf.mxu1 }
 0x405   :  { %v2850_v7 = vadd.f32 %v2683_v52, %v532_v34  ;;  %v8809_v34 = vld [vmem:[#allocation107_spill] sm:$0xff] }
 0x407   :  { %v5266_v40 = vmul.f32 -1.442695, %v2850_v7  ;;  %v8810_v7 = vld [vmem:[#allocation123_spill] sm:$0xff] }
 0x408   :  { %v590_v52 = vadd.f32 %v8810_v7, %v8809_v34 }
 0x409   :  { %v5592_v32 = vpop.eup %5591  ;;  %5593 = vpow2.f32 %v5266_v40 }
 0x40a   :  { %v2870_v14 = vadd.f32 1.0, %v5592_v32  ;;  %v2684_v38 = vpop.f32.mrf.mxu3 }
 0x40c   :  { %5595 = vrcp.f32 %v2870_v14  ;;  %v2708_v55 = vpop.f32.mrf.mxu1  ;;  %v2883_v53 = vand.u32 2147483648, %v2870_v14  ;;  %vm2877_vm9 = vweird.f32 %v2870_v14 }
 0x40d   :  { %v2709_v47 = vadd.f32 %v2708_v55, %v2695_v13 }
 0x40e   :  { %v2884_v7 = vor.u32 1.1754944e-38, %v2883_v53 }
 0x40f   :  { %v7155_v21 = vpop.f32.mrf.mxu0  ;;  %v5594_v10 = vpop.eup %5593  ;;  %v2851_v54 = vadd.f32 %v2709_v47, %v561_v35 }
 0x410   :  { %v2908_v37 = vadd.f32 1.0, %v5594_v10  ;;  %v2881_v10 = vand.u32 2147483647, %v2870_v14 }
 0x412   :  { %v5596_v46 = vpop.eup %5595  ;;  %5597 = vrcp.f32 %v2908_v37  ;;  %v2734_v51 = vpop.f32.mrf.mxu3  ;;  %vm2882_vm11 = vcmp.eq.f32.partialorder %v2881_v10, 8.507059e+37  ;;  %vm2915_vm13 = vweird.f32 %v2908_v37 }
 0x413   :  { %v2873_v61 = vmul.f32 %v5596_v46, %v2870_v14  ;;  %v2735_v32 = vadd.f32 %v2734_v51, %v2721_v24  ;;  %5599 = vtanh.f32 %v2851_v54  ;;  %vm2878_vm8 = vweird.f32 %v5596_v46 }
 0x414   :  { %v2710_v40 = vpop.f32.mrf.mxu1  ;;  %vm2879_vm10 = vmor %vm2877_vm9, %vm2878_vm8  ;;  %v2919_v54 = vand.u32 2147483647, %v2908_v37 }
 0x415   :  { %v7161_v38 = vpop.f32.mrf.mxu2  ;;  %v2874_v55 = vsub.f32 1.0, %v2873_v61  ;;  %v2852_v13 = vadd.f32 %v2735_v32, %v590_v52  ;;  %v2921_v52 = vand.u32 2147483648, %v2908_v37 }
 0x416   :  { %vm2920_vm15 = vcmp.eq.f32.partialorder %v2919_v54, 8.507059e+37 }
 0x417   :  { %v2801_v26 = vpop.f32.mrf.mxu0  ;;  %v2875_v44 = vmul.f32 %v5596_v46, %v2874_v55  ;;  %v5268_v15 = vmul.f32 -1.442695, %v2852_v13 }
 0x418   :  { %v5598_v9 = vpop.eup %5597 }
 0x419   :  { %v2911_v47 = vmul.f32 %v5598_v9, %v2908_v37  ;;  %v2876_v35 = vadd.f32 %v5596_v46, %v2875_v44  ;;  %5601 = vpow2.f32 %v5268_v15  ;;  %v5600_v61 = vpop.eup %5599  ;;  %vm2916_vm12 = vweird.f32 %v5598_v9  ;;  %v8811_v15 = vld [vmem:[#allocation190_spill] sm:$0xff]  ;;  %v8812_v37 = vld [vmem:[#allocation191_spill] sm:$0xff] }
 0x41a   :  { %v2736_v24 = vpop.f32.mrf.mxu3  ;;  %vm2917_vm14 = vmor %vm2915_vm13, %vm2916_vm12 }
 0x41b   :  { %v2912_v51 = vsub.f32 1.0, %v2911_v47  ;;  %v2880_v34 = vsel %vm2879_vm10, %v5596_v46, %v2876_v35  ;;  %v2922_v47 = vor.u32 1.1754944e-38, %v2921_v52 }
 0x41c   :  { %v2885_v32 = vsel %vm2882_vm11, %v2884_v7, %v2880_v34  ;;  %v2760_v40 = vpop.f32.mrf.mxu1 }
 0x41d   :  { %v2827_v26 = vpop.f32.mrf.mxu2  ;;  %v2913_v55 = vmul.f32 %v5598_v9, %v2912_v51  ;;  %v2982_v13 = vmul.f32 %v5600_v61, %v2885_v32  ;;  %v2761_v39 = vadd.f32 %v2760_v40, %v7143_v56 }
 0x41f   :  { %v5602_v44 = vpop.eup %5601  ;;  %v2914_v14 = vadd.f32 %v5598_v9, %v2913_v55  ;;  %v2860_v53 = vadd.f32 %v2761_v39, %v8811_v15 }
 0x420   :  { %v2948_v46 = vadd.f32 1.0, %v5602_v44 }
 0x421   :  { %v2918_v10 = vsel %vm2917_vm14, %v5598_v9, %v2914_v14  ;;  %v5265_v35 = vmul.f32 -1.442695, %v2860_v53 }
 0x422   :  { %v2923_v34 = vsel %vm2920_vm15, %v2922_v47, %v2918_v10  ;;  %5603 = vrcp.f32 %v2948_v46  ;;  %v2786_v7 = vpop.f32.mrf.mxu3  ;;  %vm2955_vm1 = vweird.f32 %v2948_v46 }
 0x423   :  { %v2980_v24 = vmul.f32 %v2923_v34, %v6957_v8  ;;  %5605 = vpow2.f32 %v5265_v35  ;;  %v2787_v51 = vadd.f32 %v2786_v7, %v7149_v2  ;;  %v2961_v8 = vand.u32 2147483648, %v2948_v46 }
 0x424   :  { %v2762_v56 = vpop.f32.mrf.mxu1 }
 0x425   :  { %v7167_v61 = vadd.f32 %v2982_v13, %v2980_v24  ;;  %v2861_v32 = vadd.f32 %v2787_v51, %v8812_v37  ;;  %v2959_v13 = vand.u32 2147483647, %v2948_v46  ;;  %v2962_v15 = vor.u32 1.1754944e-38, %v2961_v8 }
 0x427   :  { %v5267_v39 = vmul.f32 -1.442695, %v2861_v32  ;;  %vm2960_vm3 = vcmp.eq.f32.partialorder %v2959_v13, 8.507059e+37 }
 0x428   :  { %v5604_v26 = vpop.eup %5603 }
 0x429   :  { %v5606_v52 = vpop.eup %5605  ;;  %v2951_v40 = vmul.f32 %v5604_v26, %v2948_v46  ;;  %5607 = vpow2.f32 %v5267_v39  ;;  %vm2956_vm0 = vweird.f32 %v5604_v26  ;;  %v8839_v46 = vld [vmem:[#allocation24_spill] sm:$0xff] }
 0x42a   :  { %v7170_v9 = vadd.f32 1.0, %v5606_v52  ;;  %v2788_v54 = vpop.f32.mrf.mxu3  ;;  %5609 = vtanh.f32 %v7167_v61  ;;  %vm2957_vm2 = vmor %vm2955_vm1, %vm2956_vm0 }
 0x42b   :  { %v2952_v55 = vsub.f32 1.0, %v2951_v40 }
 0x42c   :  { %5611 = vrcp.f32 %v7170_v9  ;;  %vm2892_vm6 = vweird.f32 %v7170_v9 }
 0x42d   :  { %v2953_v2 = vmul.f32 %v5604_v26, %v2952_v55  ;;  %v8813_v55 = vld [vmem:[#allocation192_spill] sm:$0xff] }
 0x42f   :  { %v5608_v44 = vpop.eup %5607  ;;  %v2954_v14 = vadd.f32 %v5604_v26, %v2953_v2 }
 0x430   :  { %v2909_v53 = vadd.f32 1.0, %v5608_v44  ;;  %v5610_v47 = vpop.eup %5609 }
 0x431   :  { %v2958_v10 = vsel %vm2957_vm2, %v5604_v26, %v2954_v14  ;;  %v2898_v14 = vand.u32 2147483648, %v7170_v9 }
 0x432   :  { %v5612_v35 = vpop.eup %5611  ;;  %v2963_v34 = vsel %vm2960_vm3, %v2962_v15, %v2958_v10  ;;  %5613 = vrcp.f32 %v2909_v53  ;;  %v2936_v54 = vand.u32 2147483648, %v2909_v53  ;;  %v2934_v44 = vand.u32 2147483647, %v2909_v53 }
 0x433   :  { %v7174_v7 = vmul.f32 %v5610_v47, %v2963_v34  ;;  %v2888_v24 = vmul.f32 %v5612_v35, %v7170_v9  ;;  %vm2893_vm4 = vweird.f32 %v5612_v35  ;;  %vm2930_vm7 = vweird.f32 %v2909_v53 }
 0x434   :  { %vm7197_vm8 = vmor %vm2892_vm6, %vm2893_vm4  ;;  %v2896_v15 = vand.u32 2147483647, %v7170_v9  ;;  %v2937_v34 = vor.u32 1.1754944e-38, %v2936_v54  ;;  %vm2935_vm10 = vcmp.eq.f32.partialorder %v2934_v44, 8.507059e+37 }
 0x435   :  { %v7179_v51 = vadd.f32 %v7174_v7, %v6968_v57  ;;  %v7185_v56 = vpack.c.bf16 %v7174_v7, %v7174_v7  ;;  %v2889_v37 = vsub.f32 1.0, %v2888_v24 }
 0x436   :  { %vm2897_vm11 = vcmp.eq.f32.partialorder %v2896_v15, 8.507059e+37 }
 0x437   :  { %3004 = vmatmul.bf16.vlgmr.msra.gmra.mxu0 %v7185_v56  ;;  %3030 = vmatmul.bf16.vlgmr.msra.gmra.mxu2 %v7185_v56  ;;  %v2890_v26 = vmul.f32 %v5612_v35, %v2889_v37 }
 0x438   :  { %v5614_v32 = vpop.eup %5613  ;;  %3100 = vmatpush.bf16.msra.mxu0 %v8487_v41  ;;  %3126 = vmatpush.bf16.msra.mxu2 %v8593_v19 }
 0x439   :  { %v2926_v39 = vmul.f32 %v5614_v32, %v2909_v53  ;;  %vm2931_vm5 = vweird.f32 %v5614_v32  ;;  %v2891_v13 = vadd.f32 %v5612_v35, %v2890_v26 }
 0x43a   :  { %vm2932_vm9 = vmor %vm2930_vm7, %vm2931_vm5 }
 0x43b   :  { %v2927_v40 = vsub.f32 1.0, %v2926_v39  ;;  %v2895_v37 = vsel %vm7197_vm8, %v5612_v35, %v2891_v13 }
 0x43c   :  { %v2812_v57 = vpop.f32.mrf.mxu1  ;;  %3101 = vmatpush.bf16.msra.mxu0 %v8595_v1  ;;  %3127 = vmatpush.bf16.msra.mxu2 %v8702_v27 }
 0x43d   :  { %v2813_v52 = vadd.f32 %v2812_v57, %v7155_v21  ;;  %v2928_v2 = vmul.f32 %v5614_v32, %v2927_v40  ;;  %v2899_v57 = vor.u32 1.1754944e-38, %v2898_v14 }
 0x43f   :  { %v2862_v8 = vadd.f32 %v2813_v52, %v8813_v55  ;;  %v2929_v47 = vadd.f32 %v5614_v32, %v2928_v2  ;;  %v8816_v52 = vld [vmem:[#allocation194_spill] sm:$0xff]  ;;  %v2900_v55 = vsel %vm2897_vm11, %v2899_v57, %v2895_v37 }
 0x440   :  { %3102 = vmatpush.bf16.msra.mxu0 %v8599_v42  ;;  %3128 = vmatpush.bf16.msra.mxu2 %v8600_v60 }
 0x441   :  { %5615 = vtanh.f32 %v2862_v8  ;;  %v2933_v53 = vsel %vm2932_vm9, %v5614_v32, %v2929_v47 }
 0x442   :  { %v2838_v10 = vpop.f32.mrf.mxu3  ;;  %v2938_v26 = vsel %vm2935_vm10, %v2937_v34, %v2933_v53 }
 0x443   :  { %v2839_v24 = vadd.f32 %v2838_v10, %v7161_v38  ;;  %v2981_v40 = vmul.f32 %v2938_v26, %v7000_v12  ;;  %v8838_v26 = vld [vmem:[#allocation22_spill] sm:$0xff] }
 0x444   :  { %v2814_v39 = vpop.f32.mrf.mxu1  ;;  %3103 = vmatpush.bf16.msra.mxu0 %v8493_v58  ;;  %3129 = vmatpush.bf16.msra.mxu2 %v8494_v63 }
 0x445   :  { %v2863_v9 = vadd.f32 %v2839_v24, %v8816_v52 }
 0x447   :  { %v5616_v54 = vpop.eup %5615  ;;  %v5269_v38 = vmul.f32 -1.442695, %v2863_v9  ;;  %3056 = vmatmul.bf16.vlgmr.msrb.gmra.mxu0 %v7185_v56  ;;  %3082 = vmatmul.bf16.vlgmr.msrb.gmra.mxu2 %v7185_v56  ;;  %v8818_v9 = vld [vmem:[#allocation89_spill] sm:$0xff] }
 0x448   :  { %v2983_v8 = vmul.f32 %v5616_v54, %v2900_v55  ;;  %3104 = vmatpush.bf16.msra.mxu0 %v8495_v28  ;;  %3130 = vmatpush.bf16.msra.mxu2 %v8496_v25  ;;  %v8820_v54 = vld [vmem:[#allocation156_spill] sm:$0xff] }
 0x449   :  { %5617 = vpow2.f32 %v5269_v38  ;;  %v8821_v55 = vld [vmem:[#allocation160_spill] sm:$0xff]  ;;  %v8822_v38 = vld [vmem:[#allocation94_spill] sm:$0xff] }
 0x44a   :  { %v7211_v35 = vadd.f32 %v2983_v8, %v2981_v40  ;;  %v2840_v32 = vpop.f32.mrf.mxu3  ;;  %v8819_v40 = vld [vmem:[#allocation91_spill] sm:$0xff]  ;;  %v8823_v8 = vld [vmem:[#allocation97_spill] sm:$0xff] }
 0x44b   :  { %v8824_v32 = vld [vmem:[#allocation164_spill] sm:$0xff] }
 0x44c   :  { %3105 = vmatpush.bf16.msra.mxu0 %v8497_v43  ;;  %3131 = vmatpush.bf16.msra.mxu2 %v8498_v5 }
 0x44f   :  { %v5618_v12 = vpop.eup %5617 }
 0x450   :  { %v2949_v2 = vadd.f32 1.0, %v5618_v12  ;;  %3106 = vmatpush.bf16.msra.mxu0 %v8499_v30  ;;  %3132 = vmatpush.bf16.msra.mxu2 %v8500_v6  ;;  %v8825_v12 = vld [vmem:[#allocation166_spill] sm:$0xff] }
 0x452   :  { %5619 = vrcp.f32 %v2949_v2  ;;  %v2976_v21 = vand.u32 2147483648, %v2949_v2  ;;  %v2974_v47 = vand.u32 2147483647, %v2949_v2  ;;  %vm2970_vm13 = vweird.f32 %v2949_v2 }
 0x453   :  { %5621 = vtanh.f32 %v7211_v35 }
 0x454   :  { %3107 = vmatpush.bf16.msra.mxu0 %v6226_v49  ;;  %3133 = vmatpush.bf16.msra.mxu2 %v6232_v4  ;;  %v2977_v34 = vor.u32 1.1754944e-38, %v2976_v21  ;;  %vm2975_vm15 = vcmp.eq.f32.partialorder %v2974_v47, 8.507059e+37  ;;  %v8830_v21 = vld [vmem:[#allocation14_spill] sm:$0xff]  ;;  %v8832_v47 = vld [vmem:[#allocation109_spill] sm:$0xff] }
 0x457   :  { %3108 = vmatmul.bf16.vlgmr.msra.gmra.mxu0 %v7185_v56  ;;  %3134 = vmatmul.bf16.vlgmr.msra.gmra.mxu2 %v7185_v56 }
 0x458   :  { %v5620_v13 = vpop.eup %5619  ;;  %3152 = vmatpush.bf16.msrb.mxu0 %v6239_v16  ;;  %3178 = vmatpush.bf16.msrb.mxu2 %v6245_v31 }
 0x459   :  { %v2966_v44 = vmul.f32 %v5620_v13, %v2949_v2  ;;  %vm2971_vm12 = vweird.f32 %v5620_v13  ;;  %v5622_v37 = vpop.eup %5621  ;;  %v8826_v2 = vld [vmem:[#allocation10_spill] sm:$0xff] }
 0x45a   :  { %vm2972_vm14 = vmor %vm2970_vm13, %vm2971_vm12 }
 0x45b   :  { %v2967_v14 = vsub.f32 1.0, %v2966_v44  ;;  %v8828_v44 = vld [vmem:[#allocation103_spill] sm:$0xff] }
 0x45c   :  { %3153 = vmatpush.bf16.msrb.mxu0 %v8501_v20  ;;  %3179 = vmatpush.bf16.msrb.mxu2 %v8502_v3 }
 0x45d   :  { %v2968_v15 = vmul.f32 %v5620_v13, %v2967_v14  ;;  %v8829_v14 = vld [vmem:[#allocation105_spill] sm:$0xff] }
 0x45f   :  { %v2969_v10 = vadd.f32 %v5620_v13, %v2968_v15  ;;  %v8831_v15 = vld [vmem:[#allocation16_spill] sm:$0xff] }
 0x460   :  { %3154 = vmatpush.bf16.msrb.mxu0 %v8503_v22  ;;  %3180 = vmatpush.bf16.msrb.mxu2 %v8504_v48 }
 0x461   :  { %v2973_v24 = vsel %vm2972_vm14, %v5620_v13, %v2969_v10  ;;  %v8827_v13 = vld [vmem:[#allocation12_spill] sm:$0xff]  ;;  %v8833_v10 = vld [vmem:[#allocation111_spill] sm:$0xff] }
 0x462   :  { %v2978_v53 = vsel %vm2975_vm15, %v2977_v34, %v2973_v24  ;;  %v8834_v34 = vld [vmem:[#allocation18_spill] sm:$0xff]  ;;  %v8835_v24 = vld [vmem:[#allocation20_spill] sm:$0xff] }
 0x463   :  { %v7232_v39 = vmul.f32 %v5622_v37, %v2978_v53  ;;  %v8836_v37 = vld [vmem:[#allocation117_spill] sm:$0xff]  ;;  %v8837_v53 = vld [vmem:[#allocation119_spill] sm:$0xff] }
 0x464   :  { %3155 = vmatpush.bf16.msrb.mxu0 %v8505_v11  ;;  %3181 = vmatpush.bf16.msrb.mxu2 %v8506_v45 }
 0x465   :  { %v7238_v57 = vadd.f32 %v7232_v39, %v7027_v36  ;;  %v7244_v52 = vpack.c.bf16 %v7232_v39, %v7232_v39  ;;  %v8817_v36 = vld [vmem:[#allocation154_spill] sm:$0xff] }
 0x467   :  { %3017 = vmatmul.bf16.vlgmr.msra.gmra.mxu1 %v7244_v52  ;;  %3043 = vmatmul.bf16.vlgmr.msra.gmra.mxu3 %v7244_v52 }
 0x468   :  { %3113 = vmatpush.bf16.msra.mxu1 %v8510_v23  ;;  %3139 = vmatpush.bf16.msra.mxu3 %v8511_v50 }
 0x469   :  { %3156 = vmatpush.bf16.msrb.mxu0 %v8508_v29  ;;  %3182 = vmatpush.bf16.msrb.mxu2 %v8509_v17 }
 0x46c   :  { %3114 = vmatpush.bf16.msra.mxu1 %v8514_v0  ;;  %3140 = vmatpush.bf16.msra.mxu3 %v8515_v62 }
 0x46d   :  { %3157 = vmatpush.bf16.msrb.mxu0 %v8512_v33  ;;  %3183 = vmatpush.bf16.msrb.mxu2 %v8817_v36 }
 0x470   :  { %3115 = vmatpush.bf16.msra.mxu1 %v8818_v9  ;;  %3141 = vmatpush.bf16.msra.mxu3 %v8819_v40 }
 0x471   :  { %3158 = vmatpush.bf16.msrb.mxu0 %v8820_v54  ;;  %3184 = vmatpush.bf16.msrb.mxu2 %v8821_v55 }
 0x474   :  { %3116 = vmatpush.bf16.msra.mxu1 %v8822_v38  ;;  %3142 = vmatpush.bf16.msra.mxu3 %v8823_v8 }
 0x475   :  { %3159 = vmatpush.bf16.msrb.mxu0 %v8824_v32  ;;  %3185 = vmatpush.bf16.msrb.mxu2 %v8825_v12 }
 0x477   :  { %3069 = vmatmul.bf16.vlgmr.msrb.gmra.mxu1 %v7244_v52  ;;  %3095 = vmatmul.bf16.vlgmr.msrb.gmra.mxu3 %v7244_v52 }
 0x478   :  { %3117 = vmatpush.bf16.msra.mxu1 %v8828_v44  ;;  %3143 = vmatpush.bf16.msra.mxu3 %v8829_v14  ;;  %v8902_v44 = vld [vmem:[#allocation51_spill] sm:$0xff] }
 0x479   :  { %3356 = vmatpush.bf16.msra.mxu0 %v8826_v2  ;;  %3382 = vmatpush.bf16.msra.mxu2 %v8827_v13  ;;  %v8906_v13 = vld [vmem:[#allocation59_spill] sm:$0xff] }
 0x47a   :  { %3160 = vmatmul.bf16.vlgmr.msrb.gmra.mxu0 %v7185_v56  ;;  %3186 = vmatmul.bf16.vlgmr.msrb.gmra.mxu2 %v7185_v56  ;;  %v8840_v56 = vld [vmem:[#allocation120_spill] sm:$0xff] }
 0x47c   :  { %3118 = vmatpush.bf16.msra.mxu1 %v8832_v47  ;;  %3144 = vmatpush.bf16.msra.mxu3 %v8833_v10  ;;  %v8843_v47 = vld [vmem:[#allocation126_spill] sm:$0xff] }
 0x47d   :  { %3357 = vmatpush.bf16.msra.mxu0 %v8830_v21  ;;  %3383 = vmatpush.bf16.msra.mxu2 %v8831_v15  ;;  %v8841_v21 = vld [vmem:[#allocation122_spill] sm:$0xff]  ;;  %v8842_v15 = vld [vmem:[#allocation124_spill] sm:$0xff] }
 0x47e   :  { %v8844_v10 = vld [vmem:[#allocation26_spill] sm:$0xff] }
 0x480   :  { %3119 = vmatpush.bf16.msra.mxu1 %v8836_v37  ;;  %3145 = vmatpush.bf16.msra.mxu3 %v8837_v53  ;;  %v8846_v53 = vld [vmem:[#allocation129_spill] sm:$0xff]  ;;  %v8855_v37 = vld [vmem:[#allocation143_spill] sm:$0xff] }
 0x481   :  { %3358 = vmatpush.bf16.msra.mxu0 %v8834_v34  ;;  %3384 = vmatpush.bf16.msra.mxu2 %v8835_v24  ;;  %v8845_v34 = vld [vmem:[#allocation28_spill] sm:$0xff]  ;;  %v8856_v24 = vld [vmem:[#allocation38_spill] sm:$0xff] }
 0x484   :  { %3120 = vmatpush.bf16.msra.mxu1 %v8840_v56  ;;  %3146 = vmatpush.bf16.msra.mxu3 %v8841_v21  ;;  %v8849_v56 = vld [vmem:[#allocation32_spill] sm:$0xff]  ;;  %v8850_v21 = vld [vmem:[#allocation135_spill] sm:$0xff] }
 0x485   :  { %3359 = vmatpush.bf16.msra.mxu0 %v8838_v26  ;;  %3385 = vmatpush.bf16.msra.mxu2 %v8839_v46  ;;  %v8847_v26 = vld [vmem:[#allocation131_spill] sm:$0xff]  ;;  %v8848_v46 = vld [vmem:[#allocation30_spill] sm:$0xff] }
 0x487   :  { %3121 = vmatmul.bf16.vlgmr.msra.gmra.mxu1 %v7244_v52  ;;  %3147 = vmatmul.bf16.vlgmr.msra.gmra.mxu3 %v7244_v52 }
 0x488   :  { %3165 = vmatpush.bf16.msrb.mxu1 %v8842_v15  ;;  %3191 = vmatpush.bf16.msrb.mxu3 %v8843_v47  ;;  %v8851_v15 = vld [vmem:[#allocation139_spill] sm:$0xff]  ;;  %v8852_v47 = vld [vmem:[#allocation34_spill] sm:$0xff] }
 0x489   :  { %3360 = vmatpush.bf16.msra.mxu0 %v8844_v10  ;;  %3386 = vmatpush.bf16.msra.mxu2 %v8845_v34  ;;  %v8853_v10 = vld [vmem:[#allocation36_spill] sm:$0xff]  ;;  %v8854_v34 = vld [vmem:[#allocation141_spill] sm:$0xff] }
 0x48c   :  { %3166 = vmatpush.bf16.msrb.mxu1 %v8846_v53  ;;  %3192 = vmatpush.bf16.msrb.mxu3 %v8847_v26  ;;  %v8857_v53 = vld [vmem:[#allocation40_spill] sm:$0xff]  ;;  %v8858_v26 = vld [vmem:[#allocation42_spill] sm:$0xff] }
 0x48d   :  { %3361 = vmatpush.bf16.msra.mxu0 %v8848_v46  ;;  %3387 = vmatpush.bf16.msra.mxu2 %v8849_v56  ;;  %v8859_v46 = vld [vmem:[#allocation44_spill] sm:$0xff]  ;;  %v8860_v56 = vld [vmem:[#allocation147_spill] sm:$0xff] }
 0x490   :  { %3167 = vmatpush.bf16.msrb.mxu1 %v8850_v21  ;;  %3193 = vmatpush.bf16.msrb.mxu3 %v8851_v15  ;;  %v8861_v21 = vld [vmem:[#allocation150_spill] sm:$0xff] }
 0x491   :  { %3362 = vmatpush.bf16.msra.mxu0 %v8852_v47  ;;  %3388 = vmatpush.bf16.msra.mxu2 %v8853_v10  ;;  %v8862_v15 = vld [vmem:[#allocation46_spill] sm:$0xff]  ;;  %v8863_v47 = vld [vmem:[#allocation48_spill] sm:$0xff]  ;;  %v8864_v10 = vld [vmem:[#allocation153_spill] sm:$0xff] }
 0x494   :  { %3168 = vmatpush.bf16.msrb.mxu1 %v8854_v34  ;;  %3194 = vmatpush.bf16.msrb.mxu3 %v8855_v37  ;;  %v8865_v34 = vld [vmem:[#allocation155_spill] sm:$0xff]  ;;  %v8866_v37 = vld [vmem:[#allocation50_spill] sm:$0xff] }
 0x495   :  { %3363 = vmatpush.bf16.msra.mxu0 %v8856_v24  ;;  %3389 = vmatpush.bf16.msra.mxu2 %v8857_v53  ;;  %v8867_v24 = vld [vmem:[#allocation52_spill] sm:$0xff]  ;;  %v8868_v53 = vld [vmem:[#allocation159_spill] sm:$0xff] }
 0x498   :  { %3169 = vmatpush.bf16.msrb.mxu1 %v8860_v56  ;;  %3195 = vmatpush.bf16.msrb.mxu3 %v8861_v21  ;;  %v8871_v56 = vld [vmem:[#allocation56_spill] sm:$0xff]  ;;  %v8872_v21 = vld [vmem:[#allocation165_spill] sm:$0xff] }
 0x499   :  { %3408 = vmatpush.bf16.msrb.mxu0 %v8858_v26  ;;  %3434 = vmatpush.bf16.msrb.mxu2 %v8859_v46  ;;  %v8869_v26 = vld [vmem:[#allocation163_spill] sm:$0xff]  ;;  %v8870_v46 = vld [vmem:[#allocation54_spill] sm:$0xff] }
 0x49c   :  { %3170 = vmatpush.bf16.msrb.mxu1 %v8864_v10  ;;  %3196 = vmatpush.bf16.msrb.mxu3 %v8865_v34  ;;  %v8875_v10 = vld [vmem:[#allocation13_spill] sm:$0xff]  ;;  %v8876_v34 = vld [vmem:[#allocation58_spill] sm:$0xff] }
 0x49d   :  { %3409 = vmatpush.bf16.msrb.mxu0 %v8862_v15  ;;  %3435 = vmatpush.bf16.msrb.mxu2 %v8863_v47  ;;  %v8873_v15 = vld [vmem:[#allocation167_spill] sm:$0xff] }
 0x49e   :  { %v8874_v47 = vld [vmem:[#allocation11_spill] sm:$0xff] }
 0x4a0   :  { %3171 = vmatpush.bf16.msrb.mxu1 %v8868_v53  ;;  %3197 = vmatpush.bf16.msrb.mxu3 %v8869_v26  ;;  %v8878_v26 = vld [vmem:[#allocation15_spill] sm:$0xff]  ;;  %v8887_v53 = vld [vmem:[#allocation25_spill] sm:$0xff] }
 0x4a1   :  { %3410 = vmatpush.bf16.msrb.mxu0 %v8866_v37  ;;  %3436 = vmatpush.bf16.msrb.mxu2 %v8867_v24  ;;  %v8877_v37 = vld [vmem:[#allocation60_spill] sm:$0xff]  ;;  %v8896_v24 = vld [vmem:[#allocation39_spill] sm:$0xff] }
 0x4a4   :  { %3172 = vmatpush.bf16.msrb.mxu1 %v8872_v21  ;;  %3198 = vmatpush.bf16.msrb.mxu3 %v8873_v15  ;;  %v8881_v21 = vld [vmem:[#allocation64_spill] sm:$0xff]  ;;  %v8882_v15 = vld [vmem:[#allocation19_spill] sm:$0xff] }
 0x4a5   :  { %3411 = vmatpush.bf16.msrb.mxu0 %v8870_v46  ;;  %3437 = vmatpush.bf16.msrb.mxu2 %v8871_v56  ;;  %v8879_v46 = vld [vmem:[#allocation17_spill] sm:$0xff]  ;;  %v8880_v56 = vld [vmem:[#allocation62_spill] sm:$0xff] }
 0x4a7   :  { %3173 = vmatmul.bf16.vlgmr.msrb.gmra.mxu1 %v7244_v52  ;;  %3199 = vmatmul.bf16.vlgmr.msrb.gmra.mxu3 %v7244_v52  ;;  %v8888_v52 = vld [vmem:[#allocation70_spill] sm:$0xff] }
 0x4a8   :  { %3369 = vmatpush.bf16.msra.mxu1 %v8874_v47  ;;  %3395 = vmatpush.bf16.msra.mxu3 %v8875_v10  ;;  %v8883_v47 = vld [vmem:[#allocation21_spill] sm:$0xff]  ;;  %v8884_v10 = vld [vmem:[#allocation66_spill] sm:$0xff] }
 0x4a9   :  { %3412 = vmatpush.bf16.msrb.mxu0 %v8876_v34  ;;  %3438 = vmatpush.bf16.msrb.mxu2 %v8877_v37  ;;  %v8885_v34 = vld [vmem:[#allocation68_spill] sm:$0xff]  ;;  %v8886_v37 = vld [vmem:[#allocation23_spill] sm:$0xff] }
 0x4ac   :  { %3370 = vmatpush.bf16.msra.mxu1 %v8878_v26  ;;  %3396 = vmatpush.bf16.msra.mxu3 %v8879_v46  ;;  %v8889_v26 = vld [vmem:[#allocation72_spill] sm:$0xff]  ;;  %v8890_v46 = vld [vmem:[#allocation27_spill] sm:$0xff] }
 0x4ad   :  { %3413 = vmatpush.bf16.msrb.mxu0 %v8880_v56  ;;  %3439 = vmatpush.bf16.msrb.mxu2 %v8881_v21  ;;  %v8891_v56 = vld [vmem:[#allocation29_spill] sm:$0xff]  ;;  %v8892_v21 = vld [vmem:[#allocation31_spill] sm:$0xff] }
 0x4b0   :  { %3371 = vmatpush.bf16.msra.mxu1 %v8882_v15  ;;  %3397 = vmatpush.bf16.msra.mxu3 %v8883_v47  ;;  %v8893_v15 = vld [vmem:[#allocation33_spill] sm:$0xff] }
 0x4b1   :  { %3414 = vmatpush.bf16.msrb.mxu0 %v8884_v10  ;;  %3440 = vmatpush.bf16.msrb.mxu2 %v8885_v34  ;;  %v8894_v10 = vld [vmem:[#allocation35_spill] sm:$0xff]  ;;  %v8895_v34 = vld [vmem:[#allocation37_spill] sm:$0xff] }
 0x4b4   :  { %3372 = vmatpush.bf16.msra.mxu1 %v8886_v37  ;;  %3398 = vmatpush.bf16.msra.mxu3 %v8887_v53  ;;  %v3005_v47 = vpop.f32.mrf.mxu0  ;;  %v8897_v53 = vld [vmem:[#allocation41_spill] sm:$0xff] }
 0x4b5   :  { %3415 = vmatpush.bf16.msrb.mxu0 %v8888_v52  ;;  %3441 = vmatpush.bf16.msrb.mxu2 %v8889_v26  ;;  %v8898_v26 = vld [vmem:[#allocation43_spill] sm:$0xff] }
 0x4b8   :  { %3373 = vmatpush.bf16.msra.mxu1 %v8890_v46  ;;  %3399 = vmatpush.bf16.msra.mxu3 %v8891_v56  ;;  %v8899_v46 = vld [vmem:[#allocation45_spill] sm:$0xff]  ;;  %v8900_v56 = vld [vmem:[#allocation47_spill] sm:$0xff] }
 0x4ba   :  { %v3031_v37 = vpop.f32.mrf.mxu2 }
 0x4bc   :  { %3374 = vmatpush.bf16.msra.mxu1 %v8892_v21  ;;  %3400 = vmatpush.bf16.msra.mxu3 %v8893_v15  ;;  %v3007_v52 = vpop.f32.mrf.mxu0  ;;  %v8901_v21 = vld [vmem:[#allocation49_spill] sm:$0xff] }
 0x4c0   :  { %3375 = vmatpush.bf16.msra.mxu1 %v8894_v10  ;;  %3401 = vmatpush.bf16.msra.mxu3 %v8895_v34  ;;  %v8903_v10 = vld [vmem:[#allocation53_spill] sm:$0xff]  ;;  %v8904_v34 = vld [vmem:[#allocation55_spill] sm:$0xff] }
 0x4c2   :  { %v3033_v15 = vpop.f32.mrf.mxu2 }
 0x4c4   :  { %3376 = vmatpush.bf16.msra.mxu1 %v8896_v24  ;;  %3402 = vmatpush.bf16.msra.mxu3 %v8897_v53  ;;  %v3057_v14 = vpop.f32.mrf.mxu0  ;;  %v8905_v24 = vld [vmem:[#allocation57_spill] sm:$0xff] }
 0x4c8   :  { %3421 = vmatpush.bf16.msrb.mxu1 %v8898_v26  ;;  %3447 = vmatpush.bf16.msrb.mxu3 %v8899_v46  ;;  %v8907_v26 = vld [vmem:[#allocation61_spill] sm:$0xff]  ;;  %v8908_v46 = vld [vmem:[#allocation63_spill] sm:$0xff] }
 0x4ca   :  { %v3083_v53 = vpop.f32.mrf.mxu2 }
 0x4cc   :  { %3422 = vmatpush.bf16.msrb.mxu1 %v8900_v56  ;;  %3448 = vmatpush.bf16.msrb.mxu3 %v8901_v21  ;;  %v3059_v52 = vpop.f32.mrf.mxu0  ;;  %v8909_v56 = vld [vmem:[#allocation65_spill] sm:$0xff] }
 0x4d0   :  { %3423 = vmatpush.bf16.msrb.mxu1 %v8902_v44  ;;  %3449 = vmatpush.bf16.msrb.mxu3 %v8903_v10  ;;  %v8910_v44 = vld [vmem:[#allocation67_spill] sm:$0xff]  ;;  %v8911_v10 = vld [vmem:[#allocation69_spill] sm:$0xff] }
 0x4d2   :  { %v3085_v15 = vpop.f32.mrf.mxu2 }
 0x4d4   :  { %3424 = vmatpush.bf16.msrb.mxu1 %v8904_v34  ;;  %3450 = vmatpush.bf16.msrb.mxu3 %v8905_v24  ;;  %v7356_v21 = vpop.f32.mrf.mxu0  ;;  %v8912_v34 = vld [vmem:[#allocation71_spill] sm:$0xff]  ;;  %v8913_v24 = vld [vmem:[#allocation73_spill] sm:$0xff] }
 0x4d8   :  { %3425 = vmatpush.bf16.msrb.mxu1 %v8906_v13  ;;  %3451 = vmatpush.bf16.msrb.mxu3 %v8907_v26 }
 0x4da   :  { %v7362_v52 = vpop.f32.mrf.mxu2 }
 0x4dc   :  { %3426 = vmatpush.bf16.msrb.mxu1 %v8908_v46  ;;  %3452 = vmatpush.bf16.msrb.mxu3 %v8909_v56  ;;  %v3111_v13 = vpop.f32.mrf.mxu0  ;;  %v8914_v46 = vld [vmem:[#allocation125_spill] sm:$0xff] }
 0x4e0   :  { %3427 = vmatpush.bf16.msrb.mxu1 %v8910_v44  ;;  %3453 = vmatpush.bf16.msrb.mxu3 %v8911_v10  ;;  %v8915_v44 = vld [vmem:[#allocation127_spill] sm:$0xff] }
 0x4e2   :  { %v3137_v12 = vpop.f32.mrf.mxu2 }
 0x4e4   :  { %3428 = vmatpush.bf16.msrb.mxu1 %v8912_v34  ;;  %3454 = vmatpush.bf16.msrb.mxu3 %v8913_v24  ;;  %v3018_v2 = vpop.f32.mrf.mxu1 }
 0x4e5   :  { %v3019_v26 = vadd.f32 %v3018_v2, %v3005_v47 }
 0x4e7   :  { %v3210_v32 = vadd.f32 %v3019_v26, %v8914_v46  ;;  %v8916_v26 = vld [vmem:[#allocation133_spill] sm:$0xff] }
 0x4e9   :  { %v5270_v56 = vmul.f32 -1.442695, %v3210_v32 }
 0x4ea   :  { %v3044_v15 = vpop.f32.mrf.mxu3 }
 0x4eb   :  { %5623 = vpow2.f32 %v5270_v56  ;;  %v3045_v8 = vadd.f32 %v3044_v15, %v3031_v37 }
 0x4ec   :  { %v3020_v38 = vpop.f32.mrf.mxu1 }
 0x4ed   :  { %v3211_v55 = vadd.f32 %v3045_v8, %v8915_v44 }
 0x4ef   :  { %v5272_v10 = vmul.f32 -1.442695, %v3211_v55 }
 0x4f1   :  { %v5624_v54 = vpop.eup %5623  ;;  %5625 = vpow2.f32 %v5272_v10 }
 0x4f2   :  { %v3230_v34 = vadd.f32 1.0, %v5624_v54  ;;  %v3046_v24 = vpop.f32.mrf.mxu3  ;;  %v8917_v54 = vld [vmem:[#allocation137_spill] sm:$0xff] }
 0x4f4   :  { %5627 = vrcp.f32 %v3230_v34  ;;  %v3070_v40 = vpop.f32.mrf.mxu1  ;;  %v3243_v24 = vand.u32 2147483648, %v3230_v34  ;;  %v3241_v56 = vand.u32 2147483647, %v3230_v34  ;;  %vm3237_vm1 = vweird.f32 %v3230_v34 }
 0x4f5   :  { %v3071_v13 = vadd.f32 %v3070_v40, %v3057_v14 }
 0x4f6   :  { %vm3242_vm3 = vcmp.eq.f32.partialorder %v3241_v56, 8.507059e+37 }
 0x4f7   :  { %v7366_v9 = vpop.f32.mrf.mxu0  ;;  %v5626_v12 = vpop.eup %5625  ;;  %v3212_v32 = vadd.f32 %v3071_v13, %v8916_v26 }
 0x4f8   :  { %v3268_v2 = vadd.f32 1.0, %v5626_v12 }
 0x4fa   :  { %v5628_v46 = vpop.eup %5627  ;;  %5629 = vrcp.f32 %v3268_v2  ;;  %v3096_v47 = vpop.f32.mrf.mxu3  ;;  %vm3275_vm5 = vweird.f32 %v3268_v2 }
 0x4fb   :  { %v3233_v38 = vmul.f32 %v5628_v46, %v3230_v34  ;;  %v3097_v37 = vadd.f32 %v3096_v47, %v3083_v53  ;;  %5631 = vtanh.f32 %v3212_v32  ;;  %vm3238_vm0 = vweird.f32 %v5628_v46 }
 0x4fc   :  { %v3072_v55 = vpop.f32.mrf.mxu1  ;;  %vm3239_vm2 = vmor %vm3237_vm1, %vm3238_vm0  ;;  %v3244_v53 = vor.u32 1.1754944e-38, %v3243_v24 }
 0x4fd   :  { %v7369_v8 = vpop.f32.mrf.mxu2  ;;  %v3234_v44 = vsub.f32 1.0, %v3233_v38  ;;  %v3213_v10 = vadd.f32 %v3097_v37, %v8917_v54  ;;  %v8918_v37 = vld [vmem:[#allocation168_spill] sm:$0xff]  ;;  %v8919_v55 = vld [vmem:[#allocation185_spill] sm:$0xff]  ;;  %v3281_v54 = vand.u32 2147483648, %v3268_v2 }
 0x4fe   :  { %v619_v32 = vadd.f32 %v8919_v55, %v8918_v37  ;;  %v8958_v37 = vld [vmem:[#allocation124_spill] sm:$0xff] }
 0x4ff   :  { %v3163_v40 = vpop.f32.mrf.mxu0  ;;  %v3235_v14 = vmul.f32 %v5628_v46, %v3234_v44  ;;  %v5274_v15 = vmul.f32 -1.442695, %v3213_v10 }
 0x500   :  { %v5630_v12 = vpop.eup %5629  ;;  %v3279_v40 = vand.u32 2147483647, %v3268_v2 }
 0x501   :  { %v3271_v36 = vmul.f32 %v5630_v12, %v3268_v2  ;;  %v3236_v33 = vadd.f32 %v5628_v46, %v3235_v14  ;;  %5633 = vpow2.f32 %v5274_v15  ;;  %v5632_v38 = vpop.eup %5631  ;;  %vm3276_vm4 = vweird.f32 %v5630_v12 }
 0x502   :  { %v3098_v13 = vpop.f32.mrf.mxu3  ;;  %vm3277_vm6 = vmor %vm3275_vm5, %vm3276_vm4  ;;  %vm3280_vm7 = vcmp.eq.f32.partialorder %v3279_v40, 8.507059e+37 }
 0x503   :  { %v3272_v26 = vsub.f32 1.0, %v3271_v36  ;;  %v3240_v47 = vsel %vm3239_vm2, %v5628_v46, %v3236_v33  ;;  %v3282_v33 = vor.u32 1.1754944e-38, %v3281_v54 }
 0x504   :  { %v3245_v44 = vsel %vm3242_vm3, %v3244_v53, %v3240_v47  ;;  %v3122_v10 = vpop.f32.mrf.mxu1  ;;  %v8921_v47 = vld [vmem:[#allocation187_spill] sm:$0xff] }
 0x505   :  { %v3189_v62 = vpop.f32.mrf.mxu2  ;;  %v3273_v0 = vmul.f32 %v5630_v12, %v3272_v26  ;;  %v3342_v14 = vmul.f32 %v5632_v38, %v3245_v44  ;;  %v3123_v34 = vadd.f32 %v3122_v10, %v7356_v21 }
 0x506   :  { %v8920_v62 = vld [vmem:[#allocation169_spill] sm:$0xff] }
 0x507   :  { %v5634_v15 = vpop.eup %5633  ;;  %v3274_v24 = vadd.f32 %v5630_v12, %v3273_v0  ;;  %v3220_v36 = vadd.f32 %v3123_v34, %v619_v32  ;;  %v648_v26 = vadd.f32 %v8921_v47, %v8920_v62  ;;  %v8957_v62 = vld [vmem:[#allocation122_spill] sm:$0xff] }
 0x508   :  { %v3308_v46 = vadd.f32 1.0, %v5634_v15 }
 0x509   :  { %v3278_v56 = vsel %vm3277_vm6, %v5630_v12, %v3274_v24  ;;  %v5271_v13 = vmul.f32 -1.442695, %v3220_v36 }
 0x50a   :  { %v3283_v55 = vsel %vm3280_vm7, %v3282_v33, %v3278_v56  ;;  %5635 = vrcp.f32 %v3308_v46  ;;  %v3148_v53 = vpop.f32.mrf.mxu3  ;;  %v3321_v24 = vand.u32 2147483648, %v3308_v46  ;;  %vm3315_vm9 = vweird.f32 %v3308_v46 }
 0x50b   :  { %v3340_v38 = vmul.f32 %v3283_v55, %v7167_v61  ;;  %5637 = vpow2.f32 %v5271_v13  ;;  %v3149_v21 = vadd.f32 %v3148_v53, %v7362_v52  ;;  %v3319_v52 = vand.u32 2147483647, %v3308_v46 }
 0x50c   :  { %v3124_v2 = vpop.f32.mrf.mxu1  ;;  %v3322_v33 = vor.u32 1.1754944e-38, %v3321_v24 }
 0x50d   :  { %v7379_v0 = vadd.f32 %v3342_v14, %v3340_v38  ;;  %v3221_v32 = vadd.f32 %v3149_v21, %v648_v26  ;;  %vm3320_vm11 = vcmp.eq.f32.partialorder %v3319_v52, 8.507059e+37  ;;  %v8922_v2 = vmax.f32 %v6970_v18, %v7174_v7 }
 0x50f   :  { %v5273_v54 = vmul.f32 -1.442695, %v3221_v32 }
 0x510   :  { %v5636_v44 = vpop.eup %5635 }
 0x511   :  { %v5638_v12 = vpop.eup %5637  ;;  %v3311_v40 = vmul.f32 %v5636_v44, %v3308_v46  ;;  %5639 = vpow2.f32 %v5273_v54  ;;  %vm3316_vm8 = vweird.f32 %v5636_v44 }
 0x512   :  { %v7381_v10 = vadd.f32 1.0, %v5638_v12  ;;  %v3150_v34 = vpop.f32.mrf.mxu3  ;;  %5641 = vtanh.f32 %v7379_v0  ;;  %vm3317_vm10 = vmor %vm3315_vm9, %vm3316_vm8 }
 0x513   :  { %v3312_v15 = vsub.f32 1.0, %v3311_v40  ;;  %v8923_v34 = vld [vmem:[#allocation174_spill] sm:$0xff] }
 0x514   :  { %5643 = vrcp.f32 %v7381_v10  ;;  %vm3252_vm14 = vweird.f32 %v7381_v10 }
 0x515   :  { %v3313_v61 = vmul.f32 %v5636_v44, %v3312_v15  ;;  %v8924_v15 = vld [vmem:[#allocation188_spill] sm:$0xff] }
 0x516   :  { %v677_v18 = vadd.f32 %v8924_v15, %v8923_v34  ;;  %v8955_v34 = vld [vmem:[#allocation24_spill] sm:$0xff] }
 0x517   :  { %v5640_v14 = vpop.eup %5639  ;;  %v3314_v36 = vadd.f32 %v5636_v44, %v3313_v61 }
 0x518   :  { %v3269_v56 = vadd.f32 1.0, %v5640_v14  ;;  %v5642_v13 = vpop.eup %5641 }
 0x519   :  { %v3318_v55 = vsel %vm3317_vm10, %v5636_v44, %v3314_v36 }
 0x51a   :  { %v5644_v53 = vpop.eup %5643  ;;  %v3323_v47 = vsel %vm3320_vm11, %v3322_v33, %v3318_v55  ;;  %5645 = vrcp.f32 %v3269_v56  ;;  %v3296_v61 = vand.u32 2147483648, %v3269_v56  ;;  %v3294_v33 = vand.u32 2147483647, %v3269_v56 }
 0x51b   :  { %v3348_v26 = vmul.f32 %v5642_v13, %v3323_v47  ;;  %v3248_v38 = vmul.f32 %v5644_v53, %v7381_v10  ;;  %vm3253_vm12 = vweird.f32 %v5644_v53  ;;  %v3258_v13 = vand.u32 2147483648, %v7381_v10 }
 0x51c   :  { %vm3290_vm15 = vweird.f32 %v3269_v56  ;;  %vm7407_vm0 = vmor %vm3252_vm14, %vm3253_vm12  ;;  %v3256_v55 = vand.u32 2147483647, %v7381_v10  ;;  %vm3295_vm2 = vcmp.eq.f32.partialorder %v3294_v33, 8.507059e+37 }
 0x51d   :  { %v7387_v21 = vadd.f32 %v3348_v26, %v7179_v51  ;;  %v7392_v32 = vmax.f32 %v8922_v2, %v3348_v26  ;;  %v7394_v46 = vpack.c.bf16 %v3348_v26, %v3348_v26  ;;  %v3249_v54 = vsub.f32 1.0, %v3248_v38  ;;  %v8927_v38 = vld [vmem:[#allocation175_spill] sm:$0xff]  ;;  %v8928_v2 = vld [vmem:[#allocation189_spill] sm:$0xff] }
 0x51e   :  { %v3259_v10 = vor.u32 1.1754944e-38, %v3258_v13  ;;  %vm3257_vm3 = vcmp.eq.f32.partialorder %v3256_v55, 8.507059e+37 }
 0x51f   :  { %3364 = vmatmul.bf16.vlgmr.msra.gmra.mxu0 %v7394_v46  ;;  %3390 = vmatmul.bf16.vlgmr.msra.gmra.mxu2 %v7394_v46  ;;  %v3250_v40 = vmul.f32 %v5644_v53, %v3249_v54  ;;  %v706_v54 = vadd.f32 %v8928_v2, %v8927_v38  ;;  %v8954_v38 = vld [vmem:[#allocation22_spill] sm:$0xff] }
 0x520   :  { %v5646_v44 = vpop.eup %5645  ;;  %3460 = vmatpush.bf16.msra.mxu0 %v8487_v41  ;;  %3486 = vmatpush.bf16.msra.mxu2 %v8593_v19 }
 0x521   :  { %v3286_v12 = vmul.f32 %v5646_v44, %v3269_v56  ;;  %vm3291_vm13 = vweird.f32 %v5646_v44  ;;  %v3251_v36 = vadd.f32 %v5644_v53, %v3250_v40 }
 0x522   :  { %vm3292_vm1 = vmor %vm3290_vm15, %vm3291_vm13 }
 0x523   :  { %v3287_v24 = vsub.f32 1.0, %v3286_v12  ;;  %v3297_v12 = vor.u32 1.1754944e-38, %v3296_v61  ;;  %v3255_v56 = vsel %vm7407_vm0, %v5644_v53, %v3251_v36 }
 0x524   :  { %v3174_v51 = vpop.f32.mrf.mxu1  ;;  %3461 = vmatpush.bf16.msra.mxu0 %v8595_v1  ;;  %3487 = vmatpush.bf16.msra.mxu2 %v8702_v27  ;;  %v3260_v61 = vsel %vm3257_vm3, %v3259_v10, %v3255_v56  ;;  %v8929_v10 = vmax.f32 %v7029_v59, %v7232_v39  ;;  %v8932_v59 = vld [vmem:[#allocation152_spill] sm:$0xff]  ;;  %v8933_v39 = vld [vmem:[#allocation154_spill] sm:$0xff] }
 0x525   :  { %v3175_v7 = vadd.f32 %v3174_v51, %v7366_v9  ;;  %v3288_v14 = vmul.f32 %v5646_v44, %v3287_v24 }
 0x527   :  { %v3222_v52 = vadd.f32 %v3175_v7, %v677_v18  ;;  %v3289_v47 = vadd.f32 %v5646_v44, %v3288_v14 }
 0x528   :  { %3462 = vmatpush.bf16.msra.mxu0 %v8599_v42  ;;  %3488 = vmatpush.bf16.msra.mxu2 %v8600_v60 }
 0x529   :  { %5647 = vtanh.f32 %v3222_v52  ;;  %v3293_v40 = vsel %vm3292_vm1, %v5646_v44, %v3289_v47 }
 0x52a   :  { %v3200_v26 = vpop.f32.mrf.mxu3  ;;  %v3298_v18 = vsel %vm3295_vm2, %v3297_v12, %v3293_v40 }
 0x52b   :  { %v3201_v51 = vadd.f32 %v3200_v26, %v7369_v8  ;;  %v3341_v24 = vmul.f32 %v3298_v18, %v7211_v35 }
 0x52c   :  { %v3176_v15 = vpop.f32.mrf.mxu1  ;;  %3463 = vmatpush.bf16.msra.mxu0 %v8493_v58  ;;  %3489 = vmatpush.bf16.msra.mxu2 %v8494_v63 }
 0x52d   :  { %v3223_v7 = vadd.f32 %v3201_v51, %v706_v54 }
 0x52f   :  { %v5648_v52 = vpop.eup %5647  ;;  %v5275_v14 = vmul.f32 -1.442695, %v3223_v7  ;;  %3416 = vmatmul.bf16.vlgmr.msrb.gmra.mxu0 %v7394_v46  ;;  %3442 = vmatmul.bf16.vlgmr.msrb.gmra.mxu2 %v7394_v46 }
 0x530   :  { %v3343_v8 = vmul.f32 %v5648_v52, %v3260_v61  ;;  %3464 = vmatpush.bf16.msra.mxu0 %v8495_v28  ;;  %3490 = vmatpush.bf16.msra.mxu2 %v8496_v25  ;;  %v8934_v52 = vld [vmem:[#allocation89_spill] sm:$0xff]  ;;  %v8935_v61 = vld [vmem:[#allocation91_spill] sm:$0xff] }
 0x531   :  { %5649 = vpow2.f32 %v5275_v14  ;;  %v8936_v14 = vld [vmem:[#allocation156_spill] sm:$0xff] }
 0x532   :  { %v7422_v9 = vadd.f32 %v3343_v8, %v3341_v24  ;;  %v3202_v53 = vpop.f32.mrf.mxu3  ;;  %v8931_v24 = vld [vmem:[#allocation84_spill] sm:$0xff] }
 0x533   :  { %v8937_v8 = vld [vmem:[#allocation160_spill] sm:$0xff]  ;;  %v8938_v53 = vld [vmem:[#allocation94_spill] sm:$0xff] }
 0x534   :  { %3465 = vmatpush.bf16.msra.mxu0 %v8497_v43  ;;  %3491 = vmatpush.bf16.msra.mxu2 %v8498_v5 }
 0x537   :  { %v5650_v35 = vpop.eup %5649 }
 0x538   :  { %v3309_v44 = vadd.f32 1.0, %v5650_v35  ;;  %3466 = vmatpush.bf16.msra.mxu0 %v8499_v30  ;;  %3492 = vmatpush.bf16.msra.mxu2 %v8500_v6  ;;  %v8939_v35 = vld [vmem:[#allocation97_spill] sm:$0xff] }
 0x53a   :  { %5651 = vrcp.f32 %v3309_v44  ;;  %v3336_v55 = vand.u32 2147483648, %v3309_v44  ;;  %v3334_v26 = vand.u32 2147483647, %v3309_v44  ;;  %vm3330_vm5 = vweird.f32 %v3309_v44 }
 0x53b   :  { %5653 = vtanh.f32 %v7422_v9 }
 0x53c   :  { %3467 = vmatpush.bf16.msra.mxu0 %v6226_v49  ;;  %3493 = vmatpush.bf16.msra.mxu2 %v6232_v4  ;;  %v3337_v54 = vor.u32 1.1754944e-38, %v3336_v55  ;;  %vm3335_vm7 = vcmp.eq.f32.partialorder %v3334_v26, 8.507059e+37  ;;  %v8944_v55 = vld [vmem:[#allocation103_spill] sm:$0xff]  ;;  %v8946_v26 = vld [vmem:[#allocation14_spill] sm:$0xff] }
 0x53f   :  { %3468 = vmatmul.bf16.vlgmr.msra.gmra.mxu0 %v7394_v46  ;;  %3494 = vmatmul.bf16.vlgmr.msra.gmra.mxu2 %v7394_v46 }
 0x540   :  { %v5652_v36 = vpop.eup %5651  ;;  %3512 = vmatpush.bf16.msrb.mxu0 %v6239_v16  ;;  %3538 = vmatpush.bf16.msrb.mxu2 %v6245_v31 }
 0x541   :  { %v3326_v33 = vmul.f32 %v5652_v36, %v3309_v44  ;;  %vm3331_vm4 = vweird.f32 %v5652_v36  ;;  %v5654_v51 = vpop.eup %5653  ;;  %v8940_v44 = vld [vmem:[#allocation164_spill] sm:$0xff] }
 0x542   :  { %vm3332_vm6 = vmor %vm3330_vm5, %vm3331_vm4 }
 0x543   :  { %v3327_v13 = vsub.f32 1.0, %v3326_v33  ;;  %v8942_v33 = vld [vmem:[#allocation10_spill] sm:$0xff] }
 0x544   :  { %3513 = vmatpush.bf16.msrb.mxu0 %v8501_v20  ;;  %3539 = vmatpush.bf16.msrb.mxu2 %v8502_v3 }
 0x545   :  { %v3328_v47 = vmul.f32 %v5652_v36, %v3327_v13  ;;  %v8943_v13 = vld [vmem:[#allocation12_spill] sm:$0xff] }
 0x547   :  { %v3329_v2 = vadd.f32 %v5652_v36, %v3328_v47  ;;  %v8945_v47 = vld [vmem:[#allocation105_spill] sm:$0xff] }
 0x548   :  { %3514 = vmatpush.bf16.msrb.mxu0 %v8503_v22  ;;  %3540 = vmatpush.bf16.msrb.mxu2 %v8504_v48 }
 0x549   :  { %v3333_v12 = vsel %vm3332_vm6, %v5652_v36, %v3329_v2  ;;  %v8941_v36 = vld [vmem:[#allocation166_spill] sm:$0xff]  ;;  %v8947_v2 = vld [vmem:[#allocation16_spill] sm:$0xff] }
 0x54a   :  { %v3338_v56 = vsel %vm3335_vm7, %v3337_v54, %v3333_v12  ;;  %v8948_v54 = vld [vmem:[#allocation109_spill] sm:$0xff]  ;;  %v8949_v12 = vld [vmem:[#allocation111_spill] sm:$0xff] }
 0x54b   :  { %v3349_v40 = vmul.f32 %v5654_v51, %v3338_v56  ;;  %v8950_v51 = vld [vmem:[#allocation18_spill] sm:$0xff]  ;;  %v8951_v56 = vld [vmem:[#allocation20_spill] sm:$0xff] }
 0x54c   :  { %3515 = vmatpush.bf16.msrb.mxu0 %v8505_v11  ;;  %3541 = vmatpush.bf16.msrb.mxu2 %v8506_v45 }
 0x54d   :  { %v7446_v15 = vadd.f32 %v3349_v40, %v7238_v57  ;;  %v7451_v18 = vmax.f32 %v8929_v10, %v3349_v40  ;;  %v7453_v7 = vpack.c.bf16 %v3349_v40, %v3349_v40  ;;  %v8930_v57 = vld [vmem:[#allocation81_spill] sm:$0xff]  ;;  %v8953_v10 = vld [vmem:[#allocation119_spill] sm:$0xff] }
 0x54e   :  { %v8952_v40 = vld [vmem:[#allocation117_spill] sm:$0xff] }
 0x54f   :  { %3377 = vmatmul.bf16.vlgmr.msra.gmra.mxu1 %v7453_v7  ;;  %3403 = vmatmul.bf16.vlgmr.msra.gmra.mxu3 %v7453_v7 }
 0x550   :  { %3473 = vmatpush.bf16.msra.mxu1 %v8510_v23  ;;  %3499 = vmatpush.bf16.msra.mxu3 %v8511_v50 }
 0x551   :  { %3516 = vmatpush.bf16.msrb.mxu0 %v8508_v29  ;;  %3542 = vmatpush.bf16.msrb.mxu2 %v8509_v17 }
 0x554   :  { %3474 = vmatpush.bf16.msra.mxu1 %v8930_v57  ;;  %3500 = vmatpush.bf16.msra.mxu3 %v8931_v24 }
 0x555   :  { %3517 = vmatpush.bf16.msrb.mxu0 %v8932_v59  ;;  %3543 = vmatpush.bf16.msrb.mxu2 %v8933_v39 }
 0x558   :  { %3475 = vmatpush.bf16.msra.mxu1 %v8934_v52  ;;  %3501 = vmatpush.bf16.msra.mxu3 %v8935_v61 }
 0x559   :  { %3518 = vmatpush.bf16.msrb.mxu0 %v8936_v14  ;;  %3544 = vmatpush.bf16.msrb.mxu2 %v8937_v8 }
 0x55c   :  { %3476 = vmatpush.bf16.msra.mxu1 %v8938_v53  ;;  %3502 = vmatpush.bf16.msra.mxu3 %v8939_v35  ;;  %v9032_v35 = vld [vmem:[#allocation98_spill] sm:$0xff] }
 0x55d   :  { %3519 = vmatpush.bf16.msrb.mxu0 %v8940_v44  ;;  %3545 = vmatpush.bf16.msrb.mxu2 %v8941_v36 }
 0x55f   :  { %3429 = vmatmul.bf16.vlgmr.msrb.gmra.mxu1 %v7453_v7  ;;  %3455 = vmatmul.bf16.vlgmr.msrb.gmra.mxu3 %v7453_v7 }
 0x560   :  { %3477 = vmatpush.bf16.msra.mxu1 %v8944_v55  ;;  %3503 = vmatpush.bf16.msra.mxu3 %v8945_v47  ;;  %v9022_v47 = vld [vmem:[#allocation59_spill] sm:$0xff] }
 0x561   :  { %3716 = vmatpush.bf16.msra.mxu0 %v8942_v33  ;;  %3742 = vmatpush.bf16.msra.mxu2 %v8943_v13  ;;  %v9031_v13 = vld [vmem:[#allocation134_spill] sm:$0xff] }
 0x562   :  { %3520 = vmatmul.bf16.vlgmr.msrb.gmra.mxu0 %v7394_v46  ;;  %3546 = vmatmul.bf16.vlgmr.msrb.gmra.mxu2 %v7394_v46  ;;  %v8956_v46 = vld [vmem:[#allocation120_spill] sm:$0xff] }
 0x564   :  { %3478 = vmatpush.bf16.msra.mxu1 %v8948_v54  ;;  %3504 = vmatpush.bf16.msra.mxu3 %v8949_v12  ;;  %v8959_v54 = vld [vmem:[#allocation126_spill] sm:$0xff] }
 0x565   :  { %3717 = vmatpush.bf16.msra.mxu0 %v8946_v26  ;;  %3743 = vmatpush.bf16.msra.mxu2 %v8947_v2  ;;  %v8960_v12 = vld [vmem:[#allocation26_spill] sm:$0xff]  ;;  %v9018_v26 = vld [vmem:[#allocation51_spill] sm:$0xff] }
 0x568   :  { %3479 = vmatpush.bf16.msra.mxu1 %v8952_v40  ;;  %3505 = vmatpush.bf16.msra.mxu3 %v8953_v10  ;;  %v8962_v10 = vld [vmem:[#allocation129_spill] sm:$0xff]  ;;  %v8971_v40 = vld [vmem:[#allocation143_spill] sm:$0xff] }
 0x569   :  { %3718 = vmatpush.bf16.msra.mxu0 %v8950_v51  ;;  %3744 = vmatpush.bf16.msra.mxu2 %v8951_v56  ;;  %v8961_v51 = vld [vmem:[#allocation28_spill] sm:$0xff]  ;;  %v8972_v56 = vld [vmem:[#allocation38_spill] sm:$0xff] }
 0x56c   :  { %3480 = vmatpush.bf16.msra.mxu1 %v8956_v46  ;;  %3506 = vmatpush.bf16.msra.mxu3 %v8957_v62  ;;  %v8965_v46 = vld [vmem:[#allocation32_spill] sm:$0xff]  ;;  %v8966_v62 = vld [vmem:[#allocation135_spill] sm:$0xff] }
 0x56d   :  { %3719 = vmatpush.bf16.msra.mxu0 %v8954_v38  ;;  %3745 = vmatpush.bf16.msra.mxu2 %v8955_v34  ;;  %v8963_v38 = vld [vmem:[#allocation131_spill] sm:$0xff]  ;;  %v8964_v34 = vld [vmem:[#allocation30_spill] sm:$0xff] }
 0x56f   :  { %3481 = vmatmul.bf16.vlgmr.msra.gmra.mxu1 %v7453_v7  ;;  %3507 = vmatmul.bf16.vlgmr.msra.gmra.mxu3 %v7453_v7 }
 0x570   :  { %3525 = vmatpush.bf16.msrb.mxu1 %v8958_v37  ;;  %3551 = vmatpush.bf16.msrb.mxu3 %v8959_v54  ;;  %v8967_v37 = vld [vmem:[#allocation139_spill] sm:$0xff]  ;;  %v8968_v54 = vld [vmem:[#allocation34_spill] sm:$0xff] }
 0x571   :  { %3720 = vmatpush.bf16.msra.mxu0 %v8960_v12  ;;  %3746 = vmatpush.bf16.msra.mxu2 %v8961_v51  ;;  %v8969_v12 = vld [vmem:[#allocation36_spill] sm:$0xff]  ;;  %v8970_v51 = vld [vmem:[#allocation141_spill] sm:$0xff] }
 0x574   :  { %3526 = vmatpush.bf16.msrb.mxu1 %v8962_v10  ;;  %3552 = vmatpush.bf16.msrb.mxu3 %v8963_v38  ;;  %v8973_v10 = vld [vmem:[#allocation40_spill] sm:$0xff]  ;;  %v8974_v38 = vld [vmem:[#allocation42_spill] sm:$0xff] }
 0x575   :  { %3721 = vmatpush.bf16.msra.mxu0 %v8964_v34  ;;  %3747 = vmatpush.bf16.msra.mxu2 %v8965_v46  ;;  %v8975_v34 = vld [vmem:[#allocation44_spill] sm:$0xff]  ;;  %v8976_v46 = vld [vmem:[#allocation147_spill] sm:$0xff] }
 0x578   :  { %3527 = vmatpush.bf16.msrb.mxu1 %v8966_v62  ;;  %3553 = vmatpush.bf16.msrb.mxu3 %v8967_v37  ;;  %v8977_v62 = vld [vmem:[#allocation150_spill] sm:$0xff] }
 0x579   :  { %3722 = vmatpush.bf16.msra.mxu0 %v8968_v54  ;;  %3748 = vmatpush.bf16.msra.mxu2 %v8969_v12  ;;  %v8978_v37 = vld [vmem:[#allocation46_spill] sm:$0xff]  ;;  %v8979_v54 = vld [vmem:[#allocation48_spill] sm:$0xff]  ;;  %v8980_v12 = vld [vmem:[#allocation153_spill] sm:$0xff] }
 0x57c   :  { %3528 = vmatpush.bf16.msrb.mxu1 %v8970_v51  ;;  %3554 = vmatpush.bf16.msrb.mxu3 %v8971_v40  ;;  %v8981_v51 = vld [vmem:[#allocation155_spill] sm:$0xff]  ;;  %v8982_v40 = vld [vmem:[#allocation50_spill] sm:$0xff] }
 0x57d   :  { %3723 = vmatpush.bf16.msra.mxu0 %v8972_v56  ;;  %3749 = vmatpush.bf16.msra.mxu2 %v8973_v10  ;;  %v8983_v56 = vld [vmem:[#allocation52_spill] sm:$0xff]  ;;  %v8984_v10 = vld [vmem:[#allocation159_spill] sm:$0xff] }
 0x580   :  { %3529 = vmatpush.bf16.msrb.mxu1 %v8976_v46  ;;  %3555 = vmatpush.bf16.msrb.mxu3 %v8977_v62  ;;  %v8987_v46 = vld [vmem:[#allocation56_spill] sm:$0xff]  ;;  %v8988_v62 = vld [vmem:[#allocation165_spill] sm:$0xff] }
 0x581   :  { %3768 = vmatpush.bf16.msrb.mxu0 %v8974_v38  ;;  %3794 = vmatpush.bf16.msrb.mxu2 %v8975_v34  ;;  %v8985_v38 = vld [vmem:[#allocation163_spill] sm:$0xff]  ;;  %v8986_v34 = vld [vmem:[#allocation54_spill] sm:$0xff] }
 0x584   :  { %3530 = vmatpush.bf16.msrb.mxu1 %v8980_v12  ;;  %3556 = vmatpush.bf16.msrb.mxu3 %v8981_v51  ;;  %v8991_v12 = vld [vmem:[#allocation13_spill] sm:$0xff]  ;;  %v8992_v51 = vld [vmem:[#allocation58_spill] sm:$0xff] }
 0x585   :  { %3769 = vmatpush.bf16.msrb.mxu0 %v8978_v37  ;;  %3795 = vmatpush.bf16.msrb.mxu2 %v8979_v54  ;;  %v8989_v37 = vld [vmem:[#allocation167_spill] sm:$0xff] }
 0x586   :  { %v8990_v54 = vld [vmem:[#allocation11_spill] sm:$0xff] }
 0x588   :  { %3531 = vmatpush.bf16.msrb.mxu1 %v8984_v10  ;;  %3557 = vmatpush.bf16.msrb.mxu3 %v8985_v38  ;;  %v8994_v38 = vld [vmem:[#allocation15_spill] sm:$0xff]  ;;  %v9003_v10 = vld [vmem:[#allocation25_spill] sm:$0xff] }
 0x589   :  { %3770 = vmatpush.bf16.msrb.mxu0 %v8982_v40  ;;  %3796 = vmatpush.bf16.msrb.mxu2 %v8983_v56  ;;  %v8993_v40 = vld [vmem:[#allocation60_spill] sm:$0xff]  ;;  %v9012_v56 = vld [vmem:[#allocation39_spill] sm:$0xff] }
 0x58c   :  { %3532 = vmatpush.bf16.msrb.mxu1 %v8988_v62  ;;  %3558 = vmatpush.bf16.msrb.mxu3 %v8989_v37  ;;  %v8997_v62 = vld [vmem:[#allocation64_spill] sm:$0xff]  ;;  %v8998_v37 = vld [vmem:[#allocation19_spill] sm:$0xff] }
 0x58d   :  { %3771 = vmatpush.bf16.msrb.mxu0 %v8986_v34  ;;  %3797 = vmatpush.bf16.msrb.mxu2 %v8987_v46  ;;  %v8995_v34 = vld [vmem:[#allocation17_spill] sm:$0xff]  ;;  %v8996_v46 = vld [vmem:[#allocation62_spill] sm:$0xff] }
 0x58f   :  { %3533 = vmatmul.bf16.vlgmr.msrb.gmra.mxu1 %v7453_v7  ;;  %3559 = vmatmul.bf16.vlgmr.msrb.gmra.mxu3 %v7453_v7  ;;  %v9004_v7 = vld [vmem:[#allocation70_spill] sm:$0xff] }
 0x590   :  { %3729 = vmatpush.bf16.msra.mxu1 %v8990_v54  ;;  %3755 = vmatpush.bf16.msra.mxu3 %v8991_v12  ;;  %v8999_v54 = vld [vmem:[#allocation21_spill] sm:$0xff]  ;;  %v9000_v12 = vld [vmem:[#allocation66_spill] sm:$0xff] }
 0x591   :  { %3772 = vmatpush.bf16.msrb.mxu0 %v8992_v51  ;;  %3798 = vmatpush.bf16.msrb.mxu2 %v8993_v40  ;;  %v9001_v51 = vld [vmem:[#allocation68_spill] sm:$0xff]  ;;  %v9002_v40 = vld [vmem:[#allocation23_spill] sm:$0xff] }
 0x594   :  { %3730 = vmatpush.bf16.msra.mxu1 %v8994_v38  ;;  %3756 = vmatpush.bf16.msra.mxu3 %v8995_v34  ;;  %v9005_v38 = vld [vmem:[#allocation72_spill] sm:$0xff]  ;;  %v9006_v34 = vld [vmem:[#allocation27_spill] sm:$0xff] }
 0x595   :  { %3773 = vmatpush.bf16.msrb.mxu0 %v8996_v46  ;;  %3799 = vmatpush.bf16.msrb.mxu2 %v8997_v62  ;;  %v9007_v46 = vld [vmem:[#allocation29_spill] sm:$0xff]  ;;  %v9008_v62 = vld [vmem:[#allocation31_spill] sm:$0xff] }
 0x598   :  { %3731 = vmatpush.bf16.msra.mxu1 %v8998_v37  ;;  %3757 = vmatpush.bf16.msra.mxu3 %v8999_v54  ;;  %v9009_v37 = vld [vmem:[#allocation33_spill] sm:$0xff] }
 0x599   :  { %3774 = vmatpush.bf16.msrb.mxu0 %v9000_v12  ;;  %3800 = vmatpush.bf16.msrb.mxu2 %v9001_v51  ;;  %v9010_v12 = vld [vmem:[#allocation35_spill] sm:$0xff]  ;;  %v9011_v51 = vld [vmem:[#allocation37_spill] sm:$0xff] }
 0x59c   :  { %3732 = vmatpush.bf16.msra.mxu1 %v9002_v40  ;;  %3758 = vmatpush.bf16.msra.mxu3 %v9003_v10  ;;  %v3365_v54 = vpop.f32.mrf.mxu0  ;;  %v9013_v10 = vld [vmem:[#allocation41_spill] sm:$0xff] }
 0x59d   :  { %3775 = vmatpush.bf16.msrb.mxu0 %v9004_v7  ;;  %3801 = vmatpush.bf16.msrb.mxu2 %v9005_v38  ;;  %v9014_v38 = vld [vmem:[#allocation43_spill] sm:$0xff] }
 0x5a0   :  { %3733 = vmatpush.bf16.msra.mxu1 %v9006_v34  ;;  %3759 = vmatpush.bf16.msra.mxu3 %v9007_v46  ;;  %v9015_v34 = vld [vmem:[#allocation45_spill] sm:$0xff]  ;;  %v9016_v46 = vld [vmem:[#allocation47_spill] sm:$0xff] }
 0x5a2   :  { %v3391_v40 = vpop.f32.mrf.mxu2 }
 0x5a4   :  { %3734 = vmatpush.bf16.msra.mxu1 %v9008_v62  ;;  %3760 = vmatpush.bf16.msra.mxu3 %v9009_v37  ;;  %v3367_v7 = vpop.f32.mrf.mxu0  ;;  %v9017_v62 = vld [vmem:[#allocation49_spill] sm:$0xff] }
 0x5a8   :  { %3735 = vmatpush.bf16.msra.mxu1 %v9010_v12  ;;  %3761 = vmatpush.bf16.msra.mxu3 %v9011_v51  ;;  %v9019_v12 = vld [vmem:[#allocation53_spill] sm:$0xff]  ;;  %v9020_v51 = vld [vmem:[#allocation55_spill] sm:$0xff] }
 0x5aa   :  { %v3393_v37 = vpop.f32.mrf.mxu2 }
 0x5ac   :  { %3736 = vmatpush.bf16.msra.mxu1 %v9012_v56  ;;  %3762 = vmatpush.bf16.msra.mxu3 %v9013_v10  ;;  %v3417_v2 = vpop.f32.mrf.mxu0  ;;  %v9021_v56 = vld [vmem:[#allocation57_spill] sm:$0xff] }
 0x5b0   :  { %3781 = vmatpush.bf16.msrb.mxu1 %v9014_v38  ;;  %3807 = vmatpush.bf16.msrb.mxu3 %v9015_v34  ;;  %v9023_v38 = vld [vmem:[#allocation61_spill] sm:$0xff]  ;;  %v9024_v34 = vld [vmem:[#allocation63_spill] sm:$0xff] }
 0x5b2   :  { %v3443_v10 = vpop.f32.mrf.mxu2 }
 0x5b4   :  { %3782 = vmatpush.bf16.msrb.mxu1 %v9016_v46  ;;  %3808 = vmatpush.bf16.msrb.mxu3 %v9017_v62  ;;  %v3419_v7 = vpop.f32.mrf.mxu0  ;;  %v9025_v46 = vld [vmem:[#allocation65_spill] sm:$0xff] }
 0x5b8   :  { %3783 = vmatpush.bf16.msrb.mxu1 %v9018_v26  ;;  %3809 = vmatpush.bf16.msrb.mxu3 %v9019_v12  ;;  %v9026_v26 = vld [vmem:[#allocation67_spill] sm:$0xff]  ;;  %v9027_v12 = vld [vmem:[#allocation69_spill] sm:$0xff] }
 0x5ba   :  { %v3445_v37 = vpop.f32.mrf.mxu2 }
 0x5bc   :  { %3784 = vmatpush.bf16.msrb.mxu1 %v9020_v51  ;;  %3810 = vmatpush.bf16.msrb.mxu3 %v9021_v56  ;;  %v7565_v62 = vpop.f32.mrf.mxu0  ;;  %v9028_v51 = vld [vmem:[#allocation71_spill] sm:$0xff]  ;;  %v9029_v56 = vld [vmem:[#allocation73_spill] sm:$0xff] }
 0x5c0   :  { %3785 = vmatpush.bf16.msrb.mxu1 %v9022_v47  ;;  %3811 = vmatpush.bf16.msrb.mxu3 %v9023_v38  ;;  %v9030_v38 = vld [vmem:[#allocation92_spill] sm:$0xff] }
 0x5c2   :  { %v7571_v7 = vpop.f32.mrf.mxu2 }
 0x5c4   :  { %3786 = vmatpush.bf16.msrb.mxu1 %v9024_v34  ;;  %3812 = vmatpush.bf16.msrb.mxu3 %v9025_v46  ;;  %v3471_v47 = vpop.f32.mrf.mxu0  ;;  %v508_v34 = vadd.f32 %v9031_v13, %v9030_v38 }
 0x5c8   :  { %3787 = vmatpush.bf16.msrb.mxu1 %v9026_v26  ;;  %3813 = vmatpush.bf16.msrb.mxu3 %v9027_v12  ;;  %v9033_v26 = vld [vmem:[#allocation138_spill] sm:$0xff] }
 0x5c9   :  { %v537_v53 = vadd.f32 %v9033_v26, %v9032_v35 }
 0x5ca   :  { %v3497_v46 = vpop.f32.mrf.mxu2 }
 0x5cc   :  { %3788 = vmatpush.bf16.msrb.mxu1 %v9028_v51  ;;  %3814 = vmatpush.bf16.msrb.mxu3 %v9029_v56  ;;  %v3378_v55 = vpop.f32.mrf.mxu1 }
 0x5cd   :  { %v3379_v33 = vadd.f32 %v3378_v55, %v3365_v54  ;;  %v9035_v54 = vld [vmem:[#allocation144_spill] sm:$0xff] }
 0x5cf   :  { %v3570_v37 = vadd.f32 %v3379_v33, %v508_v34  ;;  %v9034_v33 = vld [vmem:[#allocation106_spill] sm:$0xff] }
 0x5d0   :  { %v566_v46 = vadd.f32 %v9035_v54, %v9034_v33 }
 0x5d1   :  { %v5276_v36 = vmul.f32 -1.442695, %v3570_v37 }
 0x5d2   :  { %v3404_v44 = vpop.f32.mrf.mxu3 }
 0x5d3   :  { %5655 = vpow2.f32 %v5276_v36  ;;  %v3405_v12 = vadd.f32 %v3404_v44, %v3391_v40 }
 0x5d4   :  { %v3380_v51 = vpop.f32.mrf.mxu1 }
 0x5d5   :  { %v3571_v8 = vadd.f32 %v3405_v12, %v537_v53  ;;  %v9036_v53 = vld [vmem:[#allocation107_spill] sm:$0xff] }
 0x5d7   :  { %v5278_v56 = vmul.f32 -1.442695, %v3571_v8  ;;  %v9037_v8 = vld [vmem:[#allocation146_spill] sm:$0xff] }
 0x5d8   :  { %v595_v12 = vadd.f32 %v9037_v8, %v9036_v53 }
 0x5d9   :  { %v5656_v14 = vpop.eup %5655  ;;  %5657 = vpow2.f32 %v5278_v56 }
 0x5da   :  { %v3590_v47 = vadd.f32 1.0, %v5656_v14  ;;  %v3406_v61 = vpop.f32.mrf.mxu3 }
 0x5dc   :  { %5659 = vrcp.f32 %v3590_v47  ;;  %v3430_v52 = vpop.f32.mrf.mxu1  ;;  %v3603_v40 = vand.u32 2147483648, %v3590_v47  ;;  %vm3597_vm9 = vweird.f32 %v3590_v47 }
 0x5dd   :  { %v3431_v13 = vadd.f32 %v3430_v52, %v3417_v2 }
 0x5de   :  { %v3604_v8 = vor.u32 1.1754944e-38, %v3603_v40 }
 0x5df   :  { %v7577_v55 = vpop.f32.mrf.mxu0  ;;  %v5658_v34 = vpop.eup %5657  ;;  %v3572_v44 = vadd.f32 %v3431_v13, %v566_v46 }
 0x5e0   :  { %v3628_v37 = vadd.f32 1.0, %v5658_v34  ;;  %v3601_v34 = vand.u32 2147483647, %v3590_v47 }
 0x5e2   :  { %v5660_v26 = vpop.eup %5659  ;;  %5661 = vrcp.f32 %v3628_v37  ;;  %v3456_v36 = vpop.f32.mrf.mxu3  ;;  %vm3602_vm11 = vcmp.eq.f32.partialorder %v3601_v34, 8.507059e+37  ;;  %vm3635_vm13 = vweird.f32 %v3628_v37 }
 0x5e3   :  { %v3593_v51 = vmul.f32 %v5660_v26, %v3590_v47  ;;  %v3457_v14 = vadd.f32 %v3456_v36, %v3443_v10  ;;  %5663 = vtanh.f32 %v3572_v44  ;;  %vm3598_vm8 = vweird.f32 %v5660_v26 }
 0x5e4   :  { %v3432_v56 = vpop.f32.mrf.mxu1  ;;  %vm3599_vm10 = vmor %vm3597_vm9, %vm3598_vm8  ;;  %v3639_v44 = vand.u32 2147483647, %v3628_v37 }
 0x5e5   :  { %v7583_v61 = vpop.f32.mrf.mxu2  ;;  %v3594_v52 = vsub.f32 1.0, %v3593_v51  ;;  %v3573_v2 = vadd.f32 %v3457_v14, %v595_v12  ;;  %v3641_v12 = vand.u32 2147483648, %v3628_v37 }
 0x5e6   :  { %vm3640_vm15 = vcmp.eq.f32.partialorder %v3639_v44, 8.507059e+37 }
 0x5e7   :  { %v3523_v35 = vpop.f32.mrf.mxu0  ;;  %v3595_v38 = vmul.f32 %v5660_v26, %v3594_v52  ;;  %v5280_v54 = vmul.f32 -1.442695, %v3573_v2 }
 0x5e8   :  { %v5662_v33 = vpop.eup %5661 }
 0x5e9   :  { %v3631_v13 = vmul.f32 %v5662_v33, %v3628_v37  ;;  %v3596_v46 = vadd.f32 %v5660_v26, %v3595_v38  ;;  %5665 = vpow2.f32 %v5280_v54  ;;  %v5664_v51 = vpop.eup %5663  ;;  %vm3636_vm12 = vweird.f32 %v5662_v33  ;;  %v9038_v54 = vld [vmem:[#allocation182_spill] sm:$0xff]  ;;  %v9039_v37 = vld [vmem:[#allocation183_spill] sm:$0xff] }
 0x5ea   :  { %v3458_v10 = vpop.f32.mrf.mxu3  ;;  %vm3637_vm14 = vmor %vm3635_vm13, %vm3636_vm12 }
 0x5eb   :  { %v3632_v36 = vsub.f32 1.0, %v3631_v13  ;;  %v3600_v53 = vsel %vm3599_vm10, %v5660_v26, %v3596_v46  ;;  %v3642_v13 = vor.u32 1.1754944e-38, %v3641_v12 }
 0x5ec   :  { %v3605_v14 = vsel %vm3602_vm11, %v3604_v8, %v3600_v53  ;;  %v3482_v56 = vpop.f32.mrf.mxu1 }
 0x5ed   :  { %v3549_v35 = vpop.f32.mrf.mxu2  ;;  %v3633_v52 = vmul.f32 %v5662_v33, %v3632_v36  ;;  %v3702_v2 = vmul.f32 %v5664_v51, %v3605_v14  ;;  %v3483_v39 = vadd.f32 %v3482_v56, %v7565_v62 }
 0x5ef   :  { %v5666_v38 = vpop.eup %5665  ;;  %v3634_v47 = vadd.f32 %v5662_v33, %v3633_v52  ;;  %v3580_v40 = vadd.f32 %v3483_v39, %v9038_v54 }
 0x5f0   :  { %v3668_v26 = vadd.f32 1.0, %v5666_v38 }
 0x5f1   :  { %v3638_v34 = vsel %vm3637_vm14, %v5662_v33, %v3634_v47  ;;  %v5277_v46 = vmul.f32 -1.442695, %v3580_v40 }
 0x5f2   :  { %v3643_v53 = vsel %vm3640_vm15, %v3642_v13, %v3638_v34  ;;  %5667 = vrcp.f32 %v3668_v26  ;;  %v3508_v8 = vpop.f32.mrf.mxu3  ;;  %vm3675_vm1 = vweird.f32 %v3668_v26 }
 0x5f3   :  { %v3700_v10 = vmul.f32 %v3643_v53, %v7379_v0  ;;  %5669 = vpow2.f32 %v5277_v46  ;;  %v3509_v36 = vadd.f32 %v3508_v8, %v7571_v7  ;;  %v3681_v0 = vand.u32 2147483648, %v3668_v26 }
 0x5f4   :  { %v3484_v62 = vpop.f32.mrf.mxu1 }
 0x5f5   :  { %v7589_v51 = vadd.f32 %v3702_v2, %v3700_v10  ;;  %v3581_v14 = vadd.f32 %v3509_v36, %v9039_v37  ;;  %v3679_v2 = vand.u32 2147483647, %v3668_v26  ;;  %v3682_v54 = vor.u32 1.1754944e-38, %v3681_v0 }
 0x5f7   :  { %v5279_v39 = vmul.f32 -1.442695, %v3581_v14  ;;  %vm3680_vm3 = vcmp.eq.f32.partialorder %v3679_v2, 8.507059e+37 }
 0x5f8   :  { %v5668_v35 = vpop.eup %5667 }
 0x5f9   :  { %v5670_v12 = vpop.eup %5669  ;;  %v3671_v56 = vmul.f32 %v5668_v35, %v3668_v26  ;;  %5671 = vpow2.f32 %v5279_v39  ;;  %vm3676_vm0 = vweird.f32 %v5668_v35  ;;  %v9071_v26 = vld [vmem:[#allocation26_spill] sm:$0xff] }
 0x5fa   :  { %v7592_v33 = vadd.f32 1.0, %v5670_v12  ;;  %v3510_v44 = vpop.f32.mrf.mxu3  ;;  %5673 = vtanh.f32 %v7589_v51  ;;  %vm3677_vm2 = vmor %vm3675_vm1, %vm3676_vm0 }
 0x5fb   :  { %v3672_v52 = vsub.f32 1.0, %v3671_v56 }
 0x5fc   :  { %5675 = vrcp.f32 %v7592_v33  ;;  %vm3612_vm6 = vweird.f32 %v7592_v33 }
 0x5fd   :  { %v3673_v7 = vmul.f32 %v5668_v35, %v3672_v52  ;;  %v9040_v52 = vld [vmem:[#allocation184_spill] sm:$0xff] }
 0x5ff   :  { %v5672_v38 = vpop.eup %5671  ;;  %v3674_v47 = vadd.f32 %v5668_v35, %v3673_v7 }
 0x600   :  { %v3629_v40 = vadd.f32 1.0, %v5672_v38  ;;  %v5674_v13 = vpop.eup %5673 }
 0x601   :  { %v3678_v34 = vsel %vm3677_vm2, %v5668_v35, %v3674_v47  ;;  %v3618_v47 = vand.u32 2147483648, %v7592_v33 }
 0x602   :  { %v5676_v46 = vpop.eup %5675  ;;  %v3683_v53 = vsel %vm3680_vm3, %v3682_v54, %v3678_v34  ;;  %5677 = vrcp.f32 %v3629_v40  ;;  %v3656_v44 = vand.u32 2147483648, %v3629_v40  ;;  %v3654_v38 = vand.u32 2147483647, %v3629_v40 }
 0x603   :  { %v7596_v8 = vmul.f32 %v5674_v13, %v3683_v53  ;;  %v3608_v10 = vmul.f32 %v5676_v46, %v7592_v33  ;;  %vm3613_vm4 = vweird.f32 %v5676_v46  ;;  %vm3650_vm7 = vweird.f32 %v3629_v40 }
 0x604   :  { %vm7619_vm8 = vmor %vm3612_vm6, %vm3613_vm4  ;;  %v3616_v54 = vand.u32 2147483647, %v7592_v33  ;;  %v3657_v53 = vor.u32 1.1754944e-38, %v3656_v44  ;;  %vm3655_vm10 = vcmp.eq.f32.partialorder %v3654_v38, 8.507059e+37 }
 0x605   :  { %v7601_v36 = vadd.f32 %v7596_v8, %v7387_v21  ;;  %v7607_v62 = vpack.c.bf16 %v7596_v8, %v7596_v8  ;;  %v3609_v37 = vsub.f32 1.0, %v3608_v10 }
 0x606   :  { %vm3617_vm11 = vcmp.eq.f32.partialorder %v3616_v54, 8.507059e+37 }
 0x607   :  { %3724 = vmatmul.bf16.vlgmr.msra.gmra.mxu0 %v7607_v62  ;;  %3750 = vmatmul.bf16.vlgmr.msra.gmra.mxu2 %v7607_v62  ;;  %v3610_v35 = vmul.f32 %v5676_v46, %v3609_v37 }
 0x608   :  { %v5678_v14 = vpop.eup %5677  ;;  %3820 = vmatpush.bf16.msra.mxu0 %v8487_v41  ;;  %3846 = vmatpush.bf16.msra.mxu2 %v8593_v19 }
 0x609   :  { %v3646_v39 = vmul.f32 %v5678_v14, %v3629_v40  ;;  %vm3651_vm5 = vweird.f32 %v5678_v14  ;;  %v3611_v2 = vadd.f32 %v5676_v46, %v3610_v35 }
 0x60a   :  { %vm3652_vm9 = vmor %vm3650_vm7, %vm3651_vm5 }
 0x60b   :  { %v3647_v56 = vsub.f32 1.0, %v3646_v39  ;;  %v3615_v37 = vsel %vm7619_vm8, %v5676_v46, %v3611_v2 }
 0x60c   :  { %v3534_v21 = vpop.f32.mrf.mxu1  ;;  %3821 = vmatpush.bf16.msra.mxu0 %v8595_v1  ;;  %3847 = vmatpush.bf16.msra.mxu2 %v8702_v27 }
 0x60d   :  { %v3535_v12 = vadd.f32 %v3534_v21, %v7577_v55  ;;  %v3648_v7 = vmul.f32 %v5678_v14, %v3647_v56  ;;  %v3619_v21 = vor.u32 1.1754944e-38, %v3618_v47 }
 0x60f   :  { %v3582_v0 = vadd.f32 %v3535_v12, %v9040_v52  ;;  %v3649_v13 = vadd.f32 %v5678_v14, %v3648_v7  ;;  %v9043_v12 = vld [vmem:[#allocation186_spill] sm:$0xff]  ;;  %v3620_v52 = vsel %vm3617_vm11, %v3619_v21, %v3615_v37 }
 0x610   :  { %3822 = vmatpush.bf16.msra.mxu0 %v8599_v42  ;;  %3848 = vmatpush.bf16.msra.mxu2 %v8600_v60 }
 0x611   :  { %5679 = vtanh.f32 %v3582_v0  ;;  %v3653_v40 = vsel %vm3652_vm9, %v5678_v14, %v3649_v13 }
 0x612   :  { %v3560_v34 = vpop.f32.mrf.mxu3  ;;  %v3658_v35 = vsel %vm3655_vm10, %v3657_v53, %v3653_v40 }
 0x613   :  { %v3561_v10 = vadd.f32 %v3560_v34, %v7583_v61  ;;  %v3701_v56 = vmul.f32 %v3658_v35, %v7422_v9  ;;  %v9070_v35 = vld [vmem:[#allocation126_spill] sm:$0xff] }
 0x614   :  { %v3536_v39 = vpop.f32.mrf.mxu1  ;;  %3823 = vmatpush.bf16.msra.mxu0 %v8493_v58  ;;  %3849 = vmatpush.bf16.msra.mxu2 %v8494_v63 }
 0x615   :  { %v3583_v33 = vadd.f32 %v3561_v10, %v9043_v12 }
 0x617   :  { %v5680_v44 = vpop.eup %5679  ;;  %v5281_v61 = vmul.f32 -1.442695, %v3583_v33  ;;  %3776 = vmatmul.bf16.vlgmr.msrb.gmra.mxu0 %v7607_v62  ;;  %3802 = vmatmul.bf16.vlgmr.msrb.gmra.mxu2 %v7607_v62  ;;  %v9045_v33 = vld [vmem:[#allocation89_spill] sm:$0xff] }
 0x618   :  { %v3703_v0 = vmul.f32 %v5680_v44, %v3620_v52  ;;  %3824 = vmatpush.bf16.msra.mxu0 %v8495_v28  ;;  %3850 = vmatpush.bf16.msra.mxu2 %v8496_v25  ;;  %v9047_v44 = vld [vmem:[#allocation156_spill] sm:$0xff] }
 0x619   :  { %5681 = vpow2.f32 %v5281_v61  ;;  %v9048_v52 = vld [vmem:[#allocation160_spill] sm:$0xff]  ;;  %v9049_v61 = vld [vmem:[#allocation94_spill] sm:$0xff] }
 0x61a   :  { %v7633_v46 = vadd.f32 %v3703_v0, %v3701_v56  ;;  %v3562_v14 = vpop.f32.mrf.mxu3  ;;  %v9046_v56 = vld [vmem:[#allocation91_spill] sm:$0xff]  ;;  %v9050_v0 = vld [vmem:[#allocation97_spill] sm:$0xff] }
 0x61b   :  { %v9051_v14 = vld [vmem:[#allocation164_spill] sm:$0xff] }
 0x61c   :  { %3825 = vmatpush.bf16.msra.mxu0 %v8497_v43  ;;  %3851 = vmatpush.bf16.msra.mxu2 %v8498_v5 }
 0x61f   :  { %v5682_v9 = vpop.eup %5681 }
 0x620   :  { %v3669_v7 = vadd.f32 1.0, %v5682_v9  ;;  %3826 = vmatpush.bf16.msra.mxu0 %v8499_v30  ;;  %3852 = vmatpush.bf16.msra.mxu2 %v8500_v6  ;;  %v9052_v9 = vld [vmem:[#allocation166_spill] sm:$0xff] }
 0x622   :  { %5683 = vrcp.f32 %v3669_v7  ;;  %v3696_v55 = vand.u32 2147483648, %v3669_v7  ;;  %v3694_v13 = vand.u32 2147483647, %v3669_v7  ;;  %vm3690_vm13 = vweird.f32 %v3669_v7 }
 0x623   :  { %5685 = vtanh.f32 %v7633_v46 }
 0x624   :  { %3827 = vmatpush.bf16.msra.mxu0 %v6226_v49  ;;  %3853 = vmatpush.bf16.msra.mxu2 %v6232_v4  ;;  %v3697_v53 = vor.u32 1.1754944e-38, %v3696_v55  ;;  %vm3695_vm15 = vcmp.eq.f32.partialorder %v3694_v13, 8.507059e+37  ;;  %v9057_v55 = vld [vmem:[#allocation14_spill] sm:$0xff]  ;;  %v9059_v13 = vld [vmem:[#allocation109_spill] sm:$0xff] }
 0x627   :  { %3828 = vmatmul.bf16.vlgmr.msra.gmra.mxu0 %v7607_v62  ;;  %3854 = vmatmul.bf16.vlgmr.msra.gmra.mxu2 %v7607_v62 }
 0x628   :  { %v5684_v2 = vpop.eup %5683  ;;  %3872 = vmatpush.bf16.msrb.mxu0 %v6239_v16  ;;  %3898 = vmatpush.bf16.msrb.mxu2 %v6245_v31 }
 0x629   :  { %v3686_v38 = vmul.f32 %v5684_v2, %v3669_v7  ;;  %vm3691_vm12 = vweird.f32 %v5684_v2  ;;  %v5686_v37 = vpop.eup %5685  ;;  %v9053_v7 = vld [vmem:[#allocation10_spill] sm:$0xff] }
 0x62a   :  { %vm3692_vm14 = vmor %vm3690_vm13, %vm3691_vm12 }
 0x62b   :  { %v3687_v47 = vsub.f32 1.0, %v3686_v38  ;;  %v9055_v38 = vld [vmem:[#allocation103_spill] sm:$0xff] }
 0x62c   :  { %3873 = vmatpush.bf16.msrb.mxu0 %v8501_v20  ;;  %3899 = vmatpush.bf16.msrb.mxu2 %v8502_v3 }
 0x62d   :  { %v3688_v54 = vmul.f32 %v5684_v2, %v3687_v47  ;;  %v9056_v47 = vld [vmem:[#allocation105_spill] sm:$0xff] }
 0x62f   :  { %v3689_v34 = vadd.f32 %v5684_v2, %v3688_v54  ;;  %v9058_v54 = vld [vmem:[#allocation16_spill] sm:$0xff] }
 0x630   :  { %3874 = vmatpush.bf16.msrb.mxu0 %v8503_v22  ;;  %3900 = vmatpush.bf16.msrb.mxu2 %v8504_v48 }
 0x631   :  { %v3693_v10 = vsel %vm3692_vm14, %v5684_v2, %v3689_v34  ;;  %v9054_v2 = vld [vmem:[#allocation12_spill] sm:$0xff]  ;;  %v9060_v34 = vld [vmem:[#allocation111_spill] sm:$0xff] }
 0x632   :  { %v3698_v40 = vsel %vm3695_vm15, %v3697_v53, %v3693_v10  ;;  %v9061_v53 = vld [vmem:[#allocation18_spill] sm:$0xff]  ;;  %v9062_v10 = vld [vmem:[#allocation20_spill] sm:$0xff] }
 0x633   :  { %v7654_v39 = vmul.f32 %v5686_v37, %v3698_v40  ;;  %v9063_v37 = vld [vmem:[#allocation117_spill] sm:$0xff]  ;;  %v9064_v40 = vld [vmem:[#allocation119_spill] sm:$0xff] }
 0x634   :  { %3875 = vmatpush.bf16.msrb.mxu0 %v8505_v11  ;;  %3901 = vmatpush.bf16.msrb.mxu2 %v8506_v45 }
 0x635   :  { %v7660_v21 = vadd.f32 %v7654_v39, %v7446_v15  ;;  %v7666_v12 = vpack.c.bf16 %v7654_v39, %v7654_v39  ;;  %v9044_v15 = vld [vmem:[#allocation154_spill] sm:$0xff] }
 0x637   :  { %3737 = vmatmul.bf16.vlgmr.msra.gmra.mxu1 %v7666_v12  ;;  %3763 = vmatmul.bf16.vlgmr.msra.gmra.mxu3 %v7666_v12 }
 0x638   :  { %3833 = vmatpush.bf16.msra.mxu1 %v8510_v23  ;;  %3859 = vmatpush.bf16.msra.mxu3 %v8511_v50 }
 0x639   :  { %3876 = vmatpush.bf16.msrb.mxu0 %v8508_v29  ;;  %3902 = vmatpush.bf16.msrb.mxu2 %v8509_v17 }
 0x63c   :  { %3834 = vmatpush.bf16.msra.mxu1 %v8930_v57  ;;  %3860 = vmatpush.bf16.msra.mxu3 %v8931_v24 }
 0x63d   :  { %3877 = vmatpush.bf16.msrb.mxu0 %v8932_v59  ;;  %3903 = vmatpush.bf16.msrb.mxu2 %v9044_v15 }
 0x640   :  { %3835 = vmatpush.bf16.msra.mxu1 %v9045_v33  ;;  %3861 = vmatpush.bf16.msra.mxu3 %v9046_v56 }
 0x641   :  { %3878 = vmatpush.bf16.msrb.mxu0 %v9047_v44  ;;  %3904 = vmatpush.bf16.msrb.mxu2 %v9048_v52 }
 0x644   :  { %3836 = vmatpush.bf16.msra.mxu1 %v9049_v61  ;;  %3862 = vmatpush.bf16.msra.mxu3 %v9050_v0 }
 0x645   :  { %3879 = vmatpush.bf16.msrb.mxu0 %v9051_v14  ;;  %3905 = vmatpush.bf16.msrb.mxu2 %v9052_v9 }
 0x647   :  { %3789 = vmatmul.bf16.vlgmr.msrb.gmra.mxu1 %v7666_v12  ;;  %3815 = vmatmul.bf16.vlgmr.msrb.gmra.mxu3 %v7666_v12 }
 0x648   :  { %3837 = vmatpush.bf16.msra.mxu1 %v9055_v38  ;;  %3863 = vmatpush.bf16.msra.mxu3 %v9056_v47  ;;  %v9133_v47 = vld [vmem:[#allocation59_spill] sm:$0xff] }
 0x649   :  { %4076 = vmatpush.bf16.msra.mxu0 %v9053_v7  ;;  %4102 = vmatpush.bf16.msra.mxu2 %v9054_v2  ;;  %v9065_v7 = vld [vmem:[#allocation22_spill] sm:$0xff]  ;;  %v9066_v2 = vld [vmem:[#allocation24_spill] sm:$0xff] }
 0x64a   :  { %3880 = vmatmul.bf16.vlgmr.msrb.gmra.mxu0 %v7607_v62  ;;  %3906 = vmatmul.bf16.vlgmr.msrb.gmra.mxu2 %v7607_v62  ;;  %v9067_v62 = vld [vmem:[#allocation120_spill] sm:$0xff] }
 0x64c   :  { %3838 = vmatpush.bf16.msra.mxu1 %v9059_v13  ;;  %3864 = vmatpush.bf16.msra.mxu3 %v9060_v34  ;;  %v9129_v13 = vld [vmem:[#allocation51_spill] sm:$0xff] }
 0x64d   :  { %4077 = vmatpush.bf16.msra.mxu0 %v9057_v55  ;;  %4103 = vmatpush.bf16.msra.mxu2 %v9058_v54  ;;  %v9068_v55 = vld [vmem:[#allocation122_spill] sm:$0xff]  ;;  %v9069_v54 = vld [vmem:[#allocation124_spill] sm:$0xff] }
 0x650   :  { %3839 = vmatpush.bf16.msra.mxu1 %v9063_v37  ;;  %3865 = vmatpush.bf16.msra.mxu3 %v9064_v40  ;;  %v9082_v40 = vld [vmem:[#allocation143_spill] sm:$0xff]  ;;  %v9083_v37 = vld [vmem:[#allocation38_spill] sm:$0xff] }
 0x651   :  { %4078 = vmatpush.bf16.msra.mxu0 %v9061_v53  ;;  %4104 = vmatpush.bf16.msra.mxu2 %v9062_v10  ;;  %v9072_v53 = vld [vmem:[#allocation28_spill] sm:$0xff]  ;;  %v9073_v10 = vld [vmem:[#allocation129_spill] sm:$0xff] }
 0x654   :  { %3840 = vmatpush.bf16.msra.mxu1 %v9067_v62  ;;  %3866 = vmatpush.bf16.msra.mxu3 %v9068_v55  ;;  %v9076_v62 = vld [vmem:[#allocation32_spill] sm:$0xff]  ;;  %v9077_v55 = vld [vmem:[#allocation135_spill] sm:$0xff] }
 0x655   :  { %4079 = vmatpush.bf16.msra.mxu0 %v9065_v7  ;;  %4105 = vmatpush.bf16.msra.mxu2 %v9066_v2  ;;  %v9074_v7 = vld [vmem:[#allocation131_spill] sm:$0xff]  ;;  %v9075_v2 = vld [vmem:[#allocation30_spill] sm:$0xff] }
 0x657   :  { %3841 = vmatmul.bf16.vlgmr.msra.gmra.mxu1 %v7666_v12  ;;  %3867 = vmatmul.bf16.vlgmr.msra.gmra.mxu3 %v7666_v12 }
 0x658   :  { %3885 = vmatpush.bf16.msrb.mxu1 %v9069_v54  ;;  %3911 = vmatpush.bf16.msrb.mxu3 %v9070_v35  ;;  %v9078_v54 = vld [vmem:[#allocation139_spill] sm:$0xff]  ;;  %v9079_v35 = vld [vmem:[#allocation34_spill] sm:$0xff] }
 0x659   :  { %4080 = vmatpush.bf16.msra.mxu0 %v9071_v26  ;;  %4106 = vmatpush.bf16.msra.mxu2 %v9072_v53  ;;  %v9080_v26 = vld [vmem:[#allocation36_spill] sm:$0xff]  ;;  %v9081_v53 = vld [vmem:[#allocation141_spill] sm:$0xff] }
 0x65c   :  { %3886 = vmatpush.bf16.msrb.mxu1 %v9073_v10  ;;  %3912 = vmatpush.bf16.msrb.mxu3 %v9074_v7  ;;  %v9084_v10 = vld [vmem:[#allocation40_spill] sm:$0xff]  ;;  %v9085_v7 = vld [vmem:[#allocation42_spill] sm:$0xff] }
 0x65d   :  { %4081 = vmatpush.bf16.msra.mxu0 %v9075_v2  ;;  %4107 = vmatpush.bf16.msra.mxu2 %v9076_v62  ;;  %v9086_v2 = vld [vmem:[#allocation44_spill] sm:$0xff]  ;;  %v9087_v62 = vld [vmem:[#allocation147_spill] sm:$0xff] }
 0x660   :  { %3887 = vmatpush.bf16.msrb.mxu1 %v9077_v55  ;;  %3913 = vmatpush.bf16.msrb.mxu3 %v9078_v54  ;;  %v9088_v55 = vld [vmem:[#allocation150_spill] sm:$0xff] }
 0x661   :  { %4082 = vmatpush.bf16.msra.mxu0 %v9079_v35  ;;  %4108 = vmatpush.bf16.msra.mxu2 %v9080_v26  ;;  %v9089_v54 = vld [vmem:[#allocation46_spill] sm:$0xff]  ;;  %v9090_v35 = vld [vmem:[#allocation48_spill] sm:$0xff]  ;;  %v9091_v26 = vld [vmem:[#allocation153_spill] sm:$0xff] }
 0x664   :  { %3888 = vmatpush.bf16.msrb.mxu1 %v9081_v53  ;;  %3914 = vmatpush.bf16.msrb.mxu3 %v9082_v40  ;;  %v9092_v53 = vld [vmem:[#allocation155_spill] sm:$0xff]  ;;  %v9093_v40 = vld [vmem:[#allocation50_spill] sm:$0xff] }
 0x665   :  { %4083 = vmatpush.bf16.msra.mxu0 %v9083_v37  ;;  %4109 = vmatpush.bf16.msra.mxu2 %v9084_v10  ;;  %v9094_v37 = vld [vmem:[#allocation52_spill] sm:$0xff]  ;;  %v9095_v10 = vld [vmem:[#allocation159_spill] sm:$0xff] }
 0x668   :  { %3889 = vmatpush.bf16.msrb.mxu1 %v9087_v62  ;;  %3915 = vmatpush.bf16.msrb.mxu3 %v9088_v55  ;;  %v9098_v62 = vld [vmem:[#allocation56_spill] sm:$0xff]  ;;  %v9099_v55 = vld [vmem:[#allocation165_spill] sm:$0xff] }
 0x669   :  { %4128 = vmatpush.bf16.msrb.mxu0 %v9085_v7  ;;  %4154 = vmatpush.bf16.msrb.mxu2 %v9086_v2  ;;  %v9096_v7 = vld [vmem:[#allocation163_spill] sm:$0xff]  ;;  %v9097_v2 = vld [vmem:[#allocation54_spill] sm:$0xff] }
 0x66c   :  { %3890 = vmatpush.bf16.msrb.mxu1 %v9091_v26  ;;  %3916 = vmatpush.bf16.msrb.mxu3 %v9092_v53  ;;  %v9102_v26 = vld [vmem:[#allocation13_spill] sm:$0xff]  ;;  %v9103_v53 = vld [vmem:[#allocation58_spill] sm:$0xff] }
 0x66d   :  { %4129 = vmatpush.bf16.msrb.mxu0 %v9089_v54  ;;  %4155 = vmatpush.bf16.msrb.mxu2 %v9090_v35  ;;  %v9100_v54 = vld [vmem:[#allocation167_spill] sm:$0xff] }
 0x66e   :  { %v9101_v35 = vld [vmem:[#allocation11_spill] sm:$0xff] }
 0x670   :  { %3891 = vmatpush.bf16.msrb.mxu1 %v9095_v10  ;;  %3917 = vmatpush.bf16.msrb.mxu3 %v9096_v7  ;;  %v9114_v7 = vld [vmem:[#allocation25_spill] sm:$0xff]  ;;  %v9123_v10 = vld [vmem:[#allocation39_spill] sm:$0xff] }
 0x671   :  { %4130 = vmatpush.bf16.msrb.mxu0 %v9093_v40  ;;  %4156 = vmatpush.bf16.msrb.mxu2 %v9094_v37  ;;  %v9104_v40 = vld [vmem:[#allocation60_spill] sm:$0xff]  ;;  %v9105_v37 = vld [vmem:[#allocation15_spill] sm:$0xff] }
 0x674   :  { %3892 = vmatpush.bf16.msrb.mxu1 %v9099_v55  ;;  %3918 = vmatpush.bf16.msrb.mxu3 %v9100_v54  ;;  %v9108_v55 = vld [vmem:[#allocation64_spill] sm:$0xff]  ;;  %v9109_v54 = vld [vmem:[#allocation19_spill] sm:$0xff] }
 0x675   :  { %4131 = vmatpush.bf16.msrb.mxu0 %v9097_v2  ;;  %4157 = vmatpush.bf16.msrb.mxu2 %v9098_v62  ;;  %v9106_v2 = vld [vmem:[#allocation17_spill] sm:$0xff]  ;;  %v9107_v62 = vld [vmem:[#allocation62_spill] sm:$0xff] }
 0x677   :  { %3893 = vmatmul.bf16.vlgmr.msrb.gmra.mxu1 %v7666_v12  ;;  %3919 = vmatmul.bf16.vlgmr.msrb.gmra.mxu3 %v7666_v12  ;;  %v9115_v12 = vld [vmem:[#allocation70_spill] sm:$0xff] }
 0x678   :  { %4089 = vmatpush.bf16.msra.mxu1 %v9101_v35  ;;  %4115 = vmatpush.bf16.msra.mxu3 %v9102_v26  ;;  %v9110_v35 = vld [vmem:[#allocation21_spill] sm:$0xff]  ;;  %v9111_v26 = vld [vmem:[#allocation66_spill] sm:$0xff] }
 0x679   :  { %4132 = vmatpush.bf16.msrb.mxu0 %v9103_v53  ;;  %4158 = vmatpush.bf16.msrb.mxu2 %v9104_v40  ;;  %v9112_v53 = vld [vmem:[#allocation68_spill] sm:$0xff]  ;;  %v9113_v40 = vld [vmem:[#allocation23_spill] sm:$0xff] }
 0x67c   :  { %4090 = vmatpush.bf16.msra.mxu1 %v9105_v37  ;;  %4116 = vmatpush.bf16.msra.mxu3 %v9106_v2  ;;  %v9116_v37 = vld [vmem:[#allocation72_spill] sm:$0xff]  ;;  %v9117_v2 = vld [vmem:[#allocation27_spill] sm:$0xff] }
 0x67d   :  { %4133 = vmatpush.bf16.msrb.mxu0 %v9107_v62  ;;  %4159 = vmatpush.bf16.msrb.mxu2 %v9108_v55  ;;  %v9118_v62 = vld [vmem:[#allocation29_spill] sm:$0xff]  ;;  %v9119_v55 = vld [vmem:[#allocation31_spill] sm:$0xff] }
 0x680   :  { %4091 = vmatpush.bf16.msra.mxu1 %v9109_v54  ;;  %4117 = vmatpush.bf16.msra.mxu3 %v9110_v35  ;;  %v9120_v54 = vld [vmem:[#allocation33_spill] sm:$0xff] }
 0x681   :  { %4134 = vmatpush.bf16.msrb.mxu0 %v9111_v26  ;;  %4160 = vmatpush.bf16.msrb.mxu2 %v9112_v53  ;;  %v9121_v26 = vld [vmem:[#allocation35_spill] sm:$0xff]  ;;  %v9122_v53 = vld [vmem:[#allocation37_spill] sm:$0xff] }
 0x684   :  { %4092 = vmatpush.bf16.msra.mxu1 %v9113_v40  ;;  %4118 = vmatpush.bf16.msra.mxu3 %v9114_v7  ;;  %v3725_v35 = vpop.f32.mrf.mxu0  ;;  %v9124_v7 = vld [vmem:[#allocation41_spill] sm:$0xff] }
 0x685   :  { %4135 = vmatpush.bf16.msrb.mxu0 %v9115_v12  ;;  %4161 = vmatpush.bf16.msrb.mxu2 %v9116_v37  ;;  %v9125_v37 = vld [vmem:[#allocation43_spill] sm:$0xff] }
 0x688   :  { %4093 = vmatpush.bf16.msra.mxu1 %v9117_v2  ;;  %4119 = vmatpush.bf16.msra.mxu3 %v9118_v62  ;;  %v9126_v2 = vld [vmem:[#allocation45_spill] sm:$0xff]  ;;  %v9127_v62 = vld [vmem:[#allocation47_spill] sm:$0xff] }
 0x68a   :  { %v3751_v40 = vpop.f32.mrf.mxu2 }
 0x68c   :  { %4094 = vmatpush.bf16.msra.mxu1 %v9119_v55  ;;  %4120 = vmatpush.bf16.msra.mxu3 %v9120_v54  ;;  %v3727_v12 = vpop.f32.mrf.mxu0  ;;  %v9128_v55 = vld [vmem:[#allocation49_spill] sm:$0xff] }
 0x690   :  { %4095 = vmatpush.bf16.msra.mxu1 %v9121_v26  ;;  %4121 = vmatpush.bf16.msra.mxu3 %v9122_v53  ;;  %v9130_v26 = vld [vmem:[#allocation53_spill] sm:$0xff]  ;;  %v9131_v53 = vld [vmem:[#allocation55_spill] sm:$0xff] }
 0x692   :  { %v3753_v54 = vpop.f32.mrf.mxu2 }
 0x694   :  { %4096 = vmatpush.bf16.msra.mxu1 %v9123_v10  ;;  %4122 = vmatpush.bf16.msra.mxu3 %v9124_v7  ;;  %v3777_v34 = vpop.f32.mrf.mxu0  ;;  %v9132_v10 = vld [vmem:[#allocation57_spill] sm:$0xff] }
 0x698   :  { %4141 = vmatpush.bf16.msrb.mxu1 %v9125_v37  ;;  %4167 = vmatpush.bf16.msrb.mxu3 %v9126_v2  ;;  %v9134_v37 = vld [vmem:[#allocation61_spill] sm:$0xff]  ;;  %v9135_v2 = vld [vmem:[#allocation63_spill] sm:$0xff] }
 0x69a   :  { %v3803_v7 = vpop.f32.mrf.mxu2 }
 0x69c   :  { %4142 = vmatpush.bf16.msrb.mxu1 %v9127_v62  ;;  %4168 = vmatpush.bf16.msrb.mxu3 %v9128_v55  ;;  %v3779_v12 = vpop.f32.mrf.mxu0  ;;  %v9136_v62 = vld [vmem:[#allocation65_spill] sm:$0xff] }
 0x6a0   :  { %4143 = vmatpush.bf16.msrb.mxu1 %v9129_v13  ;;  %4169 = vmatpush.bf16.msrb.mxu3 %v9130_v26  ;;  %v9137_v13 = vld [vmem:[#allocation67_spill] sm:$0xff]  ;;  %v9138_v26 = vld [vmem:[#allocation69_spill] sm:$0xff] }
 0x6a2   :  { %v3805_v55 = vpop.f32.mrf.mxu2 }
 0x6a4   :  { %4144 = vmatpush.bf16.msrb.mxu1 %v9131_v53  ;;  %4170 = vmatpush.bf16.msrb.mxu3 %v9132_v10  ;;  %v7778_v54 = vpop.f32.mrf.mxu0  ;;  %v9139_v53 = vld [vmem:[#allocation71_spill] sm:$0xff]  ;;  %v9140_v10 = vld [vmem:[#allocation73_spill] sm:$0xff] }
 0x6a8   :  { %4145 = vmatpush.bf16.msrb.mxu1 %v9133_v47  ;;  %4171 = vmatpush.bf16.msrb.mxu3 %v9134_v37 }
 0x6aa   :  { %v7784_v12 = vpop.f32.mrf.mxu2 }
 0x6ac   :  { %4146 = vmatpush.bf16.msrb.mxu1 %v9135_v2  ;;  %4172 = vmatpush.bf16.msrb.mxu3 %v9136_v62  ;;  %v3831_v47 = vpop.f32.mrf.mxu0  ;;  %v9141_v2 = vld [vmem:[#allocation149_spill] sm:$0xff] }
 0x6b0   :  { %4147 = vmatpush.bf16.msrb.mxu1 %v9137_v13  ;;  %4173 = vmatpush.bf16.msrb.mxu3 %v9138_v26  ;;  %v9142_v13 = vld [vmem:[#allocation151_spill] sm:$0xff] }
 0x6b2   :  { %v3857_v9 = vpop.f32.mrf.mxu2 }
 0x6b4   :  { %4148 = vmatpush.bf16.msrb.mxu1 %v9139_v53  ;;  %4174 = vmatpush.bf16.msrb.mxu3 %v9140_v10  ;;  %v3738_v38 = vpop.f32.mrf.mxu1 }
 0x6b5   :  { %v3739_v37 = vadd.f32 %v3738_v38, %v3725_v35 }
 0x6b7   :  { %v3930_v14 = vadd.f32 %v3739_v37, %v9141_v2 }
 0x6b9   :  { %v5282_v62 = vmul.f32 -1.442695, %v3930_v14  ;;  %v9143_v14 = vld [vmem:[#allocation157_spill] sm:$0xff] }
 0x6ba   :  { %v3764_v55 = vpop.f32.mrf.mxu3 }
 0x6bb   :  { %5687 = vpow2.f32 %v5282_v62  ;;  %v3765_v0 = vadd.f32 %v3764_v55, %v3751_v40 }
 0x6bc   :  { %v3740_v61 = vpop.f32.mrf.mxu1 }
 0x6bd   :  { %v3931_v52 = vadd.f32 %v3765_v0, %v9142_v13 }
 0x6bf   :  { %v5284_v26 = vmul.f32 -1.442695, %v3931_v52 }
 0x6c1   :  { %v5688_v44 = vpop.eup %5687  ;;  %5689 = vpow2.f32 %v5284_v26 }
 0x6c2   :  { %v3950_v53 = vadd.f32 1.0, %v5688_v44  ;;  %v3766_v10 = vpop.f32.mrf.mxu3  ;;  %v9144_v44 = vld [vmem:[#allocation161_spill] sm:$0xff] }
 0x6c4   :  { %5691 = vrcp.f32 %v3950_v53  ;;  %v3790_v56 = vpop.f32.mrf.mxu1  ;;  %v3963_v13 = vand.u32 2147483648, %v3950_v53  ;;  %v3961_v26 = vand.u32 2147483647, %v3950_v53  ;;  %vm3957_vm1 = vweird.f32 %v3950_v53 }
 0x6c5   :  { %v3791_v47 = vadd.f32 %v3790_v56, %v3777_v34 }
 0x6c6   :  { %vm3962_vm3 = vcmp.eq.f32.partialorder %v3961_v26, 8.507059e+37 }
 0x6c7   :  { %v7788_v33 = vpop.f32.mrf.mxu0  ;;  %v5690_v9 = vpop.eup %5689  ;;  %v3932_v37 = vadd.f32 %v3791_v47, %v9143_v14 }
 0x6c8   :  { %v3988_v38 = vadd.f32 1.0, %v5690_v9 }
 0x6ca   :  { %v5692_v35 = vpop.eup %5691  ;;  %5693 = vrcp.f32 %v3988_v38  ;;  %v3816_v40 = vpop.f32.mrf.mxu3  ;;  %vm3995_vm5 = vweird.f32 %v3988_v38 }
 0x6cb   :  { %v3953_v61 = vmul.f32 %v5692_v35, %v3950_v53  ;;  %v3817_v2 = vadd.f32 %v3816_v40, %v3803_v7  ;;  %5695 = vtanh.f32 %v3932_v37  ;;  %vm3958_vm0 = vweird.f32 %v5692_v35 }
 0x6cc   :  { %v3792_v52 = vpop.f32.mrf.mxu1  ;;  %vm3959_vm2 = vmor %vm3957_vm1, %vm3958_vm0  ;;  %v3964_v7 = vor.u32 1.1754944e-38, %v3963_v13 }
 0x6cd   :  { %v7791_v0 = vpop.f32.mrf.mxu2  ;;  %v3954_v62 = vsub.f32 1.0, %v3953_v61  ;;  %v3933_v55 = vadd.f32 %v3817_v2, %v9144_v44  ;;  %v9145_v2 = vld [vmem:[#allocation168_spill] sm:$0xff]  ;;  %v9146_v52 = vld [vmem:[#allocation177_spill] sm:$0xff]  ;;  %v4001_v44 = vand.u32 2147483648, %v3988_v38 }
 0x6ce   :  { %v614_v37 = vadd.f32 %v9146_v52, %v9145_v2 }
 0x6cf   :  { %v3883_v56 = vpop.f32.mrf.mxu0  ;;  %v3955_v34 = vmul.f32 %v5692_v35, %v3954_v62  ;;  %v5286_v10 = vmul.f32 -1.442695, %v3933_v55 }
 0x6d0   :  { %v5694_v9 = vpop.eup %5693  ;;  %v3999_v56 = vand.u32 2147483647, %v3988_v38 }
 0x6d1   :  { %v3991_v15 = vmul.f32 %v5694_v9, %v3988_v38  ;;  %v3956_v59 = vadd.f32 %v5692_v35, %v3955_v34  ;;  %5697 = vpow2.f32 %v5286_v10  ;;  %v5696_v61 = vpop.eup %5695  ;;  %vm3996_vm4 = vweird.f32 %v5694_v9 }
 0x6d2   :  { %v3818_v47 = vpop.f32.mrf.mxu3  ;;  %vm3997_vm6 = vmor %vm3995_vm5, %vm3996_vm4  ;;  %vm4000_vm7 = vcmp.eq.f32.partialorder %v3999_v56, 8.507059e+37 }
 0x6d3   :  { %v3992_v14 = vsub.f32 1.0, %v3991_v15  ;;  %v3960_v40 = vsel %vm3959_vm2, %v5692_v35, %v3956_v59  ;;  %v4002_v59 = vor.u32 1.1754944e-38, %v4001_v44 }
 0x6d4   :  { %v3965_v62 = vsel %vm3962_vm3, %v3964_v7, %v3960_v40  ;;  %v3842_v55 = vpop.f32.mrf.mxu1  ;;  %v9148_v40 = vld [vmem:[#allocation179_spill] sm:$0xff] }
 0x6d5   :  { %v3909_v24 = vpop.f32.mrf.mxu2  ;;  %v3993_v57 = vmul.f32 %v5694_v9, %v3992_v14  ;;  %v4062_v34 = vmul.f32 %v5696_v61, %v3965_v62  ;;  %v3843_v53 = vadd.f32 %v3842_v55, %v7778_v54 }
 0x6d6   :  { %v9147_v24 = vld [vmem:[#allocation169_spill] sm:$0xff] }
 0x6d7   :  { %v5698_v10 = vpop.eup %5697  ;;  %v3994_v13 = vadd.f32 %v5694_v9, %v3993_v57  ;;  %v3940_v15 = vadd.f32 %v3843_v53, %v614_v37  ;;  %v643_v14 = vadd.f32 %v9148_v40, %v9147_v24 }
 0x6d8   :  { %v4028_v35 = vadd.f32 1.0, %v5698_v10 }
 0x6d9   :  { %v3998_v26 = vsel %vm3997_vm6, %v5694_v9, %v3994_v13  ;;  %v5283_v47 = vmul.f32 -1.442695, %v3940_v15 }
 0x6da   :  { %v4003_v2 = vsel %vm4000_vm7, %v4002_v59, %v3998_v26  ;;  %5699 = vrcp.f32 %v4028_v35  ;;  %v3868_v7 = vpop.f32.mrf.mxu3  ;;  %v4041_v10 = vand.u32 2147483648, %v4028_v35  ;;  %vm4035_vm9 = vweird.f32 %v4028_v35 }
 0x6db   :  { %v4060_v61 = vmul.f32 %v4003_v2, %v7589_v51  ;;  %5701 = vpow2.f32 %v5283_v47  ;;  %v3869_v54 = vadd.f32 %v3868_v7, %v7784_v12  ;;  %v4039_v12 = vand.u32 2147483647, %v4028_v35 }
 0x6dc   :  { %v3844_v38 = vpop.f32.mrf.mxu1  ;;  %v4042_v15 = vor.u32 1.1754944e-38, %v4041_v10 }
 0x6dd   :  { %v7801_v57 = vadd.f32 %v4062_v34, %v4060_v61  ;;  %v3941_v52 = vadd.f32 %v3869_v54, %v643_v14  ;;  %vm4040_vm11 = vcmp.eq.f32.partialorder %v4039_v12, 8.507059e+37 }
 0x6df   :  { %v5285_v37 = vmul.f32 -1.442695, %v3941_v52 }
 0x6e0   :  { %v5700_v44 = vpop.eup %5699 }
 0x6e1   :  { %v5702_v9 = vpop.eup %5701  ;;  %v4031_v62 = vmul.f32 %v5700_v44, %v4028_v35  ;;  %5703 = vpow2.f32 %v5285_v37  ;;  %vm4036_vm8 = vweird.f32 %v5700_v44  ;;  %v9149_v35 = vmax.f32 %v7392_v32, %v7596_v8 }
 0x6e2   :  { %v7803_v56 = vadd.f32 1.0, %v5702_v9  ;;  %v3870_v55 = vpop.f32.mrf.mxu3  ;;  %5705 = vtanh.f32 %v7801_v57  ;;  %vm4037_vm10 = vmor %vm4035_vm9, %vm4036_vm8 }
 0x6e3   :  { %v4032_v53 = vsub.f32 1.0, %v4031_v62  ;;  %v9150_v62 = vld [vmem:[#allocation174_spill] sm:$0xff] }
 0x6e4   :  { %5707 = vrcp.f32 %v7803_v56  ;;  %vm3972_vm14 = vweird.f32 %v7803_v56  ;;  %v3978_v12 = vand.u32 2147483648, %v7803_v56 }
 0x6e5   :  { %v4033_v51 = vmul.f32 %v5700_v44, %v4032_v53 }
 0x6e7   :  { %v5704_v34 = vpop.eup %5703  ;;  %v4034_v13 = vadd.f32 %v5700_v44, %v4033_v51 }
 0x6e8   :  { %v3989_v59 = vadd.f32 1.0, %v5704_v34  ;;  %v5706_v26 = vpop.eup %5705  ;;  %v3976_v34 = vand.u32 2147483647, %v7803_v56 }
 0x6e9   :  { %v4038_v47 = vsel %vm4037_vm10, %v5700_v44, %v4034_v13 }
 0x6ea   :  { %v5708_v2 = vpop.eup %5707  ;;  %v4043_v7 = vsel %vm4040_vm11, %v4042_v15, %v4038_v47  ;;  %5709 = vrcp.f32 %v3989_v59  ;;  %v4016_v8 = vand.u32 2147483648, %v3989_v59  ;;  %vm4010_vm15 = vweird.f32 %v3989_v59  ;;  %v9154_v15 = vld [vmem:[#allocation175_spill] sm:$0xff] }
 0x6eb   :  { %v4068_v24 = vmul.f32 %v5706_v26, %v4043_v7  ;;  %v3968_v40 = vmul.f32 %v5708_v2, %v7803_v56  ;;  %vm3973_vm12 = vweird.f32 %v5708_v2  ;;  %v3979_v56 = vor.u32 1.1754944e-38, %v3978_v12  ;;  %v9176_v12 = vld [vmem:[#allocation122_spill] sm:$0xff] }
 0x6ec   :  { %vm7829_vm0 = vmor %vm3972_vm14, %vm3973_vm12  ;;  %v4017_v47 = vor.u32 1.1754944e-38, %v4016_v8  ;;  %vm3977_vm3 = vcmp.eq.f32.partialorder %v3976_v34, 8.507059e+37  ;;  %v9171_v8 = vld [vmem:[#allocation109_spill] sm:$0xff]  ;;  %v9178_v34 = vld [vmem:[#allocation126_spill] sm:$0xff] }
 0x6ed   :  { %v7808_v14 = vpack.c.bf16 %v4068_v24, %v4068_v24  ;;  %v3969_v61 = vsub.f32 1.0, %v3968_v40  ;;  %v7811_v54 = vadd.f32 %v4068_v24, %v7601_v36  ;;  %v7816_v38 = vmax.f32 %v9149_v35, %v4068_v24  ;;  %v9151_v36 = vld [vmem:[#allocation180_spill] sm:$0xff] }
 0x6ee   :  { %v672_v55 = vadd.f32 %v9151_v36, %v9150_v62 }
 0x6ef   :  { %4084 = vmatmul.bf16.vlgmr.msra.gmra.mxu0 %v7808_v14  ;;  %4110 = vmatmul.bf16.vlgmr.msra.gmra.mxu2 %v7808_v14  ;;  %v3970_v9 = vmul.f32 %v5708_v2, %v3969_v61 }
 0x6f0   :  { %v5710_v52 = vpop.eup %5709  ;;  %4180 = vmatpush.bf16.msra.mxu0 %v8487_v41  ;;  %4206 = vmatpush.bf16.msra.mxu2 %v8593_v19  ;;  %v4014_v19 = vand.u32 2147483647, %v3989_v59 }
 0x6f1   :  { %v4006_v37 = vmul.f32 %v5710_v52, %v3989_v59  ;;  %vm4011_vm13 = vweird.f32 %v5710_v52  ;;  %v3971_v41 = vadd.f32 %v5708_v2, %v3970_v9 }
 0x6f2   :  { %vm4012_vm1 = vmor %vm4010_vm15, %vm4011_vm13  ;;  %vm4015_vm2 = vcmp.eq.f32.partialorder %v4014_v19, 8.507059e+37  ;;  %v9175_v19 = vld [vmem:[#allocation120_spill] sm:$0xff] }
 0x6f3   :  { %v4007_v32 = vsub.f32 1.0, %v4006_v37  ;;  %v3975_v59 = vsel %vm7829_vm0, %v5708_v2, %v3971_v41  ;;  %v9174_v41 = vld [vmem:[#allocation119_spill] sm:$0xff] }
 0x6f4   :  { %v3894_v44 = vpop.f32.mrf.mxu1  ;;  %4181 = vmatpush.bf16.msra.mxu0 %v8595_v1  ;;  %4207 = vmatpush.bf16.msra.mxu2 %v8702_v27  ;;  %v9155_v27 = vld [vmem:[#allocation181_spill] sm:$0xff]  ;;  %v3980_v9 = vsel %vm3977_vm3, %v3979_v56, %v3975_v59  ;;  %v9190_v56 = vld [vmem:[#allocation163_spill] sm:$0xff] }
 0x6f5   :  { %v3895_v53 = vadd.f32 %v3894_v44, %v7788_v33  ;;  %v4008_v51 = vmul.f32 %v5710_v52, %v4007_v32  ;;  %v701_v26 = vadd.f32 %v9155_v27, %v9154_v15  ;;  %v9170_v32 = vld [vmem:[#allocation105_spill] sm:$0xff]  ;;  %v9177_v33 = vld [vmem:[#allocation124_spill] sm:$0xff]  ;;  %v9182_v15 = vld [vmem:[#allocation139_spill] sm:$0xff] }
 0x6f6   :  { %v9183_v27 = vld [vmem:[#allocation141_spill] sm:$0xff] }
 0x6f7   :  { %v3942_v10 = vadd.f32 %v3895_v53, %v672_v55  ;;  %v4009_v13 = vadd.f32 %v5710_v52, %v4008_v51  ;;  %v9168_v55 = vld [vmem:[#allocation166_spill] sm:$0xff]  ;;  %v9169_v53 = vld [vmem:[#allocation103_spill] sm:$0xff]  ;;  %v9173_v51 = vld [vmem:[#allocation117_spill] sm:$0xff] }
 0x6f8   :  { %4182 = vmatpush.bf16.msra.mxu0 %v8599_v42  ;;  %4208 = vmatpush.bf16.msra.mxu2 %v8600_v60  ;;  %v9187_v59 = vld [vmem:[#allocation153_spill] sm:$0xff] }
 0x6f9   :  { %5711 = vtanh.f32 %v3942_v10  ;;  %v4013_v24 = vsel %vm4012_vm1, %v5710_v52, %v4009_v13  ;;  %v9156_v52 = vmax.f32 %v7451_v18, %v7654_v39  ;;  %v9161_v18 = vld [vmem:[#allocation89_spill] sm:$0xff]  ;;  %v9162_v39 = vld [vmem:[#allocation91_spill] sm:$0xff] }
 0x6fa   :  { %v3920_v1 = vpop.f32.mrf.mxu3  ;;  %v4018_v61 = vsel %vm4015_vm2, %v4017_v47, %v4013_v24  ;;  %v9172_v10 = vld [vmem:[#allocation111_spill] sm:$0xff]  ;;  %v9179_v13 = vld [vmem:[#allocation129_spill] sm:$0xff] }
 0x6fb   :  { %v3921_v7 = vadd.f32 %v3920_v1, %v7791_v0  ;;  %v4061_v37 = vmul.f32 %v4018_v61, %v7633_v46  ;;  %v9181_v1 = vld [vmem:[#allocation135_spill] sm:$0xff]  ;;  %v9191_v61 = vld [vmem:[#allocation165_spill] sm:$0xff] }
 0x6fc   :  { %v3896_v40 = vpop.f32.mrf.mxu1  ;;  %4183 = vmatpush.bf16.msra.mxu0 %v8493_v58  ;;  %4209 = vmatpush.bf16.msra.mxu2 %v8494_v63  ;;  %v9185_v47 = vld [vmem:[#allocation147_spill] sm:$0xff] }
 0x6fd   :  { %v3943_v35 = vadd.f32 %v3921_v7, %v701_v26  ;;  %v9184_v26 = vld [vmem:[#allocation143_spill] sm:$0xff]  ;;  %v9186_v7 = vld [vmem:[#allocation150_spill] sm:$0xff] }
 0x6fe   :  { %v9188_v24 = vld [vmem:[#allocation155_spill] sm:$0xff] }
 0x6ff   :  { %v5712_v44 = vpop.eup %5711  ;;  %v5287_v62 = vmul.f32 -1.442695, %v3943_v35  ;;  %4136 = vmatmul.bf16.vlgmr.msrb.gmra.mxu0 %v7808_v14  ;;  %4162 = vmatmul.bf16.vlgmr.msrb.gmra.mxu2 %v7808_v14  ;;  %v9189_v40 = vld [vmem:[#allocation159_spill] sm:$0xff] }
 0x700   :  { %v4063_v42 = vmul.f32 %v5712_v44, %v3980_v9  ;;  %4184 = vmatpush.bf16.msra.mxu0 %v8495_v28  ;;  %4210 = vmatpush.bf16.msra.mxu2 %v8496_v25  ;;  %v9192_v35 = vld [vmem:[#allocation167_spill] sm:$0xff] }
 0x701   :  { %5713 = vpow2.f32 %v5287_v62 }
 0x702   :  { %v7844_v60 = vadd.f32 %v4063_v42, %v4061_v37  ;;  %v3922_v0 = vpop.f32.mrf.mxu3 }
 0x704   :  { %4185 = vmatpush.bf16.msra.mxu0 %v8497_v43  ;;  %4211 = vmatpush.bf16.msra.mxu2 %v8498_v5 }
 0x707   :  { %v5714_v46 = vpop.eup %5713 }
 0x708   :  { %v4029_v58 = vadd.f32 1.0, %v5714_v46  ;;  %4186 = vmatpush.bf16.msra.mxu0 %v8499_v30  ;;  %4212 = vmatpush.bf16.msra.mxu2 %v8500_v6 }
 0x70a   :  { %5715 = vrcp.f32 %v4029_v58  ;;  %v4056_v43 = vand.u32 2147483648, %v4029_v58  ;;  %vm4050_vm5 = vweird.f32 %v4029_v58 }
 0x70b   :  { %5717 = vtanh.f32 %v7844_v60 }
 0x70c   :  { %4187 = vmatpush.bf16.msra.mxu0 %v6226_v49  ;;  %4213 = vmatpush.bf16.msra.mxu2 %v6232_v4  ;;  %v4054_v4 = vand.u32 2147483647, %v4029_v58 }
 0x70e   :  { %vm4055_vm7 = vcmp.eq.f32.partialorder %v4054_v4, 8.507059e+37  ;;  %v9194_v4 = vld [vmem:[#allocation158_spill] sm:$0xff] }
 0x70f   :  { %4188 = vmatmul.bf16.vlgmr.msra.gmra.mxu0 %v7808_v14  ;;  %4214 = vmatmul.bf16.vlgmr.msra.gmra.mxu2 %v7808_v14 }
 0x710   :  { %v5716_v63 = vpop.eup %5715  ;;  %4232 = vmatpush.bf16.msrb.mxu0 %v6239_v16  ;;  %4258 = vmatpush.bf16.msrb.mxu2 %v6245_v31  ;;  %v4057_v31 = vor.u32 1.1754944e-38, %v4056_v43 }
 0x711   :  { %v4046_v28 = vmul.f32 %v5716_v63, %v4029_v58  ;;  %vm4051_vm4 = vweird.f32 %v5716_v63  ;;  %v5718_v30 = vpop.eup %5717 }
 0x712   :  { %vm4052_vm6 = vmor %vm4050_vm5, %vm4051_vm4 }
 0x713   :  { %v4047_v25 = vsub.f32 1.0, %v4046_v28 }
 0x714   :  { %4233 = vmatpush.bf16.msrb.mxu0 %v8501_v20  ;;  %4259 = vmatpush.bf16.msrb.mxu2 %v8502_v3 }
 0x715   :  { %v4048_v49 = vmul.f32 %v5716_v63, %v4047_v25 }
 0x717   :  { %v4049_v5 = vadd.f32 %v5716_v63, %v4048_v49  ;;  %v9193_v49 = vld [vmem:[#allocation92_spill] sm:$0xff] }
 0x718   :  { %4234 = vmatpush.bf16.msrb.mxu0 %v8503_v22  ;;  %4260 = vmatpush.bf16.msrb.mxu2 %v8504_v48  ;;  %v9157_v22 = vld [vmem:[#allocation81_spill] sm:$0xff]  ;;  %v9158_v48 = vld [vmem:[#allocation84_spill] sm:$0xff] }
 0x719   :  { %v4053_v16 = vsel %vm4052_vm6, %v5716_v63, %v4049_v5  ;;  %v513_v5 = vadd.f32 %v9194_v4, %v9193_v49 }
 0x71a   :  { %v4058_v6 = vsel %vm4055_vm7, %v4057_v31, %v4053_v16 }
 0x71b   :  { %v4069_v2 = vmul.f32 %v5718_v30, %v4058_v6 }
 0x71c   :  { %4235 = vmatpush.bf16.msrb.mxu0 %v8505_v11  ;;  %4261 = vmatpush.bf16.msrb.mxu2 %v8506_v45  ;;  %v9159_v11 = vld [vmem:[#allocation152_spill] sm:$0xff]  ;;  %v9160_v45 = vld [vmem:[#allocation154_spill] sm:$0xff] }
 0x71d   :  { %v4075_v20 = vpack.c.bf16 %v4069_v2, %v4069_v2  ;;  %v7868_v3 = vadd.f32 %v4069_v2, %v7660_v21  ;;  %v7873_v36 = vmax.f32 %v9156_v52, %v4069_v2  ;;  %v9163_v21 = vld [vmem:[#allocation156_spill] sm:$0xff]  ;;  %v9196_v52 = vld [vmem:[#allocation162_spill] sm:$0xff] }
 0x71f   :  { %4097 = vmatmul.bf16.vlgmr.msra.gmra.mxu1 %v4075_v20  ;;  %4123 = vmatmul.bf16.vlgmr.msra.gmra.mxu3 %v4075_v20 }
 0x720   :  { %4193 = vmatpush.bf16.msra.mxu1 %v8510_v23  ;;  %4219 = vmatpush.bf16.msra.mxu3 %v8511_v50  ;;  %v9164_v23 = vld [vmem:[#allocation160_spill] sm:$0xff]  ;;  %v9165_v50 = vld [vmem:[#allocation94_spill] sm:$0xff] }
 0x721   :  { %4236 = vmatpush.bf16.msrb.mxu0 %v8508_v29  ;;  %4262 = vmatpush.bf16.msrb.mxu2 %v8509_v17  ;;  %v9166_v29 = vld [vmem:[#allocation97_spill] sm:$0xff]  ;;  %v9167_v17 = vld [vmem:[#allocation164_spill] sm:$0xff] }
 0x724   :  { %4194 = vmatpush.bf16.msra.mxu1 %v9157_v22  ;;  %4220 = vmatpush.bf16.msra.mxu3 %v9158_v48 }
 0x725   :  { %4237 = vmatpush.bf16.msrb.mxu0 %v9159_v11  ;;  %4263 = vmatpush.bf16.msrb.mxu2 %v9160_v45 }
 0x728   :  { %4195 = vmatpush.bf16.msra.mxu1 %v9161_v18  ;;  %4221 = vmatpush.bf16.msra.mxu3 %v9162_v39 }
 0x729   :  { %4238 = vmatpush.bf16.msrb.mxu0 %v9163_v21  ;;  %4264 = vmatpush.bf16.msrb.mxu2 %v9164_v23 }
 0x72c   :  { %4196 = vmatpush.bf16.msra.mxu1 %v9165_v50  ;;  %4222 = vmatpush.bf16.msra.mxu3 %v9166_v29 }
 0x72d   :  { %4239 = vmatpush.bf16.msrb.mxu0 %v9167_v17  ;;  %4265 = vmatpush.bf16.msrb.mxu2 %v9168_v55 }
 0x72f   :  { %4149 = vmatmul.bf16.vlgmr.msrb.gmra.mxu1 %v4075_v20  ;;  %4175 = vmatmul.bf16.vlgmr.msrb.gmra.mxu3 %v4075_v20 }
 0x730   :  { %4197 = vmatpush.bf16.msra.mxu1 %v9169_v53  ;;  %4223 = vmatpush.bf16.msra.mxu3 %v9170_v32  ;;  %v9197_v53 = vld [vmem:[#allocation106_spill] sm:$0xff] }
 0x731   :  { %4240 = vmatmul.bf16.vlgmr.msrb.gmra.mxu0 %v7808_v14  ;;  %4266 = vmatmul.bf16.vlgmr.msrb.gmra.mxu2 %v7808_v14  ;;  %v9180_v14 = vld [vmem:[#allocation131_spill] sm:$0xff]  ;;  %v9198_v32 = vld [vmem:[#allocation170_spill] sm:$0xff] }
 0x734   :  { %4198 = vmatpush.bf16.msra.mxu1 %v9171_v8  ;;  %4224 = vmatpush.bf16.msra.mxu3 %v9172_v10  ;;  %v571_v8 = vadd.f32 %v9198_v32, %v9197_v53 }
 0x738   :  { %4199 = vmatpush.bf16.msra.mxu1 %v9173_v51  ;;  %4225 = vmatpush.bf16.msra.mxu3 %v9174_v41 }
 0x73c   :  { %4200 = vmatpush.bf16.msra.mxu1 %v9175_v19  ;;  %4226 = vmatpush.bf16.msra.mxu3 %v9176_v12  ;;  %v9199_v12 = vld [vmem:[#allocation107_spill] sm:$0xff] }
 0x73f   :  { %4201 = vmatmul.bf16.vlgmr.msra.gmra.mxu1 %v4075_v20  ;;  %4227 = vmatmul.bf16.vlgmr.msra.gmra.mxu3 %v4075_v20 }
 0x740   :  { %4245 = vmatpush.bf16.msrb.mxu1 %v9177_v33  ;;  %4271 = vmatpush.bf16.msrb.mxu3 %v9178_v34  ;;  %v9200_v33 = vld [vmem:[#allocation171_spill] sm:$0xff] }
 0x741   :  { %v600_v34 = vadd.f32 %v9200_v33, %v9199_v12 }
 0x744   :  { %4246 = vmatpush.bf16.msrb.mxu1 %v9179_v13  ;;  %4272 = vmatpush.bf16.msrb.mxu3 %v9180_v14 }
 0x748   :  { %4247 = vmatpush.bf16.msrb.mxu1 %v9181_v1  ;;  %4273 = vmatpush.bf16.msrb.mxu3 %v9182_v15 }
 0x74c   :  { %4248 = vmatpush.bf16.msrb.mxu1 %v9183_v27  ;;  %4274 = vmatpush.bf16.msrb.mxu3 %v9184_v26 }
 0x750   :  { %4249 = vmatpush.bf16.msrb.mxu1 %v9185_v47  ;;  %4275 = vmatpush.bf16.msrb.mxu3 %v9186_v7 }
 0x754   :  { %4250 = vmatpush.bf16.msrb.mxu1 %v9187_v59  ;;  %4276 = vmatpush.bf16.msrb.mxu3 %v9188_v24 }
 0x758   :  { %4251 = vmatpush.bf16.msrb.mxu1 %v9189_v40  ;;  %4277 = vmatpush.bf16.msrb.mxu3 %v9190_v56 }
 0x75c   :  { %4252 = vmatpush.bf16.msrb.mxu1 %v9191_v61  ;;  %4278 = vmatpush.bf16.msrb.mxu3 %v9192_v35 }
 0x75f   :  { %4253 = vmatmul.bf16.vlgmr.msrb.gmra.mxu1 %v4075_v20  ;;  %4279 = vmatmul.bf16.vlgmr.msrb.gmra.mxu3 %v4075_v20  ;;  %v9195_v20 = vld [vmem:[#allocation98_spill] sm:$0xff] }
 0x760   :  { %v542_v22 = vadd.f32 %v9196_v52, %v9195_v20 }
 0x76c   :  { %v4085_v37 = vpop.f32.mrf.mxu0 }
 0x772   :  { %v4111_v44 = vpop.f32.mrf.mxu2 }
 0x774   :  { %v4087_v9 = vpop.f32.mrf.mxu0 }
 0x77a   :  { %v4113_v62 = vpop.f32.mrf.mxu2 }
 0x77c   :  { %v4137_v42 = vpop.f32.mrf.mxu0 }
 0x782   :  { %v4163_v0 = vpop.f32.mrf.mxu2 }
 0x784   :  { %v4139_v46 = vpop.f32.mrf.mxu0 }
 0x78a   :  { %v4165_v58 = vpop.f32.mrf.mxu2 }
 0x78c   :  { %v7917_v63 = vpop.f32.mrf.mxu0 }
 0x792   :  { %v7919_v28 = vpop.f32.mrf.mxu2 }
 0x794   :  { %v4191_v25 = vpop.f32.mrf.mxu0 }
 0x79a   :  { %v4217_v16 = vpop.f32.mrf.mxu2 }
 0x79c   :  { %v4098_v43 = vpop.f32.mrf.mxu1 }
 0x79d   :  { %v4099_v31 = vadd.f32 %v4098_v43, %v4085_v37 }
 0x79f   :  { %v4290_v30 = vadd.f32 %v4099_v31, %v513_v5 }
 0x7a1   :  { %v5288_v6 = vmul.f32 -1.442695, %v4290_v30  ;;  %v9201_v30 = vld [vmem:[#allocation172_spill] sm:$0xff] }
 0x7a2   :  { %v4124_v2 = vpop.f32.mrf.mxu3 }
 0x7a3   :  { %5719 = vpow2.f32 %v5288_v6  ;;  %v4125_v48 = vadd.f32 %v4124_v2, %v4111_v44 }
 0x7a4   :  { %v4100_v11 = vpop.f32.mrf.mxu1 }
 0x7a5   :  { %v4291_v45 = vadd.f32 %v4125_v48, %v542_v22 }
 0x7a7   :  { %v5290_v18 = vmul.f32 -1.442695, %v4291_v45 }
 0x7a9   :  { %v5720_v39 = vpop.eup %5719  ;;  %5721 = vpow2.f32 %v5290_v18 }
 0x7aa   :  { %v4310_v21 = vadd.f32 1.0, %v5720_v39  ;;  %v4126_v23 = vpop.f32.mrf.mxu3 }
 0x7ac   :  { %5723 = vrcp.f32 %v4310_v21  ;;  %v4150_v50 = vpop.f32.mrf.mxu1  ;;  %v4323_v47 = vand.u32 2147483648, %v4310_v21  ;;  %v4321_v24 = vand.u32 2147483647, %v4310_v21  ;;  %vm4317_vm9 = vweird.f32 %v4310_v21 }
 0x7ad   :  { %v4151_v29 = vadd.f32 %v4150_v50, %v4137_v42 }
 0x7ae   :  { %v7925_v17 = vpop.f32.mrf.mxu0  ;;  %v4324_v37 = vor.u32 1.1754944e-38, %v4323_v47  ;;  %vm4322_vm11 = vcmp.eq.f32.partialorder %v4321_v24, 8.507059e+37 }
 0x7af   :  { %v5722_v55 = vpop.eup %5721  ;;  %v4292_v41 = vadd.f32 %v4151_v29, %v571_v8 }
 0x7b0   :  { %v4348_v10 = vadd.f32 1.0, %v5722_v55 }
 0x7b2   :  { %v5724_v51 = vpop.eup %5723  ;;  %5725 = vrcp.f32 %v4348_v10  ;;  %v4176_v19 = vpop.f32.mrf.mxu3  ;;  %v4359_v58 = vand.u32 2147483647, %v4348_v10  ;;  %vm4355_vm13 = vweird.f32 %v4348_v10 }
 0x7b3   :  { %v4313_v13 = vmul.f32 %v5724_v51, %v4310_v21  ;;  %v4177_v14 = vadd.f32 %v4176_v19, %v4163_v0  ;;  %5727 = vtanh.f32 %v4292_v41  ;;  %vm4318_vm8 = vweird.f32 %v5724_v51  ;;  %v9202_v21 = vld [vmem:[#allocation173_spill] sm:$0xff] }
 0x7b4   :  { %v7931_v1 = vpop.f32.mrf.mxu2  ;;  %v4152_v15 = vpop.f32.mrf.mxu1  ;;  %vm4319_vm10 = vmor %vm4317_vm9, %vm4318_vm8  ;;  %v4361_v0 = vand.u32 2147483648, %v4348_v10  ;;  %vm4360_vm15 = vcmp.eq.f32.partialorder %v4359_v58, 8.507059e+37 }
 0x7b5   :  { %v4314_v27 = vsub.f32 1.0, %v4313_v13  ;;  %v4293_v26 = vadd.f32 %v4177_v14, %v600_v34 }
 0x7b6   :  { %v4243_v7 = vpop.f32.mrf.mxu0  ;;  %v4362_v2 = vor.u32 1.1754944e-38, %v4361_v0 }
 0x7b7   :  { %v4315_v59 = vmul.f32 %v5724_v51, %v4314_v27  ;;  %v5292_v40 = vmul.f32 -1.442695, %v4293_v26 }
 0x7b8   :  { %v5726_v56 = vpop.eup %5725 }
 0x7b9   :  { %v4351_v61 = vmul.f32 %v5726_v56, %v4348_v10  ;;  %v4316_v35 = vadd.f32 %v5724_v51, %v4315_v59  ;;  %5729 = vpow2.f32 %v5292_v40  ;;  %v5728_v42 = vpop.eup %5727  ;;  %vm4356_vm12 = vweird.f32 %v5726_v56 }
 0x7ba   :  { %v4178_v44 = vpop.f32.mrf.mxu3  ;;  %vm4357_vm14 = vmor %vm4355_vm13, %vm4356_vm12 }
 0x7bb   :  { %v4352_v9 = vsub.f32 1.0, %v4351_v61  ;;  %v4320_v62 = vsel %vm4319_vm10, %v5724_v51, %v4316_v35 }
 0x7bc   :  { %v4325_v46 = vsel %vm4322_vm11, %v4324_v37, %v4320_v62  ;;  %v4269_v25 = vpop.f32.mrf.mxu2  ;;  %v4202_v43 = vpop.f32.mrf.mxu1 }
 0x7bd   :  { %v4353_v49 = vmul.f32 %v5726_v56, %v4352_v9  ;;  %v4422_v4 = vmul.f32 %v5728_v42, %v4325_v46  ;;  %v4203_v5 = vadd.f32 %v4202_v43, %v7917_v63 }
 0x7bf   :  { %v5730_v31 = vpop.eup %5729  ;;  %v4354_v16 = vadd.f32 %v5726_v56, %v4353_v49  ;;  %v4300_v6 = vadd.f32 %v4203_v5, %v9201_v30 }
 0x7c0   :  { %v4388_v20 = vadd.f32 1.0, %v5730_v31 }
 0x7c1   :  { %v4358_v52 = vsel %vm4357_vm14, %v5726_v56, %v4354_v16  ;;  %v5289_v22 = vmul.f32 -1.442695, %v4300_v6  ;;  %v9206_v6 = vld [vmem:[#allocation178_spill] sm:$0xff] }
 0x7c2   :  { %v4363_v48 = vsel %vm4360_vm15, %v4362_v2, %v4358_v52  ;;  %5731 = vrcp.f32 %v4388_v20  ;;  %v4228_v11 = vpop.f32.mrf.mxu3  ;;  %v4401_v51 = vand.u32 2147483648, %v4388_v20  ;;  %vm4395_vm1 = vweird.f32 %v4388_v20 }
 0x7c3   :  { %v4420_v45 = vmul.f32 %v4363_v48, %v7801_v57  ;;  %5733 = vpow2.f32 %v5289_v22  ;;  %v4229_v18 = vadd.f32 %v4228_v11, %v7919_v28  ;;  %v4399_v57 = vand.u32 2147483647, %v4388_v20 }
 0x7c4   :  { %v4204_v63 = vpop.f32.mrf.mxu1  ;;  %v4402_v12 = vor.u32 1.1754944e-38, %v4401_v51 }
 0x7c5   :  { %v4424_v39 = vadd.f32 %v4422_v4, %v4420_v45  ;;  %v4301_v23 = vadd.f32 %v4229_v18, %v9202_v21  ;;  %vm4400_vm3 = vcmp.eq.f32.partialorder %v4399_v57, 8.507059e+37 }
 0x7c7   :  { %v5291_v50 = vmul.f32 -1.442695, %v4301_v23 }
 0x7c8   :  { %v5732_v29 = vpop.eup %5731 }
 0x7c9   :  { %v5734_v55 = vpop.eup %5733  ;;  %v4391_v53 = vmul.f32 %v5732_v29, %v4388_v20  ;;  %5735 = vpow2.f32 %v5291_v50  ;;  %vm4396_vm0 = vweird.f32 %v5732_v29 }
 0x7ca   :  { %v4311_v32 = vadd.f32 1.0, %v5734_v55  ;;  %v4230_v8 = vpop.f32.mrf.mxu3  ;;  %5737 = vtanh.f32 %v4424_v39  ;;  %vm4397_vm2 = vmor %vm4395_vm1, %vm4396_vm0 }
 0x7cb   :  { %v4392_v10 = vsub.f32 1.0, %v4391_v53 }
 0x7cc   :  { %5739 = vrcp.f32 %v4311_v32  ;;  %vm4332_vm6 = vweird.f32 %v4311_v32  ;;  %v4338_v0 = vand.u32 2147483648, %v4311_v32  ;;  %v4336_v58 = vand.u32 2147483647, %v4311_v32 }
 0x7cd   :  { %v4393_v41 = vmul.f32 %v5732_v29, %v4392_v10 }
 0x7ce   :  { %v4339_v16 = vor.u32 1.1754944e-38, %v4338_v0  ;;  %vm4337_vm11 = vcmp.eq.f32.partialorder %v4336_v58, 8.507059e+37 }
 0x7cf   :  { %v5736_v19 = vpop.eup %5735  ;;  %v4394_v28 = vadd.f32 %v5732_v29, %v4393_v41 }
 0x7d0   :  { %v4349_v33 = vadd.f32 1.0, %v5736_v19  ;;  %v5738_v34 = vpop.eup %5737 }
 0x7d1   :  { %v4398_v13 = vsel %vm4397_vm2, %v5732_v29, %v4394_v28 }
 0x7d2   :  { %v5740_v14 = vpop.eup %5739  ;;  %v4403_v15 = vsel %vm4400_vm3, %v4402_v12, %v4398_v13  ;;  %5741 = vrcp.f32 %v4349_v33  ;;  %v4376_v44 = vand.u32 2147483648, %v4349_v33  ;;  %v4374_v42 = vand.u32 2147483647, %v4349_v33 }
 0x7d3   :  { %v4428_v27 = vmul.f32 %v5738_v34, %v4403_v15  ;;  %v4328_v26 = vmul.f32 %v5740_v14, %v4311_v32  ;;  %vm4333_vm4 = vweird.f32 %v5740_v14  ;;  %vm4370_vm7 = vweird.f32 %v4349_v33 }
 0x7d4   :  { %vm7948_vm8 = vmor %vm4332_vm6, %vm4333_vm4  ;;  %v4377_v43 = vor.u32 1.1754944e-38, %v4376_v44  ;;  %vm4375_vm10 = vcmp.eq.f32.partialorder %v4374_v42, 8.507059e+37 }
 0x7d5   :  { %v4430_v47 = vadd.f32 %v4428_v27, %v7811_v54  ;;  %v4432_v7 = vmax.f32 %v7816_v38, %v4428_v27  ;;  %v4329_v59 = vsub.f32 1.0, %v4328_v26  ;;  %v9203_v54 = vld [vmem:[#allocation176_spill] sm:$0xff] }
 0x7d7   :  { %4434 = vst [vmem:[%s7969_s4] sm:$0xff] %v4430_v47  ;;  %v4330_v61 = vmul.f32 %v5740_v14, %v4329_v59 }
 0x7d8   :  { %v5742_v24 = vpop.eup %5741  ;;  %4436 = vst [vmem:[%s7970_s5] sm:$0xff] %v4432_v7 }
 0x7d9   :  { %v4366_v40 = vmul.f32 %v5742_v24, %v4349_v33  ;;  %vm4371_vm5 = vweird.f32 %v5742_v24  ;;  %v4331_v62 = vadd.f32 %v5740_v14, %v4330_v61 }
 0x7da   :  { %vm4372_vm9 = vmor %vm4370_vm7, %vm4371_vm5 }
 0x7db   :  { %v4367_v37 = vsub.f32 1.0, %v4366_v40  ;;  %v4335_v4 = vsel %vm7948_vm8, %v5740_v14, %v4331_v62 }
 0x7dc   :  { %v4254_v56 = vpop.f32.mrf.mxu1  ;;  %v4340_v22 = vsel %vm4337_vm11, %v4339_v16, %v4335_v4 }
 0x7dd   :  { %v4255_v35 = vadd.f32 %v4254_v56, %v7925_v17  ;;  %v4368_v38 = vmul.f32 %v5742_v24, %v4367_v37 }
 0x7df   :  { %v4302_v9 = vadd.f32 %v4255_v35, %v9203_v54  ;;  %v4369_v25 = vadd.f32 %v5742_v24, %v4368_v38 }
 0x7e1   :  { %5743 = vtanh.f32 %v4302_v9  ;;  %v4373_v5 = vsel %vm4372_vm9, %v5742_v24, %v4369_v25 }
 0x7e2   :  { %v4280_v17 = vpop.f32.mrf.mxu3  ;;  %v4378_v30 = vsel %vm4375_vm10, %v4377_v43, %v4373_v5 }
 0x7e3   :  { %v4281_v49 = vadd.f32 %v4280_v17, %v7931_v1  ;;  %v4421_v20 = vmul.f32 %v4378_v30, %v7844_v60 }
 0x7e4   :  { %v4256_v31 = vpop.f32.mrf.mxu1 }
 0x7e5   :  { %v4303_v2 = vadd.f32 %v4281_v49, %v9206_v6 }
 0x7e7   :  { %v5744_v52 = vpop.eup %5743  ;;  %v5293_v48 = vmul.f32 -1.442695, %v4303_v2 }
 0x7e8   :  { %v4423_v11 = vmul.f32 %v5744_v52, %v4340_v22 }
 0x7e9   :  { %5745 = vpow2.f32 %v5293_v48 }
 0x7ea   :  { %v4425_v45 = vadd.f32 %v4423_v11, %v4421_v20  ;;  %v4282_v1 = vpop.f32.mrf.mxu3 }
 0x7ef   :  { %v5746_v18 = vpop.eup %5745 }
 0x7f0   :  { %v4389_v63 = vadd.f32 1.0, %v5746_v18 }
 0x7f2   :  { %5747 = vrcp.f32 %v4389_v63  ;;  %v4416_v50 = vand.u32 2147483648, %v4389_v63  ;;  %v4414_v55 = vand.u32 2147483647, %v4389_v63  ;;  %vm4410_vm13 = vweird.f32 %v4389_v63 }
 0x7f3   :  { %5749 = vtanh.f32 %v4425_v45 }
 0x7f4   :  { %v4417_v60 = vor.u32 1.1754944e-38, %v4416_v50  ;;  %vm4415_vm15 = vcmp.eq.f32.partialorder %v4414_v55, 8.507059e+37 }
 0x7f8   :  { %v5748_v39 = vpop.eup %5747 }
 0x7f9   :  { %v4406_v21 = vmul.f32 %v5748_v39, %v4389_v63  ;;  %vm4411_vm12 = vweird.f32 %v5748_v39  ;;  %v5750_v8 = vpop.eup %5749 }
 0x7fa   :  { %vm4412_vm14 = vmor %vm4410_vm13, %vm4411_vm12 }
 0x7fb   :  { %v4407_v23 = vsub.f32 1.0, %v4406_v21 }
 0x7fd   :  { %v4408_v29 = vmul.f32 %v5748_v39, %v4407_v23 }
 0x7ff   :  { %v4409_v53 = vadd.f32 %v5748_v39, %v4408_v29 }
 0x801   :  { %v4413_v32 = vsel %vm4412_vm14, %v5748_v39, %v4409_v53 }
 0x802   :  { %v4418_v10 = vsel %vm4415_vm15, %v4417_v60, %v4413_v32 }
 0x803   :  { %v4429_v51 = vmul.f32 %v5750_v8, %v4418_v10 }
 0x805   :  { %v4431_v41 = vadd.f32 %v4429_v51, %v7868_v3  ;;  %v4433_v57 = vmax.f32 %v7873_v36, %v4429_v51 }
 0x807   :  { %4435 = vst [vmem:[%s7969_s4 + $0x8] sm:$0xff] %v4431_v41 }
 0x808   :  { %4437 = vst [vmem:[%s7970_s5 + $0x8] sm:$0xff] %v4433_v57 }
 0x809   :  { %4446 = vsyncpa [#allocation5], 1 }
 0x80a   :  { %4447 = vsyncpa [#allocation7], 1 }

</bundles_post_ra>
